<compile_context>
chip_gen: v7x
topology: tpu7x:2x2x1
jax: 0.10.0
libtpu: 0.0.40
codegen_flags: <defaults>
</compile_context>

<pallas_src>
import functools

import jax
import jax.numpy as jnp
from jax.experimental import pallas as pl
from jax.experimental.pallas import tpu as pltpu

LATENT = 32


def _round_up(x, m):
    return ((x + m - 1) // m) * m


def _pick_tiling(M):
    """Choose (tm, Mp): tiles are multiples of 8 rows, <= ~256 rows, and large
    matmuls always get >= 2 tiles so the 'parallel' axis can split across the
    two v7x TensorCores."""
    if M <= 256:
        tm = _round_up(M, 8)
    else:
        ntiles = max(2, -(-M // 256))
        tm = _round_up(-(-M // ntiles), 8)
    return tm, _round_up(M, tm)


# --------------------------------------------------------------------------
# Pallas kernels
# --------------------------------------------------------------------------
def _matmul_bias_act_kernel(x_ref, w_ref, b_ref, o_ref, *, act):
    # bf16 operands -> f32 accumulation on the MXU; f32 epilogue.
    acc = jnp.dot(x_ref[...], w_ref[...], preferred_element_type=jnp.float32)
    acc = acc + b_ref[...]
    if act == "relu":
        acc = jnp.maximum(acc, 0.0)
    elif act == "sigmoid":
        acc = jax.nn.sigmoid(acc)
    o_ref[...] = acc.astype(o_ref.dtype)


def _matvec_bias_act_kernel(x_ref, w_ref, b_ref, o_ref, *, act):
    # Cout == 1 path: VPU multiply + cross-lane reduce (no padded MXU matmul).
    acc = jnp.sum(x_ref[...].astype(jnp.float32) * w_ref[...],
                  axis=1, keepdims=True)
    acc = acc + b_ref[...]
    if act == "relu":
        acc = jnp.maximum(acc, 0.0)
    elif act == "sigmoid":
        acc = jax.nn.sigmoid(acc)
    o_ref[...] = acc.astype(o_ref.dtype)


def _encfc_reparam_kernel(x_ref, wmu_ref, bmu_ref, wlv_ref, blv_ref, eps_ref,
                          mu_ref, lv_ref, z_ref):
    # Fused encoder FC (mu & logvar heads) + reparametrisation epilogue.
    x = x_ref[...]
    mu = jnp.dot(x, wmu_ref[...], preferred_element_type=jnp.float32) + bmu_ref[...]
    lv = jnp.dot(x, wlv_ref[...], preferred_element_type=jnp.float32) + blv_ref[...]
    mu_ref[...] = mu
    lv_ref[...] = lv
    # std = exp(logvar).sqrt() == exp(0.5 * logvar)
    z_ref[...] = eps_ref[...] * jnp.exp(0.5 * lv) + mu


# --------------------------------------------------------------------------
# Pallas-call wrappers
# --------------------------------------------------------------------------
def matmul_bias_act(x, w, b, act="none", out_dtype=jnp.float32):
    """x: (M, K) float; w: (Kp, N) bf16 with K pre-padded; b: (1, N) f32."""
    M, K = x.shape
    Kp, N = w.shape
    tm, Mp = _pick_tiling(M)
    xp = jnp.pad(x.astype(jnp.bfloat16), ((0, Mp - M), (0, Kp - K)))

    out = pl.pallas_call(
        functools.partial(_matmul_bias_act_kernel, act=act),
        out_shape=jax.ShapeDtypeStruct((Mp, N), out_dtype),
        grid_spec=pltpu.PrefetchScalarGridSpec(
            num_scalar_prefetch=0,
            grid=(Mp // tm,),
            in_specs=[
                pl.BlockSpec((tm, Kp), lambda i: (i, 0)),
                pl.BlockSpec((Kp, N), lambda i: (0, 0)),
                pl.BlockSpec((1, N), lambda i: (0, 0)),
            ],
            out_specs=pl.BlockSpec((tm, N), lambda i: (i, 0)),
        ),
        compiler_params=pltpu.CompilerParams(
            dimension_semantics=("parallel",)),
    )(xp, w, b)
    return out[:M] if Mp != M else out


def matvec_bias_act(x, w_row, b, act="none"):
    """x: (M, K); w_row: (1, Kp) f32; b: (1, 1) f32 -> (M, 1) f32."""
    M, K = x.shape
    Kp = w_row.shape[1]
    tm, Mp = _pick_tiling(M)
    xp = jnp.pad(x.astype(jnp.bfloat16), ((0, Mp - M), (0, Kp - K)))

    out = pl.pallas_call(
        functools.partial(_matvec_bias_act_kernel, act=act),
        out_shape=jax.ShapeDtypeStruct((Mp, 1), jnp.float32),
        grid_spec=pltpu.PrefetchScalarGridSpec(
            num_scalar_prefetch=0,
            grid=(Mp // tm,),
            in_specs=[
                pl.BlockSpec((tm, Kp), lambda i: (i, 0)),
                pl.BlockSpec((1, Kp), lambda i: (0, 0)),
                pl.BlockSpec((1, 1), lambda i: (0, 0)),
            ],
            out_specs=pl.BlockSpec((tm, 1), lambda i: (i, 0)),
        ),
        compiler_params=pltpu.CompilerParams(
            dimension_semantics=("parallel",)),
    )(xp, w_row, b)
    return out[:M] if Mp != M else out


def encode_fused(h_flat, w_mu, b_mu, w_lv, b_lv, eps):
    """Fused encoder FC + reparametrisation. Returns (mu, logvar, z)."""
    B, K = h_flat.shape
    Kp = w_mu.shape[0]
    Bp = _round_up(B, 8)
    xp = jnp.pad(h_flat.astype(jnp.bfloat16), ((0, Bp - B), (0, Kp - K)))
    ep = jnp.pad(eps.astype(jnp.float32), ((0, Bp - B), (0, 0)))
    mu, lv, z = pl.pallas_call(
        _encfc_reparam_kernel,
        out_shape=(jax.ShapeDtypeStruct((Bp, LATENT), jnp.float32),) * 3,
    )(xp, w_mu, b_mu, w_lv, b_lv, ep)
    return mu[:B], lv[:B], z[:B]


# --------------------------------------------------------------------------
# Conv / ConvTranspose via im2col (glue) + Pallas matmul (compute)
# --------------------------------------------------------------------------
def _im2col(x, K, stride, padding):
    """x: (B,H,W,C) -> patches (B*OH*OW, K*K*C) in (kh, kw, ci) order."""
    B, H, W, C = x.shape
    xp = jnp.pad(x, ((0, 0), (padding, padding), (padding, padding), (0, 0)))
    OH = (H + 2 * padding - K) // stride + 1
    OW = (W + 2 * padding - K) // stride + 1
    cols = []
    for kh in range(K):
        for kw in range(K):
            cols.append(
                xp[:, kh:kh + stride * OH:stride, kw:kw + stride * OW:stride, :])
    cols = jnp.stack(cols, axis=3).reshape(B * OH * OW, K * K * C)
    return cols, OH, OW


def conv2d(x, wm, b, K, stride, padding, act, out_dtype=jnp.bfloat16):
    B = x.shape[0]
    Cout = wm.shape[1]
    cols, OH, OW = _im2col(x, K, stride, padding)
    out = matmul_bias_act(cols, wm, b, act=act, out_dtype=out_dtype)
    return out.reshape(B, OH, OW, Cout)


def conv_transpose2d(x, wm, b, K, stride, padding, act, out_dtype=jnp.bfloat16):
    # TODO(synk): exploit the structural zeros of the stride-2 dilation by
    # decomposing into per-parity sub-convolutions (skips ~75% of the taps).
    B, H, W, C = x.shape
    if stride > 1:
        Hd, Wd = (H - 1) * stride + 1, (W - 1) * stride + 1
        xd = jnp.zeros((B, Hd, Wd, C), x.dtype).at[:, ::stride, ::stride, :].set(x)
    else:
        xd = x
    # equivalent forward conv (kernel already flipped/reordered at init)
    return conv2d(xd, wm, b, K, 1, K - 1 - padding, act, out_dtype)


# --------------------------------------------------------------------------
# Parameters: raw (PyTorch layout) init + one-time kernel-ready preparation
# --------------------------------------------------------------------------
def init_params(key):
    ks = jax.random.split(key, 7)
    s = 0.05
    return {
        "enc_conv1_w": jax.random.normal(ks[0], (32, 1, 5, 5), jnp.float32) * s,
        "enc_conv1_b": jnp.zeros((32,), jnp.float32),
        "enc_conv2_w": jax.random.normal(ks[1], (64, 32, 5, 5), jnp.float32) * s,
        "enc_conv2_b": jnp.zeros((64,), jnp.float32),
        "enc_fc_w": jax.random.normal(ks[2], (64 * 7 * 7, LATENT * 2), jnp.float32) * s,
        "enc_fc_b": jnp.zeros((LATENT * 2,), jnp.float32),
        "dec_fc_w": jax.random.normal(ks[3], (LATENT, 7 * 7 * 64), jnp.float32) * s,
        "dec_fc_b": jnp.zeros((7 * 7 * 64,), jnp.float32),
        "dec_convt1_w": jax.random.normal(ks[4], (64, 32, 5, 5), jnp.float32) * s,
        "dec_convt1_b": jnp.zeros((32,), jnp.float32),
        "dec_convt2_w": jax.random.normal(ks[5], (32, 32, 5, 5), jnp.float32) * s,
        "dec_convt2_b": jnp.zeros((32,), jnp.float32),
        "dec_convt3_w": jax.random.normal(ks[6], (32, 1, 3, 3), jnp.float32) * s,
        "dec_convt3_b": jnp.zeros((1,), jnp.float32),
    }


def _prep_conv_w(w):
    # (Cout, Cin, K, K) Conv2d -> (Kp, Cout) bf16, rows in (kh, kw, ci) order.
    Cout, Cin, K, _ = w.shape
    wm = jnp.transpose(w, (2, 3, 1, 0)).reshape(K * K * Cin, Cout)
    Kp = _round_up(K * K * Cin, 128)
    return jnp.pad(wm, ((0, Kp - K * K * Cin), (0, 0))).astype(jnp.bfloat16)


def _prep_convt_w(w):
    # (Cin, Cout, K, K) ConvTranspose2d -> equivalent forward-conv matrix:
    # flip spatially, reorder to (kh, kw, ci, co), pad K dim, bf16.
    Cin, Cout, K, _ = w.shape
    wm = jnp.transpose(w[:, :, ::-1, ::-1], (2, 3, 0, 1)).reshape(K * K * Cin, Cout)
    Kp = _round_up(K * K * Cin, 128)
    return jnp.pad(wm, ((0, Kp - K * K * Cin), (0, 0))).astype(jnp.bfloat16)


def _prep_bias(b):
    return b.reshape(1, -1).astype(jnp.float32)


def prepare_params(raw):
    """One-time (outside the jitted forward) weight layout prep."""
    p = {
        "enc_conv1_w": _prep_conv_w(raw["enc_conv1_w"]),
        "enc_conv1_b": _prep_bias(raw["enc_conv1_b"]),
        "enc_conv2_w": _prep_conv_w(raw["enc_conv2_w"]),
        "enc_conv2_b": _prep_bias(raw["enc_conv2_b"]),
        "dec_convt1_w": _prep_convt_w(raw["dec_convt1_w"]),
        "dec_convt1_b": _prep_bias(raw["dec_convt1_b"]),
        "dec_convt2_w": _prep_convt_w(raw["dec_convt2_w"]),
        "dec_convt2_b": _prep_bias(raw["dec_convt2_b"]),
    }

    # Encoder FC: fold the PyTorch (C,H,W) flatten order into a row permutation
    # (so the NHWC conv output flattens with a plain reshape) and split the
    # mu / logvar heads so the reparametrisation fuses into the same kernel.
    w = raw["enc_fc_w"].reshape(64, 7, 7, 2 * LATENT)                 # (c,h,w,out)
    w = jnp.transpose(w, (1, 2, 0, 3)).reshape(64 * 7 * 7, 2 * LATENT)
    Kp = _round_up(64 * 7 * 7, 128)
    w = jnp.pad(w, ((0, Kp - 64 * 7 * 7), (0, 0))).astype(jnp.bfloat16)
    p["enc_fc_wmu"] = w[:, :LATENT]
    p["enc_fc_wlv"] = w[:, LATENT:]
    p["enc_fc_bmu"] = _prep_bias(raw["enc_fc_b"][:LATENT])
    p["enc_fc_blv"] = _prep_bias(raw["enc_fc_b"][LATENT:])

    # Decoder FC: fold the .view(-1, 64, 7, 7) (C,H,W) order into a column
    # permutation so the output is directly the NHWC (7,7,64) flatten.
    w = raw["dec_fc_w"].reshape(LATENT, 64, 7, 7)
    w = jnp.transpose(w, (0, 2, 3, 1)).reshape(LATENT, 7 * 7 * 64)
    Kp = _round_up(LATENT, 128)
    p["dec_fc_w"] = jnp.pad(w, ((0, Kp - LATENT), (0, 0))).astype(jnp.bfloat16)
    b = jnp.transpose(raw["dec_fc_b"].reshape(64, 7, 7), (1, 2, 0))
    p["dec_fc_b"] = b.reshape(1, 7 * 7 * 64).astype(jnp.float32)

    # Final ConvTranspose (Cout=1): store as a (1, Kp) f32 row for the
    # multiply+reduce kernel (flip + (kh,kw,ci) order).
    Cin, Cout, K, _ = raw["dec_convt3_w"].shape
    wrow = jnp.transpose(raw["dec_convt3_w"][:, :, ::-1, ::-1],
                         (2, 3, 0, 1)).reshape(-1)
    Kp = _round_up(K * K * Cin, 128)
    p["dec_convt3_w"] = jnp.pad(wrow, (0, Kp - K * K * Cin)).reshape(1, Kp).astype(jnp.float32)
    p["dec_convt3_b"] = raw["dec_convt3_b"].reshape(1, 1).astype(jnp.float32)
    return p


# --------------------------------------------------------------------------
# VAE forward
# --------------------------------------------------------------------------
@jax.jit
def vae_forward(params, x_nchw, eps):
    B = x_nchw.shape[0]
    x = jnp.transpose(x_nchw, (0, 2, 3, 1))  # NCHW -> NHWC

    # ---- encoder ----
    h = conv2d(x, params["enc_conv1_w"], params["enc_conv1_b"], 5, 2, 2, "relu")  # (B,14,14,32)
    h = conv2d(h, params["enc_conv2_w"], params["enc_conv2_b"], 5, 2, 2, "relu")  # (B,7,7,64)
    h_flat = h.reshape(B, 7 * 7 * 64)        # NHWC flatten; weight rows pre-permuted

    # ---- fused encoder FC + reparametrise (eps == torch.randn_like) ----
    z_mu, z_logvar, z = encode_fused(
        h_flat, params["enc_fc_wmu"], params["enc_fc_bmu"],
        params["enc_fc_wlv"], params["enc_fc_blv"], eps)

    # ---- decoder ----
    h = matmul_bias_act(z, params["dec_fc_w"], params["dec_fc_b"], "relu",
                        out_dtype=jnp.bfloat16)                  # (B,3136) in (h,w,c)
    h = h.reshape(B, 7, 7, 64)
    h = conv_transpose2d(h, params["dec_convt1_w"], params["dec_convt1_b"], 5, 2, 2, "relu")  # (B,13,13,32)
    h = conv_transpose2d(h, params["dec_convt2_w"], params["dec_convt2_b"], 5, 2, 1, "relu")  # (B,27,27,32)
    h = jnp.pad(h, ((0, 0), (1, 0), (1, 0), (0, 0)))             # ZeroPad2d((1,0,1,0)) -> (B,28,28,32)
    # final ConvTranspose (stride 1, Cout=1) == conv(flipped kernel, pad=1) + sigmoid
    cols, OH, OW = _im2col(h, 3, 1, 1)
    x_recon = matvec_bias_act(cols, params["dec_convt3_w"], params["dec_convt3_b"],
                              act="sigmoid").reshape(B, OH, OW, 1)

    x_recon = jnp.transpose(x_recon, (0, 3, 1, 2))               # NHWC -> NCHW (B,1,28,28)
    return x_recon, z_mu, z_logvar, z


if __name__ == "__main__":
    key = jax.random.PRNGKey(0)
    k_params, k_x, k_eps = jax.random.split(key, 3)

    # Spatial size 28 is fixed by the architecture (encoder flattens 64*7*7).
    B = 2
    x = jax.random.normal(k_x, (B, 1, 28, 28), jnp.float32)
    eps = jax.random.normal(k_eps, (B, LATENT), jnp.float32)

    raw_params = init_params(k_params)
    params = prepare_params(raw_params)     # one-time weight layout prep
    x_recon, z_mu, z_logvar, z = vae_forward(params, x, eps)
    jax.block_until_ready((x_recon, z_mu, z_logvar, z))

    assert x_recon.shape == (B, 1, 28, 28)
    assert z_mu.shape == (B, LATENT)
    assert z_logvar.shape == (B, LATENT)
    assert z.shape == (B, LATENT)
    assert bool(jnp.all(jnp.isfinite(x_recon)))
    assert bool(jnp.all((x_recon >= 0.0) & (x_recon <= 1.0)))  # sigmoid output

    print("KERNEL_OK")
</pallas_src>

<mosaic_0001>
module attributes {stable_mosaic.version = 11 : i64} {
  func.func @_matmul_bias_act_kernel(%arg0: i32, %arg1: memref<200x128xbf16, #tpu.memory_space<vmem>>, %arg2: memref<128x32xbf16, #tpu.memory_space<vmem>>, %arg3: memref<1x32xf32, #tpu.memory_space<vmem>>, %arg4: memref<200x32xbf16, #tpu.memory_space<vmem>>) attributes {dimension_semantics = [#tpu.dimension_semantics<parallel>], iteration_bounds = array<i64: 2>, scalar_prefetch = 0 : i64, scratch_operands = 0 : i64, tpu.core_type = #tpu.core_type<tc>, window_params = [{transform_indices = @transform_0, window_bounds = array<i64: 200, 128>}, {pipeline_mode = #tpu.pipeline_mode<synchronous>, transform_indices = @transform_1, window_bounds = array<i64: 128, 32>}, {pipeline_mode = #tpu.pipeline_mode<synchronous>, transform_indices = @transform_2, window_bounds = array<i64: 1, 32>}, {transform_indices = @transform_3, window_bounds = array<i64: 200, 32>}]} {
    %c0 = arith.constant 0 : index
    %c0_0 = arith.constant 0 : index
    %0 = vector.load %arg1[%c0, %c0_0] : memref<200x128xbf16, #tpu.memory_space<vmem>>, vector<200x128xbf16>
    %c0_1 = arith.constant 0 : index
    %c0_2 = arith.constant 0 : index
    %1 = vector.load %arg2[%c0_1, %c0_2] : memref<128x32xbf16, #tpu.memory_space<vmem>>, vector<128x32xbf16>
    %cst = arith.constant dense<0.000000e+00> : vector<200x32xf32>
    %2 = tpu.matmul %0, %1, %cst {dimension_numbers = #tpu.dot_dimension_numbers<[1], [0], [0], [1], [0, 0, 1, 1], [], []>} : vector<200x128xbf16>, vector<128x32xbf16>, vector<200x32xf32> -> vector<200x32xf32>
    %c0_3 = arith.constant 0 : index
    %c0_4 = arith.constant 0 : index
    %3 = vector.load %arg3[%c0_3, %c0_4] : memref<1x32xf32, #tpu.memory_space<vmem>>, vector<1x32xf32>
    %4 = vector.broadcast %3 : vector<1x32xf32> to vector<200x32xf32>
    %5 = arith.addf %2, %4 : vector<200x32xf32>
    %cst_5 = arith.constant 0.000000e+00 : f32
    %6 = vector.broadcast %cst_5 : f32 to vector<200x32xf32>
    %7 = arith.maximumf %5, %6 : vector<200x32xf32>
    %8 = arith.truncf %7 : vector<200x32xf32> to vector<200x32xbf16>
    %c0_6 = arith.constant 0 : index
    %c0_7 = arith.constant 0 : index
    %9 = vector.load %arg4[%c0_6, %c0_7] : memref<200x32xbf16, #tpu.memory_space<vmem>>, vector<200x32xbf16>
    tpu.vector_store %arg4[%c0_6, %c0_7], %8 {strides = array<i32>} : memref<200x32xbf16, #tpu.memory_space<vmem>>, vector<200x32xbf16>,
    return
  }
  func.func @transform_0(%arg0: i32) -> (i32, i32) {
    %c0_i32 = arith.constant 0 : i32
    %c0_i32_0 = arith.constant 0 : i32
    return %arg0, %c0_i32 : i32, i32
  }
  func.func @transform_1(%arg0: i32) -> (i32, i32) {
    %c0_i32 = arith.constant 0 : i32
    %c0_i32_0 = arith.constant 0 : i32
    %c0_i32_1 = arith.constant 0 : i32
    return %c0_i32, %c0_i32_0 : i32, i32
  }
  func.func @transform_2(%arg0: i32) -> (i32, i32) {
    %c0_i32 = arith.constant 0 : i32
    %c0_i32_0 = arith.constant 0 : i32
    %c0_i32_1 = arith.constant 0 : i32
    return %c0_i32, %c0_i32_0 : i32, i32
  }
  func.func @transform_3(%arg0: i32) -> (i32, i32) {
    %c0_i32 = arith.constant 0 : i32
    %c0_i32_0 = arith.constant 0 : i32
    return %arg0, %c0_i32 : i32, i32
  }
}

module attributes {stable_mosaic.version = 11 : i64} {
  func.func @_matmul_bias_act_kernel(%arg0: i32, %arg1: memref<104x896xbf16, #tpu.memory_space<vmem>>, %arg2: memref<896x64xbf16, #tpu.memory_space<vmem>>, %arg3: memref<1x64xf32, #tpu.memory_space<vmem>>, %arg4: memref<104x64xbf16, #tpu.memory_space<vmem>>) attributes {dimension_semantics = [#tpu.dimension_semantics<parallel>], iteration_bounds = array<i64: 1>, scalar_prefetch = 0 : i64, scratch_operands = 0 : i64, tpu.core_type = #tpu.core_type<tc>, window_params = [{transform_indices = @transform_0, window_bounds = array<i64: 104, 896>}, {pipeline_mode = #tpu.pipeline_mode<synchronous>, transform_indices = @transform_1, window_bounds = array<i64: 896, 64>}, {pipeline_mode = #tpu.pipeline_mode<synchronous>, transform_indices = @transform_2, window_bounds = array<i64: 1, 64>}, {transform_indices = @transform_3, window_bounds = array<i64: 104, 64>}]} {
    %c0 = arith.constant 0 : index
    %c0_0 = arith.constant 0 : index
    %0 = vector.load %arg1[%c0, %c0_0] : memref<104x896xbf16, #tpu.memory_space<vmem>>, vector<104x896xbf16>
    %c0_1 = arith.constant 0 : index
    %c0_2 = arith.constant 0 : index
    %1 = vector.load %arg2[%c0_1, %c0_2] : memref<896x64xbf16, #tpu.memory_space<vmem>>, vector<896x64xbf16>
    %cst = arith.constant dense<0.000000e+00> : vector<104x64xf32>
    %2 = tpu.matmul %0, %1, %cst {dimension_numbers = #tpu.dot_dimension_numbers<[1], [0], [0], [1], [0, 0, 1, 1], [], []>} : vector<104x896xbf16>, vector<896x64xbf16>, vector<104x64xf32> -> vector<104x64xf32>
    %c0_3 = arith.constant 0 : index
    %c0_4 = arith.constant 0 : index
    %3 = vector.load %arg3[%c0_3, %c0_4] : memref<1x64xf32, #tpu.memory_space<vmem>>, vector<1x64xf32>
    %4 = vector.broadcast %3 : vector<1x64xf32> to vector<104x64xf32>
    %5 = arith.addf %2, %4 : vector<104x64xf32>
    %cst_5 = arith.constant 0.000000e+00 : f32
    %6 = vector.broadcast %cst_5 : f32 to vector<104x64xf32>
    %7 = arith.maximumf %5, %6 : vector<104x64xf32>
    %8 = arith.truncf %7 : vector<104x64xf32> to vector<104x64xbf16>
    %c0_6 = arith.constant 0 : index
    %c0_7 = arith.constant 0 : index
    %9 = vector.load %arg4[%c0_6, %c0_7] : memref<104x64xbf16, #tpu.memory_space<vmem>>, vector<104x64xbf16>
    tpu.vector_store %arg4[%c0_6, %c0_7], %8 {strides = array<i32>} : memref<104x64xbf16, #tpu.memory_space<vmem>>, vector<104x64xbf16>,
    return
  }
  func.func @transform_0(%arg0: i32) -> (i32, i32) {
    %c0_i32 = arith.constant 0 : i32
    %c0_i32_0 = arith.constant 0 : i32
    return %arg0, %c0_i32 : i32, i32
  }
  func.func @transform_1(%arg0: i32) -> (i32, i32) {
    %c0_i32 = arith.constant 0 : i32
    %c0_i32_0 = arith.constant 0 : i32
    %c0_i32_1 = arith.constant 0 : i32
    return %c0_i32, %c0_i32_0 : i32, i32
  }
  func.func @transform_2(%arg0: i32) -> (i32, i32) {
    %c0_i32 = arith.constant 0 : i32
    %c0_i32_0 = arith.constant 0 : i32
    %c0_i32_1 = arith.constant 0 : i32
    return %c0_i32, %c0_i32_0 : i32, i32
  }
  func.func @transform_3(%arg0: i32) -> (i32, i32) {
    %c0_i32 = arith.constant 0 : i32
    %c0_i32_0 = arith.constant 0 : i32
    return %arg0, %c0_i32 : i32, i32
  }
}

module attributes {stable_mosaic.version = 11 : i64} {
  func.func @_encfc_reparam_kernel(%arg0: memref<8x3200xbf16, #tpu.memory_space<vmem>>, %arg1: memref<3200x32xbf16, #tpu.memory_space<vmem>>, %arg2: memref<1x32xf32, #tpu.memory_space<vmem>>, %arg3: memref<3200x32xbf16, #tpu.memory_space<vmem>>, %arg4: memref<1x32xf32, #tpu.memory_space<vmem>>, %arg5: memref<8x32xf32, #tpu.memory_space<vmem>>, %arg6: memref<8x32xf32, #tpu.memory_space<vmem>>, %arg7: memref<8x32xf32, #tpu.memory_space<vmem>>, %arg8: memref<8x32xf32, #tpu.memory_space<vmem>>) attributes {dimension_semantics = [], scalar_prefetch = 0 : i64, scratch_operands = 0 : i64, tpu.core_type = #tpu.core_type<tc>} {
    %c0 = arith.constant 0 : index
    %c0_0 = arith.constant 0 : index
    %0 = vector.load %arg0[%c0, %c0_0] : memref<8x3200xbf16, #tpu.memory_space<vmem>>, vector<8x3200xbf16>
    %c0_1 = arith.constant 0 : index
    %c0_2 = arith.constant 0 : index
    %1 = vector.load %arg1[%c0_1, %c0_2] : memref<3200x32xbf16, #tpu.memory_space<vmem>>, vector<3200x32xbf16>
    %cst = arith.constant dense<0.000000e+00> : vector<8x32xf32>
    %2 = tpu.matmul %0, %1, %cst {dimension_numbers = #tpu.dot_dimension_numbers<[1], [0], [0], [1], [0, 0, 1, 1], [], []>} : vector<8x3200xbf16>, vector<3200x32xbf16>, vector<8x32xf32> -> vector<8x32xf32>
    %c0_3 = arith.constant 0 : index
    %c0_4 = arith.constant 0 : index
    %3 = vector.load %arg2[%c0_3, %c0_4] : memref<1x32xf32, #tpu.memory_space<vmem>>, vector<1x32xf32>
    %4 = vector.broadcast %3 : vector<1x32xf32> to vector<8x32xf32>
    %5 = arith.addf %2, %4 : vector<8x32xf32>
    %c0_5 = arith.constant 0 : index
    %c0_6 = arith.constant 0 : index
    %6 = vector.load %arg3[%c0_5, %c0_6] : memref<3200x32xbf16, #tpu.memory_space<vmem>>, vector<3200x32xbf16>
    %cst_7 = arith.constant dense<0.000000e+00> : vector<8x32xf32>
    %7 = tpu.matmul %0, %6, %cst_7 {dimension_numbers = #tpu.dot_dimension_numbers<[1], [0], [0], [1], [0, 0, 1, 1], [], []>} : vector<8x3200xbf16>, vector<3200x32xbf16>, vector<8x32xf32> -> vector<8x32xf32>
    %c0_8 = arith.constant 0 : index
    %c0_9 = arith.constant 0 : index
    %8 = vector.load %arg4[%c0_8, %c0_9] : memref<1x32xf32, #tpu.memory_space<vmem>>, vector<1x32xf32>
    %9 = vector.broadcast %8 : vector<1x32xf32> to vector<8x32xf32>
    %10 = arith.addf %7, %9 : vector<8x32xf32>
    %c0_10 = arith.constant 0 : index
    %c0_11 = arith.constant 0 : index
    %11 = vector.load %arg6[%c0_10, %c0_11] : memref<8x32xf32, #tpu.memory_space<vmem>>, vector<8x32xf32>
    tpu.vector_store %arg6[%c0_10, %c0_11], %5 {strides = array<i32>} : memref<8x32xf32, #tpu.memory_space<vmem>>, vector<8x32xf32>,
    %c0_12 = arith.constant 0 : index
    %c0_13 = arith.constant 0 : index
    %12 = vector.load %arg7[%c0_12, %c0_13] : memref<8x32xf32, #tpu.memory_space<vmem>>, vector<8x32xf32>
    tpu.vector_store %arg7[%c0_12, %c0_13], %10 {strides = array<i32>} : memref<8x32xf32, #tpu.memory_space<vmem>>, vector<8x32xf32>,
    %c0_14 = arith.constant 0 : index
    %c0_15 = arith.constant 0 : index
    %13 = vector.load %arg5[%c0_14, %c0_15] : memref<8x32xf32, #tpu.memory_space<vmem>>, vector<8x32xf32>
    %cst_16 = arith.constant 5.000000e-01 : f32
    %14 = vector.broadcast %cst_16 : f32 to vector<8x32xf32>
    %15 = arith.mulf %14, %10 : vector<8x32xf32>
    %16 = math.exp %15 : vector<8x32xf32>
    %17 = arith.mulf %13, %16 : vector<8x32xf32>
    %18 = arith.addf %17, %5 : vector<8x32xf32>
    %c0_17 = arith.constant 0 : index
    %c0_18 = arith.constant 0 : index
    %19 = vector.load %arg8[%c0_17, %c0_18] : memref<8x32xf32, #tpu.memory_space<vmem>>, vector<8x32xf32>
    tpu.vector_store %arg8[%c0_17, %c0_18], %18 {strides = array<i32>} : memref<8x32xf32, #tpu.memory_space<vmem>>, vector<8x32xf32>,
    return
  }
}

module attributes {stable_mosaic.version = 11 : i64} {
  func.func @_matmul_bias_act_kernel(%arg0: i32, %arg1: memref<8x128xbf16, #tpu.memory_space<vmem>>, %arg2: memref<128x3136xbf16, #tpu.memory_space<vmem>>, %arg3: memref<1x3136xf32, #tpu.memory_space<vmem>>, %arg4: memref<8x3136xbf16, #tpu.memory_space<vmem>>) attributes {dimension_semantics = [#tpu.dimension_semantics<parallel>], iteration_bounds = array<i64: 1>, scalar_prefetch = 0 : i64, scratch_operands = 0 : i64, tpu.core_type = #tpu.core_type<tc>, window_params = [{transform_indices = @transform_0, window_bounds = array<i64: 8, 128>}, {pipeline_mode = #tpu.pipeline_mode<synchronous>, transform_indices = @transform_1, window_bounds = array<i64: 128, 3136>}, {pipeline_mode = #tpu.pipeline_mode<synchronous>, transform_indices = @transform_2, window_bounds = array<i64: 1, 3136>}, {transform_indices = @transform_3, window_bounds = array<i64: 8, 3136>}]} {
    %c0 = arith.constant 0 : index
    %c0_0 = arith.constant 0 : index
    %0 = vector.load %arg1[%c0, %c0_0] : memref<8x128xbf16, #tpu.memory_space<vmem>>, vector<8x128xbf16>
    %c0_1 = arith.constant 0 : index
    %c0_2 = arith.constant 0 : index
    %1 = vector.load %arg2[%c0_1, %c0_2] : memref<128x3136xbf16, #tpu.memory_space<vmem>>, vector<128x3136xbf16>
    %cst = arith.constant dense<0.000000e+00> : vector<8x3136xf32>
    %2 = tpu.matmul %0, %1, %cst {dimension_numbers = #tpu.dot_dimension_numbers<[1], [0], [0], [1], [0, 0, 1, 1], [], []>} : vector<8x128xbf16>, vector<128x3136xbf16>, vector<8x3136xf32> -> vector<8x3136xf32>
    %c0_3 = arith.constant 0 : index
    %c0_4 = arith.constant 0 : index
    %3 = vector.load %arg3[%c0_3, %c0_4] : memref<1x3136xf32, #tpu.memory_space<vmem>>, vector<1x3136xf32>
    %4 = vector.broadcast %3 : vector<1x3136xf32> to vector<8x3136xf32>
    %5 = arith.addf %2, %4 : vector<8x3136xf32>
    %cst_5 = arith.constant 0.000000e+00 : f32
    %6 = vector.broadcast %cst_5 : f32 to vector<8x3136xf32>
    %7 = arith.maximumf %5, %6 : vector<8x3136xf32>
    %8 = arith.truncf %7 : vector<8x3136xf32> to vector<8x3136xbf16>
    %c0_6 = arith.constant 0 : index
    %c0_7 = arith.constant 0 : index
    %9 = vector.load %arg4[%c0_6, %c0_7] : memref<8x3136xbf16, #tpu.memory_space<vmem>>, vector<8x3136xbf16>
    tpu.vector_store %arg4[%c0_6, %c0_7], %8 {strides = array<i32>} : memref<8x3136xbf16, #tpu.memory_space<vmem>>, vector<8x3136xbf16>,
    return
  }
  func.func @transform_0(%arg0: i32) -> (i32, i32) {
    %c0_i32 = arith.constant 0 : i32
    %c0_i32_0 = arith.constant 0 : i32
    return %arg0, %c0_i32 : i32, i32
  }
  func.func @transform_1(%arg0: i32) -> (i32, i32) {
    %c0_i32 = arith.constant 0 : i32
    %c0_i32_0 = arith.constant 0 : i32
    %c0_i32_1 = arith.constant 0 : i32
    return %c0_i32, %c0_i32_0 : i32, i32
  }
  func.func @transform_2(%arg0: i32) -> (i32, i32) {
    %c0_i32 = arith.constant 0 : i32
    %c0_i32_0 = arith.constant 0 : i32
    %c0_i32_1 = arith.constant 0 : i32
    return %c0_i32, %c0_i32_0 : i32, i32
  }
  func.func @transform_3(%arg0: i32) -> (i32, i32) {
    %c0_i32 = arith.constant 0 : i32
    %c0_i32_0 = arith.constant 0 : i32
    return %arg0, %c0_i32 : i32, i32
  }
}

module attributes {stable_mosaic.version = 11 : i64} {
  func.func @_matmul_bias_act_kernel(%arg0: i32, %arg1: memref<176x1664xbf16, #tpu.memory_space<vmem>>, %arg2: memref<1664x32xbf16, #tpu.memory_space<vmem>>, %arg3: memref<1x32xf32, #tpu.memory_space<vmem>>, %arg4: memref<176x32xbf16, #tpu.memory_space<vmem>>) attributes {dimension_semantics = [#tpu.dimension_semantics<parallel>], iteration_bounds = array<i64: 2>, scalar_prefetch = 0 : i64, scratch_operands = 0 : i64, tpu.core_type = #tpu.core_type<tc>, window_params = [{transform_indices = @transform_0, window_bounds = array<i64: 176, 1664>}, {pipeline_mode = #tpu.pipeline_mode<synchronous>, transform_indices = @transform_1, window_bounds = array<i64: 1664, 32>}, {pipeline_mode = #tpu.pipeline_mode<synchronous>, transform_indices = @transform_2, window_bounds = array<i64: 1, 32>}, {transform_indices = @transform_3, window_bounds = array<i64: 176, 32>}]} {
    %c0 = arith.constant 0 : index
    %c0_0 = arith.constant 0 : index
    %0 = vector.load %arg1[%c0, %c0_0] : memref<176x1664xbf16, #tpu.memory_space<vmem>>, vector<176x1664xbf16>
    %c0_1 = arith.constant 0 : index
    %c0_2 = arith.constant 0 : index
    %1 = vector.load %arg2[%c0_1, %c0_2] : memref<1664x32xbf16, #tpu.memory_space<vmem>>, vector<1664x32xbf16>
    %cst = arith.constant dense<0.000000e+00> : vector<176x32xf32>
    %2 = tpu.matmul %0, %1, %cst {dimension_numbers = #tpu.dot_dimension_numbers<[1], [0], [0], [1], [0, 0, 1, 1], [], []>} : vector<176x1664xbf16>, vector<1664x32xbf16>, vector<176x32xf32> -> vector<176x32xf32>
    %c0_3 = arith.constant 0 : index
    %c0_4 = arith.constant 0 : index
    %3 = vector.load %arg3[%c0_3, %c0_4] : memref<1x32xf32, #tpu.memory_space<vmem>>, vector<1x32xf32>
    %4 = vector.broadcast %3 : vector<1x32xf32> to vector<176x32xf32>
    %5 = arith.addf %2, %4 : vector<176x32xf32>
    %cst_5 = arith.constant 0.000000e+00 : f32
    %6 = vector.broadcast %cst_5 : f32 to vector<176x32xf32>
    %7 = arith.maximumf %5, %6 : vector<176x32xf32>
    %8 = arith.truncf %7 : vector<176x32xf32> to vector<176x32xbf16>
    %c0_6 = arith.constant 0 : index
    %c0_7 = arith.constant 0 : index
    %9 = vector.load %arg4[%c0_6, %c0_7] : memref<176x32xbf16, #tpu.memory_space<vmem>>, vector<176x32xbf16>
    tpu.vector_store %arg4[%c0_6, %c0_7], %8 {strides = array<i32>} : memref<176x32xbf16, #tpu.memory_space<vmem>>, vector<176x32xbf16>,
    return
  }
  func.func @transform_0(%arg0: i32) -> (i32, i32) {
    %c0_i32 = arith.constant 0 : i32
    %c0_i32_0 = arith.constant 0 : i32
    return %arg0, %c0_i32 : i32, i32
  }
  func.func @transform_1(%arg0: i32) -> (i32, i32) {
    %c0_i32 = arith.constant 0 : i32
    %c0_i32_0 = arith.constant 0 : i32
    %c0_i32_1 = arith.constant 0 : i32
    return %c0_i32, %c0_i32_0 : i32, i32
  }
  func.func @transform_2(%arg0: i32) -> (i32, i32) {
    %c0_i32 = arith.constant 0 : i32
    %c0_i32_0 = arith.constant 0 : i32
    %c0_i32_1 = arith.constant 0 : i32
    return %c0_i32, %c0_i32_0 : i32, i32
  }
  func.func @transform_3(%arg0: i32) -> (i32, i32) {
    %c0_i32 = arith.constant 0 : i32
    %c0_i32_0 = arith.constant 0 : i32
    return %arg0, %c0_i32 : i32, i32
  }
}

module attributes {stable_mosaic.version = 11 : i64} {
  func.func @_matmul_bias_act_kernel(%arg0: i32, %arg1: memref<248x896xbf16, #tpu.memory_space<vmem>>, %arg2: memref<896x32xbf16, #tpu.memory_space<vmem>>, %arg3: memref<1x32xf32, #tpu.memory_space<vmem>>, %arg4: memref<248x32xbf16, #tpu.memory_space<vmem>>) attributes {dimension_semantics = [#tpu.dimension_semantics<parallel>], iteration_bounds = array<i64: 6>, scalar_prefetch = 0 : i64, scratch_operands = 0 : i64, tpu.core_type = #tpu.core_type<tc>, window_params = [{transform_indices = @transform_0, window_bounds = array<i64: 248, 896>}, {pipeline_mode = #tpu.pipeline_mode<synchronous>, transform_indices = @transform_1, window_bounds = array<i64: 896, 32>}, {pipeline_mode = #tpu.pipeline_mode<synchronous>, transform_indices = @transform_2, window_bounds = array<i64: 1, 32>}, {transform_indices = @transform_3, window_bounds = array<i64: 248, 32>}]} {
    %c0 = arith.constant 0 : index
    %c0_0 = arith.constant 0 : index
    %0 = vector.load %arg1[%c0, %c0_0] : memref<248x896xbf16, #tpu.memory_space<vmem>>, vector<248x896xbf16>
    %c0_1 = arith.constant 0 : index
    %c0_2 = arith.constant 0 : index
    %1 = vector.load %arg2[%c0_1, %c0_2] : memref<896x32xbf16, #tpu.memory_space<vmem>>, vector<896x32xbf16>
    %cst = arith.constant dense<0.000000e+00> : vector<248x32xf32>
    %2 = tpu.matmul %0, %1, %cst {dimension_numbers = #tpu.dot_dimension_numbers<[1], [0], [0], [1], [0, 0, 1, 1], [], []>} : vector<248x896xbf16>, vector<896x32xbf16>, vector<248x32xf32> -> vector<248x32xf32>
    %c0_3 = arith.constant 0 : index
    %c0_4 = arith.constant 0 : index
    %3 = vector.load %arg3[%c0_3, %c0_4] : memref<1x32xf32, #tpu.memory_space<vmem>>, vector<1x32xf32>
    %4 = vector.broadcast %3 : vector<1x32xf32> to vector<248x32xf32>
    %5 = arith.addf %2, %4 : vector<248x32xf32>
    %cst_5 = arith.constant 0.000000e+00 : f32
    %6 = vector.broadcast %cst_5 : f32 to vector<248x32xf32>
    %7 = arith.maximumf %5, %6 : vector<248x32xf32>
    %8 = arith.truncf %7 : vector<248x32xf32> to vector<248x32xbf16>
    %c0_6 = arith.constant 0 : index
    %c0_7 = arith.constant 0 : index
    %9 = vector.load %arg4[%c0_6, %c0_7] : memref<248x32xbf16, #tpu.memory_space<vmem>>, vector<248x32xbf16>
    tpu.vector_store %arg4[%c0_6, %c0_7], %8 {strides = array<i32>} : memref<248x32xbf16, #tpu.memory_space<vmem>>, vector<248x32xbf16>,
    return
  }
  func.func @transform_0(%arg0: i32) -> (i32, i32) {
    %c0_i32 = arith.constant 0 : i32
    %c0_i32_0 = arith.constant 0 : i32
    return %arg0, %c0_i32 : i32, i32
  }
  func.func @transform_1(%arg0: i32) -> (i32, i32) {
    %c0_i32 = arith.constant 0 : i32
    %c0_i32_0 = arith.constant 0 : i32
    %c0_i32_1 = arith.constant 0 : i32
    return %c0_i32, %c0_i32_0 : i32, i32
  }
  func.func @transform_2(%arg0: i32) -> (i32, i32) {
    %c0_i32 = arith.constant 0 : i32
    %c0_i32_0 = arith.constant 0 : i32
    %c0_i32_1 = arith.constant 0 : i32
    return %c0_i32, %c0_i32_0 : i32, i32
  }
  func.func @transform_3(%arg0: i32) -> (i32, i32) {
    %c0_i32 = arith.constant 0 : i32
    %c0_i32_0 = arith.constant 0 : i32
    return %arg0, %c0_i32 : i32, i32
  }
}

module attributes {stable_mosaic.version = 11 : i64} {
  func.func @_matvec_bias_act_kernel(%arg0: i32, %arg1: memref<224x384xbf16, #tpu.memory_space<vmem>>, %arg2: memref<1x384xf32, #tpu.memory_space<vmem>>, %arg3: memref<1x1xf32, #tpu.memory_space<vmem>>, %arg4: memref<224x1xf32, #tpu.memory_space<vmem>>) attributes {dimension_semantics = [#tpu.dimension_semantics<parallel>], iteration_bounds = array<i64: 7>, scalar_prefetch = 0 : i64, scratch_operands = 0 : i64, tpu.core_type = #tpu.core_type<tc>, window_params = [{transform_indices = @transform_0, window_bounds = array<i64: 224, 384>}, {pipeline_mode = #tpu.pipeline_mode<synchronous>, transform_indices = @transform_1, window_bounds = array<i64: 1, 384>}, {pipeline_mode = #tpu.pipeline_mode<synchronous>, transform_indices = @transform_2, window_bounds = array<i64: 1, 1>}, {transform_indices = @transform_3, window_bounds = array<i64: 224, 1>}]} {
    %c0 = arith.constant 0 : index
    %c0_0 = arith.constant 0 : index
    %0 = vector.load %arg1[%c0, %c0_0] : memref<224x384xbf16, #tpu.memory_space<vmem>>, vector<224x384xbf16>
    %1 = arith.extf %0 : vector<224x384xbf16> to vector<224x384xf32>
    %c0_1 = arith.constant 0 : index
    %c0_2 = arith.constant 0 : index
    %2 = vector.load %arg2[%c0_1, %c0_2] : memref<1x384xf32, #tpu.memory_space<vmem>>, vector<1x384xf32>
    %3 = vector.broadcast %2 : vector<1x384xf32> to vector<224x384xf32>
    %4 = arith.mulf %1, %3 : vector<224x384xf32>
    %cst = arith.constant dense<0.000000e+00> : vector<224xf32>
    %5 = vector.multi_reduction <add>, %4, %cst [1] : vector<224x384xf32> to vector<224xf32>
    %6 = vector.shape_cast %5 : vector<224xf32> to vector<224x1xf32>
    %c0_3 = arith.constant 0 : index
    %c0_4 = arith.constant 0 : index
    %7 = vector.load %arg3[%c0_3, %c0_4] : memref<1x1xf32, #tpu.memory_space<vmem>>, vector<1x1xf32>
    %8 = vector.broadcast %7 : vector<1x1xf32> to vector<224x1xf32>
    %9 = arith.addf %6, %8 : vector<224x1xf32>
    %10 = arith.negf %9 : vector<224x1xf32>
    %11 = math.exp %10 : vector<224x1xf32>
    %cst_5 = arith.constant 1.000000e+00 : f32
    %12 = vector.broadcast %cst_5 : f32 to vector<224x1xf32>
    %13 = arith.addf %12, %11 : vector<224x1xf32>
    %14 = arith.divf %12, %13 : vector<224x1xf32>
    %c0_6 = arith.constant 0 : index
    %c0_7 = arith.constant 0 : index
    %15 = vector.load %arg4[%c0_6, %c0_7] : memref<224x1xf32, #tpu.memory_space<vmem>>, vector<224x1xf32>
    tpu.vector_store %arg4[%c0_6, %c0_7], %14 {strides = array<i32>} : memref<224x1xf32, #tpu.memory_space<vmem>>, vector<224x1xf32>,
    return
  }
  func.func @transform_0(%arg0: i32) -> (i32, i32) {
    %c0_i32 = arith.constant 0 : i32
    %c0_i32_0 = arith.constant 0 : i32
    return %arg0, %c0_i32 : i32, i32
  }
  func.func @transform_1(%arg0: i32) -> (i32, i32) {
    %c0_i32 = arith.constant 0 : i32
    %c0_i32_0 = arith.constant 0 : i32
    %c0_i32_1 = arith.constant 0 : i32
    return %c0_i32, %c0_i32_0 : i32, i32
  }
  func.func @transform_2(%arg0: i32) -> (i32, i32) {
    %c0_i32 = arith.constant 0 : i32
    %c0_i32_0 = arith.constant 0 : i32
    %c0_i32_1 = arith.constant 0 : i32
    return %c0_i32, %c0_i32_0 : i32, i32
  }
  func.func @transform_3(%arg0: i32) -> (i32, i32) {
    %c0_i32 = arith.constant 0 : i32
    %c0_i32_0 = arith.constant 0 : i32
    return %arg0, %c0_i32 : i32, i32
  }
}

</mosaic_0001>

<bundles_post_ra>
// kernel: vae_forward.7
= control target key start
LH: loop header
LB: loop body
LE: loop exit
PB: predicated region body
PF: predicated region fallthrough
CT: control target
= control target key end

     0   :  { %8 = vsyncpa [#allocation3], 0  ;;  %s1009_s12 = smov 0   ;;  %s1235_s0 = inlined_call_operand.vmem [shape: bf16[400,128], index: 0, kind: input, shape index: {}]   ;;  %s1236_s1 = inlined_call_operand.vmem [shape: bf16[128,32], index: 1, kind: input, shape index: {}]   ;;  %s1237_s2 = inlined_call_operand.hbm [shape: f32[1,32], index: 2, kind: input, shape index: {}]   ;;  %s1238_s3 = inlined_call_operand.vmem [shape: bf16[400,32], index: 3, kind: output, shape index: {}]  }
   0x1 LB: > { %s716_s13 = sadd.s32 4294967295, %s984_s12   ;;  %p718_p0 = scmp.ge.s32.totalorder %s984_s12, 1  ;;  %s984_s12 = sphi %s1009_s12, %s14_s12  }
   0x2   : > { %p113_p1 = scmp.lt.s32.totalorder %s984_s12, 3  ;;  %p1023_p3 = scmp.eq.s32.totalorder %s716_s13, 0 }
   0x3   : > { %s986_s16 = smov [#allocation2]   ;;  %s946_s21 = scalar_lea.hbm %s1237_s2, 16 }
   0x4   : > { %p1017_p2 = pnand %p718_p0, %p113_p1  ;;  %s129_s17 = sshll.u32 %s986_s16, 4  ;;  %s130_s17 = int_to_ptr.vmem [resolvable:$true] %s129_s17 }
   0x5   : > { %s1243_s15 = scalar_select %p1023_p3, 1, 0 }
   0x6   : > { %s1242_s14 = scalar_select %p1017_p2, 1, 0 }
   0x7   : > { %p908_p4 = pneg %p1017_p2  ;;  %p947_p6 = scmp.ne.s32.totalorder %s1237_s2, %s946_s21 }
   0x8   : > { %p953_p10 = scmp.lt.u32.totalorder %s946_s21, %s1237_s2 }
   0x9   : > { %p1031_p5 = pnand %p1023_p3, %p908_p4 }
   0xb   : > { %p948_p7 = pneg %p1031_p5 }
   0xd   : > { %p949_p8 = pnand %p948_p7, %p947_p6 }
   0xf   : > { %p950_p9 = pneg %p949_p8 }
  0x11   : > { %p955_p11 = pnand %p953_p10, %p950_p9 }
  0x13   : > { %958 = shalt.err (!%p955_p11)
}
  0x14   : > { %s959_s26 = scalar_lea.vmem %s130_s17, 16  ;;  %s966_s27 = scalar_lea.vmem %s130_s17, 32 }
  0x15   : > { %p960_p12 = scmp.ne.s32.totalorder %s130_s17, %s959_s26  ;;  %p967_p1 = scmp.lt.s32.totalorder %s130_s17, %s130_s17 }
  0x16   : > { %p968_p4 = scmp.lt.s32.totalorder %s966_s27, %s959_s26 }
  0x17   : > { %p962_p13 = pnand %p960_p12, %p948_p7 }
  0x18   : > { %p969_p3 = por %p968_p4, %p967_p1 }
  0x19   : > { %p963_p0 = pneg %p962_p13 }
  0x1b   : > { %p970_p2 = pnand %p969_p3, %p963_p0 }
  0x1d   : > { %973 = shalt.err (!%p970_p2)
}
  0x1e   : > { %911 = dma.hbm_to_vmem [thread:$0]  (!%p1031_p5), %s1237_s2, 16, %s130_s17, [#allocation3]  }
  0x1f   : > { %p1245_p6 = scmp.ne.s32.totalorder %s1242_s14, 0 }
  0x20   : > { %p1246_p8 = scmp.ne.s32.totalorder (!%p1245_p6), %s1243_s15, 0 }
  0x21   : > { %151 = sbr.rel (%p1245_p6) target bundleno = 344 (0x158), region = 32 }
  0x28   : > { %979 = dma.done.wait (%p1246_p8), [#allocation3], 16  }
  0x29   : > { %981 = vsyncadd (%p1246_p8), [#allocation3], 4294967280  ;;  %s175_s30 = smul.u32 25, %s716_s13  ;;  %v987_v0 = vmov 0.0   ;;  %vm988_vm0 = vmmov 0   ;;  %v925_v1 = vld [vmem:[%s1236_s1] sm:$0xff]  }
  0x2a   : > { %820 = vmatprep.subr.bf16.mxu0 %v987_v0  ;;  %888 = vmatprep.subr.bf16.mxu1 %v987_v0  ;;  %v926_v2 = vld [vmem:[%s1236_s1 + $0x8] sm:$0xff]   ;;  %v927_v3 = vld [vmem:[%s1236_s1 + $0x10] sm:$0xff]   ;;  %v928_v4 = vld [vmem:[%s1236_s1 + $0x18] sm:$0xff]   ;;  %vm622_vm1 = vcmask 257024  }
  0x2b   : > { %836 = vmatprep.mubr.msk.bf16.mxu0 %vm988_vm0, %v987_v0  ;;  %864 = vmatprep.mubr.msk.bf16.mxu1 %vm988_vm0, %v987_v0  ;;  %p176_p2 = scmp.lt.s32.totalorder %s175_s30, 49  ;;  %v929_v5 = vld [vmem:[%s1236_s1 + $0x20] sm:$0xff]   ;;  %v930_v6 = vld [vmem:[%s1236_s1 + $0x28] sm:$0xff]   ;;  %v931_v7 = vld [vmem:[%s1236_s1 + $0x30] sm:$0xff]  }
  0x2c   : > { %821 = vmatpush3.bf16.msra.mxu0 %v925_v1  ;;  %896 = vmatpush3.bf16.msra.mxu1 %v925_v1  ;;  %v932_v8 = vld [vmem:[%s1236_s1 + $0x38] sm:$0xff]   ;;  %v1148_v22 = vld [vmem:[#allocation2] ss:$0 sm:$0xff] }
  0x2d   : > { %s1248_s30 = smov (!%p176_p2, %s175_s30), 49  ;;  %822 = vmatprep.subr.bf16.mxu0 %v987_v0  ;;  %889 = vmatprep.subr.bf16.mxu1 %v987_v0 }
  0x2e   : > { %s723_s8 = sshll.u32 %s1248_s30, 2 }
  0x2f   : > { %s1086_s14 = scalar_lea.vmem %s1235_s0, %s723_s8  ;;  %s1159_s27 = scalar_lea.vmem %s1238_s3, %s723_s8 }
  0x30   : > { %823 = vmatpush3.bf16.msra.mxu0 %v926_v2  ;;  %897 = vmatpush3.bf16.msra.mxu1 %v926_v2  ;;  %v933_v9 = vld [vmem:[%s1086_s14] sm:$0xff]   ;;  %v934_v10 = vld [vmem:[%s1086_s14 + $0x38] sm:$0xff]   ;;  %v935_v11 = vld [vmem:[%s1086_s14 + $0x8] sm:$0xff]  }
  0x31   : > { %824 = vmatprep.subr.bf16.mxu0 %v987_v0  ;;  %890 = vmatprep.subr.bf16.mxu1 %v987_v0  ;;  %v936_v12 = vld [vmem:[%s1086_s14 + $0x40] sm:$0xff]   ;;  %v937_v13 = vld [vmem:[%s1086_s14 + $0x10] sm:$0xff]   ;;  %v938_v14 = vld [vmem:[%s1086_s14 + $0x48] sm:$0xff]  }
  0x32   : > { %v939_v15 = vld [vmem:[%s1086_s14 + $0x18] sm:$0xff]   ;;  %v940_v16 = vld [vmem:[%s1086_s14 + $0x50] sm:$0xff]   ;;  %v941_v17 = vld [vmem:[%s1086_s14 + $0x20] sm:$0xff]  }
  0x33   : > { %v942_v18 = vld [vmem:[%s1086_s14 + $0x58] sm:$0xff]   ;;  %v943_v19 = vld [vmem:[%s1086_s14 + $0x28] sm:$0xff]   ;;  %v944_v20 = vld [vmem:[%s1086_s14 + $0x60] ss:$0 sps:$4 sm:$0xff]  }
  0x34   : > { %825 = vmatpush3.bf16.msra.mxu0 %v927_v3  ;;  %898 = vmatpush3.bf16.msra.mxu1 %v927_v3  ;;  %v945_v21 = vld [vmem:[%s1086_s14 + $0x30] sm:$0xff]  }
  0x35   : > { %826 = vmatprep.subr.bf16.mxu0 %v987_v0  ;;  %891 = vmatprep.subr.bf16.mxu1 %v987_v0 }
  0x38   : > { %827 = vmatpush3.bf16.msra.mxu0 %v928_v4  ;;  %899 = vmatpush3.bf16.msra.mxu1 %v928_v4 }
  0x39   : > { %828 = vmatprep.subr.bf16.mxu0 %v987_v0  ;;  %892 = vmatprep.subr.bf16.mxu1 %v987_v0 }
  0x3c   : > { %829 = vmatpush3.bf16.msra.mxu0 %v929_v5  ;;  %900 = vmatpush3.bf16.msra.mxu1 %v929_v5 }
  0x3d   : > { %830 = vmatprep.subr.bf16.mxu0 %v987_v0  ;;  %893 = vmatprep.subr.bf16.mxu1 %v987_v0 }
  0x40   : > { %831 = vmatpush3.bf16.msra.mxu0 %v930_v6  ;;  %901 = vmatpush3.bf16.msra.mxu1 %v930_v6 }
  0x41   : > { %832 = vmatprep.subr.bf16.mxu0 %v987_v0  ;;  %894 = vmatprep.subr.bf16.mxu1 %v987_v0 }
  0x44   : > { %833 = vmatpush3.bf16.msra.mxu0 %v931_v7  ;;  %902 = vmatpush3.bf16.msra.mxu1 %v931_v7 }
  0x45   : > { %834 = vmatprep.subr.bf16.mxu0 %v987_v0  ;;  %895 = vmatprep.subr.bf16.mxu1 %v987_v0 }
  0x48   : > { %835 = vmatpush3.bf16.msra.mxu0 %v932_v8  ;;  %903 = vmatpush3.bf16.msra.mxu1 %v932_v8 }
  0x4b   : > { %837 = vmatmul.mubr.bf16.vlgmr.msra.gmra.mrb[0].mxu0 %v933_v9  ;;  %865 = vmatmul.mubr.bf16.vlgmr.msra.gmra.mrb[0].mxu1 %v934_v10 }
  0x4c   : > { %840 = vmatprep.mubr.msk.bf16.mxu0 %vm988_vm0, %v987_v0  ;;  %868 = vmatprep.mubr.msk.bf16.mxu1 %vm988_vm0, %v987_v0 }
  0x53   : > { %841 = vmatmul.mubr.bf16.gmra.mrb[4].mxu0 %v935_v11  ;;  %869 = vmatmul.mubr.bf16.gmra.mrb[4].mxu1 %v936_v12 }
  0x54   : > { %844 = vmatprep.mubr.msk.bf16.mxu0 %vm988_vm0, %v987_v0  ;;  %872 = vmatprep.mubr.msk.bf16.mxu1 %vm988_vm0, %v987_v0 }
  0x5b   : > { %845 = vmatmul.mubr.bf16.gmra.mrb[8].mxu0 %v937_v13  ;;  %873 = vmatmul.mubr.bf16.gmra.mrb[8].mxu1 %v938_v14 }
  0x5c   : > { %848 = vmatprep.mubr.msk.bf16.mxu0 %vm988_vm0, %v987_v0  ;;  %876 = vmatprep.mubr.msk.bf16.mxu1 %vm988_vm0, %v987_v0 }
  0x63   : > { %849 = vmatmul.mubr.bf16.gmra.mrb[12].mxu0 %v939_v15  ;;  %877 = vmatmul.mubr.bf16.gmra.mrb[12].mxu1 %v940_v16 }
  0x64   : > { %852 = vmatprep.mubr.msk.bf16.mxu0 %vm988_vm0, %v987_v0  ;;  %880 = vmatprep.mubr.msk.bf16.mxu1 %vm988_vm0, %v987_v0 }
  0x6b   : > { %853 = vmatmul.mubr.bf16.gmra.mrb[16].mxu0 %v941_v17  ;;  %881 = vmatmul.mubr.bf16.gmra.mrb[16].mxu1 %v942_v18 }
  0x6c   : > { %856 = vmatprep.mubr.msk.bf16.mxu0 %vm988_vm0, %v987_v0  ;;  %884 = vmatprep.mubr.msk.bf16.mxu1 %vm988_vm0, %v987_v0 }
  0x73   : > { %857 = vmatmul.mubr.bf16.gmra.mrb[20].mxu0 %v943_v19  ;;  %885 = vmatmul.mubr.bf16.gmra.mrb[20].mxu1 %v944_v20 }
  0x74   : > { %860 = vmatprep.mubr.msk.bf16.mxu0 %vm988_vm0, %v987_v0 }
  0x7b   : > { %861 = vmatmul.mubr.bf16.gmra.mrb[24].mxu0 %v945_v21 }
 0x11e   : > { %v394_v23 = vpop.f32.mrb[0].mxu0  ;;  %v450_v24 = vpop.f32.mrb[0].mxu1 }
 0x11f   : > { %v395_v25 = vadd.f32 %v1148_v22, %v394_v23  ;;  %v838_v26 = vpop.f32.mrb[1].mxu0  ;;  %v451_v27 = vadd.f32 %v1148_v22, %v450_v24  ;;  %v866_v28 = vpop.f32.mrb[1].mxu1 }
 0x120   : > { %v397_v29 = vpop.f32.mrb[2].mxu0  ;;  %v453_v30 = vpop.f32.mrb[2].mxu1 }
 0x121   : > { %v496_v31 = vmax.f32 %v395_v25, 0.0  ;;  %v398_v32 = vadd.f32 %v1148_v22, %v397_v29  ;;  %v839_v33 = vpop.f32.mrb[3].mxu0  ;;  %v510_v34 = vmax.f32 %v451_v27, 0.0  ;;  %v454_v35 = vadd.f32 %v1148_v22, %v453_v30  ;;  %v867_v36 = vpop.f32.mrb[3].mxu1 }
 0x123   : > { %v774_v37 = vpack.c.bf16 %v496_v31, %v496_v31  ;;  %v497_v38 = vmax.f32 %v398_v32, 0.0  ;;  %v788_v39 = vpack.c.bf16 %v510_v34, %v510_v34  ;;  %v511_v40 = vmax.f32 %v454_v35, 0.0 }
 0x125   : > { %623 = vst.msk [vmem:[%s1159_s27] sm:$0xf] %vm622_vm1, %v774_v37  ;;  %v775_v41 = vpack.c.bf16 %v497_v38, %v497_v38  ;;  %637 = vst.msk [vmem:[%s1159_s27 + $0x38] sm:$0xf] %vm622_vm1, %v788_v39  ;;  %v789_v42 = vpack.c.bf16 %v511_v40, %v511_v40 }
 0x126   : > { %v402_v43 = vpop.f32.mrb[4].mxu0  ;;  %v458_v44 = vpop.f32.mrb[4].mxu1 }
 0x127   : > { %624 = vst.msk [vmem:[%s1159_s27 + $0x4] sm:$0xf] %vm622_vm1, %v775_v41  ;;  %v403_v45 = vadd.f32 %v1148_v22, %v402_v43  ;;  %v842_v46 = vpop.f32.mrb[5].mxu0  ;;  %638 = vst.msk [vmem:[%s1159_s27 + $0x3c] sm:$0xf] %vm622_vm1, %v789_v42  ;;  %v459_v47 = vadd.f32 %v1148_v22, %v458_v44  ;;  %v870_v48 = vpop.f32.mrb[5].mxu1 }
 0x128   : > { %v405_v49 = vpop.f32.mrb[6].mxu0  ;;  %v461_v50 = vpop.f32.mrb[6].mxu1 }
 0x129   : > { %v498_v51 = vmax.f32 %v403_v45, 0.0  ;;  %v406_v52 = vadd.f32 %v1148_v22, %v405_v49  ;;  %v843_v53 = vpop.f32.mrb[7].mxu0  ;;  %v512_v54 = vmax.f32 %v459_v47, 0.0  ;;  %v462_v55 = vadd.f32 %v1148_v22, %v461_v50  ;;  %v871_v56 = vpop.f32.mrb[7].mxu1 }
 0x12b   : > { %v776_v57 = vpack.c.bf16 %v498_v51, %v498_v51  ;;  %v499_v58 = vmax.f32 %v406_v52, 0.0  ;;  %v790_v59 = vpack.c.bf16 %v512_v54, %v512_v54  ;;  %v513_v60 = vmax.f32 %v462_v55, 0.0 }
 0x12d   : > { %625 = vst.msk [vmem:[%s1159_s27 + $0x8] sm:$0xf] %vm622_vm1, %v776_v57  ;;  %v777_v61 = vpack.c.bf16 %v499_v58, %v499_v58  ;;  %639 = vst.msk [vmem:[%s1159_s27 + $0x40] sm:$0xf] %vm622_vm1, %v790_v59  ;;  %v791_v62 = vpack.c.bf16 %v513_v60, %v513_v60 }
 0x12e   : > { %v410_v63 = vpop.f32.mrb[8].mxu0  ;;  %v466_v0 = vpop.f32.mrb[8].mxu1 }
 0x12f   : > { %626 = vst.msk [vmem:[%s1159_s27 + $0xc] sm:$0xf] %vm622_vm1, %v777_v61  ;;  %v411_v1 = vadd.f32 %v1148_v22, %v410_v63  ;;  %v846_v2 = vpop.f32.mrb[9].mxu0  ;;  %640 = vst.msk [vmem:[%s1159_s27 + $0x44] sm:$0xf] %vm622_vm1, %v791_v62  ;;  %v467_v3 = vadd.f32 %v1148_v22, %v466_v0  ;;  %v874_v4 = vpop.f32.mrb[9].mxu1 }
 0x130   : > { %v413_v5 = vpop.f32.mrb[10].mxu0  ;;  %v469_v6 = vpop.f32.mrb[10].mxu1 }
 0x131   : > { %v500_v7 = vmax.f32 %v411_v1, 0.0  ;;  %v414_v8 = vadd.f32 %v1148_v22, %v413_v5  ;;  %v847_v9 = vpop.f32.mrb[11].mxu0  ;;  %v514_v10 = vmax.f32 %v467_v3, 0.0  ;;  %v470_v11 = vadd.f32 %v1148_v22, %v469_v6  ;;  %v875_v12 = vpop.f32.mrb[11].mxu1 }
 0x133   : > { %v778_v13 = vpack.c.bf16 %v500_v7, %v500_v7  ;;  %v501_v14 = vmax.f32 %v414_v8, 0.0  ;;  %v792_v15 = vpack.c.bf16 %v514_v10, %v514_v10  ;;  %v515_v16 = vmax.f32 %v470_v11, 0.0 }
 0x135   : > { %627 = vst.msk [vmem:[%s1159_s27 + $0x10] sm:$0xf] %vm622_vm1, %v778_v13  ;;  %v779_v17 = vpack.c.bf16 %v501_v14, %v501_v14  ;;  %641 = vst.msk [vmem:[%s1159_s27 + $0x48] sm:$0xf] %vm622_vm1, %v792_v15  ;;  %v793_v18 = vpack.c.bf16 %v515_v16, %v515_v16 }
 0x136   : > { %v418_v19 = vpop.f32.mrb[12].mxu0  ;;  %v474_v20 = vpop.f32.mrb[12].mxu1 }
 0x137   : > { %628 = vst.msk [vmem:[%s1159_s27 + $0x14] sm:$0xf] %vm622_vm1, %v779_v17  ;;  %v419_v21 = vadd.f32 %v1148_v22, %v418_v19  ;;  %v850_v23 = vpop.f32.mrb[13].mxu0  ;;  %642 = vst.msk [vmem:[%s1159_s27 + $0x4c] sm:$0xf] %vm622_vm1, %v793_v18  ;;  %v475_v24 = vadd.f32 %v1148_v22, %v474_v20  ;;  %v878_v25 = vpop.f32.mrb[13].mxu1 }
 0x138   : > { %v421_v26 = vpop.f32.mrb[14].mxu0  ;;  %v477_v27 = vpop.f32.mrb[14].mxu1 }
 0x139   : > { %v502_v28 = vmax.f32 %v419_v21, 0.0  ;;  %v422_v29 = vadd.f32 %v1148_v22, %v421_v26  ;;  %v851_v30 = vpop.f32.mrb[15].mxu0  ;;  %v516_v31 = vmax.f32 %v475_v24, 0.0  ;;  %v478_v32 = vadd.f32 %v1148_v22, %v477_v27  ;;  %v879_v33 = vpop.f32.mrb[15].mxu1 }
 0x13b   : > { %v780_v34 = vpack.c.bf16 %v502_v28, %v502_v28  ;;  %v503_v35 = vmax.f32 %v422_v29, 0.0  ;;  %v794_v36 = vpack.c.bf16 %v516_v31, %v516_v31  ;;  %v517_v37 = vmax.f32 %v478_v32, 0.0 }
 0x13d   : > { %629 = vst.msk [vmem:[%s1159_s27 + $0x18] sm:$0xf] %vm622_vm1, %v780_v34  ;;  %v781_v38 = vpack.c.bf16 %v503_v35, %v503_v35  ;;  %643 = vst.msk [vmem:[%s1159_s27 + $0x50] sm:$0xf] %vm622_vm1, %v794_v36  ;;  %v795_v39 = vpack.c.bf16 %v517_v37, %v517_v37 }
 0x13e   : > { %v426_v40 = vpop.f32.mrb[16].mxu0  ;;  %v482_v41 = vpop.f32.mrb[16].mxu1 }
 0x13f   : > { %630 = vst.msk [vmem:[%s1159_s27 + $0x1c] sm:$0xf] %vm622_vm1, %v781_v38  ;;  %v427_v42 = vadd.f32 %v1148_v22, %v426_v40  ;;  %v854_v43 = vpop.f32.mrb[17].mxu0  ;;  %644 = vst.msk [vmem:[%s1159_s27 + $0x54] sm:$0xf] %vm622_vm1, %v795_v39  ;;  %v483_v44 = vadd.f32 %v1148_v22, %v482_v41  ;;  %v882_v45 = vpop.f32.mrb[17].mxu1 }
 0x140   : > { %v429_v46 = vpop.f32.mrb[18].mxu0  ;;  %v485_v47 = vpop.f32.mrb[18].mxu1 }
 0x141   : > { %v504_v48 = vmax.f32 %v427_v42, 0.0  ;;  %v430_v49 = vadd.f32 %v1148_v22, %v429_v46  ;;  %v855_v50 = vpop.f32.mrb[19].mxu0  ;;  %v518_v51 = vmax.f32 %v483_v44, 0.0  ;;  %v486_v52 = vadd.f32 %v1148_v22, %v485_v47  ;;  %v883_v53 = vpop.f32.mrb[19].mxu1 }
 0x143   : > { %v782_v54 = vpack.c.bf16 %v504_v48, %v504_v48  ;;  %v505_v55 = vmax.f32 %v430_v49, 0.0  ;;  %v796_v56 = vpack.c.bf16 %v518_v51, %v518_v51  ;;  %v519_v57 = vmax.f32 %v486_v52, 0.0 }
 0x145   : > { %631 = vst.msk [vmem:[%s1159_s27 + $0x20] sm:$0xf] %vm622_vm1, %v782_v54  ;;  %v783_v58 = vpack.c.bf16 %v505_v55, %v505_v55  ;;  %645 = vst.msk [vmem:[%s1159_s27 + $0x58] sm:$0xf] %vm622_vm1, %v796_v56  ;;  %v797_v59 = vpack.c.bf16 %v519_v57, %v519_v57 }
 0x146   : > { %v434_v60 = vpop.f32.mrb[20].mxu0  ;;  %v490_v61 = vpop.f32.mrb[20].mxu1 }
 0x147   : > { %632 = vst.msk [vmem:[%s1159_s27 + $0x24] sm:$0xf] %vm622_vm1, %v783_v58  ;;  %v435_v62 = vadd.f32 %v1148_v22, %v434_v60  ;;  %v858_v63 = vpop.f32.mrb[21].mxu0  ;;  %646 = vst.msk [vmem:[%s1159_s27 + $0x5c] sm:$0xf] %vm622_vm1, %v797_v59  ;;  %v491_v0 = vadd.f32 %v1148_v22, %v490_v61  ;;  %v886_v1 = vpop.f32.mrb[21].mxu1 }
 0x148   : > { %v437_v2 = vpop.f32.mrb[22].mxu0  ;;  %v493_v3 = vpop.f32.mrb[22].mxu1 }
 0x149   : > { %v506_v4 = vmax.f32 %v435_v62, 0.0  ;;  %v438_v5 = vadd.f32 %v1148_v22, %v437_v2  ;;  %v859_v6 = vpop.f32.mrb[23].mxu0  ;;  %v520_v7 = vmax.f32 %v491_v0, 0.0  ;;  %v887_v8 = vpop.f32.mrb[23].mxu1 }
 0x14b   : > { %v784_v9 = vpack.c.bf16 %v506_v4, %v506_v4  ;;  %v507_v10 = vmax.f32 %v438_v5, 0.0  ;;  %v798_v11 = vpack.c.bf16 %v520_v7, %v520_v7 }
 0x14d   : > { %633 = vst.msk [vmem:[%s1159_s27 + $0x28] sm:$0xf] %vm622_vm1, %v784_v9  ;;  %v785_v12 = vpack.c.bf16 %v507_v10, %v507_v10  ;;  %647 = vst.msk [vmem:[%s1159_s27 + $0x60] sm:$0xf] %vm622_vm1, %v798_v11 }
 0x14e   : > { %v442_v13 = vpop.f32.mrb[24].mxu0 }
 0x14f   : > { %634 = vst.msk [vmem:[%s1159_s27 + $0x2c] sm:$0xf] %vm622_vm1, %v785_v12  ;;  %v443_v14 = vadd.f32 %v1148_v22, %v442_v13  ;;  %v862_v15 = vpop.f32.mrb[25].mxu0 }
 0x150   : > { %v445_v16 = vpop.f32.mrb[26].mxu0 }
 0x151   : > { %v508_v17 = vmax.f32 %v443_v14, 0.0  ;;  %v446_v18 = vadd.f32 %v1148_v22, %v445_v16  ;;  %v863_v19 = vpop.f32.mrb[27].mxu0 }
 0x153   : > { %v786_v20 = vpack.c.bf16 %v508_v17, %v508_v17  ;;  %v509_v21 = vmax.f32 %v446_v18, 0.0 }
 0x155   : > { %635 = vst.msk [vmem:[%s1159_s27 + $0x30] sm:$0xf] %vm622_vm1, %v786_v20  ;;  %v787_v23 = vpack.c.bf16 %v509_v21, %v509_v21 }
 0x157   : > { %636 = vst.msk [vmem:[%s1159_s27 + $0x34] sm:$0xf] %vm622_vm1, %v787_v23 }
 0x158 PF: > { %s14_s12 = sadd.s32 1, %s984_s12  }
 0x159   : > { %p11_p3 = scmp.ge.s32.totalorder %s14_s12, 4  }
 0x15b   :  { %13 = sbr.rel (!%p11_p3) target bundleno = 1 (0x1), region = 67 }
 0x162   :  { %670 = vsyncpa [#allocation3], 1 }
 0x163   :  { %672 = vsyncpa [#allocation3 + $0x1], 1 }

// kernel: vae_forward.8
= control target key start
LH: loop header
LB: loop body
LE: loop exit
PB: predicated region body
PF: predicated region fallthrough
CT: control target
= control target key end

     0   :  { %v1689_v38 = vmov 0.0   ;;  %vm1690_vm0 = vmmov 0   ;;  %vm1181_vm1 = vcmask 519168   ;;  %s2148_s1 = inlined_call_operand.vmem [shape: bf16[896,64], index: 1, kind: input, shape index: {}]   ;;  %s2149_s0 = inlined_call_operand.vmem [shape: bf16[104,896], index: 0, kind: input, shape index: {}]   ;;  %s2150_s2 = inlined_call_operand.vmem [shape: f32[1,64], index: 2, kind: input, shape index: {}]   ;;  %s2151_s3 = inlined_call_operand.vmem [shape: bf16[104,64], index: 3, kind: output, shape index: {}]  }
   0x1   :  { %v1566_v0 = vld [vmem:[%s2148_s1 + $0x40] sm:$0xff]   ;;  %v1570_v4 = vld [vmem:[%s2148_s1 + $0x48] sm:$0xff]   ;;  %v1574_v8 = vld [vmem:[%s2148_s1 + $0x50] sm:$0xff]  }
   0x2   :  { %v1567_v1 = vld [vmem:[%s2148_s1] sm:$0xff]   ;;  %1331 = vmatprep.subr.bf16.mxu0 %v1566_v0  ;;  %v1571_v5 = vld [vmem:[%s2148_s1 + $0x8] sm:$0xff]   ;;  %v1575_v9 = vld [vmem:[%s2148_s1 + $0x10] sm:$0xff]  }
   0x3   :  { %v1568_v2 = vld [vmem:[%s2148_s1 + $0xc0] sm:$0xff]   ;;  %1332 = vmatpush3.bf16.msra.mxu0 %v1567_v1  ;;  %v1572_v6 = vld [vmem:[%s2148_s1 + $0xc8] sm:$0xff]   ;;  %v1576_v10 = vld [vmem:[%s2148_s1 + $0xd0] sm:$0xff]  }
   0x4   :  { %v1569_v3 = vld [vmem:[%s2148_s1 + $0x80] sm:$0xff]   ;;  %1389 = vmatprep.subr.bf16.mxu1 %v1568_v2  ;;  %1333 = vmatprep.subr.bf16.mxu0 %v1570_v4  ;;  %v1573_v7 = vld [vmem:[%s2148_s1 + $0x88] sm:$0xff]   ;;  %v1577_v11 = vld [vmem:[%s2148_s1 + $0x90] sm:$0xff]  }
   0x5   :  { %1390 = vmatpush3.bf16.msra.mxu1 %v1569_v3  ;;  %v1578_v12 = vld [vmem:[%s2148_s1 + $0x58] sm:$0xff]   ;;  %v1582_v16 = vld [vmem:[%s2148_s1 + $0x60] sm:$0xff]   ;;  %v1586_v20 = vld [vmem:[%s2148_s1 + $0x68] sm:$0xff]  }
   0x6   :  { %1391 = vmatprep.subr.bf16.mxu1 %v1572_v6  ;;  %v1579_v13 = vld [vmem:[%s2148_s1 + $0x18] sm:$0xff]   ;;  %v1583_v17 = vld [vmem:[%s2148_s1 + $0x20] sm:$0xff]   ;;  %v1587_v21 = vld [vmem:[%s2148_s1 + $0x28] sm:$0xff]  }
   0x7   :  { %1334 = vmatpush3.bf16.msra.mxu0 %v1571_v5  ;;  %v1580_v14 = vld [vmem:[%s2148_s1 + $0xd8] sm:$0xff]   ;;  %v1584_v18 = vld [vmem:[%s2148_s1 + $0xe0] sm:$0xff]   ;;  %v1588_v22 = vld [vmem:[%s2148_s1 + $0xe8] sm:$0xff]  }
   0x8   :  { %1335 = vmatprep.subr.bf16.mxu0 %v1574_v8  ;;  %v1581_v15 = vld [vmem:[%s2148_s1 + $0x98] sm:$0xff]   ;;  %v1585_v19 = vld [vmem:[%s2148_s1 + $0xa0] sm:$0xff]   ;;  %v1589_v23 = vld [vmem:[%s2148_s1 + $0xa8] sm:$0xff]  }
   0x9   :  { %1392 = vmatpush3.bf16.msra.mxu1 %v1573_v7  ;;  %v1590_v24 = vld [vmem:[%s2148_s1 + $0x70] sm:$0xff]   ;;  %v1594_v28 = vld [vmem:[%s2148_s1 + $0x78] sm:$0xff]   ;;  %v1599_v32 = vld [vmem:[%s2149_s0 + $0x4] ss:$28 sps:$4 sm:$0xff]  }
   0xa   :  { %1393 = vmatprep.subr.bf16.mxu1 %v1576_v10  ;;  %v1591_v25 = vld [vmem:[%s2148_s1 + $0x30] sm:$0xff]   ;;  %v1595_v29 = vld [vmem:[%s2148_s1 + $0x38] sm:$0xff]   ;;  %795 = vmatprep.mubr.bf16.mxu0 %v1599_v32  ;;  %v1601_v34 = vld [vmem:[%s2148_s1 + $0x140] sm:$0xff]  }
   0xb   :  { %1336 = vmatpush3.bf16.msra.mxu0 %v1575_v9  ;;  %v1592_v26 = vld [vmem:[%s2148_s1 + $0xf0] sm:$0xff]   ;;  %v1596_v30 = vld [vmem:[%s2148_s1 + $0xf8] sm:$0xff]   ;;  %v1602_v35 = vld [vmem:[%s2149_s0 + $0x8] ss:$28 sps:$4 sm:$0xff]  }
   0xc   :  { %1337 = vmatprep.subr.bf16.mxu0 %v1578_v12  ;;  %v1593_v27 = vld [vmem:[%s2148_s1 + $0xb0] sm:$0xff]   ;;  %v1597_v31 = vld [vmem:[%s2149_s0] ss:$28 sps:$4 sm:$0xff]   ;;  %v1604_v36 = vld [vmem:[%s2149_s0 + $0xc] ss:$28 sps:$4 sm:$0xff]  }
   0xd   :  { %1394 = vmatpush3.bf16.msra.mxu1 %v1577_v11  ;;  %v1600_v33 = vld [vmem:[%s2148_s1 + $0xb8] sm:$0xff]   ;;  %v1605_v37 = vld [vmem:[%s2148_s1 + $0x100] sm:$0xff]   ;;  %883 = vmatprep.mubr.bf16.mxu1 %v1604_v36  ;;  %v1609_v41 = vld [vmem:[%s2148_s1 + $0x148] sm:$0xff]  }
   0xe   :  { %1395 = vmatprep.subr.bf16.mxu1 %v1580_v14  ;;  %v1606_v39 = vld [vmem:[%s2148_s1 + $0x180] sm:$0xff]   ;;  %v1607_v40 = vld [vmem:[%s2149_s0 + $0x3c] ss:$28 sps:$4 sm:$0xff]   ;;  %v1611_v43 = vld [vmem:[%s2148_s1 + $0x108] sm:$0xff]  }
   0xf   :  { %1338 = vmatpush3.bf16.msra.mxu0 %v1579_v13  ;;  %v1610_v42 = vld [vmem:[%s2149_s0 + $0x38] ss:$28 sps:$4 sm:$0xff]   ;;  %v1612_v44 = vld [vmem:[%s2149_s0 + $0x44] ss:$28 sps:$4 sm:$0xff]   ;;  %v1615_v46 = vld [vmem:[%s2148_s1 + $0x188] sm:$0xff]  }
  0x10   :  { %1339 = vmatprep.subr.bf16.mxu0 %v1582_v16  ;;  %v1614_v45 = vld [vmem:[%s2149_s0 + $0x40] ss:$28 sps:$4 sm:$0xff]   ;;  %v1616_v47 = vld [vmem:[%s2148_s1 + $0x150] sm:$0xff]   ;;  %v1627_v56 = vld [vmem:[%s2149_s0 + $0xac] ss:$28 sps:$4 sm:$0xff]  }
  0x11   :  { %1396 = vmatpush3.bf16.msra.mxu1 %v1581_v15  ;;  %v1617_v48 = vld [vmem:[%s2149_s0 + $0x74] ss:$28 sps:$4 sm:$0xff]   ;;  %v1621_v51 = vld [vmem:[%s2149_s0 + $0x7c] ss:$28 sps:$4 sm:$0xff]   ;;  %v1629_v57 = vld [vmem:[%s2149_s0 + $0xa8] ss:$28 sps:$4 sm:$0xff]  }
  0x12   :  { %1397 = vmatprep.subr.bf16.mxu1 %v1584_v18  ;;  %v1619_v49 = vld [vmem:[%s2148_s1 + $0x110] sm:$0xff]   ;;  %v1625_v54 = vld [vmem:[%s2148_s1 + $0x158] sm:$0xff]   ;;  %v1634_v60 = vld [vmem:[%s2148_s1 + $0x160] sm:$0xff]  }
  0x13   :  { %1340 = vmatpush3.bf16.msra.mxu0 %v1583_v17  ;;  %v1620_v50 = vld [vmem:[%s2149_s0 + $0x70] ss:$28 sps:$4 sm:$0xff]   ;;  %v1623_v52 = vld [vmem:[%s2149_s0 + $0x78] ss:$28 sps:$4 sm:$0xff]   ;;  %v1635_v61 = vld [vmem:[%s2148_s1 + $0x120] sm:$0xff]  }
  0x14   :  { %1341 = vmatprep.subr.bf16.mxu0 %v1586_v20  ;;  %v1624_v53 = vld [vmem:[%s2148_s1 + $0x190] sm:$0xff]   ;;  %v1626_v55 = vld [vmem:[%s2148_s1 + $0x118] sm:$0xff]   ;;  %v1636_v62 = vld [vmem:[%s2149_s0 + $0xe4] ss:$28 sps:$4 sm:$0xff]  }
  0x15   :  { %1398 = vmatpush3.bf16.msra.mxu1 %v1585_v19  ;;  %v1630_v58 = vld [vmem:[%s2149_s0 + $0xb4] ss:$28 sps:$4 sm:$0xff]   ;;  %v1633_v59 = vld [vmem:[%s2148_s1 + $0x198] sm:$0xff]   ;;  %v1639_v0 = vld [vmem:[%s2149_s0 + $0xec] ss:$28 sps:$4 sm:$0xff]  }
  0x16   :  { %1399 = vmatprep.subr.bf16.mxu1 %v1588_v22  ;;  %v1632_v63 = vld [vmem:[%s2149_s0 + $0xb0] ss:$28 sps:$4 sm:$0xff]   ;;  %v1642_v1 = vld [vmem:[%s2148_s1 + $0x1a0] sm:$0xff]   ;;  %v1645_v6 = vld [vmem:[%s2149_s0 + $0x11c] ss:$28 sps:$4 sm:$0xff]  }
  0x17   :  { %1342 = vmatpush3.bf16.msra.mxu0 %v1587_v21  ;;  %v1643_v2 = vld [vmem:[%s2148_s1 + $0x168] sm:$0xff]   ;;  %v1638_v4 = vld [vmem:[%s2149_s0 + $0xe0] ss:$28 sps:$4 sm:$0xff]   ;;  %v1652_v9 = vld [vmem:[%s2148_s1 + $0x170] sm:$0xff]  }
  0x18   :  { %1343 = vmatprep.subr.bf16.mxu0 %v1590_v24  ;;  %v1644_v3 = vld [vmem:[%s2148_s1 + $0x128] sm:$0xff]   ;;  %v1648_v7 = vld [vmem:[%s2149_s0 + $0x124] ss:$28 sps:$4 sm:$0xff]   ;;  %v1653_v10 = vld [vmem:[%s2148_s1 + $0x130] sm:$0xff]  }
  0x19   :  { %1400 = vmatpush3.bf16.msra.mxu1 %v1589_v23  ;;  %v1641_v5 = vld [vmem:[%s2149_s0 + $0xe8] ss:$28 sps:$4 sm:$0xff]   ;;  %v1647_v11 = vld [vmem:[%s2149_s0 + $0x118] ss:$28 sps:$4 sm:$0xff]   ;;  %v1651_v19 = vld [vmem:[%s2149_s0 + $0x120] ss:$28 sps:$4 sm:$0xff]  }
  0x1a   :  { %1401 = vmatprep.subr.bf16.mxu1 %v1592_v26  ;;  %v1650_v8 = vld [vmem:[%s2148_s1 + $0x1a8] sm:$0xff]   ;;  %v63_v12 = vld [vmem:[%s2149_s0 + $0x150] sm:$0xff]  ;;  %v1658_v14 = vld [vmem:[%s2148_s1 + $0x178] sm:$0xff]  }
  0x1b   :  { %1344 = vmatpush3.bf16.msra.mxu0 %v1591_v25  ;;  %v1656_v13 = vld [vmem:[%s2148_s1 + $0x1b0] sm:$0xff]   ;;  %v1660_v15 = vld [vmem:[%s2148_s1 + $0x138] sm:$0xff]   ;;  %v1243_v16 = vcombine.high %v63_v12, %v63_v12  ;;  %v1242_v21 = vcombine.low %v63_v12, %v63_v12  ;;  %v1666_v25 = vld [vmem:[%s2149_s0 + $0x4c] ss:$28 sps:$4 sm:$0xff]  }
  0x1c   :  { %1345 = vmatprep.subr.bf16.mxu0 %v1594_v28  ;;  %v64_v17 = vld [vmem:[%s2149_s0 + $0x158] sm:$0xff]  ;;  %v1663_v22 = vld [vmem:[%s2149_s0 + $0x14] ss:$28 sps:$4 sm:$0xff]   ;;  %v1670_v28 = vld [vmem:[%s2149_s0 + $0x84] ss:$28 sps:$4 sm:$0xff]  }
  0x1d   :  { %1402 = vmatpush3.bf16.msra.mxu1 %v1593_v27  ;;  %v1664_v18 = vld [vmem:[%s2148_s1 + $0x1b8] sm:$0xff]   ;;  %v1245_v20 = vcombine.high %v64_v17, %v64_v17  ;;  %v1244_v23 = vcombine.low %v64_v17, %v64_v17  ;;  %v1661_v24 = vld [vmem:[%s2149_s0 + $0x10] ss:$28 sps:$4 sm:$0xff]   ;;  %v1668_v27 = vld [vmem:[%s2149_s0 + $0x48] ss:$28 sps:$4 sm:$0xff]  }
  0x1e   :  { %1403 = vmatprep.subr.bf16.mxu1 %v1596_v30  ;;  %v1665_v26 = vld [vmem:[%s2149_s0 + $0x18] ss:$28 sps:$4 sm:$0xff]   ;;  %v1672_v30 = vld [vmem:[%s2149_s0 + $0x80] ss:$28 sps:$4 sm:$0xff]   ;;  %v1673_v32 = vld [vmem:[%s2149_s0 + $0x88] ss:$28 sps:$4 sm:$0xff]  }
  0x1f   :  { %1346 = vmatpush3.bf16.msra.mxu0 %v1595_v29  ;;  %v1669_v29 = vld [vmem:[%s2149_s0 + $0x50] ss:$28 sps:$4 sm:$0xff]  }
  0x20   :  { %1447 = vmatprep.subr.bf16.mxu0 %v1601_v34  ;;  %v1678_v34 = vld [vmem:[%s2149_s0 + $0xf4] ss:$28 sps:$4 sm:$0xff]  }
  0x21   :  { %1404 = vmatpush3.bf16.msra.mxu1 %v1600_v33  ;;  %v1676_v33 = vld [vmem:[%s2149_s0 + $0xb8] ss:$28 sps:$4 sm:$0xff]   ;;  %v1680_v36 = vld [vmem:[%s2149_s0 + $0xf0] ss:$28 sps:$4 sm:$0xff]  }
  0x22   :  { %796 = vmatmul.mubr.bf16.vlgmr.msra.gmra.mrb[0].mxu0 %v1597_v31  ;;  %1520 = vmatprep.subr.bf16.mxu1 %v1689_v38  ;;  %v1674_v31 = vld [vmem:[%s2149_s0 + $0xbc] ss:$28 sps:$4 sm:$0xff]  }
  0x23   :  { %1448 = vmatpush3.bf16.msra.mxu0 %v1605_v37  ;;  %803 = vmatprep.mubr.bf16.mxu0 %v1607_v40  ;;  %v1682_v37 = vld [vmem:[%s2149_s0 + $0x12c] ss:$28 sps:$4 sm:$0xff]   ;;  %v65_v40 = vld [vmem:[%s2149_s0 + $0x160] sm:$0xff] }
  0x24   :  { %884 = vmatmul.mubr.bf16.vlgmr.msra.gmra.mrb[0].mxu1 %v1602_v35  ;;  %1449 = vmatprep.subr.bf16.mxu0 %v1609_v41  ;;  %v1677_v35 = vld [vmem:[%s2149_s0 + $0xc0] ss:$28 sps:$4 sm:$0xff]   ;;  %v1684_v41 = vld [vmem:[%s2149_s0 + $0x128] ss:$28 sps:$4 sm:$0xff]  }
  0x25   :  { %1521 = vmatpush3.bf16.msra.mxu1 %v1606_v39  ;;  %891 = vmatprep.mubr.bf16.mxu1 %v1612_v44  ;;  %v1681_v39 = vld [vmem:[%s2149_s0 + $0xf8] ss:$28 sps:$4 sm:$0xff]   ;;  %v1246_v44 = vcombine.low %v65_v40, %v65_v40 }
  0x26   :  { %1522 = vmatprep.subr.bf16.mxu1 %v1689_v38 }
  0x27   :  { %1450 = vmatpush3.bf16.msra.mxu0 %v1611_v43  ;;  %v1685_v43 = vld [vmem:[%s2149_s0 + $0x130] ss:$28 sps:$4 sm:$0xff]  }
  0x28   :  { %1451 = vmatprep.subr.bf16.mxu0 %v1616_v47  ;;  %v2042_v47 = vld [vmem:[%s2150_s2] ss:$0 sm:$0xff] }
  0x29   :  { %1523 = vmatpush3.bf16.msra.mxu1 %v1615_v46 }
  0x2a   :  { %804 = vmatmul.mubr.bf16.gmra.mrb[4].mxu0 %v1610_v42  ;;  %1524 = vmatprep.subr.bf16.mxu1 %v1689_v38  ;;  %v1247_v42 = vcombine.high %v65_v40, %v65_v40 }
  0x2b   :  { %811 = vmatprep.mubr.bf16.mxu0 %v1617_v48  ;;  %1452 = vmatpush3.bf16.msra.mxu0 %v1619_v49 }
  0x2c   :  { %892 = vmatmul.mubr.bf16.gmra.mrb[4].mxu1 %v1614_v45  ;;  %1453 = vmatprep.subr.bf16.mxu0 %v1625_v54  ;;  %v1688_v45 = vld [vmem:[%s2149_s0 + $0x168] ss:$0 sps:$4 sm:$0xff]  }
  0x2d   :  { %899 = vmatprep.mubr.bf16.mxu1 %v1621_v51  ;;  %1525 = vmatpush3.bf16.msra.mxu1 %v1624_v53 }
  0x2e   :  { %1526 = vmatprep.subr.bf16.mxu1 %v1689_v38 }
  0x2f   :  { %1454 = vmatpush3.bf16.msra.mxu0 %v1626_v55 }
  0x30   :  { %1455 = vmatprep.subr.bf16.mxu0 %v1634_v60 }
  0x31   :  { %1527 = vmatpush3.bf16.msra.mxu1 %v1633_v59 }
  0x32   :  { %812 = vmatmul.mubr.bf16.gmra.mrb[8].mxu0 %v1620_v50  ;;  %1528 = vmatprep.subr.bf16.mxu1 %v1689_v38 }
  0x33   :  { %819 = vmatprep.mubr.bf16.mxu0 %v1627_v56  ;;  %1456 = vmatpush3.bf16.msra.mxu0 %v1635_v61 }
  0x34   :  { %900 = vmatmul.mubr.bf16.gmra.mrb[8].mxu1 %v1623_v52  ;;  %1457 = vmatprep.subr.bf16.mxu0 %v1643_v2 }
  0x35   :  { %907 = vmatprep.mubr.bf16.mxu1 %v1630_v58  ;;  %1529 = vmatpush3.bf16.msra.mxu1 %v1642_v1 }
  0x36   :  { %1530 = vmatprep.subr.bf16.mxu1 %v1689_v38 }
  0x37   :  { %1458 = vmatpush3.bf16.msra.mxu0 %v1644_v3 }
  0x38   :  { %1459 = vmatprep.subr.bf16.mxu0 %v1652_v9 }
  0x39   :  { %1531 = vmatpush3.bf16.msra.mxu1 %v1650_v8 }
  0x3a   :  { %820 = vmatmul.mubr.bf16.gmra.mrb[12].mxu0 %v1629_v57  ;;  %1532 = vmatprep.subr.bf16.mxu1 %v1689_v38 }
  0x3b   :  { %827 = vmatprep.mubr.bf16.mxu0 %v1636_v62  ;;  %1460 = vmatpush3.bf16.msra.mxu0 %v1653_v10 }
  0x3c   :  { %908 = vmatmul.mubr.bf16.gmra.mrb[12].mxu1 %v1632_v63  ;;  %1461 = vmatprep.subr.bf16.mxu0 %v1658_v14 }
  0x3d   :  { %915 = vmatprep.mubr.bf16.mxu1 %v1639_v0  ;;  %1533 = vmatpush3.bf16.msra.mxu1 %v1656_v13 }
  0x3e   :  { %1534 = vmatprep.subr.bf16.mxu1 %v1689_v38 }
  0x3f   :  { %1462 = vmatpush3.bf16.msra.mxu0 %v1660_v15 }
  0x41   :  { %1535 = vmatpush3.bf16.msra.mxu1 %v1664_v18 }
  0x42   :  { %828 = vmatmul.mubr.bf16.gmra.mrb[16].mxu0 %v1638_v4 }
  0x43   :  { %835 = vmatprep.mubr.bf16.mxu0 %v1645_v6 }
  0x44   :  { %916 = vmatmul.mubr.bf16.gmra.mrb[16].mxu1 %v1641_v5 }
  0x45   :  { %923 = vmatprep.mubr.bf16.mxu1 %v1648_v7 }
  0x4a   :  { %836 = vmatmul.mubr.bf16.gmra.mrb[20].mxu0 %v1647_v11 }
  0x4b   :  { %843 = vmatprep.mubr.bf16.mxu0 %v1243_v16 }
  0x4c   :  { %924 = vmatmul.mubr.bf16.gmra.mrb[20].mxu1 %v1651_v19 }
  0x4d   :  { %931 = vmatprep.mubr.bf16.mxu1 %v1245_v20 }
  0x52   :  { %844 = vmatmul.mubr.bf16.gmra.mrb[24].mxu0 %v1242_v21 }
  0x53   :  { %971 = vmatprep.mubr.bf16.mxu0 %v1663_v22 }
  0x54   :  { %932 = vmatmul.mubr.bf16.gmra.mrb[24].mxu1 %v1244_v23 }
  0x55   :  { %1536 = vmatprep.mubr.msk.bf16.mxu1 %vm1690_vm0, %v1689_v38 }
  0x5a   :  { %972 = vmatmul.mubr.bf16.vlgmr.msra.gmra.mrb[28].mxu0 %v1661_v24 }
  0x5b   :  { %979 = vmatprep.mubr.bf16.mxu0 %v1666_v25 }
  0x5c   :  { %1537 = vmatmul.mubr.bf16.vlgmr.msra.gmra.mrb[28].mxu1 %v1665_v26 }
  0x5d   :  { %1540 = vmatprep.mubr.msk.bf16.mxu1 %vm1690_vm0, %v1689_v38 }
  0x62   :  { %980 = vmatmul.mubr.bf16.gmra.mrb[32].mxu0 %v1668_v27 }
  0x63   :  { %987 = vmatprep.mubr.bf16.mxu0 %v1670_v28 }
  0x64   :  { %1541 = vmatmul.mubr.bf16.gmra.mrb[32].mxu1 %v1669_v29 }
  0x65   :  { %1544 = vmatprep.mubr.msk.bf16.mxu1 %vm1690_vm0, %v1689_v38 }
  0x6a   :  { %988 = vmatmul.mubr.bf16.gmra.mrb[36].mxu0 %v1672_v30 }
  0x6b   :  { %995 = vmatprep.mubr.bf16.mxu0 %v1674_v31 }
  0x6c   :  { %1545 = vmatmul.mubr.bf16.gmra.mrb[36].mxu1 %v1673_v32 }
  0x6d   :  { %1548 = vmatprep.mubr.msk.bf16.mxu1 %vm1690_vm0, %v1689_v38 }
  0x72   :  { %996 = vmatmul.mubr.bf16.gmra.mrb[40].mxu0 %v1676_v33 }
  0x73   :  { %1003 = vmatprep.mubr.bf16.mxu0 %v1678_v34 }
  0x74   :  { %1549 = vmatmul.mubr.bf16.gmra.mrb[40].mxu1 %v1677_v35 }
  0x75   :  { %1552 = vmatprep.mubr.msk.bf16.mxu1 %vm1690_vm0, %v1689_v38 }
  0x7a   :  { %1004 = vmatmul.mubr.bf16.gmra.mrb[44].mxu0 %v1680_v36 }
  0x7b   :  { %1011 = vmatprep.mubr.bf16.mxu0 %v1682_v37 }
  0x7c   :  { %1553 = vmatmul.mubr.bf16.gmra.mrb[44].mxu1 %v1681_v39 }
  0x7d   :  { %1556 = vmatprep.mubr.msk.bf16.mxu1 %vm1690_vm0, %v1689_v38 }
  0x82   :  { %1012 = vmatmul.mubr.bf16.gmra.mrb[48].mxu0 %v1684_v41 }
  0x83   :  { %1019 = vmatprep.mubr.bf16.mxu0 %v1247_v42 }
  0x84   :  { %1557 = vmatmul.mubr.bf16.gmra.mrb[48].mxu1 %v1685_v43 }
  0x85   :  { %1560 = vmatprep.mubr.msk.bf16.mxu1 %vm1690_vm0, %v1689_v38 }
  0x8a   :  { %1020 = vmatmul.mubr.bf16.gmra.mrb[52].mxu0 %v1246_v44 }
  0x8c   :  { %1561 = vmatmul.mubr.bf16.gmra.mrb[52].mxu1 %v1688_v45 }
  0xf5   :  { %v1347_v46 = vpop.f32.mrb[0].mxu0 }
  0xf6   :  { %v1348_v48 = vpop.f32.mrb[1].mxu0 }
  0xf7   :  { %v1349_v49 = vadd.f32 %v1348_v48, %v1347_v46  ;;  %v1350_v50 = vpop.f32.mrb[2].mxu0  ;;  %v1405_v51 = vpop.f32.mrb[0].mxu1 }
  0xf8   :  { %v1351_v52 = vpop.f32.mrb[3].mxu0  ;;  %v1406_v54 = vpop.f32.mrb[1].mxu1 }
  0xf9   :  { %v798_v53 = vadd.f32 %v1349_v49, %v2042_v47  ;;  %v1352_v38 = vadd.f32 %v1351_v52, %v1350_v50  ;;  %v1407_v55 = vadd.f32 %v1406_v54, %v1405_v51  ;;  %v1408_v56 = vpop.f32.mrb[2].mxu1 }
  0xfa   :  { %v1409_v58 = vpop.f32.mrb[3].mxu1 }
  0xfb   :  { %v801_v57 = vadd.f32 %v1352_v38, %v2042_v47  ;;  %v2046_v59 = vadd.f32 %v1407_v55, %v798_v53  ;;  %v1410_v60 = vadd.f32 %v1409_v58, %v1408_v56 }
  0xfd   :  { %v1353_v61 = vpop.f32.mrb[4].mxu0  ;;  %v2048_v62 = vadd.f32 %v1410_v60, %v801_v57 }
  0xfe   :  { %v1354_v63 = vpop.f32.mrb[5].mxu0 }
  0xff   :  { %v1355_v0 = vadd.f32 %v1354_v63, %v1353_v61  ;;  %v1356_v1 = vpop.f32.mrb[6].mxu0  ;;  %v1411_v2 = vpop.f32.mrb[4].mxu1 }
 0x100   :  { %v1357_v3 = vpop.f32.mrb[7].mxu0  ;;  %v1412_v6 = vpop.f32.mrb[5].mxu1 }
 0x101   :  { %v806_v4 = vadd.f32 %v1355_v0, %v2042_v47  ;;  %v1358_v5 = vadd.f32 %v1357_v3, %v1356_v1  ;;  %v1413_v7 = vadd.f32 %v1412_v6, %v1411_v2  ;;  %v1414_v8 = vpop.f32.mrb[6].mxu1 }
 0x102   :  { %v1415_v10 = vpop.f32.mrb[7].mxu1 }
 0x103   :  { %v809_v9 = vadd.f32 %v1358_v5, %v2042_v47  ;;  %v2052_v11 = vadd.f32 %v1413_v7, %v806_v4  ;;  %v1416_v12 = vadd.f32 %v1415_v10, %v1414_v8 }
 0x105   :  { %v1359_v13 = vpop.f32.mrb[8].mxu0  ;;  %v2054_v14 = vadd.f32 %v1416_v12, %v809_v9 }
 0x106   :  { %v1360_v15 = vpop.f32.mrb[9].mxu0 }
 0x107   :  { %v1361_v16 = vadd.f32 %v1360_v15, %v1359_v13  ;;  %v1362_v17 = vpop.f32.mrb[10].mxu0  ;;  %v1417_v18 = vpop.f32.mrb[8].mxu1 }
 0x108   :  { %v1363_v19 = vpop.f32.mrb[11].mxu0  ;;  %v1418_v22 = vpop.f32.mrb[9].mxu1 }
 0x109   :  { %v814_v20 = vadd.f32 %v1361_v16, %v2042_v47  ;;  %v1364_v21 = vadd.f32 %v1363_v19, %v1362_v17  ;;  %v1419_v23 = vadd.f32 %v1418_v22, %v1417_v18  ;;  %v1420_v24 = vpop.f32.mrb[10].mxu1 }
 0x10a   :  { %v1421_v26 = vpop.f32.mrb[11].mxu1 }
 0x10b   :  { %v817_v25 = vadd.f32 %v1364_v21, %v2042_v47  ;;  %v2058_v27 = vadd.f32 %v1419_v23, %v814_v20  ;;  %v1422_v28 = vadd.f32 %v1421_v26, %v1420_v24 }
 0x10d   :  { %v1365_v29 = vpop.f32.mrb[12].mxu0  ;;  %v2060_v30 = vadd.f32 %v1422_v28, %v817_v25 }
 0x10e   :  { %v1366_v31 = vpop.f32.mrb[13].mxu0 }
 0x10f   :  { %v1367_v32 = vadd.f32 %v1366_v31, %v1365_v29  ;;  %v1368_v33 = vpop.f32.mrb[14].mxu0  ;;  %v1423_v34 = vpop.f32.mrb[12].mxu1 }
 0x110   :  { %v1369_v35 = vpop.f32.mrb[15].mxu0  ;;  %v1424_v39 = vpop.f32.mrb[13].mxu1 }
 0x111   :  { %v822_v36 = vadd.f32 %v1367_v32, %v2042_v47  ;;  %v1370_v37 = vadd.f32 %v1369_v35, %v1368_v33  ;;  %v1425_v40 = vadd.f32 %v1424_v39, %v1423_v34  ;;  %v1426_v41 = vpop.f32.mrb[14].mxu1 }
 0x112   :  { %v1427_v43 = vpop.f32.mrb[15].mxu1 }
 0x113   :  { %v825_v42 = vadd.f32 %v1370_v37, %v2042_v47  ;;  %v2064_v44 = vadd.f32 %v1425_v40, %v822_v36  ;;  %v1428_v45 = vadd.f32 %v1427_v43, %v1426_v41 }
 0x115   :  { %v1371_v46 = vpop.f32.mrb[16].mxu0  ;;  %v2066_v48 = vadd.f32 %v1428_v45, %v825_v42 }
 0x116   :  { %v1372_v49 = vpop.f32.mrb[17].mxu0 }
 0x117   :  { %v1373_v50 = vadd.f32 %v1372_v49, %v1371_v46  ;;  %v1374_v51 = vpop.f32.mrb[18].mxu0  ;;  %v1429_v52 = vpop.f32.mrb[16].mxu1 }
 0x118   :  { %v1375_v53 = vpop.f32.mrb[19].mxu0  ;;  %v1430_v55 = vpop.f32.mrb[17].mxu1 }
 0x119   :  { %v830_v38 = vadd.f32 %v1373_v50, %v2042_v47  ;;  %v1376_v54 = vadd.f32 %v1375_v53, %v1374_v51  ;;  %v1431_v56 = vadd.f32 %v1430_v55, %v1429_v52  ;;  %v1432_v57 = vpop.f32.mrb[18].mxu1 }
 0x11a   :  { %v1433_v60 = vpop.f32.mrb[19].mxu1 }
 0x11b   :  { %v833_v58 = vadd.f32 %v1376_v54, %v2042_v47  ;;  %v2070_v61 = vadd.f32 %v1431_v56, %v830_v38  ;;  %v1434_v63 = vadd.f32 %v1433_v60, %v1432_v57 }
 0x11d   :  { %v1377_v0 = vpop.f32.mrb[20].mxu0  ;;  %v2072_v1 = vadd.f32 %v1434_v63, %v833_v58 }
 0x11e   :  { %v1378_v2 = vpop.f32.mrb[21].mxu0 }
 0x11f   :  { %v1379_v3 = vadd.f32 %v1378_v2, %v1377_v0  ;;  %v1380_v4 = vpop.f32.mrb[22].mxu0  ;;  %v1435_v5 = vpop.f32.mrb[20].mxu1 }
 0x120   :  { %v1381_v6 = vpop.f32.mrb[23].mxu0  ;;  %v1436_v9 = vpop.f32.mrb[21].mxu1 }
 0x121   :  { %v838_v7 = vadd.f32 %v1379_v3, %v2042_v47  ;;  %v1382_v8 = vadd.f32 %v1381_v6, %v1380_v4  ;;  %v1437_v10 = vadd.f32 %v1436_v9, %v1435_v5  ;;  %v1438_v12 = vpop.f32.mrb[22].mxu1 }
 0x122   :  { %v1439_v15 = vpop.f32.mrb[23].mxu1 }
 0x123   :  { %v841_v13 = vadd.f32 %v1382_v8, %v2042_v47  ;;  %v2076_v16 = vadd.f32 %v1437_v10, %v838_v7  ;;  %v1440_v17 = vadd.f32 %v1439_v15, %v1438_v12 }
 0x125   :  { %v1383_v18 = vpop.f32.mrb[24].mxu0  ;;  %v2078_v19 = vadd.f32 %v1440_v17, %v841_v13 }
 0x126   :  { %v1384_v20 = vpop.f32.mrb[25].mxu0 }
 0x127   :  { %v1385_v21 = vadd.f32 %v1384_v20, %v1383_v18  ;;  %v1386_v22 = vpop.f32.mrb[26].mxu0  ;;  %v1441_v23 = vpop.f32.mrb[24].mxu1 }
 0x128   :  { %v1387_v24 = vpop.f32.mrb[27].mxu0  ;;  %v1442_v26 = vpop.f32.mrb[25].mxu1 }
 0x129   :  { %v846_v25 = vadd.f32 %v1385_v21, %v2042_v47  ;;  %v1443_v28 = vadd.f32 %v1442_v26, %v1441_v23  ;;  %v1444_v29 = vpop.f32.mrb[26].mxu1 }
 0x12a   :  { %v1445_v31 = vpop.f32.mrb[27].mxu1 }
 0x12b   :  { %v2081_v32 = vadd.f32 %v1443_v28, %v846_v25 }
 0x12d   :  { %v1463_v33 = vpop.f32.mrb[28].mxu0 }
 0x12e   :  { %v1464_v34 = vpop.f32.mrb[29].mxu0 }
 0x12f   :  { %v1465_v35 = vadd.f32 %v1464_v34, %v1463_v33  ;;  %v1466_v36 = vpop.f32.mrb[30].mxu0  ;;  %v1061_v39 = vpop.f32.mrb[28].mxu1 }
 0x130   :  { %v1467_v37 = vpop.f32.mrb[31].mxu0  ;;  %v1538_v42 = vpop.f32.mrb[29].mxu1 }
 0x131   :  { %v1468_v40 = vadd.f32 %v1467_v37, %v1466_v36  ;;  %v974_v41 = vadd.f32 %v1465_v35, %v2046_v59  ;;  %v1064_v43 = vpop.f32.mrb[30].mxu1 }
 0x132   :  { %v1539_v46 = vpop.f32.mrb[31].mxu1 }
 0x133   :  { %v1062_v45 = vadd.f32 %v1061_v39, %v974_v41  ;;  %v977_v47 = vadd.f32 %v1468_v40, %v2048_v62 }
 0x135   :  { %v1115_v49 = vmax.f32 %v1062_v45, 0.0  ;;  %v1065_v50 = vadd.f32 %v1064_v43, %v977_v47  ;;  %v1469_v51 = vpop.f32.mrb[32].mxu0 }
 0x136   :  { %v1470_v52 = vpop.f32.mrb[33].mxu0 }
 0x137   :  { %v1318_v53 = vpack.c.bf16 %v1115_v49, %v1115_v49  ;;  %v1116_v38 = vmax.f32 %v1065_v50, 0.0  ;;  %v1471_v54 = vadd.f32 %v1470_v52, %v1469_v51  ;;  %v1472_v55 = vpop.f32.mrb[34].mxu0  ;;  %v1069_v57 = vpop.f32.mrb[32].mxu1 }
 0x138   :  { %v1473_v56 = vpop.f32.mrb[35].mxu0  ;;  %v1542_v60 = vpop.f32.mrb[33].mxu1 }
 0x139   :  { %1182 = vst.msk [vmem:[%s2151_s3] sm:$0xf] %vm1181_vm1, %v1318_v53  ;;  %v1319_v59 = vpack.c.bf16 %v1116_v38, %v1116_v38  ;;  %v1474_v58 = vadd.f32 %v1473_v56, %v1472_v55  ;;  %v982_v62 = vadd.f32 %v1471_v54, %v2052_v11  ;;  %v1072_v63 = vpop.f32.mrb[34].mxu1 }
 0x13a   :  { %v1543_v3 = vpop.f32.mrb[35].mxu1 }
 0x13b   :  { %1183 = vst.msk [vmem:[%s2151_s3 + $0x4] sm:$0xf] %vm1181_vm1, %v1319_v59  ;;  %v1070_v0 = vadd.f32 %v1069_v57, %v982_v62  ;;  %v985_v2 = vadd.f32 %v1474_v58, %v2054_v14 }
 0x13d   :  { %v1117_v4 = vmax.f32 %v1070_v0, 0.0  ;;  %v1073_v5 = vadd.f32 %v1072_v63, %v985_v2  ;;  %v1475_v6 = vpop.f32.mrb[36].mxu0 }
 0x13e   :  { %v1476_v7 = vpop.f32.mrb[37].mxu0 }
 0x13f   :  { %v1320_v8 = vpack.c.bf16 %v1117_v4, %v1117_v4  ;;  %v1118_v9 = vmax.f32 %v1073_v5, 0.0  ;;  %v1477_v10 = vadd.f32 %v1476_v7, %v1475_v6  ;;  %v1478_v12 = vpop.f32.mrb[38].mxu0  ;;  %v1077_v13 = vpop.f32.mrb[36].mxu1 }
 0x140   :  { %v1479_v11 = vpop.f32.mrb[39].mxu0  ;;  %v1546_v18 = vpop.f32.mrb[37].mxu1 }
 0x141   :  { %1184 = vst.msk [vmem:[%s2151_s3 + $0x8] sm:$0xf] %vm1181_vm1, %v1320_v8  ;;  %v1321_v15 = vpack.c.bf16 %v1118_v9, %v1118_v9  ;;  %v1480_v17 = vadd.f32 %v1479_v11, %v1478_v12  ;;  %v990_v14 = vadd.f32 %v1477_v10, %v2058_v27  ;;  %v1080_v20 = vpop.f32.mrb[38].mxu1 }
 0x142   :  { %v1547_v23 = vpop.f32.mrb[39].mxu1 }
 0x143   :  { %1185 = vst.msk [vmem:[%s2151_s3 + $0xc] sm:$0xf] %vm1181_vm1, %v1321_v15  ;;  %v1078_v21 = vadd.f32 %v1077_v13, %v990_v14  ;;  %v993_v22 = vadd.f32 %v1480_v17, %v2060_v30 }
 0x145   :  { %v1119_v24 = vmax.f32 %v1078_v21, 0.0  ;;  %v1081_v25 = vadd.f32 %v1080_v20, %v993_v22  ;;  %v1481_v26 = vpop.f32.mrb[40].mxu0 }
 0x146   :  { %v1482_v28 = vpop.f32.mrb[41].mxu0 }
 0x147   :  { %v1322_v29 = vpack.c.bf16 %v1119_v24, %v1119_v24  ;;  %v1120_v31 = vmax.f32 %v1081_v25, 0.0  ;;  %v1483_v33 = vadd.f32 %v1482_v28, %v1481_v26  ;;  %v1484_v34 = vpop.f32.mrb[42].mxu0  ;;  %v1085_v35 = vpop.f32.mrb[40].mxu1 }
 0x148   :  { %v1485_v27 = vpop.f32.mrb[43].mxu0  ;;  %v1550_v39 = vpop.f32.mrb[41].mxu1 }
 0x149   :  { %1186 = vst.msk [vmem:[%s2151_s3 + $0x10] sm:$0xf] %vm1181_vm1, %v1322_v29  ;;  %v1323_v36 = vpack.c.bf16 %v1120_v31, %v1120_v31  ;;  %v1486_v37 = vadd.f32 %v1485_v27, %v1484_v34  ;;  %v998_v30 = vadd.f32 %v1483_v33, %v2064_v44  ;;  %v1088_v40 = vpop.f32.mrb[42].mxu1 }
 0x14a   :  { %v1551_v43 = vpop.f32.mrb[43].mxu1 }
 0x14b   :  { %1187 = vst.msk [vmem:[%s2151_s3 + $0x14] sm:$0xf] %vm1181_vm1, %v1323_v36  ;;  %v1086_v41 = vadd.f32 %v1085_v35, %v998_v30  ;;  %v1001_v42 = vadd.f32 %v1486_v37, %v2066_v48 }
 0x14d   :  { %v1121_v45 = vmax.f32 %v1086_v41, 0.0  ;;  %v1089_v47 = vadd.f32 %v1088_v40, %v1001_v42  ;;  %v1487_v46 = vpop.f32.mrb[44].mxu0 }
 0x14e   :  { %v1488_v49 = vpop.f32.mrb[45].mxu0 }
 0x14f   :  { %v1324_v50 = vpack.c.bf16 %v1121_v45, %v1121_v45  ;;  %v1122_v51 = vmax.f32 %v1089_v47, 0.0  ;;  %v1489_v52 = vadd.f32 %v1488_v49, %v1487_v46  ;;  %v1490_v53 = vpop.f32.mrb[46].mxu0  ;;  %v1093_v38 = vpop.f32.mrb[44].mxu1 }
 0x150   :  { %v1491_v44 = vpop.f32.mrb[47].mxu0  ;;  %v1554_v56 = vpop.f32.mrb[45].mxu1 }
 0x151   :  { %1188 = vst.msk [vmem:[%s2151_s3 + $0x18] sm:$0xf] %vm1181_vm1, %v1324_v50  ;;  %v1325_v54 = vpack.c.bf16 %v1122_v51, %v1122_v51  ;;  %v1492_v55 = vadd.f32 %v1491_v44, %v1490_v53  ;;  %v1006_v48 = vadd.f32 %v1489_v52, %v2070_v61  ;;  %v1096_v57 = vpop.f32.mrb[46].mxu1 }
 0x152   :  { %v1555_v62 = vpop.f32.mrb[47].mxu1 }
 0x153   :  { %1189 = vst.msk [vmem:[%s2151_s3 + $0x1c] sm:$0xf] %vm1181_vm1, %v1325_v54  ;;  %v1094_v59 = vadd.f32 %v1093_v38, %v1006_v48  ;;  %v1009_v58 = vadd.f32 %v1492_v55, %v2072_v1 }
 0x155   :  { %v1123_v60 = vmax.f32 %v1094_v59, 0.0  ;;  %v1097_v63 = vadd.f32 %v1096_v57, %v1009_v58  ;;  %v1493_v0 = vpop.f32.mrb[48].mxu0 }
 0x156   :  { %v1494_v2 = vpop.f32.mrb[49].mxu0 }
 0x157   :  { %v1326_v3 = vpack.c.bf16 %v1123_v60, %v1123_v60  ;;  %v1124_v4 = vmax.f32 %v1097_v63, 0.0  ;;  %v1495_v5 = vadd.f32 %v1494_v2, %v1493_v0  ;;  %v1496_v6 = vpop.f32.mrb[50].mxu0  ;;  %v1101_v7 = vpop.f32.mrb[48].mxu1 }
 0x158   :  { %v1497_v61 = vpop.f32.mrb[51].mxu0  ;;  %v1558_v10 = vpop.f32.mrb[49].mxu1 }
 0x159   :  { %1190 = vst.msk [vmem:[%s2151_s3 + $0x20] sm:$0xf] %vm1181_vm1, %v1326_v3  ;;  %v1327_v8 = vpack.c.bf16 %v1124_v4, %v1124_v4  ;;  %v1498_v9 = vadd.f32 %v1497_v61, %v1496_v6  ;;  %v1014_v1 = vadd.f32 %v1495_v5, %v2076_v16  ;;  %v1104_v12 = vpop.f32.mrb[50].mxu1 }
 0x15a   :  { %v1559_v15 = vpop.f32.mrb[51].mxu1 }
 0x15b   :  { %1191 = vst.msk [vmem:[%s2151_s3 + $0x24] sm:$0xf] %vm1181_vm1, %v1327_v8  ;;  %v1102_v11 = vadd.f32 %v1101_v7, %v1014_v1  ;;  %v1017_v13 = vadd.f32 %v1498_v9, %v2078_v19 }
 0x15d   :  { %v1125_v17 = vmax.f32 %v1102_v11, 0.0  ;;  %v1105_v14 = vadd.f32 %v1104_v12, %v1017_v13  ;;  %v1499_v18 = vpop.f32.mrb[52].mxu0 }
 0x15e   :  { %v1500_v20 = vpop.f32.mrb[53].mxu0 }
 0x15f   :  { %v1328_v21 = vpack.c.bf16 %v1125_v17, %v1125_v17  ;;  %v1126_v22 = vmax.f32 %v1105_v14, 0.0  ;;  %v1501_v23 = vadd.f32 %v1500_v20, %v1499_v18  ;;  %v1502_v24 = vpop.f32.mrb[54].mxu0  ;;  %v1109_v25 = vpop.f32.mrb[52].mxu1 }
 0x160   :  { %v1503_v16 = vpop.f32.mrb[55].mxu0  ;;  %v1562_v19 = vpop.f32.mrb[53].mxu1 }
 0x161   :  { %1192 = vst.msk [vmem:[%s2151_s3 + $0x28] sm:$0xf] %vm1181_vm1, %v1328_v21  ;;  %v1329_v26 = vpack.c.bf16 %v1126_v22, %v1126_v22  ;;  %v1022_v28 = vadd.f32 %v1501_v23, %v2081_v32  ;;  %v1112_v29 = vpop.f32.mrb[54].mxu1 }
 0x162   :  { %v1563_v33 = vpop.f32.mrb[55].mxu1 }
 0x163   :  { %1193 = vst.msk [vmem:[%s2151_s3 + $0x2c] sm:$0xf] %vm1181_vm1, %v1329_v26  ;;  %v1110_v31 = vadd.f32 %v1109_v25, %v1022_v28 }
 0x165   :  { %v1127_v34 = vmax.f32 %v1110_v31, 0.0 }
 0x167   :  { %v1330_v27 = vpack.c.bf16 %v1127_v34, %v1127_v34 }
 0x169   :  { %1194 = vst.msk [vmem:[%s2151_s3 + $0x30] sm:$0xf] %vm1181_vm1, %v1330_v27 }

// kernel: vae_forward.10
= control target key start
LH: loop header
LB: loop body
LE: loop exit
PB: predicated region body
PF: predicated region fallthrough
CT: control target
= control target key end

     0   :  { %v2597_v1 = vmov 0   ;;  %vm2599_vm0 = vmmov 0   ;;  %vm2035_vm1 = vcmask 519168   ;;  %s3342_s1 = inlined_call_operand.vmem [shape: bf16[128,3136], index: 1, kind: input, shape index: {}]   ;;  %s3343_s0 = inlined_call_operand.vmem [shape: bf16[8,128], index: 0, kind: input, shape index: {}]   ;;  %s3344_s2 = inlined_call_operand.vmem [shape: f32[1,3136], index: 2, kind: input, shape index: {}]   ;;  %s3345_s3 = inlined_call_operand.vmem [shape: bf16[8,3136], index: 3, kind: output, shape index: {}]  }
   0x1   :  { %v2300_v0 = vld [vmem:[%s3342_s1 + $0x4] ss:$100 sps:$4 sm:$0xff]   ;;  %1397 = vmatprep.mubr.bf16.mxu0 %v2597_v1  ;;  %1438 = vmatprep.mubr.bf16.mxu1 %v2597_v1  ;;  %v2303_v3 = vld [vmem:[%s3342_s1 + $0xcc] ss:$100 sps:$4 sm:$0xff]   ;;  %v2306_v5 = vld [vmem:[%s3342_s1 + $0x194] ss:$100 sps:$4 sm:$0xff]  }
   0x2   :  { %v2302_v2 = vld [vmem:[%s3342_s1] ss:$100 sps:$4 sm:$0xff]   ;;  %1365 = vmatprep.subr.bf16.mxu0 %v2300_v0  ;;  %v2305_v4 = vld [vmem:[%s3342_s1 + $0xc8] ss:$100 sps:$4 sm:$0xff]   ;;  %v2308_v6 = vld [vmem:[%s3342_s1 + $0x190] ss:$100 sps:$4 sm:$0xff]  }
   0x3   :  { %1366 = vmatpush1.bf16.msra.mxu0 %v2302_v2  ;;  %v2309_v7 = vld [vmem:[%s3342_s1 + $0x25c] ss:$100 sps:$4 sm:$0xff]   ;;  %v2323_v9 = vld [vmem:[%s3342_s1 + $0xc] ss:$100 sps:$4 sm:$0xff]   ;;  %v2312_v11 = vld [vmem:[%s3342_s1 + $0x324] ss:$100 sps:$4 sm:$0xff]  }
   0x4   :  { %1367 = vmatprep.subr.bf16.mxu0 %v2303_v3  ;;  %v2311_v8 = vld [vmem:[%s3342_s1 + $0x258] ss:$100 sps:$4 sm:$0xff]   ;;  %v2326_v10 = vld [vmem:[%s3342_s1 + $0x8] ss:$100 sps:$4 sm:$0xff]   ;;  %1406 = vmatprep.subr.bf16.mxu1 %v2323_v9  ;;  %v2314_v13 = vld [vmem:[%s3342_s1 + $0x320] ss:$100 sps:$4 sm:$0xff]  }
   0x5   :  { %v2327_v12 = vld [vmem:[%s3342_s1 + $0xd4] ss:$100 sps:$4 sm:$0xff]   ;;  %1407 = vmatpush1.bf16.msra.mxu1 %v2326_v10  ;;  %v2333_v15 = vld [vmem:[%s3342_s1 + $0x19c] ss:$100 sps:$4 sm:$0xff]   ;;  %v2315_v16 = vld [vmem:[%s3342_s1 + $0x3ec] ss:$100 sps:$4 sm:$0xff]  }
   0x6   :  { %v2332_v14 = vld [vmem:[%s3342_s1 + $0xd0] ss:$100 sps:$4 sm:$0xff]   ;;  %1408 = vmatprep.subr.bf16.mxu1 %v2327_v12  ;;  %v2338_v17 = vld [vmem:[%s3342_s1 + $0x198] ss:$100 sps:$4 sm:$0xff]   ;;  %v2317_v18 = vld [vmem:[%s3342_s1 + $0x3e8] ss:$100 sps:$4 sm:$0xff]  }
   0x7   :  { %1368 = vmatpush1.bf16.msra.mxu0 %v2305_v4  ;;  %v2339_v19 = vld [vmem:[%s3342_s1 + $0x264] ss:$100 sps:$4 sm:$0xff]   ;;  %v2318_v20 = vld [vmem:[%s3342_s1 + $0x4b4] ss:$100 sps:$4 sm:$0xff]   ;;  %v2345_v23 = vld [vmem:[%s3342_s1 + $0x32c] ss:$100 sps:$4 sm:$0xff]  }
   0x8   :  { %1369 = vmatprep.subr.bf16.mxu0 %v2306_v5  ;;  %v2320_v21 = vld [vmem:[%s3342_s1 + $0x4b0] ss:$100 sps:$4 sm:$0xff]   ;;  %v2344_v22 = vld [vmem:[%s3342_s1 + $0x260] ss:$100 sps:$4 sm:$0xff]   ;;  %v2350_v25 = vld [vmem:[%s3342_s1 + $0x328] ss:$100 sps:$4 sm:$0xff]  }
   0x9   :  { %1409 = vmatpush1.bf16.msra.mxu1 %v2332_v14  ;;  %v2321_v24 = vld [vmem:[%s3342_s1 + $0x57c] ss:$100 sps:$4 sm:$0xff]   ;;  %v2351_v27 = vld [vmem:[%s3342_s1 + $0x3f4] ss:$100 sps:$4 sm:$0xff]   ;;  %v2363_v36 = vld [vmem:[%s3342_s1 + $0x584] ss:$100 sps:$4 sm:$0xff]  }
   0xa   :  { %1410 = vmatprep.subr.bf16.mxu1 %v2333_v15  ;;  %v2325_v26 = vld [vmem:[%s3342_s1 + $0x578] ss:$100 sps:$4 sm:$0xff]   ;;  %v2709_v29 = vld [vmem:[%s3343_s0] sm:$0xf]  ;;  %v2329_v30 = vld [vmem:[%s3342_s1 + $0x10] ss:$100 sps:$4 sm:$0xff]  }
   0xb   :  { %1370 = vmatpush1.bf16.msra.mxu0 %v2308_v6  ;;  %v2331_v28 = vld [vmem:[%s3342_s1 + $0x14] ss:$100 sps:$4 sm:$0xff]   ;;  %v2357_v32 = vld [vmem:[%s3342_s1 + $0x4bc] ss:$100 sps:$4 sm:$0xff]   ;;  %v2343_v37 = vld [vmem:[%s3342_s1 + $0x1a4] ss:$100 sps:$4 sm:$0xff]  }
   0xc   :  { %1371 = vmatprep.subr.bf16.mxu0 %v2309_v7  ;;  %v2356_v31 = vld [vmem:[%s3342_s1 + $0x3f0] ss:$100 sps:$4 sm:$0xff]   ;;  %v2337_v33 = vld [vmem:[%s3342_s1 + $0xdc] ss:$100 sps:$4 sm:$0xff]   ;;  %v2347_v42 = vld [vmem:[%s3342_s1 + $0x268] ss:$100 sps:$4 sm:$0xff]  }
   0xd   :  { %1411 = vmatpush1.bf16.msra.mxu1 %v2338_v17  ;;  %v2335_v34 = vld [vmem:[%s3342_s1 + $0xd8] ss:$100 sps:$4 sm:$0xff]   ;;  %v2341_v38 = vld [vmem:[%s3342_s1 + $0x1a0] ss:$100 sps:$4 sm:$0xff]   ;;  %v2349_v41 = vld [vmem:[%s3342_s1 + $0x26c] ss:$100 sps:$4 sm:$0xff]  }
   0xe   :  { %1412 = vmatprep.subr.bf16.mxu1 %v2339_v19  ;;  %v2362_v35 = vld [vmem:[%s3342_s1 + $0x4b8] ss:$100 sps:$4 sm:$0xff]   ;;  %v2368_v39 = vld [vmem:[%s3342_s1 + $0x580] ss:$100 sps:$4 sm:$0xff]   ;;  %v2353_v46 = vld [vmem:[%s3342_s1 + $0x330] ss:$100 sps:$4 sm:$0xff]  }
   0xf   :  { %1372 = vmatpush1.bf16.msra.mxu0 %v2311_v8  ;;  %v2374_v40 = vld [vmem:[%s3342_s1 + $0x1c] ss:$100 sps:$4 sm:$0xff]   ;;  %v2377_v44 = vld [vmem:[%s3342_s1 + $0xe4] ss:$100 sps:$4 sm:$0xff]   ;;  %v2355_v45 = vld [vmem:[%s3342_s1 + $0x334] ss:$100 sps:$4 sm:$0xff]  }
  0x10   :  { %1373 = vmatprep.subr.bf16.mxu0 %v2312_v11  ;;  %v2372_v43 = vld [vmem:[%s3342_s1 + $0x18] ss:$100 sps:$4 sm:$0xff]   ;;  %v2375_v47 = vld [vmem:[%s3342_s1 + $0xe0] ss:$100 sps:$4 sm:$0xff]   ;;  %v2383_v48 = vld [vmem:[%s3342_s1 + $0x1ac] ss:$100 sps:$4 sm:$0xff]  }
  0x11   :  { %1413 = vmatpush1.bf16.msra.mxu1 %v2344_v22  ;;  %v2361_v49 = vld [vmem:[%s3342_s1 + $0x3fc] ss:$100 sps:$4 sm:$0xff]   ;;  %v2381_v51 = vld [vmem:[%s3342_s1 + $0x1a8] ss:$100 sps:$4 sm:$0xff]   ;;  %v2389_v52 = vld [vmem:[%s3342_s1 + $0x274] ss:$100 sps:$4 sm:$0xff]  }
  0x12   :  { %1414 = vmatprep.subr.bf16.mxu1 %v2345_v23  ;;  %v2359_v50 = vld [vmem:[%s3342_s1 + $0x3f8] ss:$100 sps:$4 sm:$0xff]   ;;  %v2367_v53 = vld [vmem:[%s3342_s1 + $0x4c4] ss:$100 sps:$4 sm:$0xff]   ;;  %v2387_v55 = vld [vmem:[%s3342_s1 + $0x270] ss:$100 sps:$4 sm:$0xff]  }
  0x13   :  { %1374 = vmatpush1.bf16.msra.mxu0 %v2314_v13  ;;  %v2365_v54 = vld [vmem:[%s3342_s1 + $0x4c0] ss:$100 sps:$4 sm:$0xff]   ;;  %v2371_v57 = vld [vmem:[%s3342_s1 + $0x58c] ss:$100 sps:$4 sm:$0xff]   ;;  %v2393_v59 = vld [vmem:[%s3342_s1 + $0x338] ss:$100 sps:$4 sm:$0xff]  }
  0x14   :  { %1375 = vmatprep.subr.bf16.mxu0 %v2315_v16  ;;  %v2395_v56 = vld [vmem:[%s3342_s1 + $0x33c] ss:$100 sps:$4 sm:$0xff]   ;;  %v2369_v58 = vld [vmem:[%s3342_s1 + $0x588] ss:$100 sps:$4 sm:$0xff]   ;;  %v2413_v5 = vld [vmem:[%s3342_s1 + $0x594] ss:$100 sps:$4 sm:$0xff]  }
  0x15   :  { %1415 = vmatpush1.bf16.msra.mxu1 %v2350_v25  ;;  %v2401_v60 = vld [vmem:[%s3342_s1 + $0x404] ss:$100 sps:$4 sm:$0xff]   ;;  %v2407_v0 = vld [vmem:[%s3342_s1 + $0x4cc] ss:$100 sps:$4 sm:$0xff]   ;;  %v2392_v6 = vld [vmem:[%s3342_s1 + $0x1b4] ss:$100 sps:$4 sm:$0xff]  }
  0x16   :  { %1416 = vmatprep.subr.bf16.mxu1 %v2351_v27  ;;  %v2380_v61 = vld [vmem:[%s3342_s1 + $0x24] ss:$100 sps:$4 sm:$0xff]   ;;  %v2386_v2 = vld [vmem:[%s3342_s1 + $0xec] ss:$100 sps:$4 sm:$0xff]   ;;  %v2398_v10 = vld [vmem:[%s3342_s1 + $0x27c] ss:$100 sps:$4 sm:$0xff]  }
  0x17   :  { %1376 = vmatpush1.bf16.msra.mxu0 %v2317_v18  ;;  %v2378_v62 = vld [vmem:[%s3342_s1 + $0x20] ss:$100 sps:$4 sm:$0xff]   ;;  %v2384_v3 = vld [vmem:[%s3342_s1 + $0xe8] ss:$100 sps:$4 sm:$0xff]   ;;  %v2390_v7 = vld [vmem:[%s3342_s1 + $0x1b0] ss:$100 sps:$4 sm:$0xff]  }
  0x18   :  { %1377 = vmatprep.subr.bf16.mxu0 %v2318_v20  ;;  %v2399_v63 = vld [vmem:[%s3342_s1 + $0x400] ss:$100 sps:$4 sm:$0xff]   ;;  %v2405_v4 = vld [vmem:[%s3342_s1 + $0x4c8] ss:$100 sps:$4 sm:$0xff]   ;;  %v2411_v8 = vld [vmem:[%s3342_s1 + $0x590] ss:$100 sps:$4 sm:$0xff]  }
  0x19   :  { %1417 = vmatpush1.bf16.msra.mxu1 %v2356_v31  ;;  %v2422_v9 = vld [vmem:[%s3342_s1 + $0x2c] ss:$100 sps:$4 sm:$0xff]   ;;  %v2396_v11 = vld [vmem:[%s3342_s1 + $0x278] ss:$100 sps:$4 sm:$0xff]   ;;  %v2404_v14 = vld [vmem:[%s3342_s1 + $0x344] ss:$100 sps:$4 sm:$0xff]  }
  0x1a   :  { %1418 = vmatprep.subr.bf16.mxu1 %v2357_v32  ;;  %v2420_v12 = vld [vmem:[%s3342_s1 + $0x28] ss:$100 sps:$4 sm:$0xff]   ;;  %v2425_v13 = vld [vmem:[%s3342_s1 + $0xf4] ss:$100 sps:$4 sm:$0xff]   ;;  %v2402_v15 = vld [vmem:[%s3342_s1 + $0x340] ss:$100 sps:$4 sm:$0xff]  }
  0x1b   :  { %1378 = vmatpush1.bf16.msra.mxu0 %v2320_v21  ;;  %v2423_v16 = vld [vmem:[%s3342_s1 + $0xf0] ss:$100 sps:$4 sm:$0xff]   ;;  %v2431_v17 = vld [vmem:[%s3342_s1 + $0x1bc] ss:$100 sps:$4 sm:$0xff]   ;;  %v2408_v19 = vld [vmem:[%s3342_s1 + $0x408] ss:$100 sps:$4 sm:$0xff]  }
  0x1c   :  { %1379 = vmatprep.subr.bf16.mxu0 %v2321_v24  ;;  %v2410_v18 = vld [vmem:[%s3342_s1 + $0x40c] ss:$100 sps:$4 sm:$0xff]   ;;  %v2429_v20 = vld [vmem:[%s3342_s1 + $0x1b8] ss:$100 sps:$4 sm:$0xff]   ;;  %v2437_v21 = vld [vmem:[%s3342_s1 + $0x284] ss:$100 sps:$4 sm:$0xff]  }
  0x1d   :  { %1419 = vmatpush1.bf16.msra.mxu1 %v2362_v35  ;;  %v2416_v22 = vld [vmem:[%s3342_s1 + $0x4d4] ss:$100 sps:$4 sm:$0xff]   ;;  %v2435_v24 = vld [vmem:[%s3342_s1 + $0x280] ss:$100 sps:$4 sm:$0xff]   ;;  %v2443_v25 = vld [vmem:[%s3342_s1 + $0x34c] ss:$100 sps:$4 sm:$0xff]  }
  0x1e   :  { %1420 = vmatprep.subr.bf16.mxu1 %v2363_v36  ;;  %v2414_v23 = vld [vmem:[%s3342_s1 + $0x4d0] ss:$100 sps:$4 sm:$0xff]   ;;  %v2417_v27 = vld [vmem:[%s3342_s1 + $0x598] ss:$100 sps:$4 sm:$0xff]  }
  0x1f   :  { %1380 = vmatpush1.bf16.msra.mxu0 %v2325_v26  ;;  %v2419_v26 = vld [vmem:[%s3342_s1 + $0x59c] ss:$100 sps:$4 sm:$0xff]   ;;  %v2428_v31 = vld [vmem:[%s3342_s1 + $0x34] ss:$100 sps:$4 sm:$0xff]  }
  0x20   :  { %1447 = vmatprep.subr.bf16.mxu0 %v2331_v28  ;;  %v2441_v28 = vld [vmem:[%s3342_s1 + $0x348] ss:$100 sps:$4 sm:$0xff]   ;;  %v2426_v32 = vld [vmem:[%s3342_s1 + $0x30] ss:$100 sps:$4 sm:$0xff]   ;;  %v2434_v35 = vld [vmem:[%s3342_s1 + $0xfc] ss:$100 sps:$4 sm:$0xff]  }
  0x21   :  { %1421 = vmatpush1.bf16.msra.mxu1 %v2368_v39  ;;  %v2432_v36 = vld [vmem:[%s3342_s1 + $0xf8] ss:$100 sps:$4 sm:$0xff]   ;;  %v2440_v39 = vld [vmem:[%s3342_s1 + $0x1c4] ss:$100 sps:$4 sm:$0xff]  }
  0x22   :  { %1398 = vmatmul.mubr.bf16.vlgmr.msra.gmra.mrb[0].mxu0 %v2709_v29  ;;  %1488 = vmatprep.subr.bf16.mxu1 %v2374_v40  ;;  %v2438_v40 = vld [vmem:[%s3342_s1 + $0x1c0] ss:$100 sps:$4 sm:$0xff]  }
  0x23   :  { %1448 = vmatpush1.bf16.msra.mxu0 %v2329_v30  ;;  %1479 = vmatprep.mubr.bf16.mxu0 %v2597_v1  ;;  %v2449_v30 = vld [vmem:[%s3342_s1 + $0x414] ss:$100 sps:$4 sm:$0xff]  }
  0x24   :  { %1449 = vmatprep.subr.bf16.mxu0 %v2337_v33  ;;  %1439 = vmatmul.mubr.bf16.vlgmr.msra.gmra.mrb[0].mxu1 %v2709_v29  ;;  %v2447_v33 = vld [vmem:[%s3342_s1 + $0x410] ss:$100 sps:$4 sm:$0xff]  }
  0x25   :  { %1489 = vmatpush1.bf16.msra.mxu1 %v2372_v43  ;;  %1520 = vmatprep.mubr.bf16.mxu1 %v2597_v1  ;;  %v2446_v43 = vld [vmem:[%s3342_s1 + $0x28c] ss:$100 sps:$4 sm:$0xff]  }
  0x26   :  { %1490 = vmatprep.subr.bf16.mxu1 %v2377_v44  ;;  %v2444_v44 = vld [vmem:[%s3342_s1 + $0x288] ss:$100 sps:$4 sm:$0xff]  }
  0x27   :  { %1450 = vmatpush1.bf16.msra.mxu0 %v2335_v34  ;;  %v2455_v34 = vld [vmem:[%s3342_s1 + $0x4dc] ss:$100 sps:$4 sm:$0xff]  }
  0x28   :  { %1451 = vmatprep.subr.bf16.mxu0 %v2343_v37  ;;  %v2453_v37 = vld [vmem:[%s3342_s1 + $0x4d8] ss:$100 sps:$4 sm:$0xff]  }
  0x29   :  { %1491 = vmatpush1.bf16.msra.mxu1 %v2375_v47  ;;  %v2452_v47 = vld [vmem:[%s3342_s1 + $0x354] ss:$100 sps:$4 sm:$0xff]  }
  0x2a   :  { %1492 = vmatprep.subr.bf16.mxu1 %v2383_v48  ;;  %v2450_v48 = vld [vmem:[%s3342_s1 + $0x350] ss:$100 sps:$4 sm:$0xff]  }
  0x2b   :  { %1452 = vmatpush1.bf16.msra.mxu0 %v2341_v38  ;;  %v2461_v38 = vld [vmem:[%s3342_s1 + $0x5a4] ss:$100 sps:$4 sm:$0xff]  }
  0x2c   :  { %1453 = vmatprep.subr.bf16.mxu0 %v2349_v41  ;;  %v2459_v41 = vld [vmem:[%s3342_s1 + $0x5a0] ss:$100 sps:$4 sm:$0xff]  }
  0x2d   :  { %1493 = vmatpush1.bf16.msra.mxu1 %v2381_v51  ;;  %v2458_v51 = vld [vmem:[%s3342_s1 + $0x41c] ss:$100 sps:$4 sm:$0xff]  }
  0x2e   :  { %1494 = vmatprep.subr.bf16.mxu1 %v2389_v52  ;;  %v2456_v52 = vld [vmem:[%s3342_s1 + $0x418] ss:$100 sps:$4 sm:$0xff]  }
  0x2f   :  { %1454 = vmatpush1.bf16.msra.mxu0 %v2347_v42  ;;  %v2470_v42 = vld [vmem:[%s3342_s1 + $0x3c] ss:$100 sps:$4 sm:$0xff]  }
  0x30   :  { %1455 = vmatprep.subr.bf16.mxu0 %v2355_v45  ;;  %v2468_v45 = vld [vmem:[%s3342_s1 + $0x38] ss:$100 sps:$4 sm:$0xff]  }
  0x31   :  { %1495 = vmatpush1.bf16.msra.mxu1 %v2387_v55  ;;  %v2464_v55 = vld [vmem:[%s3342_s1 + $0x4e4] ss:$100 sps:$4 sm:$0xff]  }
  0x32   :  { %1496 = vmatprep.subr.bf16.mxu1 %v2395_v56  ;;  %v2462_v56 = vld [vmem:[%s3342_s1 + $0x4e0] ss:$100 sps:$4 sm:$0xff]  }
  0x33   :  { %1456 = vmatpush1.bf16.msra.mxu0 %v2353_v46  ;;  %v2473_v46 = vld [vmem:[%s3342_s1 + $0x104] ss:$100 sps:$4 sm:$0xff]  }
  0x34   :  { %1457 = vmatprep.subr.bf16.mxu0 %v2361_v49  ;;  %v2471_v49 = vld [vmem:[%s3342_s1 + $0x100] ss:$100 sps:$4 sm:$0xff]  }
  0x35   :  { %1497 = vmatpush1.bf16.msra.mxu1 %v2393_v59  ;;  %v2467_v59 = vld [vmem:[%s3342_s1 + $0x5ac] ss:$100 sps:$4 sm:$0xff]  }
  0x36   :  { %1498 = vmatprep.subr.bf16.mxu1 %v2401_v60  ;;  %v2465_v60 = vld [vmem:[%s3342_s1 + $0x5a8] ss:$100 sps:$4 sm:$0xff]  }
  0x37   :  { %1458 = vmatpush1.bf16.msra.mxu0 %v2359_v50  ;;  %v2479_v50 = vld [vmem:[%s3342_s1 + $0x1cc] ss:$100 sps:$4 sm:$0xff]  }
  0x38   :  { %1459 = vmatprep.subr.bf16.mxu0 %v2367_v53  ;;  %v2477_v53 = vld [vmem:[%s3342_s1 + $0x1c8] ss:$100 sps:$4 sm:$0xff]  }
  0x39   :  { %1499 = vmatpush1.bf16.msra.mxu1 %v2399_v63  ;;  %v2476_v63 = vld [vmem:[%s3342_s1 + $0x44] ss:$100 sps:$4 sm:$0xff]  }
  0x3a   :  { %1500 = vmatprep.subr.bf16.mxu1 %v2407_v0  ;;  %v2474_v0 = vld [vmem:[%s3342_s1 + $0x40] ss:$100 sps:$4 sm:$0xff]  }
  0x3b   :  { %1460 = vmatpush1.bf16.msra.mxu0 %v2365_v54  ;;  %v2485_v54 = vld [vmem:[%s3342_s1 + $0x294] ss:$100 sps:$4 sm:$0xff]  }
  0x3c   :  { %1461 = vmatprep.subr.bf16.mxu0 %v2371_v57  ;;  %v2483_v57 = vld [vmem:[%s3342_s1 + $0x290] ss:$100 sps:$4 sm:$0xff]  }
  0x3d   :  { %1501 = vmatpush1.bf16.msra.mxu1 %v2405_v4  ;;  %v2482_v4 = vld [vmem:[%s3342_s1 + $0x10c] ss:$100 sps:$4 sm:$0xff]  }
  0x3e   :  { %1502 = vmatprep.subr.bf16.mxu1 %v2413_v5  ;;  %v2501_v5 = vld [vmem:[%s3342_s1 + $0x4e8] ss:$100 sps:$4 sm:$0xff]  }
  0x3f   :  { %1462 = vmatpush1.bf16.msra.mxu0 %v2369_v58  ;;  %v2491_v58 = vld [vmem:[%s3342_s1 + $0x35c] ss:$100 sps:$4 sm:$0xff]  }
  0x40   :  { %1529 = vmatprep.subr.bf16.mxu0 %v2380_v61  ;;  %v2489_v61 = vld [vmem:[%s3342_s1 + $0x358] ss:$100 sps:$4 sm:$0xff]  }
  0x41   :  { %1503 = vmatpush1.bf16.msra.mxu1 %v2411_v8  ;;  %v2488_v8 = vld [vmem:[%s3342_s1 + $0x1d4] ss:$100 sps:$4 sm:$0xff]  }
  0x42   :  { %1480 = vmatmul.mubr.bf16.vlgmr.msra.gmra.mrb[4].mxu0 %v2709_v29  ;;  %1570 = vmatprep.subr.bf16.mxu1 %v2422_v9  ;;  %v2486_v9 = vld [vmem:[%s3342_s1 + $0x1d0] ss:$100 sps:$4 sm:$0xff]  }
  0x43   :  { %1530 = vmatpush1.bf16.msra.mxu0 %v2378_v62  ;;  %1561 = vmatprep.mubr.bf16.mxu0 %v2597_v1  ;;  %v2497_v62 = vld [vmem:[%s3342_s1 + $0x424] ss:$100 sps:$4 sm:$0xff]  }
  0x44   :  { %1531 = vmatprep.subr.bf16.mxu0 %v2386_v2  ;;  %1521 = vmatmul.mubr.bf16.vlgmr.msra.gmra.mrb[4].mxu1 %v2709_v29  ;;  %v2495_v2 = vld [vmem:[%s3342_s1 + $0x420] ss:$100 sps:$4 sm:$0xff]  }
  0x45   :  { %1571 = vmatpush1.bf16.msra.mxu1 %v2420_v12  ;;  %1602 = vmatprep.mubr.bf16.mxu1 %v2597_v1  ;;  %v2494_v12 = vld [vmem:[%s3342_s1 + $0x29c] ss:$100 sps:$4 sm:$0xff]  }
  0x46   :  { %1572 = vmatprep.subr.bf16.mxu1 %v2425_v13  ;;  %v2516_v13 = vld [vmem:[%s3342_s1 + $0x48] ss:$100 sps:$4 sm:$0xff]  }
  0x47   :  { %1532 = vmatpush1.bf16.msra.mxu0 %v2384_v3  ;;  %v2503_v3 = vld [vmem:[%s3342_s1 + $0x4ec] ss:$100 sps:$4 sm:$0xff]  }
  0x48   :  { %1533 = vmatprep.subr.bf16.mxu0 %v2392_v6  ;;  %v2480_v6 = vld [vmem:[%s3342_s1 + $0x108] ss:$100 sps:$4 sm:$0xff]  }
  0x49   :  { %1573 = vmatpush1.bf16.msra.mxu1 %v2423_v16  ;;  %v2500_v16 = vld [vmem:[%s3342_s1 + $0x364] ss:$100 sps:$4 sm:$0xff]  }
  0x4a   :  { %1574 = vmatprep.subr.bf16.mxu1 %v2431_v17  ;;  %v2519_v17 = vld [vmem:[%s3342_s1 + $0x110] ss:$100 sps:$4 sm:$0xff]  }
  0x4b   :  { %1534 = vmatpush1.bf16.msra.mxu0 %v2390_v7  ;;  %v2509_v7 = vld [vmem:[%s3342_s1 + $0x5b4] ss:$100 sps:$4 sm:$0xff]  }
  0x4c   :  { %1535 = vmatprep.subr.bf16.mxu0 %v2398_v10  ;;  %v2507_v10 = vld [vmem:[%s3342_s1 + $0x5b0] ss:$100 sps:$4 sm:$0xff]  }
  0x4d   :  { %1575 = vmatpush1.bf16.msra.mxu1 %v2429_v20  ;;  %v2506_v20 = vld [vmem:[%s3342_s1 + $0x42c] ss:$100 sps:$4 sm:$0xff]  }
  0x4e   :  { %1576 = vmatprep.subr.bf16.mxu1 %v2437_v21  ;;  %v2525_v21 = vld [vmem:[%s3342_s1 + $0x1d8] ss:$100 sps:$4 sm:$0xff]  }
  0x4f   :  { %1536 = vmatpush1.bf16.msra.mxu0 %v2396_v11  ;;  %v2518_v11 = vld [vmem:[%s3342_s1 + $0x4c] ss:$100 sps:$4 sm:$0xff]  }
  0x50   :  { %1537 = vmatprep.subr.bf16.mxu0 %v2404_v14  ;;  %v2492_v14 = vld [vmem:[%s3342_s1 + $0x298] ss:$100 sps:$4 sm:$0xff]  }
  0x51   :  { %1577 = vmatpush1.bf16.msra.mxu1 %v2435_v24  ;;  %v2512_v24 = vld [vmem:[%s3342_s1 + $0x4f4] ss:$100 sps:$4 sm:$0xff]  }
  0x52   :  { %1578 = vmatprep.subr.bf16.mxu1 %v2443_v25  ;;  %v2531_v25 = vld [vmem:[%s3342_s1 + $0x2a0] ss:$100 sps:$4 sm:$0xff]  }
  0x53   :  { %1538 = vmatpush1.bf16.msra.mxu0 %v2402_v15  ;;  %v2521_v15 = vld [vmem:[%s3342_s1 + $0x114] ss:$100 sps:$4 sm:$0xff]  }
  0x54   :  { %1539 = vmatprep.subr.bf16.mxu0 %v2410_v18  ;;  %v2498_v18 = vld [vmem:[%s3342_s1 + $0x360] ss:$100 sps:$4 sm:$0xff]  }
  0x55   :  { %1579 = vmatpush1.bf16.msra.mxu1 %v2441_v28  ;;  %v2515_v28 = vld [vmem:[%s3342_s1 + $0x5bc] ss:$100 sps:$4 sm:$0xff]  }
  0x56   :  { %1580 = vmatprep.subr.bf16.mxu1 %v2449_v30  ;;  %v2537_v30 = vld [vmem:[%s3342_s1 + $0x368] ss:$100 sps:$4 sm:$0xff]  }
  0x57   :  { %1540 = vmatpush1.bf16.msra.mxu0 %v2408_v19  ;;  %v2527_v19 = vld [vmem:[%s3342_s1 + $0x1dc] ss:$100 sps:$4 sm:$0xff]  }
  0x58   :  { %1541 = vmatprep.subr.bf16.mxu0 %v2416_v22  ;;  %v2504_v22 = vld [vmem:[%s3342_s1 + $0x428] ss:$100 sps:$4 sm:$0xff]  }
  0x59   :  { %1581 = vmatpush1.bf16.msra.mxu1 %v2447_v33  ;;  %v2524_v33 = vld [vmem:[%s3342_s1 + $0x54] ss:$100 sps:$4 sm:$0xff]  }
  0x5a   :  { %1582 = vmatprep.subr.bf16.mxu1 %v2455_v34  ;;  %v2543_v34 = vld [vmem:[%s3342_s1 + $0x430] ss:$100 sps:$4 sm:$0xff]  }
  0x5b   :  { %1542 = vmatpush1.bf16.msra.mxu0 %v2414_v23  ;;  %v2533_v23 = vld [vmem:[%s3342_s1 + $0x2a4] ss:$100 sps:$4 sm:$0xff]  }
  0x5c   :  { %1543 = vmatprep.subr.bf16.mxu0 %v2419_v26  ;;  %v2510_v26 = vld [vmem:[%s3342_s1 + $0x4f0] ss:$100 sps:$4 sm:$0xff]  }
  0x5d   :  { %1583 = vmatpush1.bf16.msra.mxu1 %v2453_v37  ;;  %v2530_v37 = vld [vmem:[%s3342_s1 + $0x11c] ss:$100 sps:$4 sm:$0xff]  }
  0x5e   :  { %1584 = vmatprep.subr.bf16.mxu1 %v2461_v38  ;;  %v2549_v38 = vld [vmem:[%s3342_s1 + $0x4f8] ss:$100 sps:$4 sm:$0xff]  }
  0x5f   :  { %1544 = vmatpush1.bf16.msra.mxu0 %v2417_v27  ;;  %v2539_v27 = vld [vmem:[%s3342_s1 + $0x36c] ss:$100 sps:$4 sm:$0xff]  }
  0x60   :  { %1611 = vmatprep.subr.bf16.mxu0 %v2428_v31  ;;  %v2513_v31 = vld [vmem:[%s3342_s1 + $0x5b8] ss:$100 sps:$4 sm:$0xff]  }
  0x61   :  { %1585 = vmatpush1.bf16.msra.mxu1 %v2459_v41  ;;  %v2536_v41 = vld [vmem:[%s3342_s1 + $0x1e4] ss:$100 sps:$4 sm:$0xff]  }
  0x62   :  { %1562 = vmatmul.mubr.bf16.vlgmr.msra.gmra.mrb[8].mxu0 %v2709_v29  ;;  %1652 = vmatprep.subr.bf16.mxu1 %v2470_v42  ;;  %v2555_v42 = vld [vmem:[%s3342_s1 + $0x5c0] ss:$100 sps:$4 sm:$0xff]  }
  0x63   :  { %1612 = vmatpush1.bf16.msra.mxu0 %v2426_v32  ;;  %1643 = vmatprep.mubr.bf16.mxu0 %v2597_v1  ;;  %v2545_v32 = vld [vmem:[%s3342_s1 + $0x434] ss:$100 sps:$4 sm:$0xff]  }
  0x64   :  { %1613 = vmatprep.subr.bf16.mxu0 %v2434_v35  ;;  %1603 = vmatmul.mubr.bf16.vlgmr.msra.gmra.mrb[8].mxu1 %v2709_v29  ;;  %v2522_v35 = vld [vmem:[%s3342_s1 + $0x50] ss:$100 sps:$4 sm:$0xff]  }
  0x65   :  { %1653 = vmatpush1.bf16.msra.mxu1 %v2468_v45  ;;  %1684 = vmatprep.mubr.bf16.mxu1 %v2597_v1  ;;  %v2542_v45 = vld [vmem:[%s3342_s1 + $0x2ac] ss:$100 sps:$4 sm:$0xff]  }
  0x66   :  { %1654 = vmatprep.subr.bf16.mxu1 %v2473_v46  ;;  %v2564_v46 = vld [vmem:[%s3342_s1 + $0x58] ss:$100 sps:$4 sm:$0xff]  }
  0x67   :  { %1614 = vmatpush1.bf16.msra.mxu0 %v2432_v36  ;;  %v2551_v36 = vld [vmem:[%s3342_s1 + $0x4fc] ss:$100 sps:$4 sm:$0xff]  }
  0x68   :  { %1615 = vmatprep.subr.bf16.mxu0 %v2440_v39  ;;  %v2528_v39 = vld [vmem:[%s3342_s1 + $0x118] ss:$100 sps:$4 sm:$0xff]  }
  0x69   :  { %1655 = vmatpush1.bf16.msra.mxu1 %v2471_v49  ;;  %v2548_v49 = vld [vmem:[%s3342_s1 + $0x374] ss:$100 sps:$4 sm:$0xff]  }
  0x6a   :  { %1656 = vmatprep.subr.bf16.mxu1 %v2479_v50  ;;  %v2567_v50 = vld [vmem:[%s3342_s1 + $0x120] ss:$100 sps:$4 sm:$0xff]  }
  0x6b   :  { %1616 = vmatpush1.bf16.msra.mxu0 %v2438_v40  ;;  %v2557_v40 = vld [vmem:[%s3342_s1 + $0x5c4] ss:$100 sps:$4 sm:$0xff]  }
  0x6c   :  { %1617 = vmatprep.subr.bf16.mxu0 %v2446_v43  ;;  %v2534_v43 = vld [vmem:[%s3342_s1 + $0x1e0] ss:$100 sps:$4 sm:$0xff]  }
  0x6d   :  { %1657 = vmatpush1.bf16.msra.mxu1 %v2477_v53  ;;  %v2554_v53 = vld [vmem:[%s3342_s1 + $0x43c] ss:$100 sps:$4 sm:$0xff]  }
  0x6e   :  { %1658 = vmatprep.subr.bf16.mxu1 %v2485_v54  ;;  %v2552_v54 = vld [vmem:[%s3342_s1 + $0x438] ss:$100 sps:$4 sm:$0xff]  }
  0x6f   :  { %1618 = vmatpush1.bf16.msra.mxu0 %v2444_v44  ;;  %v2566_v44 = vld [vmem:[%s3342_s1 + $0x5c] ss:$100 sps:$4 sm:$0xff]  }
  0x70   :  { %1619 = vmatprep.subr.bf16.mxu0 %v2452_v47  ;;  %v2540_v47 = vld [vmem:[%s3342_s1 + $0x2a8] ss:$100 sps:$4 sm:$0xff]  }
  0x71   :  { %1659 = vmatpush1.bf16.msra.mxu1 %v2483_v57  ;;  %v2575_v57 = vld [vmem:[%s3342_s1 + $0x2b0] ss:$100 sps:$4 sm:$0xff]  }
  0x72   :  { %1660 = vmatprep.subr.bf16.mxu1 %v2491_v58  ;;  %v2558_v58 = vld [vmem:[%s3342_s1 + $0x500] ss:$100 sps:$4 sm:$0xff]  }
  0x73   :  { %1620 = vmatpush1.bf16.msra.mxu0 %v2450_v48  ;;  %v2569_v48 = vld [vmem:[%s3342_s1 + $0x124] ss:$100 sps:$4 sm:$0xff]  }
  0x74   :  { %1621 = vmatprep.subr.bf16.mxu0 %v2458_v51  ;;  %v2546_v51 = vld [vmem:[%s3342_s1 + $0x370] ss:$100 sps:$4 sm:$0xff]  }
  0x75   :  { %1661 = vmatpush1.bf16.msra.mxu1 %v2489_v61  ;;  %v2579_v61 = vld [vmem:[%s3342_s1 + $0x378] ss:$100 sps:$4 sm:$0xff]  }
  0x76   :  { %1662 = vmatprep.subr.bf16.mxu1 %v2497_v62  ;;  %v2561_v62 = vld [vmem:[%s3342_s1 + $0x5c8] ss:$100 sps:$4 sm:$0xff]  }
  0x77   :  { %1622 = vmatpush1.bf16.msra.mxu0 %v2456_v52  ;;  %v2573_v52 = vld [vmem:[%s3342_s1 + $0x1ec] ss:$100 sps:$4 sm:$0xff]  }
  0x78   :  { %1623 = vmatprep.subr.bf16.mxu0 %v2464_v55  ;;  %v2577_v55 = vld [vmem:[%s3342_s1 + $0x2b4] ss:$100 sps:$4 sm:$0xff]  }
  0x79   :  { %1663 = vmatpush1.bf16.msra.mxu1 %v2495_v2  ;;  %v2570_v2 = vld [vmem:[%s3342_s1 + $0x60] ss:$100 sps:$4 sm:$0xff]  }
  0x7a   :  { %1664 = vmatprep.subr.bf16.mxu1 %v2503_v3  ;;  %v2589_v3 = vld [vmem:[%s3342_s1 + $0x50c] ss:$100 sps:$4 sm:$0xff]  }
  0x7b   :  { %1624 = vmatpush1.bf16.msra.mxu0 %v2462_v56  ;;  %v2560_v56 = vld [vmem:[%s3342_s1 + $0x504] ss:$100 sps:$4 sm:$0xff]  }
  0x7c   :  { %1625 = vmatprep.subr.bf16.mxu0 %v2467_v59  ;;  %v2581_v59 = vld [vmem:[%s3342_s1 + $0x37c] ss:$100 sps:$4 sm:$0xff]  }
  0x7d   :  { %1665 = vmatpush1.bf16.msra.mxu1 %v2501_v5  ;;  %v2587_v5 = vld [vmem:[%s3342_s1 + $0x508] ss:$100 sps:$4 sm:$0xff]  }
  0x7e   :  { %1666 = vmatprep.subr.bf16.mxu1 %v2509_v7  ;;  %v2593_v7 = vld [vmem:[%s3342_s1 + $0x5d4] ss:$100 sps:$4 sm:$0xff]  }
  0x7f   :  { %1626 = vmatpush1.bf16.msra.mxu0 %v2465_v60  ;;  %v2563_v60 = vld [vmem:[%s3342_s1 + $0x5cc] ss:$100 sps:$4 sm:$0xff]  }
  0x80   :  { %1693 = vmatprep.subr.bf16.mxu0 %v2476_v63  ;;  %v2585_v63 = vld [vmem:[%s3342_s1 + $0x444] ss:$100 sps:$4 sm:$0xff]  }
  0x81   :  { %1667 = vmatpush1.bf16.msra.mxu1 %v2507_v10  ;;  %v2596_v10 = vld [vmem:[%s3343_s0] sm:$0xf] }
  0x82   :  { %1644 = vmatmul.mubr.bf16.vlgmr.msra.gmra.mrb[12].mxu0 %v2709_v29  ;;  %1734 = vmatprep.subr.bf16.mxu1 %v2518_v11  ;;  %v2586_v11 = vld [vmem:[%s3342_s1 + $0x380] ss:$100 sps:$4 sm:$0xff]  }
  0x83   :  { %1694 = vmatpush1.bf16.msra.mxu0 %v2474_v0  ;;  %1725 = vmatprep.mubr.bf16.mxu0 %v2597_v1  ;;  %v2583_v0 = vld [vmem:[%s3342_s1 + $0x440] ss:$100 sps:$4 sm:$0xff]  }
  0x84   :  { %1695 = vmatprep.subr.bf16.mxu0 %v2482_v4  ;;  %1685 = vmatmul.mubr.bf16.vlgmr.msra.gmra.mrb[12].mxu1 %v2709_v29  ;;  %v2598_v4 = vmov 0.0  }
  0x85   :  { %1735 = vmatpush1.bf16.msra.mxu1 %v2516_v13  ;;  %1766 = vmatprep.mubr.bf16.mxu1 %v2597_v1  ;;  %v2594_v13 = vld [vmem:[%s3342_s1 + $0x510] ss:$100 sps:$4 sm:$0xff]  }
  0x86   :  { %1736 = vmatprep.subr.bf16.mxu1 %v2521_v15  ;;  %v232_v15 = vlaneseq }
  0x87   :  { %1696 = vmatpush1.bf16.msra.mxu0 %v2480_v6  ;;  %v2574_v6 = vld [vmem:[%s3342_s1 + $0x128] ss:$100 sps:$4 sm:$0xff]  }
  0x88   :  { %1697 = vmatprep.subr.bf16.mxu0 %v2488_v8  ;;  %v2578_v8 = vld [vmem:[%s3342_s1 + $0x1f0] ss:$100 sps:$4 sm:$0xff]  }
  0x89   :  { %1737 = vmatpush1.bf16.msra.mxu1 %v2519_v17 }
  0x8a   :  { %1738 = vmatprep.subr.bf16.mxu1 %v2527_v19 }
  0x8b   :  { %1698 = vmatpush1.bf16.msra.mxu0 %v2486_v9  ;;  %v2582_v9 = vld [vmem:[%s3342_s1 + $0x2b8] ss:$100 sps:$4 sm:$0xff]  }
  0x8c   :  { %1699 = vmatprep.subr.bf16.mxu0 %v2494_v12  ;;  %v2590_v12 = vld [vmem:[%s3342_s1 + $0x448] ss:$100 sps:$4 sm:$0xff]  }
  0x8d   :  { %1739 = vmatpush1.bf16.msra.mxu1 %v2525_v21 }
  0x8e   :  { %1740 = vmatprep.subr.bf16.mxu1 %v2533_v23 }
  0x8f   :  { %1700 = vmatpush1.bf16.msra.mxu0 %v2492_v14  ;;  %v2595_v14 = vld [vmem:[%s3342_s1 + $0x5d8] ss:$100 sps:$4 sm:$0xff]  }
  0x90   :  { %1701 = vmatprep.subr.bf16.mxu0 %v2500_v16  ;;  %v233_v16 = vshrl.u32 %v232_v15, 7 }
  0x91   :  { %1741 = vmatpush1.bf16.msra.mxu1 %v2531_v25 }
  0x92   :  { %1742 = vmatprep.subr.bf16.mxu1 %v2539_v27  ;;  %v3251_v17 = vsub.s32 0, %v233_v16  ;;  %v3256_v19 = vsub.s32 1, %v233_v16 }
  0x93   :  { %1702 = vmatpush1.bf16.msra.mxu0 %v2498_v18  ;;  %v224_v18 = vld [vmem:[%s3344_s2] sm:$0xff] }
  0x94   :  { %1703 = vmatprep.subr.bf16.mxu0 %v2506_v20  ;;  %v235_v20 = vrot.slane %v224_v18, %v3251_v17  ;;  %v239_v21 = vrot.slane %v224_v18, %v3256_v19 }
  0x95   :  { %1743 = vmatpush1.bf16.msra.mxu1 %v2537_v30 }
  0x96   :  { %1744 = vmatprep.subr.bf16.mxu1 %v2545_v32  ;;  %v3262_v32 = vsub.s32 3, %v233_v16 }
  0x97   :  { %1704 = vmatpush1.bf16.msra.mxu0 %v2504_v22 }
  0x98   :  { %1705 = vmatprep.subr.bf16.mxu0 %v2512_v24 }
  0x99   :  { %1745 = vmatpush1.bf16.msra.mxu1 %v2543_v34 }
  0x9a   :  { %1746 = vmatprep.subr.bf16.mxu1 %v2551_v36 }
  0x9b   :  { %1706 = vmatpush1.bf16.msra.mxu0 %v2510_v26 }
  0x9c   :  { %1707 = vmatprep.subr.bf16.mxu0 %v2515_v28 }
  0x9d   :  { %1747 = vmatpush1.bf16.msra.mxu1 %v2549_v38 }
  0x9e   :  { %1748 = vmatprep.subr.bf16.mxu1 %v2557_v40 }
  0x9f   :  { %1708 = vmatpush1.bf16.msra.mxu0 %v2513_v31  ;;  %v3260_v31 = vsub.s32 2, %v233_v16 }
  0xa0   :  { %1775 = vmatprep.subr.bf16.mxu0 %v2524_v33 }
  0xa1   :  { %1749 = vmatpush1.bf16.msra.mxu1 %v2555_v42  ;;  %v243_v34 = vrot.slane %v224_v18, %v3260_v31 }
  0xa2   :  { %1726 = vmatmul.mubr.bf16.vlgmr.msra.gmra.mrb[16].mxu0 %v2709_v29  ;;  %1816 = vmatprep.subr.bf16.mxu1 %v2566_v44 }
  0xa3   :  { %1776 = vmatpush1.bf16.msra.mxu0 %v2522_v35  ;;  %1807 = vmatprep.mubr.bf16.mxu0 %v2597_v1  ;;  %v247_v35 = vrot.slane %v224_v18, %v3262_v32 }
  0xa4   :  { %1777 = vmatprep.subr.bf16.mxu0 %v2530_v37  ;;  %1767 = vmatmul.mubr.bf16.vlgmr.msra.gmra.mrb[16].mxu1 %v2709_v29 }
  0xa5   :  { %1817 = vmatpush1.bf16.msra.mxu1 %v2564_v46  ;;  %1848 = vmatprep.mubr.bf16.mxu1 %v2597_v1  ;;  %v2571_v1 = vld [vmem:[%s3342_s1 + $0x1e8] ss:$100 sps:$4 sm:$0xff]   ;;  %v3274_v46 = vsub.s32 5, %v233_v16 }
  0xa6   :  { %1818 = vmatprep.subr.bf16.mxu1 %v2569_v48 }
  0xa7   :  { %1778 = vmatpush1.bf16.msra.mxu0 %v2528_v39  ;;  %v255_v48 = vrot.slane %v224_v18, %v3274_v46 }
  0xa8   :  { %1779 = vmatprep.subr.bf16.mxu0 %v2536_v41 }
  0xa9   :  { %1819 = vmatpush1.bf16.msra.mxu1 %v2567_v50 }
  0xaa   :  { %1820 = vmatprep.subr.bf16.mxu1 %v2573_v52 }
  0xab   :  { %1780 = vmatpush1.bf16.msra.mxu0 %v2534_v43 }
  0xac   :  { %1781 = vmatprep.subr.bf16.mxu0 %v2542_v45  ;;  %v3272_v45 = vsub.s32 4, %v233_v16 }
  0xad   :  { %1821 = vmatpush1.bf16.msra.mxu1 %v2571_v1 }
  0xae   :  { %1822 = vmatprep.subr.bf16.mxu1 %v2577_v55 }
  0xaf   :  { %1782 = vmatpush1.bf16.msra.mxu0 %v2540_v47  ;;  %v251_v47 = vrot.slane %v224_v18, %v3272_v45 }
  0xb0   :  { %1783 = vmatprep.subr.bf16.mxu0 %v2548_v49 }
  0xb1   :  { %1823 = vmatpush1.bf16.msra.mxu1 %v2575_v57  ;;  %v3280_v57 = vsub.s32 7, %v233_v16 }
  0xb2   :  { %1824 = vmatprep.subr.bf16.mxu1 %v2581_v59 }
  0xb3   :  { %1784 = vmatpush1.bf16.msra.mxu0 %v2546_v51 }
  0xb4   :  { %1785 = vmatprep.subr.bf16.mxu0 %v2554_v53 }
  0xb5   :  { %1825 = vmatpush1.bf16.msra.mxu1 %v2579_v61 }
  0xb6   :  { %1826 = vmatprep.subr.bf16.mxu1 %v2585_v63 }
  0xb7   :  { %1786 = vmatpush1.bf16.msra.mxu0 %v2552_v54 }
  0xb8   :  { %1787 = vmatprep.subr.bf16.mxu0 %v2560_v56  ;;  %v3278_v56 = vsub.s32 6, %v233_v16 }
  0xb9   :  { %1827 = vmatpush1.bf16.msra.mxu1 %v2583_v0 }
  0xba   :  { %1828 = vmatprep.subr.bf16.mxu1 %v2589_v3  ;;  %v259_v59 = vrot.slane %v224_v18, %v3278_v56 }
  0xbb   :  { %1788 = vmatpush1.bf16.msra.mxu0 %v2558_v58 }
  0xbc   :  { %1789 = vmatprep.subr.bf16.mxu0 %v2563_v60  ;;  %v263_v60 = vrot.slane %v224_v18, %v3280_v57 }
  0xbd   :  { %1829 = vmatpush1.bf16.msra.mxu1 %v2587_v5 }
  0xbe   :  { %1830 = vmatprep.subr.bf16.mxu1 %v2593_v7  ;;  %v225_v7 = vld [vmem:[%s3344_s2 + $0x8] sm:$0xff] }
  0xbf   :  { %1790 = vmatpush1.bf16.msra.mxu0 %v2561_v62 }
  0xc0   :  { %2277 = vmatprep.subr.bf16.mxu0 %v2598_v4 }
  0xc2   :  { %1808 = vmatmul.mubr.bf16.vlgmr.msra.gmra.mrb[20].mxu0 %v2709_v29  ;;  %v2591_v29 = vld [vmem:[%s3342_s1 + $0x5d0] ss:$100 sps:$4 sm:$0xff]  }
  0xc3   :  { %2278 = vmatpush3.bf16.msra.mxu0 %v2570_v2  ;;  %2293 = vmatprep.mubr.msk.bf16.mxu0 %vm2599_vm0, %v2598_v4 }
  0xc4   :  { %2279 = vmatprep.subr.bf16.mxu0 %v2598_v4  ;;  %1831 = vmatpush1.bf16.msra.mxu1 %v2591_v29  ;;  %v267_v29 = vrot.slane %v225_v7, %v3251_v17 }
  0xc7   :  { %2280 = vmatpush3.bf16.msra.mxu0 %v2574_v6  ;;  %1849 = vmatmul.mubr.bf16.vlgmr.msra.gmra.mrb[20].mxu1 %v2596_v10 }
  0xc8   :  { %2281 = vmatprep.subr.bf16.mxu0 %v2598_v4 }
  0xcb   :  { %2282 = vmatpush3.bf16.msra.mxu0 %v2578_v8  ;;  %v271_v8 = vrot.slane %v225_v7, %v3256_v19 }
  0xcc   :  { %2283 = vmatprep.subr.bf16.mxu0 %v2598_v4 }
  0xcf   :  { %2284 = vmatpush3.bf16.msra.mxu0 %v2582_v9 }
  0xd0   :  { %2285 = vmatprep.subr.bf16.mxu0 %v2598_v4 }
  0xd3   :  { %2286 = vmatpush3.bf16.msra.mxu0 %v2586_v11 }
  0xd4   :  { %2287 = vmatprep.subr.bf16.mxu0 %v2598_v4 }
  0xd7   :  { %2288 = vmatpush3.bf16.msra.mxu0 %v2590_v12 }
  0xd8   :  { %2289 = vmatprep.subr.bf16.mxu0 %v2598_v4 }
  0xdb   :  { %2290 = vmatpush3.bf16.msra.mxu0 %v2594_v13 }
  0xdc   :  { %2291 = vmatprep.subr.bf16.mxu0 %v2598_v4 }
  0xdf   :  { %2292 = vmatpush3.bf16.msra.mxu0 %v2595_v14 }
  0xe2   :  { %2294 = vmatmul.mubr.bf16.vlgmr.msra.gmra.mrb[24].mxu0 %v2596_v10 }
  0xf5   :  { %v1399_v22 = vpop.f32.mrb[0].mxu0 }
  0xf6   :  { %v1400_v23 = vadd.f32 %v1399_v22, %v235_v20  ;;  %v1401_v24 = vpop.f32.mrb[1].mxu0  ;;  %v275_v20 = vrot.slane %v225_v7, %v3260_v31 }
  0xf7   :  { %v1402_v25 = vadd.f32 %v1401_v24, %v239_v21  ;;  %v1403_v26 = vpop.f32.mrb[2].mxu0  ;;  %v1440_v36 = vpop.f32.mrb[0].mxu1  ;;  %v279_v21 = vrot.slane %v225_v7, %v3262_v32 }
  0xf8   :  { %v1897_v27 = vmax.f32 %v1400_v23, 0.0  ;;  %v1404_v28 = vpop.f32.mrb[3].mxu0  ;;  %v1441_v37 = vadd.f32 %v1440_v36, %v243_v34  ;;  %v1442_v38 = vpop.f32.mrb[1].mxu1  ;;  %v283_v34 = vrot.slane %v225_v7, %v3272_v45 }
  0xf9   :  { %v1898_v30 = vmax.f32 %v1402_v25, 0.0  ;;  %v1443_v39 = vadd.f32 %v1442_v38, %v247_v35  ;;  %v1444_v40 = vpop.f32.mrb[2].mxu1  ;;  %v287_v35 = vrot.slane %v225_v7, %v3274_v46 }
  0xfa   :  { %v1899_v41 = vmax.f32 %v1441_v37, 0.0  ;;  %v1445_v42 = vpop.f32.mrb[3].mxu1 }
  0xfb   :  { %v2255_v33 = vpack.c.bf16 %v1898_v30, %v1897_v27  ;;  %v1900_v43 = vmax.f32 %v1443_v39, 0.0 }
  0xfd   :  { %2023 = vst [vmem:[%s3345_s3] sm:$0xff] %v2255_v33  ;;  %v2256_v44 = vpack.c.bf16 %v1900_v43, %v1899_v41 }
  0xff   :  { %2024 = vst [vmem:[%s3345_s3 + $0x8] sm:$0xff] %v2256_v44 }
 0x115   :  { %v1481_v49 = vpop.f32.mrb[4].mxu0 }
 0x116   :  { %v1482_v50 = vadd.f32 %v1481_v49, %v251_v47  ;;  %v1483_v51 = vpop.f32.mrb[5].mxu0  ;;  %v291_v47 = vrot.slane %v225_v7, %v3278_v56 }
 0x117   :  { %v1484_v52 = vadd.f32 %v1483_v51, %v255_v48  ;;  %v1485_v53 = vpop.f32.mrb[6].mxu0  ;;  %v1522_v61 = vpop.f32.mrb[4].mxu1  ;;  %v295_v48 = vrot.slane %v225_v7, %v3280_v57 }
 0x118   :  { %v1901_v1 = vmax.f32 %v1482_v50, 0.0  ;;  %v1486_v54 = vpop.f32.mrb[7].mxu0  ;;  %v1523_v62 = vadd.f32 %v1522_v61, %v259_v59  ;;  %v1524_v63 = vpop.f32.mrb[5].mxu1  ;;  %v226_v59 = vld [vmem:[%s3344_s2 + $0x10] sm:$0xff] }
 0x119   :  { %v1902_v55 = vmax.f32 %v1484_v52, 0.0  ;;  %v1525_v0 = vadd.f32 %v1524_v63, %v263_v60  ;;  %v1526_v2 = vpop.f32.mrb[6].mxu1  ;;  %v299_v60 = vrot.slane %v226_v59, %v3251_v17  ;;  %v303_v61 = vrot.slane %v226_v59, %v3256_v19 }
 0x11a   :  { %v1903_v3 = vmax.f32 %v1523_v62, 0.0  ;;  %v1527_v4 = vpop.f32.mrb[7].mxu1 }
 0x11b   :  { %v2257_v58 = vpack.c.bf16 %v1902_v55, %v1901_v1  ;;  %v1904_v5 = vmax.f32 %v1525_v0, 0.0 }
 0x11d   :  { %2025 = vst [vmem:[%s3345_s3 + $0x10] sm:$0xff] %v2257_v58  ;;  %v2258_v6 = vpack.c.bf16 %v1904_v5, %v1903_v3 }
 0x11f   :  { %2026 = vst [vmem:[%s3345_s3 + $0x18] sm:$0xff] %v2258_v6 }
 0x135   :  { %v1563_v9 = vpop.f32.mrb[8].mxu0 }
 0x136   :  { %v1564_v10 = vadd.f32 %v1563_v9, %v267_v29  ;;  %v1565_v11 = vpop.f32.mrb[9].mxu0  ;;  %v307_v29 = vrot.slane %v226_v59, %v3260_v31 }
 0x137   :  { %v1566_v12 = vadd.f32 %v1565_v11, %v271_v8  ;;  %v1567_v13 = vpop.f32.mrb[10].mxu0  ;;  %v1604_v22 = vpop.f32.mrb[8].mxu1  ;;  %v311_v8 = vrot.slane %v226_v59, %v3262_v32 }
 0x138   :  { %v1905_v14 = vmax.f32 %v1564_v10, 0.0  ;;  %v1568_v15 = vpop.f32.mrb[11].mxu0  ;;  %v1605_v23 = vadd.f32 %v1604_v22, %v275_v20  ;;  %v1606_v24 = vpop.f32.mrb[9].mxu1 }
 0x139   :  { %v1906_v16 = vmax.f32 %v1566_v12, 0.0  ;;  %v1607_v25 = vadd.f32 %v1606_v24, %v279_v21  ;;  %v1608_v26 = vpop.f32.mrb[10].mxu1 }
 0x13a   :  { %v1907_v27 = vmax.f32 %v1605_v23, 0.0  ;;  %v1609_v28 = vpop.f32.mrb[11].mxu1 }
 0x13b   :  { %v2259_v18 = vpack.c.bf16 %v1906_v16, %v1905_v14  ;;  %v1908_v30 = vmax.f32 %v1607_v25, 0.0  ;;  %v315_v16 = vrot.slane %v226_v59, %v3272_v45  ;;  %v327_v28 = vrot.slane %v226_v59, %v3280_v57 }
 0x13d   :  { %2027 = vst [vmem:[%s3345_s3 + $0x20] sm:$0xff] %v2259_v18  ;;  %v2260_v33 = vpack.c.bf16 %v1908_v30, %v1907_v27  ;;  %v319_v18 = vrot.slane %v226_v59, %v3274_v46  ;;  %v323_v27 = vrot.slane %v226_v59, %v3278_v56 }
 0x13f   :  { %2028 = vst [vmem:[%s3345_s3 + $0x28] sm:$0xff] %v2260_v33 }
 0x155   :  { %v1645_v36 = vpop.f32.mrb[12].mxu0 }
 0x156   :  { %v1646_v37 = vadd.f32 %v1645_v36, %v283_v34  ;;  %v1647_v38 = vpop.f32.mrb[13].mxu0 }
 0x157   :  { %v1648_v39 = vadd.f32 %v1647_v38, %v287_v35  ;;  %v1649_v40 = vpop.f32.mrb[14].mxu0  ;;  %v1686_v49 = vpop.f32.mrb[12].mxu1 }
 0x158   :  { %v1909_v41 = vmax.f32 %v1646_v37, 0.0  ;;  %v1650_v42 = vpop.f32.mrb[15].mxu0  ;;  %v1687_v50 = vadd.f32 %v1686_v49, %v291_v47  ;;  %v1688_v51 = vpop.f32.mrb[13].mxu1 }
 0x159   :  { %v1910_v43 = vmax.f32 %v1648_v39, 0.0  ;;  %v1689_v52 = vadd.f32 %v1688_v51, %v295_v48  ;;  %v1690_v53 = vpop.f32.mrb[14].mxu1  ;;  %v2041_v39 = vld [vmem:[%s3344_s2 + $0x18] ss:$0 sm:$0xff] }
 0x15a   :  { %v1911_v1 = vmax.f32 %v1687_v50, 0.0  ;;  %v1691_v54 = vpop.f32.mrb[15].mxu1 }
 0x15b   :  { %v2261_v44 = vpack.c.bf16 %v1910_v43, %v1909_v41  ;;  %v1912_v55 = vmax.f32 %v1689_v52, 0.0 }
 0x15d   :  { %2029 = vst [vmem:[%s3345_s3 + $0x30] sm:$0xff] %v2261_v44  ;;  %v2262_v58 = vpack.c.bf16 %v1912_v55, %v1911_v1 }
 0x15f   :  { %2030 = vst [vmem:[%s3345_s3 + $0x38] sm:$0xff] %v2262_v58 }
 0x175   :  { %v1727_v62 = vpop.f32.mrb[16].mxu0 }
 0x176   :  { %v1728_v63 = vadd.f32 %v1727_v62, %v299_v60  ;;  %v1729_v0 = vpop.f32.mrb[17].mxu0 }
 0x177   :  { %v1730_v2 = vadd.f32 %v1729_v0, %v303_v61  ;;  %v1731_v3 = vpop.f32.mrb[18].mxu0  ;;  %v1768_v17 = vpop.f32.mrb[16].mxu1 }
 0x178   :  { %v1913_v4 = vmax.f32 %v1728_v63, 0.0  ;;  %v1732_v5 = vpop.f32.mrb[19].mxu0  ;;  %v1769_v9 = vadd.f32 %v1768_v17, %v307_v29  ;;  %v1770_v19 = vpop.f32.mrb[17].mxu1 }
 0x179   :  { %v1914_v6 = vmax.f32 %v1730_v2, 0.0  ;;  %v1771_v10 = vadd.f32 %v1770_v19, %v311_v8  ;;  %v1772_v11 = vpop.f32.mrb[18].mxu1 }
 0x17a   :  { %v1915_v12 = vmax.f32 %v1769_v9, 0.0  ;;  %v1773_v13 = vpop.f32.mrb[19].mxu1 }
 0x17b   :  { %v2263_v7 = vpack.c.bf16 %v1914_v6, %v1913_v4  ;;  %v1916_v14 = vmax.f32 %v1771_v10, 0.0 }
 0x17d   :  { %2031 = vst [vmem:[%s3345_s3 + $0x40] sm:$0xff] %v2263_v7  ;;  %v2264_v15 = vpack.c.bf16 %v1916_v14, %v1915_v12 }
 0x17f   :  { %2032 = vst [vmem:[%s3345_s3 + $0x48] sm:$0xff] %v2264_v15 }
 0x195   :  { %v1809_v31 = vpop.f32.mrb[20].mxu0 }
 0x196   :  { %v1810_v20 = vadd.f32 %v1809_v31, %v315_v16  ;;  %v1811_v32 = vpop.f32.mrb[21].mxu0 }
 0x197   :  { %v1812_v21 = vadd.f32 %v1811_v32, %v319_v18  ;;  %v1813_v22 = vpop.f32.mrb[22].mxu0 }
 0x198   :  { %v1917_v23 = vmax.f32 %v1810_v20, 0.0  ;;  %v1814_v24 = vpop.f32.mrb[23].mxu0 }
 0x199   :  { %v1918_v25 = vmax.f32 %v1812_v21, 0.0 }
 0x19a   :  { %v1850_v45 = vpop.f32.mrb[20].mxu1 }
 0x19b   :  { %v2265_v26 = vpack.c.bf16 %v1918_v25, %v1917_v23  ;;  %v1851_v30 = vadd.f32 %v1850_v45, %v323_v27  ;;  %v1852_v46 = vpop.f32.mrb[21].mxu1 }
 0x19c   :  { %v1853_v33 = vadd.f32 %v1852_v46, %v327_v28  ;;  %v1854_v34 = vpop.f32.mrb[22].mxu1 }
 0x19d   :  { %2033 = vst [vmem:[%s3345_s3 + $0x50] sm:$0xff] %v2265_v26  ;;  %v1919_v35 = vmax.f32 %v1851_v30, 0.0  ;;  %v1855_v36 = vpop.f32.mrb[23].mxu1 }
 0x19e   :  { %v1920_v37 = vmax.f32 %v1853_v33, 0.0 }
 0x1a0   :  { %v2266_v38 = vpack.c.bf16 %v1920_v37, %v1919_v35 }
 0x1a2   :  { %2034 = vst [vmem:[%s3345_s3 + $0x58] sm:$0xff] %v2266_v38 }
 0x1b5   :  { %v1891_v56 = vpop.f32.mrb[24].mxu0 }
 0x1b6   :  { %v1892_v40 = vadd.f32 %v2041_v39, %v1891_v56  ;;  %v2295_v57 = vpop.f32.mrb[25].mxu0 }
 0x1b7   :  { %v1894_v41 = vpop.f32.mrb[26].mxu0 }
 0x1b8   :  { %v1921_v42 = vmax.f32 %v1892_v40, 0.0  ;;  %v2296_v43 = vpop.f32.mrb[27].mxu0 }
 0x1ba   :  { %v2267_v44 = vpack.c.bf16 %v1921_v42, %v1921_v42 }
 0x1bc   :  { %2036 = vst.msk [vmem:[%s3345_s3 + $0x60] sm:$0xf] %vm2035_vm1, %v2267_v44 }

// kernel: vae_forward.9
= control target key start
LH: loop header
LB: loop body
LE: loop exit
PB: predicated region body
PF: predicated region fallthrough
CT: control target
= control target key end

     0   :  { %vm5848_vm0 = vmmov 0   ;;  %vm4382_vm1 = vcmask 261120   ;;  %s7292_s1 = inlined_call_operand.vmem [shape: bf16[3200,32], index: 1, kind: input, shape index: {}]   ;;  %s7293_s0 = inlined_call_operand.vmem [shape: bf16[8,3200], index: 0, kind: input, shape index: {}]   ;;  %s7294_s3 = inlined_call_operand.vmem [shape: bf16[3200,32], index: 3, kind: input, shape index: {}]   ;;  %s7295_s2 = inlined_call_operand.vmem [shape: f32[1,32], index: 2, kind: input, shape index: {}]   ;;  %s7296_s6 = inlined_call_operand.vmem [shape: f32[8,32], index: 6, kind: output, shape index: {0}]   ;;  %s7297_s4 = inlined_call_operand.vmem [shape: f32[1,32], index: 4, kind: input, shape index: {}]   ;;  %s7298_s7 = inlined_call_operand.vmem [shape: f32[8,32], index: 7, kind: output, shape index: {1}]   ;;  %s7299_s5 = inlined_call_operand.vmem [shape: f32[8,32], index: 5, kind: input, shape index: {}]   ;;  %s7300_s8 = inlined_call_operand.vmem [shape: f32[8,32], index: 8, kind: output, shape index: {2}]  }
   0x1   :  { %v5419_v0 = vld [vmem:[%s7292_s1 + $0x40] sm:$0xff]   ;;  %v5423_v4 = vld [vmem:[%s7292_s1 + $0x48] sm:$0xff]   ;;  %v5427_v8 = vld [vmem:[%s7292_s1 + $0x50] sm:$0xff]  }
   0x2   :  { %v5420_v1 = vld [vmem:[%s7292_s1] sm:$0xff]   ;;  %4831 = vmatprep.subr.bf16.mxu0 %v5419_v0  ;;  %v5424_v5 = vld [vmem:[%s7292_s1 + $0x8] sm:$0xff]   ;;  %v5428_v9 = vld [vmem:[%s7292_s1 + $0x10] sm:$0xff]  }
   0x3   :  { %v5421_v2 = vld [vmem:[%s7292_s1 + $0xc0] sm:$0xff]   ;;  %4832 = vmatpush3.bf16.msra.mxu0 %v5420_v1  ;;  %v5425_v6 = vld [vmem:[%s7292_s1 + $0xc8] sm:$0xff]   ;;  %v5429_v10 = vld [vmem:[%s7292_s1 + $0xd0] sm:$0xff]  }
   0x4   :  { %v5422_v3 = vld [vmem:[%s7292_s1 + $0x80] sm:$0xff]   ;;  %4853 = vmatprep.subr.bf16.mxu1 %v5421_v2  ;;  %4833 = vmatprep.subr.bf16.mxu0 %v5423_v4  ;;  %v5426_v7 = vld [vmem:[%s7292_s1 + $0x88] sm:$0xff]   ;;  %v5430_v11 = vld [vmem:[%s7292_s1 + $0x90] sm:$0xff]  }
   0x5   :  { %4854 = vmatpush3.bf16.msra.mxu1 %v5422_v3  ;;  %v5431_v12 = vld [vmem:[%s7292_s1 + $0x58] sm:$0xff]   ;;  %v5435_v16 = vld [vmem:[%s7292_s1 + $0x60] sm:$0xff]   ;;  %v5439_v20 = vld [vmem:[%s7292_s1 + $0x68] sm:$0xff]  }
   0x6   :  { %4855 = vmatprep.subr.bf16.mxu1 %v5425_v6  ;;  %v5432_v13 = vld [vmem:[%s7292_s1 + $0x18] sm:$0xff]   ;;  %v5436_v17 = vld [vmem:[%s7292_s1 + $0x20] sm:$0xff]   ;;  %v5440_v21 = vld [vmem:[%s7292_s1 + $0x28] sm:$0xff]  }
   0x7   :  { %4834 = vmatpush3.bf16.msra.mxu0 %v5424_v5  ;;  %v5433_v14 = vld [vmem:[%s7292_s1 + $0xd8] sm:$0xff]   ;;  %v5437_v18 = vld [vmem:[%s7292_s1 + $0xe0] sm:$0xff]   ;;  %v5441_v22 = vld [vmem:[%s7292_s1 + $0xe8] sm:$0xff]  }
   0x8   :  { %4835 = vmatprep.subr.bf16.mxu0 %v5427_v8  ;;  %v5434_v15 = vld [vmem:[%s7292_s1 + $0x98] sm:$0xff]   ;;  %v5438_v19 = vld [vmem:[%s7292_s1 + $0xa0] sm:$0xff]   ;;  %v5442_v23 = vld [vmem:[%s7292_s1 + $0xa8] sm:$0xff]  }
   0x9   :  { %4856 = vmatpush3.bf16.msra.mxu1 %v5426_v7  ;;  %v5443_v24 = vld [vmem:[%s7292_s1 + $0x70] sm:$0xff]   ;;  %v5447_v28 = vld [vmem:[%s7292_s1 + $0x78] sm:$0xff]   ;;  %v27_v31 = vld [vmem:[%s7293_s0] sm:$0xff] }
   0xa   :  { %4857 = vmatprep.subr.bf16.mxu1 %v5429_v10  ;;  %v5444_v25 = vld [vmem:[%s7292_s1 + $0x30] sm:$0xff]   ;;  %v5448_v29 = vld [vmem:[%s7292_s1 + $0x38] sm:$0xff]   ;;  %v5990_v32 = vcombine.low %v27_v31, %v27_v31  ;;  %v5992_v33 = vcombine.high %v27_v31, %v27_v31  ;;  %v5453_v35 = vld [vmem:[%s7292_s1 + $0x140] sm:$0xff]  }
   0xb   :  { %4836 = vmatpush3.bf16.msra.mxu0 %v5428_v9  ;;  %v5445_v26 = vld [vmem:[%s7292_s1 + $0xf0] sm:$0xff]   ;;  %v5449_v30 = vld [vmem:[%s7292_s1 + $0xf8] sm:$0xff]   ;;  %v28_v36 = vld [vmem:[%s7293_s0 + $0x8] sm:$0xff] }
   0xc   :  { %4837 = vmatprep.subr.bf16.mxu0 %v5431_v12  ;;  %v5446_v27 = vld [vmem:[%s7292_s1 + $0xb0] sm:$0xff]   ;;  %v5452_v34 = vld [vmem:[%s7292_s1 + $0xb8] sm:$0xff]   ;;  %1767 = vmatprep.mubr.bf16.mxu0 %v5992_v33  ;;  %v6004_v37 = vcombine.low %v28_v36, %v28_v36  ;;  %v6006_v38 = vcombine.high %v28_v36, %v28_v36  ;;  %v5456_v39 = vld [vmem:[%s7292_s1 + $0x100] sm:$0xff]  }
   0xd   :  { %4858 = vmatpush3.bf16.msra.mxu1 %v5430_v11  ;;  %v5457_v40 = vld [vmem:[%s7292_s1 + $0x1c0] sm:$0xff]   ;;  %v5459_v42 = vld [vmem:[%s7292_s1 + $0x148] sm:$0xff]   ;;  %v5463_v46 = vld [vmem:[%s7292_s1 + $0x150] sm:$0xff]  }
   0xe   :  { %4859 = vmatprep.subr.bf16.mxu1 %v5433_v14  ;;  %1807 = vmatprep.mubr.bf16.mxu1 %v6006_v38  ;;  %v5458_v41 = vld [vmem:[%s7292_s1 + $0x180] sm:$0xff]   ;;  %v5460_v43 = vld [vmem:[%s7292_s1 + $0x108] sm:$0xff]   ;;  %v5464_v47 = vld [vmem:[%s7292_s1 + $0x110] sm:$0xff]  }
   0xf   :  { %4838 = vmatpush3.bf16.msra.mxu0 %v5432_v13  ;;  %v5461_v44 = vld [vmem:[%s7292_s1 + $0x1c8] sm:$0xff]   ;;  %v5465_v48 = vld [vmem:[%s7292_s1 + $0x1d0] sm:$0xff]   ;;  %v5467_v50 = vld [vmem:[%s7292_s1 + $0x158] sm:$0xff]  }
  0x10   :  { %4839 = vmatprep.subr.bf16.mxu0 %v5435_v16  ;;  %v5462_v45 = vld [vmem:[%s7292_s1 + $0x188] sm:$0xff]   ;;  %v5466_v49 = vld [vmem:[%s7292_s1 + $0x190] sm:$0xff]   ;;  %v5468_v51 = vld [vmem:[%s7292_s1 + $0x118] sm:$0xff]  }
  0x11   :  { %4860 = vmatpush3.bf16.msra.mxu1 %v5434_v15  ;;  %v5469_v52 = vld [vmem:[%s7292_s1 + $0x1d8] sm:$0xff]   ;;  %v5471_v54 = vld [vmem:[%s7292_s1 + $0x160] sm:$0xff]   ;;  %v5475_v58 = vld [vmem:[%s7292_s1 + $0x168] sm:$0xff]  }
  0x12   :  { %4861 = vmatprep.subr.bf16.mxu1 %v5437_v18  ;;  %v5470_v53 = vld [vmem:[%s7292_s1 + $0x198] sm:$0xff]   ;;  %v5472_v55 = vld [vmem:[%s7292_s1 + $0x120] sm:$0xff]   ;;  %v5476_v59 = vld [vmem:[%s7292_s1 + $0x128] sm:$0xff]  }
  0x13   :  { %4840 = vmatpush3.bf16.msra.mxu0 %v5436_v17  ;;  %v5473_v56 = vld [vmem:[%s7292_s1 + $0x1e0] sm:$0xff]   ;;  %v5477_v60 = vld [vmem:[%s7292_s1 + $0x1e8] sm:$0xff]   ;;  %v5479_v62 = vld [vmem:[%s7292_s1 + $0x170] sm:$0xff]  }
  0x14   :  { %4841 = vmatprep.subr.bf16.mxu0 %v5439_v20  ;;  %v5474_v57 = vld [vmem:[%s7292_s1 + $0x1a0] sm:$0xff]   ;;  %v5478_v61 = vld [vmem:[%s7292_s1 + $0x1a8] sm:$0xff]   ;;  %v5480_v63 = vld [vmem:[%s7292_s1 + $0x130] sm:$0xff]  }
  0x15   :  { %4862 = vmatpush3.bf16.msra.mxu1 %v5438_v19  ;;  %v5481_v0 = vld [vmem:[%s7292_s1 + $0x1f0] sm:$0xff]   ;;  %v5483_v2 = vld [vmem:[%s7292_s1 + $0x178] sm:$0xff]   ;;  %v5489_v9 = vld [vmem:[%s7292_s1 + $0x240] sm:$0xff]  }
  0x16   :  { %4863 = vmatprep.subr.bf16.mxu1 %v5441_v22  ;;  %v5482_v1 = vld [vmem:[%s7292_s1 + $0x1b0] sm:$0xff]   ;;  %v5484_v3 = vld [vmem:[%s7292_s1 + $0x138] sm:$0xff]   ;;  %v5492_v13 = vld [vmem:[%s7292_s1 + $0x200] sm:$0xff]  }
  0x17   :  { %4842 = vmatpush3.bf16.msra.mxu0 %v5440_v21  ;;  %v5485_v4 = vld [vmem:[%s7292_s1 + $0x1f8] sm:$0xff]   ;;  %v29_v5 = vld [vmem:[%s7293_s0 + $0x10] sm:$0xff]  ;;  %v5493_v14 = vld [vmem:[%s7292_s1 + $0x2c0] sm:$0xff]  }
  0x18   :  { %4843 = vmatprep.subr.bf16.mxu0 %v5443_v24  ;;  %v6104_v6 = vcombine.low %v29_v5, %v29_v5  ;;  %v6106_v7 = vcombine.high %v29_v5, %v29_v5  ;;  %v5488_v8 = vld [vmem:[%s7292_s1 + $0x1b8] sm:$0xff]   ;;  %v5494_v15 = vld [vmem:[%s7292_s1 + $0x280] sm:$0xff]   ;;  %v5495_v16 = vld [vmem:[%s7292_s1 + $0x248] sm:$0xff]  }
  0x19   :  { %4864 = vmatpush3.bf16.msra.mxu1 %v5442_v23  ;;  %v30_v10 = vld [vmem:[%s7293_s0 + $0x18] sm:$0xff]  ;;  %v5496_v17 = vld [vmem:[%s7292_s1 + $0x208] sm:$0xff]   ;;  %v5499_v20 = vld [vmem:[%s7292_s1 + $0x250] sm:$0xff]  }
  0x1a   :  { %4865 = vmatprep.subr.bf16.mxu1 %v5445_v26  ;;  %v6119_v11 = vcombine.low %v30_v10, %v30_v10  ;;  %v6121_v12 = vcombine.high %v30_v10, %v30_v10  ;;  %v5497_v18 = vld [vmem:[%s7292_s1 + $0x2c8] sm:$0xff]   ;;  %v5500_v21 = vld [vmem:[%s7292_s1 + $0x210] sm:$0xff]   ;;  %v5503_v24 = vld [vmem:[%s7292_s1 + $0x258] sm:$0xff]  }
  0x1b   :  { %4844 = vmatpush3.bf16.msra.mxu0 %v5444_v25  ;;  %v5498_v19 = vld [vmem:[%s7292_s1 + $0x288] sm:$0xff]   ;;  %v5501_v22 = vld [vmem:[%s7292_s1 + $0x2d0] sm:$0xff]   ;;  %v5504_v25 = vld [vmem:[%s7292_s1 + $0x218] sm:$0xff]  }
  0x1c   :  { %4845 = vmatprep.subr.bf16.mxu0 %v5447_v28  ;;  %v5502_v23 = vld [vmem:[%s7292_s1 + $0x290] sm:$0xff]   ;;  %v5505_v26 = vld [vmem:[%s7292_s1 + $0x2d8] sm:$0xff]   ;;  %v5507_v28 = vld [vmem:[%s7292_s1 + $0x260] sm:$0xff]  }
  0x1d   :  { %4866 = vmatpush3.bf16.msra.mxu1 %v5446_v27  ;;  %v5506_v27 = vld [vmem:[%s7292_s1 + $0x298] sm:$0xff]   ;;  %v5510_v31 = vld [vmem:[%s7292_s1 + $0x2a0] sm:$0xff]   ;;  %v5513_v36 = vld [vmem:[%s7292_s1 + $0x2e8] sm:$0xff]  }
  0x1e   :  { %4867 = vmatprep.subr.bf16.mxu1 %v5449_v30  ;;  %v5509_v30 = vld [vmem:[%s7292_s1 + $0x2e0] sm:$0xff]   ;;  %v5542_v5 = vld [vmem:[%s7292_s1 + $0x398] sm:$0xff]  }
  0x1f   :  { %4846 = vmatpush3.bf16.msra.mxu0 %v5448_v29  ;;  %v5508_v29 = vld [vmem:[%s7292_s1 + $0x220] sm:$0xff]  }
  0x20   :  { %4875 = vmatprep.subr.bf16.mxu0 %v5453_v35  ;;  %v5512_v35 = vld [vmem:[%s7292_s1 + $0x228] sm:$0xff]   ;;  %v5545_v10 = vld [vmem:[%s7292_s1 + $0x3e0] sm:$0xff]  }
  0x21   :  { %4868 = vmatpush3.bf16.msra.mxu1 %v5452_v34  ;;  %v5511_v34 = vld [vmem:[%s7292_s1 + $0x268] sm:$0xff]  }
  0x22   :  { %1768 = vmatmul.mubr.bf16.vlgmr.msra.gmra.mrb[0].mxu0 %v5990_v32  ;;  %4897 = vmatprep.subr.bf16.mxu1 %v5457_v40  ;;  %v5515_v40 = vld [vmem:[%s7292_s1 + $0x270] sm:$0xff]  }
  0x23   :  { %4876 = vmatpush3.bf16.msra.mxu0 %v5456_v39  ;;  %1847 = vmatprep.mubr.bf16.mxu0 %v6106_v7  ;;  %v5514_v39 = vld [vmem:[%s7292_s1 + $0x2a8] sm:$0xff]  }
  0x24   :  { %1808 = vmatmul.mubr.bf16.vlgmr.msra.gmra.mrb[0].mxu1 %v6004_v37  ;;  %4877 = vmatprep.subr.bf16.mxu0 %v5459_v42  ;;  %v5517_v42 = vld [vmem:[%s7292_s1 + $0x2f0] sm:$0xff]  }
  0x25   :  { %4898 = vmatpush3.bf16.msra.mxu1 %v5458_v41  ;;  %1887 = vmatprep.mubr.bf16.mxu1 %v6121_v12  ;;  %v5516_v41 = vld [vmem:[%s7292_s1 + $0x230] sm:$0xff]  }
  0x26   :  { %4899 = vmatprep.subr.bf16.mxu1 %v5461_v44  ;;  %v5519_v44 = vld [vmem:[%s7292_s1 + $0x278] sm:$0xff]  }
  0x27   :  { %4878 = vmatpush3.bf16.msra.mxu0 %v5460_v43  ;;  %v5518_v43 = vld [vmem:[%s7292_s1 + $0x2b0] sm:$0xff]  }
  0x28   :  { %4879 = vmatprep.subr.bf16.mxu0 %v5463_v46  ;;  %v5521_v46 = vld [vmem:[%s7292_s1 + $0x2f8] sm:$0xff]  }
  0x29   :  { %4900 = vmatpush3.bf16.msra.mxu1 %v5462_v45  ;;  %v5520_v45 = vld [vmem:[%s7292_s1 + $0x238] sm:$0xff]  }
  0x2a   :  { %4901 = vmatprep.subr.bf16.mxu1 %v5465_v48 }
  0x2b   :  { %4880 = vmatpush3.bf16.msra.mxu0 %v5464_v47  ;;  %v31_v47 = vld [vmem:[%s7293_s0 + $0x20] sm:$0xff] }
  0x2c   :  { %4881 = vmatprep.subr.bf16.mxu0 %v5467_v50  ;;  %v6218_v48 = vcombine.low %v31_v47, %v31_v47  ;;  %v5524_v50 = vld [vmem:[%s7292_s1 + $0x2b8] sm:$0xff]  }
  0x2d   :  { %4902 = vmatpush3.bf16.msra.mxu1 %v5466_v49  ;;  %v6220_v49 = vcombine.high %v31_v47, %v31_v47  ;;  %v5574_v47 = vld [vmem:[%s7292_s1 + $0x490] sm:$0xff]  }
  0x2e   :  { %4903 = vmatprep.subr.bf16.mxu1 %v5469_v52  ;;  %v32_v52 = vld [vmem:[%s7293_s0 + $0x28] sm:$0xff] }
  0x2f   :  { %4882 = vmatpush3.bf16.msra.mxu0 %v5468_v51  ;;  %v5525_v51 = vld [vmem:[%s7292_s1 + $0x340] sm:$0xff]  }
  0x30   :  { %4883 = vmatprep.subr.bf16.mxu0 %v5471_v54  ;;  %v6234_v54 = vcombine.high %v32_v52, %v32_v52 }
  0x31   :  { %4904 = vmatpush3.bf16.msra.mxu1 %v5470_v53  ;;  %v6232_v53 = vcombine.low %v32_v52, %v32_v52  ;;  %v5577_v52 = vld [vmem:[%s7292_s1 + $0x4d8] sm:$0xff]  }
  0x32   :  { %4905 = vmatprep.subr.bf16.mxu1 %v5473_v56  ;;  %v5529_v56 = vld [vmem:[%s7292_s1 + $0x3c0] sm:$0xff]  }
  0x33   :  { %4884 = vmatpush3.bf16.msra.mxu0 %v5472_v55  ;;  %v5528_v55 = vld [vmem:[%s7292_s1 + $0x300] sm:$0xff]  }
  0x34   :  { %4885 = vmatprep.subr.bf16.mxu0 %v5475_v58  ;;  %v5531_v58 = vld [vmem:[%s7292_s1 + $0x348] sm:$0xff]  }
  0x35   :  { %4906 = vmatpush3.bf16.msra.mxu1 %v5474_v57  ;;  %v5530_v57 = vld [vmem:[%s7292_s1 + $0x380] sm:$0xff]  }
  0x36   :  { %4907 = vmatprep.subr.bf16.mxu1 %v5477_v60  ;;  %v5533_v60 = vld [vmem:[%s7292_s1 + $0x3c8] sm:$0xff]  }
  0x37   :  { %4886 = vmatpush3.bf16.msra.mxu0 %v5476_v59  ;;  %v5532_v59 = vld [vmem:[%s7292_s1 + $0x308] sm:$0xff]  }
  0x38   :  { %4887 = vmatprep.subr.bf16.mxu0 %v5479_v62  ;;  %v5535_v62 = vld [vmem:[%s7292_s1 + $0x350] sm:$0xff]  }
  0x39   :  { %4908 = vmatpush3.bf16.msra.mxu1 %v5478_v61  ;;  %v5534_v61 = vld [vmem:[%s7292_s1 + $0x388] sm:$0xff]  }
  0x3a   :  { %4909 = vmatprep.subr.bf16.mxu1 %v5481_v0  ;;  %v5537_v0 = vld [vmem:[%s7292_s1 + $0x3d0] sm:$0xff]  }
  0x3b   :  { %4888 = vmatpush3.bf16.msra.mxu0 %v5480_v63  ;;  %v5536_v63 = vld [vmem:[%s7292_s1 + $0x310] sm:$0xff]  }
  0x3c   :  { %4889 = vmatprep.subr.bf16.mxu0 %v5483_v2  ;;  %v5539_v2 = vld [vmem:[%s7292_s1 + $0x358] sm:$0xff]  }
  0x3d   :  { %4910 = vmatpush3.bf16.msra.mxu1 %v5482_v1  ;;  %v5538_v1 = vld [vmem:[%s7292_s1 + $0x390] sm:$0xff]  }
  0x3e   :  { %4911 = vmatprep.subr.bf16.mxu1 %v5485_v4  ;;  %v5541_v4 = vld [vmem:[%s7292_s1 + $0x3d8] sm:$0xff]  }
  0x3f   :  { %4890 = vmatpush3.bf16.msra.mxu0 %v5484_v3  ;;  %v5540_v3 = vld [vmem:[%s7292_s1 + $0x318] sm:$0xff]  }
  0x40   :  { %4919 = vmatprep.subr.bf16.mxu0 %v5489_v9  ;;  %v5544_v9 = vld [vmem:[%s7292_s1 + $0x320] sm:$0xff]  }
  0x41   :  { %4912 = vmatpush3.bf16.msra.mxu1 %v5488_v8  ;;  %v5543_v8 = vld [vmem:[%s7292_s1 + $0x360] sm:$0xff]  }
  0x42   :  { %1848 = vmatmul.mubr.bf16.vlgmr.msra.gmra.mrb[4].mxu0 %v6104_v6  ;;  %4941 = vmatprep.subr.bf16.mxu1 %v5493_v14  ;;  %v5547_v14 = vld [vmem:[%s7292_s1 + $0x368] sm:$0xff]  }
  0x43   :  { %4920 = vmatpush3.bf16.msra.mxu0 %v5492_v13  ;;  %1927 = vmatprep.mubr.bf16.mxu0 %v6220_v49  ;;  %v5546_v13 = vld [vmem:[%s7292_s1 + $0x3a0] sm:$0xff]  }
  0x44   :  { %1888 = vmatmul.mubr.bf16.vlgmr.msra.gmra.mrb[4].mxu1 %v6119_v11  ;;  %4921 = vmatprep.subr.bf16.mxu0 %v5495_v16  ;;  %v5549_v16 = vld [vmem:[%s7292_s1 + $0x3e8] sm:$0xff]  }
  0x45   :  { %4942 = vmatpush3.bf16.msra.mxu1 %v5494_v15  ;;  %1967 = vmatprep.mubr.bf16.mxu1 %v6234_v54  ;;  %v5548_v15 = vld [vmem:[%s7292_s1 + $0x328] sm:$0xff]  }
  0x46   :  { %4943 = vmatprep.subr.bf16.mxu1 %v5497_v18  ;;  %v5551_v18 = vld [vmem:[%s7292_s1 + $0x370] sm:$0xff]  }
  0x47   :  { %4922 = vmatpush3.bf16.msra.mxu0 %v5496_v17  ;;  %v5550_v17 = vld [vmem:[%s7292_s1 + $0x3a8] sm:$0xff]  }
  0x48   :  { %4923 = vmatprep.subr.bf16.mxu0 %v5499_v20  ;;  %v5553_v20 = vld [vmem:[%s7292_s1 + $0x3f0] sm:$0xff]  }
  0x49   :  { %4944 = vmatpush3.bf16.msra.mxu1 %v5498_v19  ;;  %v5552_v19 = vld [vmem:[%s7292_s1 + $0x330] sm:$0xff]  }
  0x4a   :  { %4945 = vmatprep.subr.bf16.mxu1 %v5501_v22  ;;  %v5555_v22 = vld [vmem:[%s7292_s1 + $0x378] sm:$0xff]  }
  0x4b   :  { %4924 = vmatpush3.bf16.msra.mxu0 %v5500_v21  ;;  %v5554_v21 = vld [vmem:[%s7292_s1 + $0x3b0] sm:$0xff]  }
  0x4c   :  { %4925 = vmatprep.subr.bf16.mxu0 %v5503_v24  ;;  %v5557_v24 = vld [vmem:[%s7292_s1 + $0x3f8] sm:$0xff]  }
  0x4d   :  { %4946 = vmatpush3.bf16.msra.mxu1 %v5502_v23  ;;  %v5556_v23 = vld [vmem:[%s7292_s1 + $0x338] sm:$0xff]  }
  0x4e   :  { %4947 = vmatprep.subr.bf16.mxu1 %v5505_v26 }
  0x4f   :  { %4926 = vmatpush3.bf16.msra.mxu0 %v5504_v25  ;;  %v33_v25 = vld [vmem:[%s7293_s0 + $0x30] sm:$0xff] }
  0x50   :  { %4927 = vmatprep.subr.bf16.mxu0 %v5507_v28  ;;  %v6332_v26 = vcombine.low %v33_v25, %v33_v25  ;;  %v5560_v28 = vld [vmem:[%s7292_s1 + $0x3b8] sm:$0xff]  }
  0x51   :  { %4948 = vmatpush3.bf16.msra.mxu1 %v5506_v27  ;;  %v6334_v27 = vcombine.high %v33_v25, %v33_v25  ;;  %v5606_v25 = vld [vmem:[%s7292_s1 + $0x588] sm:$0xff]  }
  0x52   :  { %4949 = vmatprep.subr.bf16.mxu1 %v5509_v30  ;;  %v34_v30 = vld [vmem:[%s7293_s0 + $0x38] sm:$0xff] }
  0x53   :  { %4928 = vmatpush3.bf16.msra.mxu0 %v5508_v29  ;;  %v5561_v29 = vld [vmem:[%s7292_s1 + $0x440] sm:$0xff]  }
  0x54   :  { %4929 = vmatprep.subr.bf16.mxu0 %v5511_v34  ;;  %v6348_v34 = vcombine.high %v34_v30, %v34_v30 }
  0x55   :  { %4950 = vmatpush3.bf16.msra.mxu1 %v5510_v31  ;;  %v6346_v31 = vcombine.low %v34_v30, %v34_v30  ;;  %v5609_v30 = vld [vmem:[%s7292_s1 + $0x5d0] sm:$0xff]  }
  0x56   :  { %4951 = vmatprep.subr.bf16.mxu1 %v5513_v36  ;;  %v5565_v36 = vld [vmem:[%s7292_s1 + $0x4c0] sm:$0xff]  }
  0x57   :  { %4930 = vmatpush3.bf16.msra.mxu0 %v5512_v35  ;;  %v5564_v35 = vld [vmem:[%s7292_s1 + $0x400] sm:$0xff]  }
  0x58   :  { %4931 = vmatprep.subr.bf16.mxu0 %v5515_v40  ;;  %v5567_v40 = vld [vmem:[%s7292_s1 + $0x448] sm:$0xff]  }
  0x59   :  { %4952 = vmatpush3.bf16.msra.mxu1 %v5514_v39  ;;  %v5566_v39 = vld [vmem:[%s7292_s1 + $0x480] sm:$0xff]  }
  0x5a   :  { %4953 = vmatprep.subr.bf16.mxu1 %v5517_v42  ;;  %v5569_v42 = vld [vmem:[%s7292_s1 + $0x4c8] sm:$0xff]  }
  0x5b   :  { %4932 = vmatpush3.bf16.msra.mxu0 %v5516_v41  ;;  %v5568_v41 = vld [vmem:[%s7292_s1 + $0x408] sm:$0xff]  }
  0x5c   :  { %4933 = vmatprep.subr.bf16.mxu0 %v5519_v44  ;;  %v5571_v44 = vld [vmem:[%s7292_s1 + $0x450] sm:$0xff]  }
  0x5d   :  { %4954 = vmatpush3.bf16.msra.mxu1 %v5518_v43  ;;  %v5570_v43 = vld [vmem:[%s7292_s1 + $0x488] sm:$0xff]  }
  0x5e   :  { %4955 = vmatprep.subr.bf16.mxu1 %v5521_v46  ;;  %v5573_v46 = vld [vmem:[%s7292_s1 + $0x4d0] sm:$0xff]  }
  0x5f   :  { %4934 = vmatpush3.bf16.msra.mxu0 %v5520_v45  ;;  %v5572_v45 = vld [vmem:[%s7292_s1 + $0x410] sm:$0xff]  }
  0x60   :  { %4963 = vmatprep.subr.bf16.mxu0 %v5525_v51  ;;  %v5576_v51 = vld [vmem:[%s7292_s1 + $0x418] sm:$0xff]  }
  0x61   :  { %4956 = vmatpush3.bf16.msra.mxu1 %v5524_v50  ;;  %v5575_v50 = vld [vmem:[%s7292_s1 + $0x458] sm:$0xff]  }
  0x62   :  { %1928 = vmatmul.mubr.bf16.vlgmr.msra.gmra.mrb[8].mxu0 %v6218_v48  ;;  %4985 = vmatprep.subr.bf16.mxu1 %v5529_v56  ;;  %v5579_v56 = vld [vmem:[%s7292_s1 + $0x460] sm:$0xff]  }
  0x63   :  { %4964 = vmatpush3.bf16.msra.mxu0 %v5528_v55  ;;  %2007 = vmatprep.mubr.bf16.mxu0 %v6334_v27  ;;  %v5578_v55 = vld [vmem:[%s7292_s1 + $0x498] sm:$0xff]  }
  0x64   :  { %1968 = vmatmul.mubr.bf16.vlgmr.msra.gmra.mrb[8].mxu1 %v6232_v53  ;;  %4965 = vmatprep.subr.bf16.mxu0 %v5531_v58  ;;  %v5581_v58 = vld [vmem:[%s7292_s1 + $0x4e0] sm:$0xff]  }
  0x65   :  { %4986 = vmatpush3.bf16.msra.mxu1 %v5530_v57  ;;  %2047 = vmatprep.mubr.bf16.mxu1 %v6348_v34  ;;  %v5580_v57 = vld [vmem:[%s7292_s1 + $0x420] sm:$0xff]  }
  0x66   :  { %4987 = vmatprep.subr.bf16.mxu1 %v5533_v60  ;;  %v5583_v60 = vld [vmem:[%s7292_s1 + $0x468] sm:$0xff]  }
  0x67   :  { %4966 = vmatpush3.bf16.msra.mxu0 %v5532_v59  ;;  %v5582_v59 = vld [vmem:[%s7292_s1 + $0x4a0] sm:$0xff]  }
  0x68   :  { %4967 = vmatprep.subr.bf16.mxu0 %v5535_v62  ;;  %v5585_v62 = vld [vmem:[%s7292_s1 + $0x4e8] sm:$0xff]  }
  0x69   :  { %4988 = vmatpush3.bf16.msra.mxu1 %v5534_v61  ;;  %v5584_v61 = vld [vmem:[%s7292_s1 + $0x428] sm:$0xff]  }
  0x6a   :  { %4989 = vmatprep.subr.bf16.mxu1 %v5537_v0  ;;  %v5587_v0 = vld [vmem:[%s7292_s1 + $0x470] sm:$0xff]  }
  0x6b   :  { %4968 = vmatpush3.bf16.msra.mxu0 %v5536_v63  ;;  %v5586_v63 = vld [vmem:[%s7292_s1 + $0x4a8] sm:$0xff]  }
  0x6c   :  { %4969 = vmatprep.subr.bf16.mxu0 %v5539_v2  ;;  %v5589_v2 = vld [vmem:[%s7292_s1 + $0x4f0] sm:$0xff]  }
  0x6d   :  { %4990 = vmatpush3.bf16.msra.mxu1 %v5538_v1  ;;  %v5588_v1 = vld [vmem:[%s7292_s1 + $0x430] sm:$0xff]  }
  0x6e   :  { %4991 = vmatprep.subr.bf16.mxu1 %v5541_v4  ;;  %v5591_v4 = vld [vmem:[%s7292_s1 + $0x478] sm:$0xff]  }
  0x6f   :  { %4970 = vmatpush3.bf16.msra.mxu0 %v5540_v3  ;;  %v5590_v3 = vld [vmem:[%s7292_s1 + $0x4b0] sm:$0xff]  }
  0x70   :  { %4971 = vmatprep.subr.bf16.mxu0 %v5543_v8  ;;  %v5593_v8 = vld [vmem:[%s7292_s1 + $0x4f8] sm:$0xff]  }
  0x71   :  { %4992 = vmatpush3.bf16.msra.mxu1 %v5542_v5  ;;  %v5592_v5 = vld [vmem:[%s7292_s1 + $0x438] sm:$0xff]  }
  0x72   :  { %4993 = vmatprep.subr.bf16.mxu1 %v5545_v10 }
  0x73   :  { %4972 = vmatpush3.bf16.msra.mxu0 %v5544_v9  ;;  %v35_v9 = vld [vmem:[%s7293_s0 + $0x40] sm:$0xff] }
  0x74   :  { %4973 = vmatprep.subr.bf16.mxu0 %v5547_v14  ;;  %v6446_v10 = vcombine.low %v35_v9, %v35_v9  ;;  %v5596_v14 = vld [vmem:[%s7292_s1 + $0x4b8] sm:$0xff]  }
  0x75   :  { %4994 = vmatpush3.bf16.msra.mxu1 %v5546_v13  ;;  %v6448_v13 = vcombine.high %v35_v9, %v35_v9  ;;  %v5637_v9 = vld [vmem:[%s7294_s3] sm:$0xff]  }
  0x76   :  { %4995 = vmatprep.subr.bf16.mxu1 %v5549_v16  ;;  %v36_v16 = vld [vmem:[%s7293_s0 + $0x48] sm:$0xff] }
  0x77   :  { %4974 = vmatpush3.bf16.msra.mxu0 %v5548_v15  ;;  %v5597_v15 = vld [vmem:[%s7292_s1 + $0x540] sm:$0xff]  }
  0x78   :  { %4975 = vmatprep.subr.bf16.mxu0 %v5551_v18  ;;  %v6463_v18 = vcombine.high %v36_v16, %v36_v16 }
  0x79   :  { %4996 = vmatpush3.bf16.msra.mxu1 %v5550_v17  ;;  %v6461_v17 = vcombine.low %v36_v16, %v36_v16  ;;  %v5640_v16 = vld [vmem:[%s7294_s3 + $0x8] sm:$0xff]  }
  0x7a   :  { %4997 = vmatprep.subr.bf16.mxu1 %v5553_v20  ;;  %v5601_v20 = vld [vmem:[%s7292_s1 + $0x5c0] sm:$0xff]  }
  0x7b   :  { %4976 = vmatpush3.bf16.msra.mxu0 %v5552_v19  ;;  %v5600_v19 = vld [vmem:[%s7292_s1 + $0x500] sm:$0xff]  }
  0x7c   :  { %4977 = vmatprep.subr.bf16.mxu0 %v5555_v22  ;;  %v5603_v22 = vld [vmem:[%s7292_s1 + $0x548] sm:$0xff]  }
  0x7d   :  { %4998 = vmatpush3.bf16.msra.mxu1 %v5554_v21  ;;  %v5602_v21 = vld [vmem:[%s7292_s1 + $0x580] sm:$0xff]  }
  0x7e   :  { %4999 = vmatprep.subr.bf16.mxu1 %v5557_v24  ;;  %v5605_v24 = vld [vmem:[%s7292_s1 + $0x5c8] sm:$0xff]  }
  0x7f   :  { %4978 = vmatpush3.bf16.msra.mxu0 %v5556_v23  ;;  %v5604_v23 = vld [vmem:[%s7292_s1 + $0x508] sm:$0xff]  }
  0x80   :  { %5007 = vmatprep.subr.bf16.mxu0 %v5561_v29  ;;  %v5608_v29 = vld [vmem:[%s7292_s1 + $0x510] sm:$0xff]  }
  0x81   :  { %5000 = vmatpush3.bf16.msra.mxu1 %v5560_v28  ;;  %v5607_v28 = vld [vmem:[%s7292_s1 + $0x550] sm:$0xff]  }
  0x82   :  { %2008 = vmatmul.mubr.bf16.vlgmr.msra.gmra.mrb[12].mxu0 %v6332_v26  ;;  %5029 = vmatprep.subr.bf16.mxu1 %v5565_v36  ;;  %v5611_v36 = vld [vmem:[%s7292_s1 + $0x558] sm:$0xff]  }
  0x83   :  { %5008 = vmatpush3.bf16.msra.mxu0 %v5564_v35  ;;  %2087 = vmatprep.mubr.bf16.mxu0 %v6448_v13  ;;  %v5610_v35 = vld [vmem:[%s7292_s1 + $0x590] sm:$0xff]  }
  0x84   :  { %2048 = vmatmul.mubr.bf16.vlgmr.msra.gmra.mrb[12].mxu1 %v6346_v31  ;;  %5009 = vmatprep.subr.bf16.mxu0 %v5567_v40  ;;  %v5613_v40 = vld [vmem:[%s7292_s1 + $0x5d8] sm:$0xff]  }
  0x85   :  { %5030 = vmatpush3.bf16.msra.mxu1 %v5566_v39  ;;  %2127 = vmatprep.mubr.bf16.mxu1 %v6463_v18  ;;  %v5612_v39 = vld [vmem:[%s7292_s1 + $0x518] sm:$0xff]  }
  0x86   :  { %5031 = vmatprep.subr.bf16.mxu1 %v5569_v42  ;;  %v5615_v42 = vld [vmem:[%s7292_s1 + $0x560] sm:$0xff]  }
  0x87   :  { %5010 = vmatpush3.bf16.msra.mxu0 %v5568_v41  ;;  %v5614_v41 = vld [vmem:[%s7292_s1 + $0x598] sm:$0xff]  }
  0x88   :  { %5011 = vmatprep.subr.bf16.mxu0 %v5571_v44  ;;  %v5617_v44 = vld [vmem:[%s7292_s1 + $0x5e0] sm:$0xff]  }
  0x89   :  { %5032 = vmatpush3.bf16.msra.mxu1 %v5570_v43  ;;  %v5616_v43 = vld [vmem:[%s7292_s1 + $0x520] sm:$0xff]  }
  0x8a   :  { %5033 = vmatprep.subr.bf16.mxu1 %v5573_v46  ;;  %v5619_v46 = vld [vmem:[%s7292_s1 + $0x568] sm:$0xff]  }
  0x8b   :  { %5012 = vmatpush3.bf16.msra.mxu0 %v5572_v45  ;;  %v5618_v45 = vld [vmem:[%s7292_s1 + $0x5a0] sm:$0xff]  }
  0x8c   :  { %5013 = vmatprep.subr.bf16.mxu0 %v5575_v50  ;;  %v5621_v50 = vld [vmem:[%s7292_s1 + $0x5e8] sm:$0xff]  }
  0x8d   :  { %5034 = vmatpush3.bf16.msra.mxu1 %v5574_v47  ;;  %v5620_v47 = vld [vmem:[%s7292_s1 + $0x528] sm:$0xff]  }
  0x8e   :  { %5035 = vmatprep.subr.bf16.mxu1 %v5577_v52  ;;  %v5623_v52 = vld [vmem:[%s7292_s1 + $0x570] sm:$0xff]  }
  0x8f   :  { %5014 = vmatpush3.bf16.msra.mxu0 %v5576_v51  ;;  %v5622_v51 = vld [vmem:[%s7292_s1 + $0x5a8] sm:$0xff]  }
  0x90   :  { %5015 = vmatprep.subr.bf16.mxu0 %v5579_v56  ;;  %v5625_v56 = vld [vmem:[%s7292_s1 + $0x5f0] sm:$0xff]  }
  0x91   :  { %5036 = vmatpush3.bf16.msra.mxu1 %v5578_v55  ;;  %v5624_v55 = vld [vmem:[%s7292_s1 + $0x530] sm:$0xff]  }
  0x92   :  { %5037 = vmatprep.subr.bf16.mxu1 %v5581_v58  ;;  %v5627_v58 = vld [vmem:[%s7292_s1 + $0x578] sm:$0xff]  }
  0x93   :  { %5016 = vmatpush3.bf16.msra.mxu0 %v5580_v57  ;;  %v5626_v57 = vld [vmem:[%s7292_s1 + $0x5b0] sm:$0xff]  }
  0x94   :  { %5017 = vmatprep.subr.bf16.mxu0 %v5583_v60  ;;  %v5629_v60 = vld [vmem:[%s7292_s1 + $0x5f8] sm:$0xff]  }
  0x95   :  { %5038 = vmatpush3.bf16.msra.mxu1 %v5582_v59  ;;  %v5628_v59 = vld [vmem:[%s7292_s1 + $0x538] sm:$0xff]  }
  0x96   :  { %5039 = vmatprep.subr.bf16.mxu1 %v5585_v62 }
  0x97   :  { %5018 = vmatpush3.bf16.msra.mxu0 %v5584_v61  ;;  %v37_v61 = vld [vmem:[%s7293_s0 + $0x50] sm:$0xff] }
  0x98   :  { %5019 = vmatprep.subr.bf16.mxu0 %v5587_v0  ;;  %v6560_v62 = vcombine.low %v37_v61, %v37_v61  ;;  %v5632_v0 = vld [vmem:[%s7292_s1 + $0x5b8] sm:$0xff]  }
  0x99   :  { %5040 = vmatpush3.bf16.msra.mxu1 %v5586_v63  ;;  %v6562_v63 = vcombine.high %v37_v61, %v37_v61  ;;  %v5675_v61 = vld [vmem:[%s7294_s3 + $0x118] sm:$0xff]  }
  0x9a   :  { %5041 = vmatprep.subr.bf16.mxu1 %v5589_v2  ;;  %v5847_v2 = vmov 0.0  }
  0x9b   :  { %5020 = vmatpush3.bf16.msra.mxu0 %v5588_v1  ;;  %v38_v1 = vld [vmem:[%s7293_s0 + $0x58] sm:$0xff] }
  0x9c   :  { %5021 = vmatprep.subr.bf16.mxu0 %v5591_v4  ;;  %v6573_v4 = vcombine.high %v38_v1, %v38_v1 }
  0x9d   :  { %5042 = vmatpush3.bf16.msra.mxu1 %v5590_v3  ;;  %v6571_v3 = vcombine.low %v38_v1, %v38_v1  ;;  %v5677_v1 = vld [vmem:[%s7294_s3 + $0xa0] sm:$0xff]  }
  0x9e   :  { %5043 = vmatprep.subr.bf16.mxu1 %v5593_v8  ;;  %v5636_v8 = vld [vmem:[%s7294_s3 + $0x40] sm:$0xff]  }
  0x9f   :  { %5022 = vmatpush3.bf16.msra.mxu0 %v5592_v5  ;;  %v5635_v5 = vld [vmem:[%s7292_s1 + $0x600] sm:$0xff]  }
  0xa0   :  { %5051 = vmatprep.subr.bf16.mxu0 %v5597_v15  ;;  %v5639_v15 = vld [vmem:[%s7294_s3 + $0x48] sm:$0xff]  }
  0xa1   :  { %5044 = vmatpush3.bf16.msra.mxu1 %v5596_v14  ;;  %v5638_v14 = vld [vmem:[%s7292_s1 + $0x608] sm:$0xff]  }
  0xa2   :  { %2088 = vmatmul.mubr.bf16.vlgmr.msra.gmra.mrb[16].mxu0 %v6446_v10  ;;  %5073 = vmatprep.subr.bf16.mxu1 %v5601_v20  ;;  %v5642_v20 = vld [vmem:[%s7294_s3 + $0x50] sm:$0xff]  }
  0xa3   :  { %5052 = vmatpush3.bf16.msra.mxu0 %v5600_v19  ;;  %2167 = vmatprep.mubr.bf16.mxu0 %v6562_v63  ;;  %v5641_v19 = vld [vmem:[%s7292_s1 + $0x610] sm:$0xff]  }
  0xa4   :  { %2128 = vmatmul.mubr.bf16.vlgmr.msra.gmra.mrb[16].mxu1 %v6461_v17  ;;  %5053 = vmatprep.subr.bf16.mxu0 %v5603_v22  ;;  %v5645_v22 = vld [vmem:[%s7294_s3 + $0x58] sm:$0xff]  }
  0xa5   :  { %5074 = vmatpush3.bf16.msra.mxu1 %v5602_v21  ;;  %2207 = vmatprep.mubr.bf16.mxu1 %v6573_v4  ;;  %v5643_v21 = vld [vmem:[%s7294_s3 + $0x10] sm:$0xff]  }
  0xa6   :  { %5075 = vmatprep.subr.bf16.mxu1 %v5605_v24  ;;  %v5648_v24 = vld [vmem:[%s7294_s3 + $0x60] sm:$0xff]  }
  0xa7   :  { %5054 = vmatpush3.bf16.msra.mxu0 %v5604_v23  ;;  %v5646_v23 = vld [vmem:[%s7294_s3 + $0x18] sm:$0xff]  }
  0xa8   :  { %5055 = vmatprep.subr.bf16.mxu0 %v5607_v28  ;;  %v5649_v28 = vld [vmem:[%s7294_s3 + $0x20] sm:$0xff]  }
  0xa9   :  { %5076 = vmatpush3.bf16.msra.mxu1 %v5606_v25  ;;  %v5647_v25 = vld [vmem:[%s7292_s1 + $0x620] sm:$0xff]  }
  0xaa   :  { %5077 = vmatprep.subr.bf16.mxu1 %v5609_v30  ;;  %v5650_v30 = vld [vmem:[%s7292_s1 + $0x628] sm:$0xff]  }
  0xab   :  { %5056 = vmatpush3.bf16.msra.mxu0 %v5608_v29  ;;  %v5651_v29 = vld [vmem:[%s7294_s3 + $0x68] sm:$0xff]  }
  0xac   :  { %5057 = vmatprep.subr.bf16.mxu0 %v5611_v36  ;;  %v5654_v36 = vld [vmem:[%s7294_s3 + $0x70] sm:$0xff]  }
  0xad   :  { %5078 = vmatpush3.bf16.msra.mxu1 %v5610_v35  ;;  %v5652_v35 = vld [vmem:[%s7294_s3 + $0x28] sm:$0xff]  }
  0xae   :  { %5079 = vmatprep.subr.bf16.mxu1 %v5613_v40  ;;  %v5655_v40 = vld [vmem:[%s7294_s3 + $0x30] sm:$0xff]  }
  0xaf   :  { %5058 = vmatpush3.bf16.msra.mxu0 %v5612_v39  ;;  %v5653_v39 = vld [vmem:[%s7292_s1 + $0x630] sm:$0xff]  }
  0xb0   :  { %5059 = vmatprep.subr.bf16.mxu0 %v5615_v42  ;;  %v5657_v42 = vld [vmem:[%s7294_s3 + $0x78] sm:$0xff]  }
  0xb1   :  { %5080 = vmatpush3.bf16.msra.mxu1 %v5614_v41  ;;  %v5656_v41 = vld [vmem:[%s7292_s1 + $0x638] sm:$0xff]  }
  0xb2   :  { %5081 = vmatprep.subr.bf16.mxu1 %v5617_v44  ;;  %v5660_v44 = vld [vmem:[%s7294_s3 + $0xc0] sm:$0xff]  }
  0xb3   :  { %5060 = vmatpush3.bf16.msra.mxu0 %v5616_v43  ;;  %v5658_v43 = vld [vmem:[%s7294_s3 + $0x38] sm:$0xff]  }
  0xb4   :  { %5061 = vmatprep.subr.bf16.mxu0 %v5619_v46  ;;  %v5662_v46 = vld [vmem:[%s7294_s3 + $0x140] sm:$0xff]  }
  0xb5   :  { %5082 = vmatpush3.bf16.msra.mxu1 %v5618_v45  ;;  %v5659_v45 = vld [vmem:[%s7293_s0 + $0x60] ss:$0 sps:$4 sm:$0xff]  }
  0xb6   :  { %5083 = vmatprep.subr.bf16.mxu1 %v5621_v50  ;;  %v5664_v50 = vld [vmem:[%s7294_s3 + $0xc8] sm:$0xff]  }
  0xb7   :  { %5062 = vmatpush3.bf16.msra.mxu0 %v5620_v47  ;;  %v5661_v47 = vld [vmem:[%s7294_s3 + $0x80] sm:$0xff]  }
  0xb8   :  { %5063 = vmatprep.subr.bf16.mxu0 %v5623_v52  ;;  %v5666_v52 = vld [vmem:[%s7294_s3 + $0x148] sm:$0xff]  }
  0xb9   :  { %5084 = vmatpush3.bf16.msra.mxu1 %v5622_v51  ;;  %v5663_v51 = vld [vmem:[%s7294_s3 + $0x100] sm:$0xff]  }
  0xba   :  { %5085 = vmatprep.subr.bf16.mxu1 %v5625_v56  ;;  %v5668_v56 = vld [vmem:[%s7294_s3 + $0xd0] sm:$0xff]  }
  0xbb   :  { %5064 = vmatpush3.bf16.msra.mxu0 %v5624_v55  ;;  %v5665_v55 = vld [vmem:[%s7294_s3 + $0x88] sm:$0xff]  }
  0xbc   :  { %5065 = vmatprep.subr.bf16.mxu0 %v5627_v58  ;;  %v5670_v58 = vld [vmem:[%s7294_s3 + $0x150] sm:$0xff]  }
  0xbd   :  { %5086 = vmatpush3.bf16.msra.mxu1 %v5626_v57  ;;  %v5667_v57 = vld [vmem:[%s7294_s3 + $0x108] sm:$0xff]  }
  0xbe   :  { %5087 = vmatprep.subr.bf16.mxu1 %v5629_v60  ;;  %v5673_v60 = vld [vmem:[%s7294_s3 + $0x98] sm:$0xff]  }
  0xbf   :  { %5066 = vmatpush3.bf16.msra.mxu0 %v5628_v59  ;;  %v5674_v59 = vld [vmem:[%s7294_s3 + $0x158] sm:$0xff]  }
  0xc0   :  { %5377 = vmatprep.subr.bf16.mxu0 %v5847_v2 }
  0xc1   :  { %5088 = vmatpush3.bf16.msra.mxu1 %v5632_v0  ;;  %v5676_v0 = vld [vmem:[%s7294_s3 + $0xe0] sm:$0xff]  }
  0xc2   :  { %2168 = vmatmul.mubr.bf16.vlgmr.msra.gmra.mrb[20].mxu0 %v6560_v62  ;;  %5104 = vmatprep.subr.bf16.mxu1 %v5636_v8  ;;  %v5679_v8 = vld [vmem:[%s7294_s3 + $0x120] sm:$0xff]  }
  0xc3   :  { %5378 = vmatpush3.bf16.msra.mxu0 %v5635_v5  ;;  %5393 = vmatprep.mubr.msk.bf16.mxu0 %vm5848_vm0, %v5847_v2  ;;  %v5678_v5 = vld [vmem:[%s7294_s3 + $0x160] sm:$0xff]  }
  0xc4   :  { %2208 = vmatmul.mubr.bf16.vlgmr.msra.gmra.mrb[20].mxu1 %v6571_v3  ;;  %5379 = vmatprep.subr.bf16.mxu0 %v5847_v2 }
  0xc5   :  { %5105 = vmatpush3.bf16.msra.mxu1 %v5637_v9  ;;  %3894 = vmatprep.mubr.bf16.mxu1 %v5992_v33  ;;  %v5644_v33 = vld [vmem:[%s7292_s1 + $0x618] sm:$0xff]   ;;  %v5680_v9 = vld [vmem:[%s7294_s3 + $0xe8] sm:$0xff]  }
  0xc6   :  { %5106 = vmatprep.subr.bf16.mxu1 %v5639_v15  ;;  %v5681_v15 = vld [vmem:[%s7294_s3 + $0xa8] sm:$0xff]  }
  0xc7   :  { %5380 = vmatpush3.bf16.msra.mxu0 %v5638_v14  ;;  %v4404_v14 = vld [vmem:[%s7295_s2] ss:$0 sm:$0xff] }
  0xc8   :  { %5381 = vmatprep.subr.bf16.mxu0 %v5847_v2 }
  0xc9   :  { %5107 = vmatpush3.bf16.msra.mxu1 %v5640_v16 }
  0xca   :  { %5108 = vmatprep.subr.bf16.mxu1 %v5642_v20 }
  0xcb   :  { %5382 = vmatpush3.bf16.msra.mxu0 %v5641_v19  ;;  %v5682_v19 = vld [vmem:[%s7294_s3 + $0x168] sm:$0xff]  }
  0xcc   :  { %5383 = vmatprep.subr.bf16.mxu0 %v5847_v2 }
  0xcd   :  { %5109 = vmatpush3.bf16.msra.mxu1 %v5643_v21  ;;  %v5684_v21 = vld [vmem:[%s7294_s3 + $0xf0] sm:$0xff]  }
  0xce   :  { %5110 = vmatprep.subr.bf16.mxu1 %v5645_v22 }
  0xcf   :  { %5384 = vmatpush3.bf16.msra.mxu0 %v5644_v33 }
  0xd0   :  { %5385 = vmatprep.subr.bf16.mxu0 %v5847_v2 }
  0xd1   :  { %5111 = vmatpush3.bf16.msra.mxu1 %v5646_v23 }
  0xd2   :  { %5112 = vmatprep.subr.bf16.mxu1 %v5648_v24 }
  0xd3   :  { %5386 = vmatpush3.bf16.msra.mxu0 %v5647_v25 }
  0xd4   :  { %5387 = vmatprep.subr.bf16.mxu0 %v5847_v2 }
  0xd5   :  { %5113 = vmatpush3.bf16.msra.mxu1 %v5649_v28  ;;  %v5683_v28 = vld [vmem:[%s7294_s3 + $0x128] sm:$0xff]  }
  0xd6   :  { %5114 = vmatprep.subr.bf16.mxu1 %v5651_v29  ;;  %v5685_v29 = vld [vmem:[%s7294_s3 + $0xb0] sm:$0xff]  }
  0xd7   :  { %5388 = vmatpush3.bf16.msra.mxu0 %v5650_v30 }
  0xd8   :  { %5389 = vmatprep.subr.bf16.mxu0 %v5847_v2 }
  0xd9   :  { %5115 = vmatpush3.bf16.msra.mxu1 %v5652_v35 }
  0xda   :  { %5116 = vmatprep.subr.bf16.mxu1 %v5654_v36 }
  0xdb   :  { %5390 = vmatpush3.bf16.msra.mxu0 %v5653_v39  ;;  %v5686_v39 = vld [vmem:[%s7294_s3 + $0x170] sm:$0xff]  }
  0xdc   :  { %5391 = vmatprep.subr.bf16.mxu0 %v5847_v2 }
  0xdd   :  { %5117 = vmatpush3.bf16.msra.mxu1 %v5655_v40 }
  0xde   :  { %5118 = vmatprep.subr.bf16.mxu1 %v5657_v42 }
  0xdf   :  { %5392 = vmatpush3.bf16.msra.mxu0 %v5656_v41  ;;  %v5688_v41 = vld [vmem:[%s7294_s3 + $0xf8] sm:$0xff]  }
  0xe0   :  { %5126 = vmatprep.subr.bf16.mxu0 %v5660_v44  ;;  %v5690_v44 = vld [vmem:[%s7294_s3 + $0x178] sm:$0xff]  }
  0xe1   :  { %5119 = vmatpush3.bf16.msra.mxu1 %v5658_v43  ;;  %v5687_v43 = vld [vmem:[%s7294_s3 + $0x130] sm:$0xff]  }
  0xe2   :  { %5394 = vmatmul.mubr.bf16.vlgmr.msra.gmra.mrb[24].mxu0 %v5659_v45  ;;  %5148 = vmatprep.subr.bf16.mxu1 %v5662_v46  ;;  %v5689_v45 = vld [vmem:[%s7294_s3 + $0xb8] sm:$0xff]   ;;  %v5692_v46 = vld [vmem:[%s7294_s3 + $0x1c0] sm:$0xff]  }
  0xe3   :  { %5127 = vmatpush3.bf16.msra.mxu0 %v5661_v47  ;;  %3934 = vmatprep.mubr.bf16.mxu0 %v6006_v38  ;;  %v5672_v38 = vld [vmem:[%s7294_s3 + $0xd8] sm:$0xff]  }
  0xe4   :  { %3895 = vmatmul.mubr.bf16.vlgmr.msra.gmra.mrb[24].mxu1 %v5990_v32  ;;  %5128 = vmatprep.subr.bf16.mxu0 %v5664_v50  ;;  %v5669_v32 = vld [vmem:[%s7294_s3 + $0x90] sm:$0xff]   ;;  %v5691_v47 = vld [vmem:[%s7294_s3 + $0x138] sm:$0xff]   ;;  %v5694_v50 = vld [vmem:[%s7294_s3 + $0x240] sm:$0xff]  }
  0xe5   :  { %5149 = vmatpush3.bf16.msra.mxu1 %v5663_v51  ;;  %3974 = vmatprep.mubr.bf16.mxu1 %v6106_v7  ;;  %v5671_v7 = vld [vmem:[%s7294_s3 + $0x110] sm:$0xff]   ;;  %v5693_v51 = vld [vmem:[%s7294_s3 + $0x180] sm:$0xff]  }
  0xe6   :  { %5150 = vmatprep.subr.bf16.mxu1 %v5666_v52  ;;  %v5696_v52 = vld [vmem:[%s7294_s3 + $0x1c8] sm:$0xff]  }
  0xe7   :  { %5129 = vmatpush3.bf16.msra.mxu0 %v5665_v55  ;;  %v5695_v55 = vld [vmem:[%s7294_s3 + $0x200] sm:$0xff]  }
  0xe8   :  { %5130 = vmatprep.subr.bf16.mxu0 %v5668_v56  ;;  %v5698_v56 = vld [vmem:[%s7294_s3 + $0x248] sm:$0xff]  }
  0xe9   :  { %5151 = vmatpush3.bf16.msra.mxu1 %v5667_v57  ;;  %v5697_v57 = vld [vmem:[%s7294_s3 + $0x188] sm:$0xff]  }
  0xea   :  { %5152 = vmatprep.subr.bf16.mxu1 %v5670_v58  ;;  %v5700_v58 = vld [vmem:[%s7294_s3 + $0x1d0] sm:$0xff]  }
  0xeb   :  { %5131 = vmatpush3.bf16.msra.mxu0 %v5669_v32  ;;  %v5702_v32 = vld [vmem:[%s7294_s3 + $0x250] sm:$0xff]  }
  0xec   :  { %5132 = vmatprep.subr.bf16.mxu0 %v5672_v38  ;;  %v5706_v38 = vld [vmem:[%s7294_s3 + $0x258] sm:$0xff]  }
  0xed   :  { %5153 = vmatpush3.bf16.msra.mxu1 %v5671_v7  ;;  %v5705_v7 = vld [vmem:[%s7294_s3 + $0x198] sm:$0xff]  }
  0xee   :  { %5154 = vmatprep.subr.bf16.mxu1 %v5674_v59  ;;  %v5708_v59 = vld [vmem:[%s7294_s3 + $0x1e0] sm:$0xff]  }
  0xef   :  { %5133 = vmatpush3.bf16.msra.mxu0 %v5673_v60  ;;  %v5707_v60 = vld [vmem:[%s7294_s3 + $0x218] sm:$0xff]  }
  0xf0   :  { %5134 = vmatprep.subr.bf16.mxu0 %v5676_v0  ;;  %v5709_v0 = vld [vmem:[%s7294_s3 + $0x1a0] sm:$0xff]  }
  0xf1   :  { %5155 = vmatpush3.bf16.msra.mxu1 %v5675_v61  ;;  %v5710_v61 = vld [vmem:[%s7294_s3 + $0x260] sm:$0xff]  }
  0xf2   :  { %5156 = vmatprep.subr.bf16.mxu1 %v5678_v5  ;;  %v5711_v5 = vld [vmem:[%s7294_s3 + $0x220] sm:$0xff]  }
  0xf3   :  { %5135 = vmatpush3.bf16.msra.mxu0 %v5677_v1  ;;  %v5712_v1 = vld [vmem:[%s7294_s3 + $0x1e8] sm:$0xff]  }
  0xf4   :  { %5136 = vmatprep.subr.bf16.mxu0 %v5680_v9  ;;  %v5714_v9 = vld [vmem:[%s7294_s3 + $0x268] sm:$0xff]  }
  0xf5   :  { %v4847_v16 = vpop.f32.mrb[0].mxu0  ;;  %5157 = vmatpush3.bf16.msra.mxu1 %v5679_v8 }
  0xf6   :  { %v4848_v20 = vpop.f32.mrb[1].mxu0  ;;  %5158 = vmatprep.subr.bf16.mxu1 %v5682_v19 }
  0xf7   :  { %v4849_v22 = vadd.f32 %v4848_v20, %v4847_v16  ;;  %v4850_v33 = vpop.f32.mrb[2].mxu0  ;;  %v4869_v23 = vpop.f32.mrb[0].mxu1  ;;  %5137 = vmatpush3.bf16.msra.mxu0 %v5681_v15  ;;  %v5713_v15 = vld [vmem:[%s7294_s3 + $0x1a8] sm:$0xff]   ;;  %v5716_v20 = vld [vmem:[%s7294_s3 + $0x1f0] sm:$0xff]  }
  0xf8   :  { %v4851_v24 = vpop.f32.mrb[3].mxu0  ;;  %v4870_v25 = vpop.f32.mrb[1].mxu1  ;;  %5138 = vmatprep.subr.bf16.mxu0 %v5684_v21  ;;  %v5715_v33 = vld [vmem:[%s7294_s3 + $0x228] sm:$0xff]  }
  0xf9   :  { %v1770_v30 = vadd.f32 %v4849_v22, %v4404_v14  ;;  %v4871_v35 = vadd.f32 %v4870_v25, %v4869_v23  ;;  %v4872_v36 = vpop.f32.mrb[2].mxu1  ;;  %5159 = vmatpush3.bf16.msra.mxu1 %v5683_v28  ;;  %v5717_v23 = vld [vmem:[%s7294_s3 + $0x1b0] sm:$0xff]  }
  0xfa   :  { %v4873_v40 = vpop.f32.mrb[3].mxu1  ;;  %5160 = vmatprep.subr.bf16.mxu1 %v5686_v39  ;;  %v5718_v28 = vld [vmem:[%s7294_s3 + $0x270] sm:$0xff]   ;;  %v5720_v39 = vld [vmem:[%s7294_s3 + $0x1f8] sm:$0xff]  }
  0xfb   :  { %v6754_v42 = vadd.f32 %v4871_v35, %v1770_v30  ;;  %5139 = vmatpush3.bf16.msra.mxu0 %v5685_v29  ;;  %v5719_v35 = vld [vmem:[%s7294_s3 + $0x230] sm:$0xff]  }
  0xfc   :  { %5140 = vmatprep.subr.bf16.mxu0 %v5688_v41  ;;  %v5722_v41 = vld [vmem:[%s7294_s3 + $0x278] sm:$0xff]  }
  0xfd   :  { %5161 = vmatpush3.bf16.msra.mxu1 %v5687_v43  ;;  %v5724_v43 = vld [vmem:[%s7294_s3 + $0x2c0] sm:$0xff]  }
  0xfe   :  { %5162 = vmatprep.subr.bf16.mxu1 %v5690_v44  ;;  %v5723_v44 = vld [vmem:[%s7294_s3 + $0x238] sm:$0xff]  }
  0xff   :  { %5141 = vmatpush3.bf16.msra.mxu0 %v5689_v45  ;;  %v5726_v45 = vld [vmem:[%s7294_s3 + $0x340] sm:$0xff]  }
 0x100   :  { %5170 = vmatprep.subr.bf16.mxu0 %v5692_v46  ;;  %v5725_v46 = vld [vmem:[%s7294_s3 + $0x280] sm:$0xff]  }
 0x101   :  { %5163 = vmatpush3.bf16.msra.mxu1 %v5691_v47  ;;  %v5728_v47 = vld [vmem:[%s7294_s3 + $0x2c8] sm:$0xff]  }
 0x102   :  { %3935 = vmatmul.mubr.bf16.vlgmr.msra.gmra.mrb[28].mxu0 %v6004_v37  ;;  %5192 = vmatprep.subr.bf16.mxu1 %v5694_v50  ;;  %v5699_v37 = vld [vmem:[%s7294_s3 + $0x208] sm:$0xff]   ;;  %v5727_v50 = vld [vmem:[%s7294_s3 + $0x300] sm:$0xff]  }
 0x103   :  { %5171 = vmatpush3.bf16.msra.mxu0 %v5693_v51  ;;  %4014 = vmatprep.mubr.bf16.mxu0 %v6121_v12  ;;  %v5704_v12 = vld [vmem:[%s7294_s3 + $0x1d8] sm:$0xff]   ;;  %v5730_v51 = vld [vmem:[%s7294_s3 + $0x348] sm:$0xff]  }
 0x104   :  { %3975 = vmatmul.mubr.bf16.vlgmr.msra.gmra.mrb[28].mxu1 %v6104_v6  ;;  %5172 = vmatprep.subr.bf16.mxu0 %v5696_v52  ;;  %v5701_v6 = vld [vmem:[%s7294_s3 + $0x190] sm:$0xff]   ;;  %v5729_v52 = vld [vmem:[%s7294_s3 + $0x288] sm:$0xff]  }
 0x105   :  { %5193 = vmatpush3.bf16.msra.mxu1 %v5695_v55  ;;  %4054 = vmatprep.mubr.bf16.mxu1 %v6220_v49  ;;  %v5703_v49 = vld [vmem:[%s7294_s3 + $0x210] sm:$0xff]  }
 0x106   :  { %5194 = vmatprep.subr.bf16.mxu1 %v5698_v56  ;;  %v5732_v55 = vld [vmem:[%s7294_s3 + $0x2d0] sm:$0xff]  }
 0x107   :  { %5173 = vmatpush3.bf16.msra.mxu0 %v5697_v57  ;;  %v5734_v56 = vld [vmem:[%s7294_s3 + $0x350] sm:$0xff]   ;;  %v5738_v57 = vld [vmem:[%s7294_s3 + $0x358] sm:$0xff]  }
 0x108   :  { %5174 = vmatprep.subr.bf16.mxu0 %v5700_v58  ;;  %v5737_v58 = vld [vmem:[%s7294_s3 + $0x298] sm:$0xff]  }
 0x109   :  { %5195 = vmatpush3.bf16.msra.mxu1 %v5699_v37  ;;  %v5740_v37 = vld [vmem:[%s7294_s3 + $0x2e0] sm:$0xff]  }
 0x10a   :  { %5196 = vmatprep.subr.bf16.mxu1 %v5702_v32  ;;  %v5739_v32 = vld [vmem:[%s7294_s3 + $0x318] sm:$0xff]  }
 0x10b   :  { %5175 = vmatpush3.bf16.msra.mxu0 %v5701_v6  ;;  %v5742_v6 = vld [vmem:[%s7294_s3 + $0x360] sm:$0xff]  }
 0x10c   :  { %5176 = vmatprep.subr.bf16.mxu0 %v5704_v12  ;;  %v5741_v12 = vld [vmem:[%s7294_s3 + $0x2a0] sm:$0xff]  }
 0x10d   :  { %5197 = vmatpush3.bf16.msra.mxu1 %v5703_v49  ;;  %v5744_v49 = vld [vmem:[%s7294_s3 + $0x2e8] sm:$0xff]  }
 0x10e   :  { %5198 = vmatprep.subr.bf16.mxu1 %v5706_v38  ;;  %v5743_v38 = vld [vmem:[%s7294_s3 + $0x320] sm:$0xff]  }
 0x10f   :  { %5177 = vmatpush3.bf16.msra.mxu0 %v5705_v7  ;;  %v5746_v7 = vld [vmem:[%s7294_s3 + $0x368] sm:$0xff]  }
 0x110   :  { %5178 = vmatprep.subr.bf16.mxu0 %v5708_v59 }
 0x111   :  { %5199 = vmatpush3.bf16.msra.mxu1 %v5707_v60  ;;  %v5745_v60 = vld [vmem:[%s7294_s3 + $0x2a8] sm:$0xff]  }
 0x112   :  { %5200 = vmatprep.subr.bf16.mxu1 %v5710_v61 }
 0x113   :  { %5179 = vmatpush3.bf16.msra.mxu0 %v5709_v0  ;;  %v5748_v0 = vld [vmem:[%s7294_s3 + $0x2f0] sm:$0xff]  }
 0x114   :  { %5180 = vmatprep.subr.bf16.mxu0 %v5712_v1 }
 0x115   :  { %v4891_v8 = vpop.f32.mrb[4].mxu0  ;;  %5201 = vmatpush3.bf16.msra.mxu1 %v5711_v5 }
 0x116   :  { %v4892_v14 = vpop.f32.mrb[5].mxu0  ;;  %5202 = vmatprep.subr.bf16.mxu1 %v5714_v9  ;;  %v5747_v9 = vld [vmem:[%s7294_s3 + $0x328] sm:$0xff]  }
 0x117   :  { %v4893_v16 = vadd.f32 %v4892_v14, %v4891_v8  ;;  %v4894_v19 = vpop.f32.mrb[6].mxu0  ;;  %v4913_v21 = vpop.f32.mrb[4].mxu1  ;;  %5181 = vmatpush3.bf16.msra.mxu0 %v5713_v15  ;;  %v5750_v14 = vld [vmem:[%s7294_s3 + $0x370] sm:$0xff]  }
 0x118   :  { %v4895_v22 = vpop.f32.mrb[7].mxu0  ;;  %v4914_v25 = vpop.f32.mrb[5].mxu1  ;;  %5182 = vmatprep.subr.bf16.mxu0 %v5716_v20 }
 0x119   :  { %v1850_v24 = vadd.f32 %v4893_v16, %v6754_v42  ;;  %v4915_v29 = vadd.f32 %v4914_v25, %v4913_v21  ;;  %v4916_v30 = vpop.f32.mrb[6].mxu1  ;;  %5203 = vmatpush3.bf16.msra.mxu1 %v5715_v33  ;;  %v5721_v42 = vld [vmem:[%s7294_s3 + $0x1b8] sm:$0xff]   ;;  %v5749_v22 = vld [vmem:[%s7294_s3 + $0x2b0] sm:$0xff]  }
 0x11a   :  { %v4917_v36 = vpop.f32.mrb[7].mxu1  ;;  %5204 = vmatprep.subr.bf16.mxu1 %v5718_v28  ;;  %v5751_v25 = vld [vmem:[%s7294_s3 + $0x330] sm:$0xff]   ;;  %v5754_v28 = vld [vmem:[%s7294_s3 + $0x378] sm:$0xff]   ;;  %v5756_v30 = vld [vmem:[%s7294_s3 + $0x3c0] sm:$0xff]  }
 0x11b   :  { %v6860_v40 = vadd.f32 %v4915_v29, %v1850_v24  ;;  %5183 = vmatpush3.bf16.msra.mxu0 %v5717_v23  ;;  %v5752_v23 = vld [vmem:[%s7294_s3 + $0x2f8] sm:$0xff]   ;;  %v5758_v36 = vld [vmem:[%s7294_s3 + $0x440] sm:$0xff]  }
 0x11c   :  { %5184 = vmatprep.subr.bf16.mxu0 %v5720_v39  ;;  %v5753_v29 = vld [vmem:[%s7294_s3 + $0x2b8] sm:$0xff]   ;;  %v5757_v39 = vld [vmem:[%s7294_s3 + $0x380] sm:$0xff]  }
 0x11d   :  { %5205 = vmatpush3.bf16.msra.mxu1 %v5719_v35  ;;  %v5755_v35 = vld [vmem:[%s7294_s3 + $0x338] sm:$0xff]  }
 0x11e   :  { %5206 = vmatprep.subr.bf16.mxu1 %v5722_v41  ;;  %v5759_v41 = vld [vmem:[%s7294_s3 + $0x400] sm:$0xff]  }
 0x11f   :  { %5185 = vmatpush3.bf16.msra.mxu0 %v5721_v42  ;;  %v5762_v42 = vld [vmem:[%s7294_s3 + $0x448] sm:$0xff]  }
 0x120   :  { %5214 = vmatprep.subr.bf16.mxu0 %v5724_v43  ;;  %v5761_v43 = vld [vmem:[%s7294_s3 + $0x388] sm:$0xff]  }
 0x121   :  { %5207 = vmatpush3.bf16.msra.mxu1 %v5723_v44  ;;  %v5764_v44 = vld [vmem:[%s7294_s3 + $0x3d0] sm:$0xff]  }
 0x122   :  { %4015 = vmatmul.mubr.bf16.vlgmr.msra.gmra.mrb[32].mxu0 %v6119_v11  ;;  %5236 = vmatprep.subr.bf16.mxu1 %v5726_v45  ;;  %v5731_v11 = vld [vmem:[%s7294_s3 + $0x308] sm:$0xff]   ;;  %v5766_v45 = vld [vmem:[%s7294_s3 + $0x450] sm:$0xff]  }
 0x123   :  { %5215 = vmatpush3.bf16.msra.mxu0 %v5725_v46  ;;  %4094 = vmatprep.mubr.bf16.mxu0 %v6234_v54  ;;  %v5736_v54 = vld [vmem:[%s7294_s3 + $0x2d8] sm:$0xff]  }
 0x124   :  { %4055 = vmatmul.mubr.bf16.vlgmr.msra.gmra.mrb[32].mxu1 %v6218_v48  ;;  %5216 = vmatprep.subr.bf16.mxu0 %v5728_v47  ;;  %v5733_v48 = vld [vmem:[%s7294_s3 + $0x290] sm:$0xff]   ;;  %v5770_v46 = vld [vmem:[%s7294_s3 + $0x458] sm:$0xff]  }
 0x125   :  { %5237 = vmatpush3.bf16.msra.mxu1 %v5727_v50  ;;  %4134 = vmatprep.mubr.bf16.mxu1 %v6334_v27  ;;  %v5735_v27 = vld [vmem:[%s7294_s3 + $0x310] sm:$0xff]   ;;  %v5769_v47 = vld [vmem:[%s7294_s3 + $0x398] sm:$0xff]   ;;  %v5772_v50 = vld [vmem:[%s7294_s3 + $0x3e0] sm:$0xff]  }
 0x126   :  { %5238 = vmatprep.subr.bf16.mxu1 %v5730_v51  ;;  %v5771_v51 = vld [vmem:[%s7294_s3 + $0x418] sm:$0xff]  }
 0x127   :  { %5217 = vmatpush3.bf16.msra.mxu0 %v5729_v52  ;;  %v5774_v52 = vld [vmem:[%s7294_s3 + $0x460] sm:$0xff]  }
 0x128   :  { %5218 = vmatprep.subr.bf16.mxu0 %v5732_v55  ;;  %v5773_v55 = vld [vmem:[%s7294_s3 + $0x3a0] sm:$0xff]  }
 0x129   :  { %5239 = vmatpush3.bf16.msra.mxu1 %v5731_v11  ;;  %v5776_v11 = vld [vmem:[%s7294_s3 + $0x3e8] sm:$0xff]  }
 0x12a   :  { %5240 = vmatprep.subr.bf16.mxu1 %v5734_v56  ;;  %v5775_v56 = vld [vmem:[%s7294_s3 + $0x420] sm:$0xff]  }
 0x12b   :  { %5219 = vmatpush3.bf16.msra.mxu0 %v5733_v48  ;;  %v5778_v48 = vld [vmem:[%s7294_s3 + $0x468] sm:$0xff]  }
 0x12c   :  { %5220 = vmatprep.subr.bf16.mxu0 %v5736_v54  ;;  %v5777_v54 = vld [vmem:[%s7294_s3 + $0x3a8] sm:$0xff]  }
 0x12d   :  { %5241 = vmatpush3.bf16.msra.mxu1 %v5735_v27 }
 0x12e   :  { %5242 = vmatprep.subr.bf16.mxu1 %v5738_v57  ;;  %v5780_v57 = vld [vmem:[%s7294_s3 + $0x3f0] sm:$0xff]  }
 0x12f   :  { %5221 = vmatpush3.bf16.msra.mxu0 %v5737_v58 }
 0x130   :  { %5222 = vmatprep.subr.bf16.mxu0 %v5740_v37  ;;  %v5779_v37 = vld [vmem:[%s7294_s3 + $0x428] sm:$0xff]  }
 0x131   :  { %5243 = vmatpush3.bf16.msra.mxu1 %v5739_v32 }
 0x132   :  { %5244 = vmatprep.subr.bf16.mxu1 %v5742_v6 }
 0x133   :  { %5223 = vmatpush3.bf16.msra.mxu0 %v5741_v12 }
 0x134   :  { %5224 = vmatprep.subr.bf16.mxu0 %v5744_v49  ;;  %v5781_v49 = vld [vmem:[%s7294_s3 + $0x3b0] sm:$0xff]  }
 0x135   :  { %v4935_v59 = vpop.f32.mrb[8].mxu0  ;;  %5245 = vmatpush3.bf16.msra.mxu1 %v5743_v38  ;;  %v5782_v38 = vld [vmem:[%s7294_s3 + $0x470] sm:$0xff]  }
 0x136   :  { %v4936_v61 = vpop.f32.mrb[9].mxu0  ;;  %5246 = vmatprep.subr.bf16.mxu1 %v5746_v7 }
 0x137   :  { %v4937_v1 = vadd.f32 %v4936_v61, %v4935_v59  ;;  %v4938_v5 = vpop.f32.mrb[10].mxu0  ;;  %v4957_v8 = vpop.f32.mrb[8].mxu1  ;;  %5225 = vmatpush3.bf16.msra.mxu0 %v5745_v60  ;;  %v5783_v60 = vld [vmem:[%s7294_s3 + $0x430] sm:$0xff]  }
 0x138   :  { %v4939_v15 = vpop.f32.mrb[11].mxu0  ;;  %v4958_v16 = vpop.f32.mrb[9].mxu1  ;;  %5226 = vmatprep.subr.bf16.mxu0 %v5748_v0  ;;  %v5784_v5 = vld [vmem:[%s7294_s3 + $0x3f8] sm:$0xff]  }
 0x139   :  { %v1930_v19 = vadd.f32 %v4937_v1, %v6860_v40  ;;  %v4959_v20 = vadd.f32 %v4958_v16, %v4957_v8  ;;  %v4960_v21 = vpop.f32.mrb[10].mxu1  ;;  %5247 = vmatpush3.bf16.msra.mxu1 %v5747_v9  ;;  %v5760_v40 = vld [vmem:[%s7294_s3 + $0x3c8] sm:$0xff]   ;;  %v5785_v9 = vld [vmem:[%s7294_s3 + $0x3b8] sm:$0xff]  }
 0x13a   :  { %v4961_v33 = vpop.f32.mrb[11].mxu1  ;;  %5248 = vmatprep.subr.bf16.mxu1 %v5750_v14  ;;  %v5786_v15 = vld [vmem:[%s7294_s3 + $0x478] sm:$0xff]   ;;  %v5790_v21 = vld [vmem:[%s7294_s3 + $0x540] sm:$0xff]  }
 0x13b   :  { %v6960_v24 = vadd.f32 %v4959_v20, %v1930_v19  ;;  %5227 = vmatpush3.bf16.msra.mxu0 %v5749_v22  ;;  %v5787_v16 = vld [vmem:[%s7294_s3 + $0x438] sm:$0xff]   ;;  %v5788_v19 = vld [vmem:[%s7294_s3 + $0x4c0] sm:$0xff]   ;;  %v5792_v33 = vld [vmem:[%s7294_s3 + $0x4c8] sm:$0xff]  }
 0x13c   :  { %5228 = vmatprep.subr.bf16.mxu0 %v5752_v23  ;;  %v5789_v20 = vld [vmem:[%s7294_s3 + $0x480] sm:$0xff]   ;;  %v5793_v23 = vld [vmem:[%s7294_s3 + $0x488] sm:$0xff]  }
 0x13d   :  { %5249 = vmatpush3.bf16.msra.mxu1 %v5751_v25  ;;  %v5791_v22 = vld [vmem:[%s7294_s3 + $0x500] sm:$0xff]   ;;  %v5795_v25 = vld [vmem:[%s7294_s3 + $0x508] sm:$0xff]  }
 0x13e   :  { %5250 = vmatprep.subr.bf16.mxu1 %v5754_v28  ;;  %v5796_v28 = vld [vmem:[%s7294_s3 + $0x4d0] sm:$0xff]  }
 0x13f   :  { %5229 = vmatpush3.bf16.msra.mxu0 %v5753_v29  ;;  %v5798_v29 = vld [vmem:[%s7294_s3 + $0x550] sm:$0xff]  }
 0x140   :  { %5258 = vmatprep.subr.bf16.mxu0 %v5756_v30  ;;  %v5802_v30 = vld [vmem:[%s7294_s3 + $0x558] sm:$0xff]  }
 0x141   :  { %5251 = vmatpush3.bf16.msra.mxu1 %v5755_v35  ;;  %v5803_v35 = vld [vmem:[%s7294_s3 + $0x518] sm:$0xff]  }
 0x142   :  { %4095 = vmatmul.mubr.bf16.vlgmr.msra.gmra.mrb[36].mxu0 %v6232_v53  ;;  %5280 = vmatprep.subr.bf16.mxu1 %v5758_v36  ;;  %v5763_v53 = vld [vmem:[%s7294_s3 + $0x408] sm:$0xff]   ;;  %v5804_v36 = vld [vmem:[%s7294_s3 + $0x4e0] sm:$0xff]  }
 0x143   :  { %5259 = vmatpush3.bf16.msra.mxu0 %v5757_v39  ;;  %4174 = vmatprep.mubr.bf16.mxu0 %v6348_v34  ;;  %v5768_v34 = vld [vmem:[%s7294_s3 + $0x3d8] sm:$0xff]   ;;  %v5805_v39 = vld [vmem:[%s7294_s3 + $0x4a0] sm:$0xff]  }
 0x144   :  { %4135 = vmatmul.mubr.bf16.vlgmr.msra.gmra.mrb[36].mxu1 %v6332_v26  ;;  %5260 = vmatprep.subr.bf16.mxu0 %v5760_v40  ;;  %v5765_v26 = vld [vmem:[%s7294_s3 + $0x390] sm:$0xff]   ;;  %v5806_v40 = vld [vmem:[%s7294_s3 + $0x560] sm:$0xff]  }
 0x145   :  { %5281 = vmatpush3.bf16.msra.mxu1 %v5759_v41  ;;  %4214 = vmatprep.mubr.bf16.mxu1 %v6448_v13  ;;  %v5767_v13 = vld [vmem:[%s7294_s3 + $0x410] sm:$0xff]   ;;  %v5807_v41 = vld [vmem:[%s7294_s3 + $0x520] sm:$0xff]  }
 0x146   :  { %5282 = vmatprep.subr.bf16.mxu1 %v5762_v42  ;;  %v5808_v42 = vld [vmem:[%s7294_s3 + $0x4e8] sm:$0xff]  }
 0x147   :  { %5261 = vmatpush3.bf16.msra.mxu0 %v5761_v43  ;;  %v5809_v43 = vld [vmem:[%s7294_s3 + $0x4a8] sm:$0xff]  }
 0x148   :  { %5262 = vmatprep.subr.bf16.mxu0 %v5764_v44  ;;  %v5810_v44 = vld [vmem:[%s7294_s3 + $0x568] sm:$0xff]  }
 0x149   :  { %5283 = vmatpush3.bf16.msra.mxu1 %v5763_v53  ;;  %v5811_v53 = vld [vmem:[%s7294_s3 + $0x528] sm:$0xff]  }
 0x14a   :  { %5284 = vmatprep.subr.bf16.mxu1 %v5766_v45 }
 0x14b   :  { %5263 = vmatpush3.bf16.msra.mxu0 %v5765_v26  ;;  %v5812_v26 = vld [vmem:[%s7294_s3 + $0x4f0] sm:$0xff]  }
 0x14c   :  { %5264 = vmatprep.subr.bf16.mxu0 %v5768_v34 }
 0x14d   :  { %5285 = vmatpush3.bf16.msra.mxu1 %v5767_v13  ;;  %v5813_v13 = vld [vmem:[%s7294_s3 + $0x4b0] sm:$0xff]  }
 0x14e   :  { %5286 = vmatprep.subr.bf16.mxu1 %v5770_v46 }
 0x14f   :  { %5265 = vmatpush3.bf16.msra.mxu0 %v5769_v47 }
 0x150   :  { %5266 = vmatprep.subr.bf16.mxu0 %v5772_v50  ;;  %v5814_v50 = vld [vmem:[%s7294_s3 + $0x570] sm:$0xff]  }
 0x151   :  { %5287 = vmatpush3.bf16.msra.mxu1 %v5771_v51 }
 0x152   :  { %5288 = vmatprep.subr.bf16.mxu1 %v5774_v52 }
 0x153   :  { %5267 = vmatpush3.bf16.msra.mxu0 %v5773_v55 }
 0x154   :  { %5268 = vmatprep.subr.bf16.mxu0 %v5776_v11 }
 0x155   :  { %v4979_v27 = vpop.f32.mrb[12].mxu0  ;;  %5289 = vmatpush3.bf16.msra.mxu1 %v5775_v56  ;;  %v5816_v56 = vld [vmem:[%s7294_s3 + $0x4f8] sm:$0xff]  }
 0x156   :  { %v4980_v58 = vpop.f32.mrb[13].mxu0  ;;  %5290 = vmatprep.subr.bf16.mxu1 %v5778_v48 }
 0x157   :  { %v4981_v32 = vadd.f32 %v4980_v58, %v4979_v27  ;;  %v4982_v6 = vpop.f32.mrb[14].mxu0  ;;  %v5001_v12 = vpop.f32.mrb[12].mxu1  ;;  %5269 = vmatpush3.bf16.msra.mxu0 %v5777_v54  ;;  %v5815_v27 = vld [vmem:[%s7294_s3 + $0x530] sm:$0xff]   ;;  %v5818_v58 = vld [vmem:[%s7294_s3 + $0x578] sm:$0xff]  }
 0x158   :  { %v4983_v7 = vpop.f32.mrb[15].mxu0  ;;  %v5002_v59 = vpop.f32.mrb[13].mxu1  ;;  %5270 = vmatprep.subr.bf16.mxu0 %v5780_v57  ;;  %v5820_v6 = vld [vmem:[%s7294_s3 + $0x5c0] sm:$0xff]  }
 0x159   :  { %v2010_v61 = vadd.f32 %v4981_v32, %v6960_v24  ;;  %v5003_v0 = vadd.f32 %v5002_v59, %v5001_v12  ;;  %v5004_v1 = vpop.f32.mrb[14].mxu1  ;;  %5291 = vmatpush3.bf16.msra.mxu1 %v5779_v37  ;;  %v5794_v24 = vld [vmem:[%s7294_s3 + $0x548] sm:$0xff]   ;;  %v5817_v32 = vld [vmem:[%s7294_s3 + $0x4b8] sm:$0xff]   ;;  %v5822_v7 = vld [vmem:[%s7294_s3 + $0x600] sm:$0xff]  }
 0x15a   :  { %v5005_v8 = vpop.f32.mrb[15].mxu1  ;;  %5292 = vmatprep.subr.bf16.mxu1 %v5782_v38  ;;  %v5819_v12 = vld [vmem:[%s7294_s3 + $0x538] sm:$0xff]   ;;  %v5823_v38 = vld [vmem:[%s7294_s3 + $0x5c8] sm:$0xff]   ;;  %v5832_v1 = vld [vmem:[%s7294_s3 + $0x5e0] sm:$0xff]  }
 0x15b   :  { %v7069_v14 = vadd.f32 %v5003_v0, %v2010_v61  ;;  %5271 = vmatpush3.bf16.msra.mxu0 %v5781_v49  ;;  %v5821_v49 = vld [vmem:[%s7294_s3 + $0x580] sm:$0xff]   ;;  %v5824_v59 = vld [vmem:[%s7294_s3 + $0x588] sm:$0xff]   ;;  %v5828_v61 = vld [vmem:[%s7294_s3 + $0x610] sm:$0xff]  }
 0x15c   :  { %5272 = vmatprep.subr.bf16.mxu0 %v5784_v5  ;;  %v5830_v0 = vld [vmem:[%s7294_s3 + $0x598] sm:$0xff]   ;;  %v5833_v8 = vld [vmem:[%s7294_s3 + $0x5a0] sm:$0xff]  }
 0x15d   :  { %5293 = vmatpush3.bf16.msra.mxu1 %v5783_v60  ;;  %v5826_v60 = vld [vmem:[%s7294_s3 + $0x5d0] sm:$0xff]   ;;  %v5831_v5 = vld [vmem:[%s7294_s3 + $0x618] sm:$0xff]  }
 0x15e   :  { %5294 = vmatprep.subr.bf16.mxu1 %v5786_v15  ;;  %v5836_v15 = vld [vmem:[%s7294_s3 + $0x5a8] sm:$0xff]  }
 0x15f   :  { %5273 = vmatpush3.bf16.msra.mxu0 %v5785_v9  ;;  %v5835_v9 = vld [vmem:[%s7294_s3 + $0x5e8] sm:$0xff]  }
 0x160   :  { %5302 = vmatprep.subr.bf16.mxu0 %v5788_v19 }
 0x161   :  { %5295 = vmatpush3.bf16.msra.mxu1 %v5787_v16  ;;  %v5838_v16 = vld [vmem:[%s7294_s3 + $0x5f0] sm:$0xff]  }
 0x162   :  { %4175 = vmatmul.mubr.bf16.vlgmr.msra.gmra.mrb[40].mxu0 %v6346_v31  ;;  %5324 = vmatprep.subr.bf16.mxu1 %v5790_v21  ;;  %v5797_v31 = vld [vmem:[%s7294_s3 + $0x490] sm:$0xff]  }
 0x163   :  { %5303 = vmatpush3.bf16.msra.mxu0 %v5789_v20  ;;  %4254 = vmatprep.mubr.bf16.mxu0 %v6463_v18  ;;  %v5800_v18 = vld [vmem:[%s7294_s3 + $0x4d8] sm:$0xff]   ;;  %v5837_v20 = vld [vmem:[%s7294_s3 + $0x628] sm:$0xff]  }
 0x164   :  { %4215 = vmatmul.mubr.bf16.vlgmr.msra.gmra.mrb[40].mxu1 %v6446_v10  ;;  %5304 = vmatprep.subr.bf16.mxu0 %v5792_v33  ;;  %v5799_v10 = vld [vmem:[%s7294_s3 + $0x510] sm:$0xff]  }
 0x165   :  { %5325 = vmatpush3.bf16.msra.mxu1 %v5791_v22  ;;  %4294 = vmatprep.mubr.bf16.mxu1 %v6562_v63  ;;  %v5801_v63 = vld [vmem:[%s7294_s3 + $0x498] sm:$0xff]  }
 0x166   :  { %5326 = vmatprep.subr.bf16.mxu1 %v5794_v24  ;;  %v5839_v24 = vld [vmem:[%s7294_s3 + $0x5b0] sm:$0xff]  }
 0x167   :  { %5305 = vmatpush3.bf16.msra.mxu0 %v5793_v23 }
 0x168   :  { %5306 = vmatprep.subr.bf16.mxu0 %v5796_v28 }
 0x169   :  { %5327 = vmatpush3.bf16.msra.mxu1 %v5795_v25 }
 0x16a   :  { %5328 = vmatprep.subr.bf16.mxu1 %v5798_v29 }
 0x16b   :  { %5307 = vmatpush3.bf16.msra.mxu0 %v5797_v31  ;;  %v5841_v31 = vld [vmem:[%s7294_s3 + $0x5f8] sm:$0xff]  }
 0x16c   :  { %5308 = vmatprep.subr.bf16.mxu0 %v5800_v18 }
 0x16d   :  { %5329 = vmatpush3.bf16.msra.mxu1 %v5799_v10 }
 0x16e   :  { %5330 = vmatprep.subr.bf16.mxu1 %v5802_v30 }
 0x16f   :  { %5309 = vmatpush3.bf16.msra.mxu0 %v5801_v63  ;;  %v5840_v63 = vld [vmem:[%s7294_s3 + $0x630] sm:$0xff]  }
 0x170   :  { %5310 = vmatprep.subr.bf16.mxu0 %v5804_v36 }
 0x171   :  { %5331 = vmatpush3.bf16.msra.mxu1 %v5803_v35  ;;  %v5842_v35 = vld [vmem:[%s7294_s3 + $0x5b8] sm:$0xff]  }
 0x172   :  { %5332 = vmatprep.subr.bf16.mxu1 %v5806_v40  ;;  %v5846_v40 = vld [vmem:[%s7293_s0 + $0x60] ss:$0 sps:$4 sm:$0xff]  }
 0x173   :  { %5311 = vmatpush3.bf16.msra.mxu0 %v5805_v39  ;;  %v5843_v39 = vld [vmem:[%s7294_s3 + $0x638] sm:$0xff]  }
 0x174   :  { %5312 = vmatprep.subr.bf16.mxu0 %v5808_v42 }
 0x175   :  { %v5023_v45 = vpop.f32.mrb[16].mxu0  ;;  %5333 = vmatpush3.bf16.msra.mxu1 %v5807_v41 }
 0x176   :  { %v5024_v34 = vpop.f32.mrb[17].mxu0  ;;  %5334 = vmatprep.subr.bf16.mxu1 %v5810_v44 }
 0x177   :  { %v5025_v46 = vadd.f32 %v5024_v34, %v5023_v45  ;;  %v5026_v47 = vpop.f32.mrb[18].mxu0  ;;  %v5045_v51 = vpop.f32.mrb[16].mxu1  ;;  %5313 = vmatpush3.bf16.msra.mxu0 %v5809_v43 }
 0x178   :  { %v5027_v52 = vpop.f32.mrb[19].mxu0  ;;  %v5046_v11 = vpop.f32.mrb[17].mxu1  ;;  %5314 = vmatprep.subr.bf16.mxu0 %v5812_v26 }
 0x179   :  { %v2090_v55 = vadd.f32 %v5025_v46, %v7069_v14  ;;  %v5047_v48 = vadd.f32 %v5046_v11, %v5045_v51  ;;  %5335 = vmatpush3.bf16.msra.mxu1 %v5811_v53  ;;  %v5048_v54 = vpop.f32.mrb[18].mxu1  ;;  %v5834_v14 = vld [vmem:[%s7294_s3 + $0x620] sm:$0xff]  }
 0x17a   :  { %v5049_v57 = vpop.f32.mrb[19].mxu1  ;;  %5336 = vmatprep.subr.bf16.mxu1 %v5814_v50 }
 0x17b   :  { %v7172_v37 = vadd.f32 %v5047_v48, %v2090_v55  ;;  %5315 = vmatpush3.bf16.msra.mxu0 %v5813_v13  ;;  %v4630_v13 = vld [vmem:[%s7297_s4] ss:$0 sm:$0xff] }
 0x17c   :  { %5316 = vmatprep.subr.bf16.mxu0 %v5816_v56 }
 0x17d   :  { %5337 = vmatpush3.bf16.msra.mxu1 %v5815_v27 }
 0x17e   :  { %5338 = vmatprep.subr.bf16.mxu1 %v5818_v58 }
 0x17f   :  { %5317 = vmatpush3.bf16.msra.mxu0 %v5817_v32 }
 0x180   :  { %5346 = vmatprep.subr.bf16.mxu0 %v5820_v6 }
 0x181   :  { %5339 = vmatpush3.bf16.msra.mxu1 %v5819_v12 }
 0x182   :  { %4255 = vmatmul.mubr.bf16.vlgmr.msra.gmra.mrb[44].mxu0 %v6461_v17  ;;  %5397 = vmatprep.subr.bf16.mxu1 %v5847_v2  ;;  %v5825_v17 = vld [vmem:[%s7294_s3 + $0x608] sm:$0xff]  }
 0x183   :  { %5347 = vmatpush3.bf16.msra.mxu0 %v5821_v49  ;;  %4334 = vmatprep.mubr.bf16.mxu0 %v6573_v4  ;;  %v5829_v4 = vld [vmem:[%s7294_s3 + $0x5d8] sm:$0xff]  }
 0x184   :  { %4295 = vmatmul.mubr.bf16.vlgmr.msra.gmra.mrb[44].mxu1 %v6560_v62  ;;  %5348 = vmatprep.subr.bf16.mxu0 %v5823_v38  ;;  %v5827_v62 = vld [vmem:[%s7294_s3 + $0x590] sm:$0xff]  }
 0x185   :  { %5398 = vmatpush3.bf16.msra.mxu1 %v5822_v7  ;;  %5413 = vmatprep.mubr.msk.bf16.mxu1 %vm5848_vm0, %v5847_v2 }
 0x186   :  { %5399 = vmatprep.subr.bf16.mxu1 %v5847_v2 }
 0x187   :  { %5349 = vmatpush3.bf16.msra.mxu0 %v5824_v59 }
 0x188   :  { %5350 = vmatprep.subr.bf16.mxu0 %v5826_v60 }
 0x189   :  { %5400 = vmatpush3.bf16.msra.mxu1 %v5825_v17 }
 0x18a   :  { %5401 = vmatprep.subr.bf16.mxu1 %v5847_v2 }
 0x18b   :  { %5351 = vmatpush3.bf16.msra.mxu0 %v5827_v62 }
 0x18c   :  { %5352 = vmatprep.subr.bf16.mxu0 %v5829_v4 }
 0x18d   :  { %5402 = vmatpush3.bf16.msra.mxu1 %v5828_v61 }
 0x18e   :  { %5403 = vmatprep.subr.bf16.mxu1 %v5847_v2 }
 0x18f   :  { %5353 = vmatpush3.bf16.msra.mxu0 %v5830_v0 }
 0x190   :  { %5354 = vmatprep.subr.bf16.mxu0 %v5832_v1 }
 0x191   :  { %5404 = vmatpush3.bf16.msra.mxu1 %v5831_v5 }
 0x192   :  { %5405 = vmatprep.subr.bf16.mxu1 %v5847_v2 }
 0x193   :  { %5355 = vmatpush3.bf16.msra.mxu0 %v5833_v8 }
 0x194   :  { %5356 = vmatprep.subr.bf16.mxu0 %v5835_v9 }
 0x195   :  { %v5067_v19 = vpop.f32.mrb[20].mxu0  ;;  %5406 = vmatpush3.bf16.msra.mxu1 %v5834_v14 }
 0x196   :  { %v5068_v21 = vpop.f32.mrb[21].mxu0  ;;  %5407 = vmatprep.subr.bf16.mxu1 %v5847_v2 }
 0x197   :  { %v5069_v22 = vadd.f32 %v5068_v21, %v5067_v19  ;;  %v5070_v33 = vpop.f32.mrb[22].mxu0  ;;  %v5089_v23 = vpop.f32.mrb[20].mxu1  ;;  %5357 = vmatpush3.bf16.msra.mxu0 %v5836_v15 }
 0x198   :  { %v5071_v25 = vpop.f32.mrb[23].mxu0  ;;  %v5090_v28 = vpop.f32.mrb[21].mxu1  ;;  %5358 = vmatprep.subr.bf16.mxu0 %v5838_v16 }
 0x199   :  { %v2170_v29 = vadd.f32 %v5069_v22, %v7172_v37  ;;  %v5091_v10 = vadd.f32 %v5090_v28, %v5089_v23  ;;  %5408 = vmatpush3.bf16.msra.mxu1 %v5837_v20  ;;  %v5092_v18 = vpop.f32.mrb[22].mxu1 }
 0x19a   :  { %v5093_v30 = vpop.f32.mrb[23].mxu1  ;;  %5409 = vmatprep.subr.bf16.mxu1 %v5847_v2 }
 0x19b   :  { %5359 = vmatpush3.bf16.msra.mxu0 %v5839_v24  ;;  %v2210_v36 = vadd.f32 %v5091_v10, %v2170_v29 }
 0x19c   :  { %5360 = vmatprep.subr.bf16.mxu0 %v5841_v31 }
 0x19d   :  { %5410 = vmatpush3.bf16.msra.mxu1 %v5840_v63 }
 0x19e   :  { %5411 = vmatprep.subr.bf16.mxu1 %v5847_v2 }
 0x19f   :  { %5361 = vmatpush3.bf16.msra.mxu0 %v5842_v35 }
 0x1a1   :  { %5412 = vmatpush3.bf16.msra.mxu1 %v5843_v39 }
 0x1a2   :  { %4335 = vmatmul.mubr.bf16.vlgmr.msra.gmra.mrb[48].mxu0 %v6571_v3 }
 0x1a4   :  { %5414 = vmatmul.mubr.bf16.vlgmr.msra.gmra.mrb[48].mxu1 %v5846_v40 }
 0x1b5   :  { %v2249_v41 = vpop.f32.mrb[24].mxu0 }
 0x1b6   :  { %v7270_v42 = vadd.f32 %v2249_v41, %v2210_v36  ;;  %v5395_v43 = vpop.f32.mrb[25].mxu0 }
 0x1b7   :  { %v2252_v44 = vpop.f32.mrb[26].mxu0  ;;  %v5120_v53 = vpop.f32.mrb[24].mxu1 }
 0x1b8   :  { %4383 = vst.msk [vmem:[%s7296_s6] sm:$0xff] %vm4382_vm1, %v7270_v42  ;;  %v5396_v2 = vpop.f32.mrb[27].mxu0  ;;  %v5121_v3 = vpop.f32.mrb[25].mxu1 }
 0x1b9   :  { %v5122_v45 = vadd.f32 %v5121_v3, %v5120_v53  ;;  %v5123_v26 = vpop.f32.mrb[26].mxu1 }
 0x1ba   :  { %v5124_v34 = vpop.f32.mrb[27].mxu1 }
 0x1bb   :  { %v3897_v50 = vadd.f32 %v5122_v45, %v4630_v13 }
 0x1d5   :  { %v5142_v46 = vpop.f32.mrb[28].mxu0 }
 0x1d6   :  { %v5143_v47 = vpop.f32.mrb[29].mxu0 }
 0x1d7   :  { %v5144_v51 = vadd.f32 %v5143_v47, %v5142_v46  ;;  %v5145_v52 = vpop.f32.mrb[30].mxu0  ;;  %v5164_v55 = vpop.f32.mrb[28].mxu1 }
 0x1d8   :  { %v5146_v11 = vpop.f32.mrb[31].mxu0  ;;  %v5165_v56 = vpop.f32.mrb[29].mxu1 }
 0x1d9   :  { %v3937_v48 = vadd.f32 %v5144_v51, %v3897_v50  ;;  %v5166_v54 = vadd.f32 %v5165_v56, %v5164_v55  ;;  %v5167_v27 = vpop.f32.mrb[30].mxu1 }
 0x1da   :  { %v5168_v57 = vpop.f32.mrb[31].mxu1 }
 0x1db   :  { %v3977_v58 = vadd.f32 %v5166_v54, %v3937_v48  ;;  %v4385_v57 = vld [vmem:[%s7299_s5] sm:$0xff] }
 0x1f5   :  { %v5186_v37 = vpop.f32.mrb[32].mxu0 }
 0x1f6   :  { %v5187_v32 = vpop.f32.mrb[33].mxu0 }
 0x1f7   :  { %v5188_v6 = vadd.f32 %v5187_v32, %v5186_v37  ;;  %v5189_v12 = vpop.f32.mrb[34].mxu0  ;;  %v5208_v49 = vpop.f32.mrb[32].mxu1 }
 0x1f8   :  { %v5190_v38 = vpop.f32.mrb[35].mxu0  ;;  %v5209_v7 = vpop.f32.mrb[33].mxu1 }
 0x1f9   :  { %v4017_v59 = vadd.f32 %v5188_v6, %v3977_v58  ;;  %v5210_v60 = vadd.f32 %v5209_v7, %v5208_v49  ;;  %v5211_v17 = vpop.f32.mrb[34].mxu1 }
 0x1fa   :  { %v5212_v62 = vpop.f32.mrb[35].mxu1 }
 0x1fb   :  { %v4057_v4 = vadd.f32 %v5210_v60, %v4017_v59 }
 0x215   :  { %v5230_v61 = vpop.f32.mrb[36].mxu0 }
 0x216   :  { %v5231_v0 = vpop.f32.mrb[37].mxu0 }
 0x217   :  { %v5232_v1 = vadd.f32 %v5231_v0, %v5230_v61  ;;  %v5233_v5 = vpop.f32.mrb[38].mxu0  ;;  %v5252_v8 = vpop.f32.mrb[36].mxu1 }
 0x218   :  { %v5234_v9 = vpop.f32.mrb[39].mxu0  ;;  %v5253_v14 = vpop.f32.mrb[37].mxu1 }
 0x219   :  { %v4097_v15 = vadd.f32 %v5232_v1, %v4057_v4  ;;  %v5254_v16 = vadd.f32 %v5253_v14, %v5252_v8  ;;  %v5255_v19 = vpop.f32.mrb[38].mxu1 }
 0x21a   :  { %v5256_v20 = vpop.f32.mrb[39].mxu1 }
 0x21b   :  { %v4137_v21 = vadd.f32 %v5254_v16, %v4097_v15 }
 0x235   :  { %v5274_v22 = vpop.f32.mrb[40].mxu0 }
 0x236   :  { %v5275_v33 = vpop.f32.mrb[41].mxu0 }
 0x237   :  { %v5276_v23 = vadd.f32 %v5275_v33, %v5274_v22  ;;  %v5277_v24 = vpop.f32.mrb[42].mxu0  ;;  %v5296_v25 = vpop.f32.mrb[40].mxu1 }
 0x238   :  { %v5278_v28 = vpop.f32.mrb[43].mxu0  ;;  %v5297_v31 = vpop.f32.mrb[41].mxu1 }
 0x239   :  { %v4177_v29 = vadd.f32 %v5276_v23, %v4137_v21  ;;  %v5298_v10 = vadd.f32 %v5297_v31, %v5296_v25  ;;  %v5299_v18 = vpop.f32.mrb[42].mxu1 }
 0x23a   :  { %v5300_v63 = vpop.f32.mrb[43].mxu1 }
 0x23b   :  { %v4217_v30 = vadd.f32 %v5298_v10, %v4177_v29 }
 0x255   :  { %v5318_v35 = vpop.f32.mrb[44].mxu0 }
 0x256   :  { %v5319_v36 = vpop.f32.mrb[45].mxu0 }
 0x257   :  { %v5320_v39 = vadd.f32 %v5319_v36, %v5318_v35  ;;  %v5321_v40 = vpop.f32.mrb[46].mxu0  ;;  %v5340_v41 = vpop.f32.mrb[44].mxu1 }
 0x258   :  { %v5322_v43 = vpop.f32.mrb[47].mxu0  ;;  %v5341_v44 = vpop.f32.mrb[45].mxu1 }
 0x259   :  { %v4257_v53 = vadd.f32 %v5320_v39, %v4217_v30  ;;  %v5342_v2 = vadd.f32 %v5341_v44, %v5340_v41  ;;  %v5343_v3 = vpop.f32.mrb[46].mxu1 }
 0x25a   :  { %v5344_v45 = vpop.f32.mrb[47].mxu1 }
 0x25b   :  { %v4297_v26 = vadd.f32 %v5342_v2, %v4257_v53 }
 0x275   :  { %v5362_v34 = vpop.f32.mrb[48].mxu0 }
 0x276   :  { %v5363_v13 = vpop.f32.mrb[49].mxu0 }
 0x277   :  { %v5364_v46 = vadd.f32 %v5363_v13, %v5362_v34  ;;  %v5365_v47 = vpop.f32.mrb[50].mxu0  ;;  %v4376_v50 = vpop.f32.mrb[48].mxu1 }
 0x278   :  { %v5366_v51 = vpop.f32.mrb[51].mxu0  ;;  %v5415_v52 = vpop.f32.mrb[49].mxu1 }
 0x279   :  { %v4337_v55 = vadd.f32 %v5364_v46, %v4297_v26  ;;  %v4379_v11 = vpop.f32.mrb[50].mxu1 }
 0x27a   :  { %v5416_v56 = vpop.f32.mrb[51].mxu1 }
 0x27b   :  { %v4377_v48 = vadd.f32 %v4376_v50, %v4337_v55 }
 0x27d   :  { %4384 = vst.msk [vmem:[%s7298_s7] sm:$0xff] %vm4382_vm1, %v4377_v48  ;;  %v4386_v54 = vmul.f32 0.5, %v4377_v48 }
 0x27f   :  { %v4387_v27 = vmul.f32 1.442695, %v4386_v54 }
 0x281   :  { %5844 = vpow2.f32 %v4387_v27 }
 0x28b   :  { %v5845_v58 = vpop.eup %5844 }
 0x28c   :  { %v4389_v37 = vmul.f32 %v5845_v58, %v4385_v57 }
 0x28e   :  { %v4390_v32 = vadd.f32 %v4389_v37, %v7270_v42 }
 0x290   :  { %4391 = vst.msk [vmem:[%s7300_s8] sm:$0xff] %vm4382_vm1, %v4390_v32 }

// kernel: vae_forward.11
= control target key start
LH: loop header
LB: loop body
LE: loop exit
PB: predicated region body
PF: predicated region fallthrough
CT: control target
= control target key end

     0   :  { %s4175_s12 = smov 0   ;;  %s4954_s0 = inlined_call_operand.vmem [shape: bf16[352,1664], index: 0, kind: input, shape index: {}]   ;;  %s4955_s1 = inlined_call_operand.vmem [shape: bf16[1664,32], index: 1, kind: input, shape index: {}]   ;;  %s4956_s2 = inlined_call_operand.vmem [shape: f32[1,32], index: 2, kind: input, shape index: {}]   ;;  %s4957_s3 = inlined_call_operand.vmem [shape: bf16[352,32], index: 3, kind: output, shape index: {}]  }
   0x1 LB: > { %s2933_s13 = sadd.s32 4294967295, %s4151_s12   ;;  %p2937_p0 = scmp.ge.s32.totalorder %s4151_s12, 1  ;;  %s4151_s12 = sphi %s4175_s12, %s13_s12  }
   0x2   : > { %p139_p1 = scmp.lt.s32.totalorder %s4151_s12, 3 }
   0x4   : > { %p140_p2 = pnand %p2937_p0, %p139_p1 }
   0x5   : > { %v3832_v0 = vld [vmem:[%s4955_s1 + $0x40] sm:$0xff] (!%p140_p2)   ;;  %s164_s16 = smul.u32 (!%p140_p2), 22, %s2933_s13  ;;  %v3834_v2 = vld [vmem:[%s4955_s1 + $0x48] sm:$0xff] (!%p140_p2)   ;;  %v3836_v4 = vld [vmem:[%s4955_s1 + $0x50] sm:$0xff] (!%p140_p2)   ;;  %vm4154_vm0 = vmmov (!%p140_p2), 0   ;;  %vm2854_vm1 = vcmask (!%p140_p2), 257024  }
   0x6   : > { %143 = sbr.rel (%p140_p2) target bundleno = 563 (0x233), region = 32  ;;  %v3833_v1 = vld [vmem:[%s4955_s1] sm:$0xff] (!%p140_p2)   ;;  %3234 = vmatprep.subr.bf16.mxu0 (!%p140_p2), %v3832_v0  ;;  %3805 = vmatprep.subr.bf16.mxu1 (!%p140_p2), %v3832_v0  ;;  %v3835_v3 = vld [vmem:[%s4955_s1 + $0x8] sm:$0xff] (!%p140_p2)   ;;  %v3837_v5 = vld [vmem:[%s4955_s1 + $0x10] sm:$0xff] (!%p140_p2)  }
   0x7   : > { %p165_p3 = scmp.lt.s32.totalorder (!%p140_p2), %s164_s16, 43  ;;  %3235 = vmatpush3.bf16.msra.mxu0 (!%p140_p2), %v3833_v1  ;;  %3813 = vmatpush3.bf16.msra.mxu1 (!%p140_p2), %v3833_v1  ;;  %v3838_v6 = vld [vmem:[%s4955_s1 + $0x58] sm:$0xff] (!%p140_p2)   ;;  %v3840_v8 = vld [vmem:[%s4955_s1 + $0x60] sm:$0xff] (!%p140_p2)   ;;  %v3842_v10 = vld [vmem:[%s4955_s1 + $0x68] sm:$0xff] (!%p140_p2)  }
   0x8   : > { %3236 = vmatprep.subr.bf16.mxu0 (!%p140_p2), %v3834_v2  ;;  %3806 = vmatprep.subr.bf16.mxu1 (!%p140_p2), %v3834_v2  ;;  %v3839_v7 = vld [vmem:[%s4955_s1 + $0x18] sm:$0xff] (!%p140_p2)   ;;  %v3841_v9 = vld [vmem:[%s4955_s1 + $0x20] sm:$0xff] (!%p140_p2)   ;;  %v3843_v13 = vld [vmem:[%s4955_s1 + $0x28] sm:$0xff] (!%p140_p2)  }
   0x9   : > { %v3844_v14 = vld [vmem:[%s4955_s1 + $0x70] sm:$0xff] (!%p140_p2)   ;;  %v3846_v16 = vld [vmem:[%s4955_s1 + $0x78] sm:$0xff] (!%p140_p2)   ;;  %v3854_v18 = vld [vmem:[%s4955_s1 + $0x140] sm:$0xff] (!%p140_p2)  }
   0xa   : > { %v3845_v15 = vld [vmem:[%s4955_s1 + $0x30] sm:$0xff] (!%p140_p2)   ;;  %v3847_v17 = vld [vmem:[%s4955_s1 + $0x38] sm:$0xff] (!%p140_p2)   ;;  %v3856_v21 = vld [vmem:[%s4955_s1 + $0xc0] sm:$0xff] (!%p140_p2)  }
   0xb   : > { %3237 = vmatpush3.bf16.msra.mxu0 (!%p140_p2), %v3835_v3  ;;  %3814 = vmatpush3.bf16.msra.mxu1 (!%p140_p2), %v3835_v3  ;;  %v3855_v22 = vld [vmem:[%s4955_s1 + $0x100] sm:$0xff] (!%p140_p2)   ;;  %v3858_v24 = vld [vmem:[%s4955_s1 + $0x148] sm:$0xff] (!%p140_p2)   ;;  %v3868_v30 = vld [vmem:[%s4955_s1 + $0x150] sm:$0xff] (!%p140_p2)  }
   0xc   : > { %3238 = vmatprep.subr.bf16.mxu0 (!%p140_p2), %v3836_v4  ;;  %3807 = vmatprep.subr.bf16.mxu1 (!%p140_p2), %v3836_v4  ;;  %v3857_v23 = vld [vmem:[%s4955_s1 + $0x80] sm:$0xff] (!%p140_p2)   ;;  %v3866_v27 = vld [vmem:[%s4955_s1 + $0xc8] sm:$0xff] (!%p140_p2)   ;;  %v3869_v33 = vld [vmem:[%s4955_s1 + $0xd0] sm:$0xff] (!%p140_p2)  }
   0xd   : > { %s4959_s16 = smov (!%p165_p3, %s164_s16), 43  ;;  %v3863_v28 = vld [vmem:[%s4955_s1 + $0x108] sm:$0xff]   ;;  %v3870_v34 = vld [vmem:[%s4955_s1 + $0x110] sm:$0xff]   ;;  %v3878_v38 = vld [vmem:[%s4955_s1 + $0xd8] sm:$0xff]  }
   0xe   : > { %s3821_s29 = smul.u32 52, %s4959_s16  ;;  %v3867_v29 = vld [vmem:[%s4955_s1 + $0x88] sm:$0xff]   ;;  %v3871_v35 = vld [vmem:[%s4955_s1 + $0x90] sm:$0xff]   ;;  %v3879_v39 = vld [vmem:[%s4955_s1 + $0x158] sm:$0xff]  }
   0xf   : > { %3239 = vmatpush3.bf16.msra.mxu0 %v3837_v5  ;;  %3815 = vmatpush3.bf16.msra.mxu1 %v3837_v5  ;;  %v3880_v40 = vld [vmem:[%s4955_s1 + $0x98] sm:$0xff]   ;;  %v3886_v44 = vld [vmem:[%s4955_s1 + $0xe0] sm:$0xff]   ;;  %v3892_v50 = vld [vmem:[%s4955_s1 + $0xe8] sm:$0xff]  }
  0x10   : > { %3240 = vmatprep.subr.bf16.mxu0 %v3838_v6  ;;  %3808 = vmatprep.subr.bf16.mxu1 %v3838_v6  ;;  %s4216_s9 = scalar_lea.vmem %s4954_s0, %s3821_s29  ;;  %v3881_v41 = vld [vmem:[%s4955_s1 + $0x118] sm:$0xff]   ;;  %v3890_v47 = vld [vmem:[%s4955_s1 + $0x160] sm:$0xff]   ;;  %v3894_v51 = vld [vmem:[%s4955_s1 + $0x168] sm:$0xff]  }
  0x11   : > { %v3850_v11 = vld [vmem:[%s4216_s9 + $0x4] ss:$52 sps:$4 sm:$0xff]   ;;  %v3853_v12 = vld [vmem:[%s4216_s9 + $0x274] ss:$52 sps:$4 sm:$0xff]   ;;  %v3859_v25 = vld [vmem:[%s4216_s9 + $0x6c] ss:$52 sps:$4 sm:$0xff]  }
  0x12   : > { %1929 = vmatprep.mubr.bf16.mxu0 %v3850_v11  ;;  %1977 = vmatprep.mubr.bf16.mxu1 %v3853_v12  ;;  %v3848_v19 = vld [vmem:[%s4216_s9] ss:$52 sps:$4 sm:$0xff]   ;;  %v3851_v20 = vld [vmem:[%s4216_s9 + $0x270] ss:$52 sps:$4 sm:$0xff]   ;;  %v3864_v31 = vld [vmem:[%s4216_s9 + $0x68] ss:$52 sps:$4 sm:$0xff]  }
  0x13   : > { %3241 = vmatpush3.bf16.msra.mxu0 %v3839_v7  ;;  %3816 = vmatpush3.bf16.msra.mxu1 %v3839_v7  ;;  %v3861_v26 = vld [vmem:[%s4216_s9 + $0x2dc] ss:$52 sps:$4 sm:$0xff]   ;;  %v3865_v32 = vld [vmem:[%s4216_s9 + $0x2d8] ss:$52 sps:$4 sm:$0xff]   ;;  %v3872_v36 = vld [vmem:[%s4216_s9 + $0xd4] ss:$52 sps:$4 sm:$0xff]  }
  0x14   : > { %3242 = vmatprep.subr.bf16.mxu0 %v3840_v8  ;;  %3809 = vmatprep.subr.bf16.mxu1 %v3840_v8  ;;  %v3874_v37 = vld [vmem:[%s4216_s9 + $0x344] ss:$52 sps:$4 sm:$0xff]   ;;  %v3877_v43 = vld [vmem:[%s4216_s9 + $0x340] ss:$52 sps:$4 sm:$0xff]   ;;  %v3882_v45 = vld [vmem:[%s4216_s9 + $0x13c] ss:$52 sps:$4 sm:$0xff]  }
  0x15   : > { %v3876_v42 = vld [vmem:[%s4216_s9 + $0xd0] ss:$52 sps:$4 sm:$0xff]   ;;  %v3884_v46 = vld [vmem:[%s4216_s9 + $0x3ac] ss:$52 sps:$4 sm:$0xff]   ;;  %v3888_v53 = vld [vmem:[%s4216_s9 + $0x3a8] ss:$52 sps:$4 sm:$0xff]  }
  0x16   : > { %v3889_v48 = vld [vmem:[%s4955_s1 + $0xa0] sm:$0xff]   ;;  %v3887_v52 = vld [vmem:[%s4216_s9 + $0x138] ss:$52 sps:$4 sm:$0xff]   ;;  %v3897_v57 = vld [vmem:[%s4216_s9 + $0x414] ss:$52 sps:$4 sm:$0xff]  }
  0x17   : > { %3243 = vmatpush3.bf16.msra.mxu0 %v3841_v9  ;;  %3817 = vmatpush3.bf16.msra.mxu1 %v3841_v9  ;;  %v3891_v49 = vld [vmem:[%s4955_s1 + $0x120] sm:$0xff]   ;;  %v3893_v54 = vld [vmem:[%s4955_s1 + $0xa8] sm:$0xff]   ;;  %v3902_v58 = vld [vmem:[%s4955_s1 + $0xf0] sm:$0xff]  }
  0x18   : > { %3244 = vmatprep.subr.bf16.mxu0 %v3842_v10  ;;  %3810 = vmatprep.subr.bf16.mxu1 %v3842_v10  ;;  %v3899_v55 = vld [vmem:[%s4955_s1 + $0x128] sm:$0xff]   ;;  %v3895_v56 = vld [vmem:[%s4216_s9 + $0x1a4] ss:$52 sps:$4 sm:$0xff]   ;;  %v3903_v59 = vld [vmem:[%s4955_s1 + $0xb0] sm:$0xff]  }
  0x19   : > { %v3904_v60 = vld [vmem:[%s4955_s1 + $0xf8] sm:$0xff]   ;;  %v3905_v61 = vld [vmem:[%s4955_s1 + $0x170] sm:$0xff]   ;;  %v3908_v2 = vld [vmem:[%s4216_s9 + $0x20c] ss:$52 sps:$4 sm:$0xff]  }
  0x1a   : > { %v3907_v62 = vld [vmem:[%s4955_s1 + $0x130] sm:$0xff]   ;;  %v3906_v0 = vld [vmem:[%s4955_s1 + $0xb8] sm:$0xff]   ;;  %v3912_v3 = vld [vmem:[%s4216_s9 + $0xc] ss:$52 sps:$4 sm:$0xff]  }
  0x1b   : > { %3245 = vmatpush3.bf16.msra.mxu0 %v3843_v13  ;;  %3818 = vmatpush3.bf16.msra.mxu1 %v3843_v13  ;;  %v3900_v63 = vld [vmem:[%s4216_s9 + $0x1a0] ss:$52 sps:$4 sm:$0xff]   ;;  %v3901_v1 = vld [vmem:[%s4216_s9 + $0x410] ss:$52 sps:$4 sm:$0xff]   ;;  %v3914_v4 = vld [vmem:[%s4955_s1 + $0x178] sm:$0xff]  }
  0x1c   : > { %3246 = vmatprep.subr.bf16.mxu0 %v3844_v14  ;;  %3811 = vmatprep.subr.bf16.mxu1 %v3844_v14  ;;  %v3915_v5 = vld [vmem:[%s4955_s1 + $0x138] sm:$0xff]   ;;  %v3916_v6 = vld [vmem:[%s4955_s1 + $0x1c0] sm:$0xff]   ;;  %v3918_v11 = vld [vmem:[%s4216_s9 + $0x74] ss:$52 sps:$4 sm:$0xff]  }
  0x1d   : > { %v3910_v7 = vld [vmem:[%s4216_s9 + $0x8] ss:$52 sps:$4 sm:$0xff]   ;;  %v3917_v9 = vld [vmem:[%s4955_s1 + $0x180] sm:$0xff]  }
  0x1e   : > { %v3913_v8 = vld [vmem:[%s4216_s9 + $0x208] ss:$52 sps:$4 sm:$0xff]   ;;  %v3924_v10 = vld [vmem:[%s4955_s1 + $0x240] sm:$0xff]  }
  0x1f   : > { %3247 = vmatpush3.bf16.msra.mxu0 %v3845_v15  ;;  %3819 = vmatpush3.bf16.msra.mxu1 %v3845_v15  ;;  %v3922_v12 = vld [vmem:[%s4216_s9 + $0x14] ss:$52 sps:$4 sm:$0xff]   ;;  %v3920_v15 = vld [vmem:[%s4216_s9 + $0x10] ss:$52 sps:$4 sm:$0xff]  }
  0x20   : > { %3248 = vmatprep.subr.bf16.mxu0 %v3846_v16  ;;  %3812 = vmatprep.subr.bf16.mxu1 %v3846_v16  ;;  %v3926_v13 = vld [vmem:[%s4955_s1 + $0x1c8] sm:$0xff]   ;;  %v3923_v16 = vld [vmem:[%s4216_s9 + $0x70] ss:$52 sps:$4 sm:$0xff]  }
  0x21   : > { %v3931_v14 = vld [vmem:[%s4955_s1 + $0x188] sm:$0xff]  }
  0x23   : > { %3249 = vmatpush3.bf16.msra.mxu0 %v3847_v17  ;;  %3820 = vmatpush3.bf16.msra.mxu1 %v3847_v17  ;;  %v3925_v17 = vld [vmem:[%s4955_s1 + $0x200] sm:$0xff]  }
  0x24   : > { %3398 = vmatprep.subr.bf16.mxu0 %v3854_v18  ;;  %3316 = vmatprep.subr.bf16.mxu1 %v3856_v21  ;;  %v3927_v18 = vld [vmem:[%s4216_s9 + $0xdc] ss:$52 sps:$4 sm:$0xff]  }
  0x25   : > { %v3942_v21 = vld [vmem:[%s4955_s1 + $0x1d0] sm:$0xff]  }
  0x26   : > { %1930 = vmatmul.mubr.bf16.vlgmr.msra.gmra.mrb[0].mxu0 %v3848_v19  ;;  %1978 = vmatmul.mubr.bf16.vlgmr.msra.gmra.mrb[0].mxu1 %v3851_v20  ;;  %v3929_v19 = vld [vmem:[%s4216_s9 + $0x7c] ss:$52 sps:$4 sm:$0xff]   ;;  %v3934_v20 = vld [vmem:[%s4955_s1 + $0x248] sm:$0xff]  }
  0x27   : > { %3399 = vmatpush3.bf16.msra.mxu0 %v3855_v22  ;;  %3317 = vmatpush3.bf16.msra.mxu1 %v3857_v23  ;;  %v3943_v22 = vld [vmem:[%s4955_s1 + $0x190] sm:$0xff]   ;;  %v3935_v23 = vld [vmem:[%s4955_s1 + $0x208] sm:$0xff]  }
  0x28   : > { %3400 = vmatprep.subr.bf16.mxu0 %v3858_v24  ;;  %1937 = vmatprep.mubr.bf16.mxu0 %v3859_v25  ;;  %v3932_v24 = vld [vmem:[%s4216_s9 + $0xd8] ss:$52 sps:$4 sm:$0xff]  }
  0x29   : > { %1985 = vmatprep.mubr.bf16.mxu1 %v3861_v26  ;;  %3318 = vmatprep.subr.bf16.mxu1 %v3866_v27  ;;  %v3933_v25 = vld [vmem:[%s4216_s9 + $0x78] ss:$52 sps:$4 sm:$0xff]   ;;  %v3944_v26 = vld [vmem:[%s4955_s1 + $0x250] sm:$0xff]  }
  0x2a   : > { %v3936_v27 = vld [vmem:[%s4216_s9 + $0x144] ss:$52 sps:$4 sm:$0xff]  }
  0x2b   : > { %3401 = vmatpush3.bf16.msra.mxu0 %v3863_v28  ;;  %3319 = vmatpush3.bf16.msra.mxu1 %v3867_v29  ;;  %v3938_v28 = vld [vmem:[%s4216_s9 + $0xe4] ss:$52 sps:$4 sm:$0xff]   ;;  %v3949_v29 = vld [vmem:[%s4955_s1 + $0x210] sm:$0xff]  }
  0x2c   : > { %3402 = vmatprep.subr.bf16.mxu0 %v3868_v30  ;;  %3320 = vmatprep.subr.bf16.mxu1 %v3869_v33  ;;  %v3952_v30 = vld [vmem:[%s4955_s1 + $0x1d8] sm:$0xff]   ;;  %v3941_v33 = vld [vmem:[%s4216_s9 + $0xe0] ss:$52 sps:$4 sm:$0xff]  }
  0x2e   : > { %1938 = vmatmul.mubr.bf16.gmra.mrb[4].mxu0 %v3864_v31  ;;  %1986 = vmatmul.mubr.bf16.gmra.mrb[4].mxu1 %v3865_v32  ;;  %v3953_v31 = vld [vmem:[%s4955_s1 + $0x198] sm:$0xff]   ;;  %v3940_v32 = vld [vmem:[%s4216_s9 + $0x140] ss:$52 sps:$4 sm:$0xff]  }
  0x2f   : > { %3403 = vmatpush3.bf16.msra.mxu0 %v3870_v34  ;;  %3321 = vmatpush3.bf16.msra.mxu1 %v3871_v35  ;;  %v3960_v34 = vld [vmem:[%s4955_s1 + $0x258] sm:$0xff]  }
  0x30   : > { %1945 = vmatprep.mubr.bf16.mxu0 %v3872_v36  ;;  %1993 = vmatprep.mubr.bf16.mxu1 %v3874_v37  ;;  %v3961_v35 = vld [vmem:[%s4955_s1 + $0x218] sm:$0xff]   ;;  %v3945_v36 = vld [vmem:[%s4216_s9 + $0x1ac] ss:$52 sps:$4 sm:$0xff]  }
  0x31   : > { %3322 = vmatprep.subr.bf16.mxu1 %v3878_v38  ;;  %3404 = vmatprep.subr.bf16.mxu0 %v3879_v39  ;;  %v3947_v37 = vld [vmem:[%s4216_s9 + $0x14c] ss:$52 sps:$4 sm:$0xff]  }
  0x32   : > { %v3966_v38 = vld [vmem:[%s4955_s1 + $0x1e0] sm:$0xff]  }
  0x33   : > { %3323 = vmatpush3.bf16.msra.mxu1 %v3880_v40  ;;  %3405 = vmatpush3.bf16.msra.mxu0 %v3881_v41  ;;  %v3969_v39 = vld [vmem:[%s4955_s1 + $0x1a0] sm:$0xff]  }
  0x34   : > { %3324 = vmatprep.subr.bf16.mxu1 %v3886_v44  ;;  %3406 = vmatprep.subr.bf16.mxu0 %v3890_v47  ;;  %v3970_v40 = vld [vmem:[%s4955_s1 + $0x260] sm:$0xff]   ;;  %v3954_v44 = vld [vmem:[%s4216_s9 + $0x214] ss:$52 sps:$4 sm:$0xff]  }
  0x35   : > { %v3971_v41 = vld [vmem:[%s4955_s1 + $0x220] sm:$0xff]   ;;  %v3979_v47 = vld [vmem:[%s4955_s1 + $0x1a8] sm:$0xff]  }
  0x36   : > { %1946 = vmatmul.mubr.bf16.gmra.mrb[8].mxu0 %v3876_v42  ;;  %1994 = vmatmul.mubr.bf16.gmra.mrb[8].mxu1 %v3877_v43  ;;  %v3950_v42 = vld [vmem:[%s4216_s9 + $0x1a8] ss:$52 sps:$4 sm:$0xff]  }
  0x37   : > { %1953 = vmatprep.mubr.bf16.mxu0 %v3882_v45  ;;  %2001 = vmatprep.mubr.bf16.mxu1 %v3884_v46  ;;  %v3951_v43 = vld [vmem:[%s4216_s9 + $0x148] ss:$52 sps:$4 sm:$0xff]  }
  0x38   : > { %3325 = vmatpush3.bf16.msra.mxu1 %v3889_v48  ;;  %3407 = vmatpush3.bf16.msra.mxu0 %v3891_v49  ;;  %v3956_v45 = vld [vmem:[%s4216_s9 + $0x1b4] ss:$52 sps:$4 sm:$0xff]   ;;  %v3958_v49 = vld [vmem:[%s4216_s9 + $0x210] ss:$52 sps:$4 sm:$0xff]  }
  0x39   : > { %3326 = vmatprep.subr.bf16.mxu1 %v3892_v50  ;;  %3408 = vmatprep.subr.bf16.mxu0 %v3894_v51  ;;  %v3978_v46 = vld [vmem:[%s4955_s1 + $0x1e8] sm:$0xff]   ;;  %v3959_v50 = vld [vmem:[%s4216_s9 + $0x1b0] ss:$52 sps:$4 sm:$0xff]  }
  0x3a   : > { %v3984_v48 = vld [vmem:[%s4955_s1 + $0x268] sm:$0xff]   ;;  %v3962_v51 = vld [vmem:[%s4216_s9 + $0x27c] ss:$52 sps:$4 sm:$0xff]  }
  0x3c   : > { %3327 = vmatpush3.bf16.msra.mxu1 %v3893_v54  ;;  %3409 = vmatpush3.bf16.msra.mxu0 %v3899_v55  ;;  %v3988_v54 = vld [vmem:[%s4955_s1 + $0x1f0] sm:$0xff]  }
  0x3d   : > { %3328 = vmatprep.subr.bf16.mxu1 %v3902_v58  ;;  %3410 = vmatprep.subr.bf16.mxu0 %v3905_v61  ;;  %v3989_v55 = vld [vmem:[%s4955_s1 + $0x1b0] sm:$0xff]   ;;  %v3967_v58 = vld [vmem:[%s4216_s9 + $0x278] ss:$52 sps:$4 sm:$0xff]  }
  0x3e   : > { %1954 = vmatmul.mubr.bf16.gmra.mrb[12].mxu0 %v3887_v52  ;;  %2002 = vmatmul.mubr.bf16.gmra.mrb[12].mxu1 %v3888_v53  ;;  %v3964_v52 = vld [vmem:[%s4216_s9 + $0x21c] ss:$52 sps:$4 sm:$0xff]   ;;  %v3987_v53 = vld [vmem:[%s4955_s1 + $0x228] sm:$0xff]   ;;  %v3974_v61 = vld [vmem:[%s4216_s9 + $0x284] ss:$52 sps:$4 sm:$0xff]  }
  0x3f   : > { %1961 = vmatprep.mubr.bf16.mxu0 %v3895_v56  ;;  %2009 = vmatprep.mubr.bf16.mxu1 %v3897_v57  ;;  %v3996_v56 = vld [vmem:[%s4955_s1 + $0x270] sm:$0xff]  }
  0x40   : > { %3329 = vmatpush3.bf16.msra.mxu1 %v3903_v59  ;;  %3411 = vmatpush3.bf16.msra.mxu0 %v3907_v62  ;;  %v3997_v57 = vld [vmem:[%s4955_s1 + $0x230] sm:$0xff]   ;;  %v3968_v59 = vld [vmem:[%s4216_s9 + $0x218] ss:$52 sps:$4 sm:$0xff]  }
  0x41   : > { %3330 = vmatprep.subr.bf16.mxu1 %v3904_v60  ;;  %3412 = vmatprep.subr.bf16.mxu0 %v3914_v4  ;;  %v3972_v60 = vld [vmem:[%s4216_s9 + $0x2e4] ss:$52 sps:$4 sm:$0xff]   ;;  %v3980_v4 = vld [vmem:[%s4216_s9 + $0x34c] ss:$52 sps:$4 sm:$0xff]  }
  0x42   : > { %v4004_v62 = vld [vmem:[%s4955_s1 + $0x1f8] sm:$0xff]  }
  0x44   : > { %3331 = vmatpush3.bf16.msra.mxu1 %v3906_v0  ;;  %3413 = vmatpush3.bf16.msra.mxu0 %v3915_v5  ;;  %v4006_v0 = vld [vmem:[%s4955_s1 + $0x278] sm:$0xff]   ;;  %v4014_v5 = vld [vmem:[%s4955_s1 + $0x2c0] sm:$0xff]  }
  0x45   : > { %3480 = vmatprep.subr.bf16.mxu1 %v3916_v6  ;;  %3562 = vmatprep.subr.bf16.mxu0 %v3924_v10  ;;  %v4153_v6 = vmov 0.0   ;;  %v3990_v10 = vld [vmem:[%s4216_s9 + $0x3b4] ss:$52 sps:$4 sm:$0xff]  }
  0x46   : > { %1962 = vmatmul.mubr.bf16.gmra.mrb[16].mxu0 %v3900_v63  ;;  %2010 = vmatmul.mubr.bf16.gmra.mrb[16].mxu1 %v3901_v1  ;;  %v4005_v63 = vld [vmem:[%s4955_s1 + $0x1b8] sm:$0xff]  }
  0x47   : > { %1969 = vmatprep.mubr.bf16.mxu0 %v3908_v2  ;;  %2050 = vmatprep.mubr.bf16.mxu1 %v3912_v3  ;;  %v4007_v1 = vld [vmem:[%s4955_s1 + $0x238] sm:$0xff]   ;;  %v3976_v2 = vld [vmem:[%s4216_s9 + $0x2e0] ss:$52 sps:$4 sm:$0xff]  }
  0x48   : > { %v3977_v3 = vld [vmem:[%s4216_s9 + $0x280] ss:$52 sps:$4 sm:$0xff]  }
  0x4e   : > { %1970 = vmatmul.mubr.bf16.gmra.mrb[20].mxu0 %v3913_v8  ;;  %2051 = vmatmul.mubr.bf16.vlgmr.msra.gmra.mrb[20].mxu1 %v3910_v7  ;;  %v3982_v7 = vld [vmem:[%s4216_s9 + $0x2ec] ss:$52 sps:$4 sm:$0xff]   ;;  %v3985_v8 = vld [vmem:[%s4216_s9 + $0x348] ss:$52 sps:$4 sm:$0xff]  }
  0x4f   : > { %3481 = vmatpush3.bf16.msra.mxu1 %v3917_v9  ;;  %2058 = vmatprep.mubr.bf16.mxu1 %v3918_v11  ;;  %v3986_v9 = vld [vmem:[%s4216_s9 + $0x2e8] ss:$52 sps:$4 sm:$0xff]  }
  0x50   : > { %2171 = vmatprep.mubr.bf16.mxu0 %v3922_v12  ;;  %3482 = vmatprep.subr.bf16.mxu1 %v3926_v13  ;;  %v3992_v11 = vld [vmem:[%s4216_s9 + $0x354] ss:$52 sps:$4 sm:$0xff]   ;;  %v3994_v12 = vld [vmem:[%s4216_s9 + $0x3b0] ss:$52 sps:$4 sm:$0xff]  }
  0x51   : > { %v3995_v13 = vld [vmem:[%s4216_s9 + $0x350] ss:$52 sps:$4 sm:$0xff]  }
  0x53   : > { %3483 = vmatpush3.bf16.msra.mxu1 %v3931_v14  ;;  %v3998_v14 = vld [vmem:[%s4216_s9 + $0x41c] ss:$52 sps:$4 sm:$0xff]  }
  0x54   : > { %3484 = vmatprep.subr.bf16.mxu1 %v3942_v21  ;;  %v4013_v21 = vld [vmem:[%s4216_s9 + $0x420] ss:$52 sps:$4 sm:$0xff]  }
  0x56   : > { %2059 = vmatmul.mubr.bf16.gmra.mrb[24].mxu1 %v3923_v16  ;;  %2172 = vmatmul.mubr.bf16.vlgmr.msra.gmra.mrb[24].mxu0 %v3920_v15  ;;  %v4000_v15 = vld [vmem:[%s4216_s9 + $0x3bc] ss:$52 sps:$4 sm:$0xff]   ;;  %v4002_v16 = vld [vmem:[%s4216_s9 + $0x418] ss:$52 sps:$4 sm:$0xff]  }
  0x57   : > { %3563 = vmatpush3.bf16.msra.mxu0 %v3925_v17  ;;  %2066 = vmatprep.mubr.bf16.mxu1 %v3927_v18  ;;  %v4003_v17 = vld [vmem:[%s4216_s9 + $0x3b8] ss:$52 sps:$4 sm:$0xff]  }
  0x58   : > { %2179 = vmatprep.mubr.bf16.mxu0 %v3929_v19  ;;  %3564 = vmatprep.subr.bf16.mxu0 %v3934_v20  ;;  %v4008_v18 = vld [vmem:[%s4216_s9 + $0x424] ss:$52 sps:$4 sm:$0xff]   ;;  %v4012_v19 = vld [vmem:[%s4216_s9 + $0x1c] ss:$52 sps:$4 sm:$0xff]  }
  0x59   : > { %3485 = vmatpush3.bf16.msra.mxu1 %v3943_v22  ;;  %v4010_v20 = vld [vmem:[%s4216_s9 + $0x18] ss:$52 sps:$4 sm:$0xff]   ;;  %v4015_v22 = vld [vmem:[%s4955_s1 + $0x280] sm:$0xff]  }
  0x5a   : > { %3486 = vmatprep.subr.bf16.mxu1 %v3952_v30  ;;  %v4022_v30 = vld [vmem:[%s4955_s1 + $0x300] sm:$0xff]  }
  0x5b   : > { %3565 = vmatpush3.bf16.msra.mxu0 %v3935_v23  ;;  %v4016_v23 = vld [vmem:[%s4216_s9 + $0x84] ss:$52 sps:$4 sm:$0xff]  }
  0x5c   : > { %3566 = vmatprep.subr.bf16.mxu0 %v3944_v26  ;;  %v4028_v26 = vld [vmem:[%s4955_s1 + $0x288] sm:$0xff]  }
  0x5d   : > { %3487 = vmatpush3.bf16.msra.mxu1 %v3953_v31  ;;  %v4024_v31 = vld [vmem:[%s4216_s9 + $0xec] ss:$52 sps:$4 sm:$0xff]  }
  0x5e   : > { %2067 = vmatmul.mubr.bf16.gmra.mrb[28].mxu1 %v3932_v24  ;;  %2180 = vmatmul.mubr.bf16.gmra.mrb[28].mxu0 %v3933_v25  ;;  %v4020_v24 = vld [vmem:[%s4216_s9 + $0x24] ss:$52 sps:$4 sm:$0xff]   ;;  %v4023_v25 = vld [vmem:[%s4955_s1 + $0x2c8] sm:$0xff]  }
  0x5f   : > { %2074 = vmatprep.mubr.bf16.mxu1 %v3936_v27  ;;  %2187 = vmatprep.mubr.bf16.mxu0 %v3938_v28  ;;  %v4018_v27 = vld [vmem:[%s4216_s9 + $0x20] ss:$52 sps:$4 sm:$0xff]  }
  0x60   : > { %3567 = vmatpush3.bf16.msra.mxu0 %v3949_v29  ;;  %3488 = vmatprep.subr.bf16.mxu1 %v3966_v38  ;;  %v4038_v28 = vld [vmem:[%s4955_s1 + $0x2d0] sm:$0xff]  }
  0x61   : > { %3568 = vmatprep.subr.bf16.mxu0 %v3960_v34  ;;  %3489 = vmatpush3.bf16.msra.mxu1 %v3969_v39  ;;  %v4021_v29 = vld [vmem:[%s4216_s9 + $0x80] ss:$52 sps:$4 sm:$0xff]   ;;  %v4047_v34 = vld [vmem:[%s4955_s1 + $0x2d8] sm:$0xff]  }
  0x62   : > { %3490 = vmatprep.subr.bf16.mxu1 %v3978_v46  ;;  %v4032_v38 = vld [vmem:[%s4216_s9 + $0x154] ss:$52 sps:$4 sm:$0xff]   ;;  %v4048_v39 = vld [vmem:[%s4955_s1 + $0x298] sm:$0xff]  }
  0x63   : > { %v4055_v46 = vld [vmem:[%s4955_s1 + $0x318] sm:$0xff]  }
  0x64   : > { %3569 = vmatpush3.bf16.msra.mxu0 %v3961_v35  ;;  %v4031_v35 = vld [vmem:[%s4955_s1 + $0x308] sm:$0xff]  }
  0x65   : > { %3570 = vmatprep.subr.bf16.mxu0 %v3970_v40  ;;  %3491 = vmatpush3.bf16.msra.mxu1 %v3979_v47  ;;  %v4034_v40 = vld [vmem:[%s4216_s9 + $0xf4] ss:$52 sps:$4 sm:$0xff]  }
  0x66   : > { %2075 = vmatmul.mubr.bf16.gmra.mrb[32].mxu1 %v3940_v32  ;;  %2188 = vmatmul.mubr.bf16.gmra.mrb[32].mxu0 %v3941_v33  ;;  %v4026_v32 = vld [vmem:[%s4216_s9 + $0x8c] ss:$52 sps:$4 sm:$0xff]   ;;  %v4039_v33 = vld [vmem:[%s4955_s1 + $0x290] sm:$0xff]  }
  0x67   : > { %2082 = vmatprep.mubr.bf16.mxu1 %v3945_v36  ;;  %2195 = vmatprep.mubr.bf16.mxu0 %v3947_v37  ;;  %v4029_v36 = vld [vmem:[%s4216_s9 + $0xe8] ss:$52 sps:$4 sm:$0xff]  }
  0x68   : > { %3571 = vmatpush3.bf16.msra.mxu0 %v3971_v41  ;;  %3492 = vmatprep.subr.bf16.mxu1 %v3988_v54  ;;  %v4030_v37 = vld [vmem:[%s4216_s9 + $0x88] ss:$52 sps:$4 sm:$0xff]   ;;  %v4044_v41 = vld [vmem:[%s4955_s1 + $0x310] sm:$0xff]  }
  0x69   : > { %3572 = vmatprep.subr.bf16.mxu0 %v3984_v48  ;;  %3493 = vmatpush3.bf16.msra.mxu1 %v3989_v55  ;;  %v4072_v47 = vld [vmem:[%s4955_s1 + $0x2a8] sm:$0xff]   ;;  %v4037_v48 = vld [vmem:[%s4216_s9 + $0xf0] ss:$52 sps:$4 sm:$0xff]   ;;  %v4095_v54 = vld [vmem:[%s4955_s1 + $0x2f8] sm:$0xff]  }
  0x6a   : > { %3494 = vmatprep.subr.bf16.mxu1 %v4004_v62  ;;  %v4079_v55 = vld [vmem:[%s4955_s1 + $0x328] sm:$0xff]   ;;  %v4097_v62 = vld [vmem:[%s4955_s1 + $0x338] sm:$0xff]  }
  0x6c   : > { %3573 = vmatpush3.bf16.msra.mxu0 %v3987_v53  ;;  %v4081_v53 = vld [vmem:[%s4955_s1 + $0x2b0] sm:$0xff]  }
  0x6d   : > { %3574 = vmatprep.subr.bf16.mxu0 %v3996_v56  ;;  %3495 = vmatpush3.bf16.msra.mxu1 %v4005_v63  ;;  %v4045_v56 = vld [vmem:[%s4216_s9 + $0x1b8] ss:$52 sps:$4 sm:$0xff]   ;;  %v4053_v63 = vld [vmem:[%s4216_s9 + $0x220] ss:$52 sps:$4 sm:$0xff]  }
  0x6e   : > { %2083 = vmatmul.mubr.bf16.gmra.mrb[36].mxu1 %v3950_v42  ;;  %2196 = vmatmul.mubr.bf16.gmra.mrb[36].mxu0 %v3951_v43  ;;  %v4060_v42 = vld [vmem:[%s4955_s1 + $0x2e0] sm:$0xff]  }
  0x6f   : > { %2090 = vmatprep.mubr.bf16.mxu1 %v3954_v44  ;;  %2203 = vmatprep.mubr.bf16.mxu0 %v3956_v45  ;;  %v4063_v43 = vld [vmem:[%s4955_s1 + $0x2a0] sm:$0xff]   ;;  %v4071_v44 = vld [vmem:[%s4955_s1 + $0x2e8] sm:$0xff]  }
  0x70   : > { %3575 = vmatpush3.bf16.msra.mxu0 %v3997_v57  ;;  %3644 = vmatprep.subr.bf16.mxu1 %v4014_v5  ;;  %v4036_v45 = vld [vmem:[%s4216_s9 + $0x150] ss:$52 sps:$4 sm:$0xff]   ;;  %v4096_v57 = vld [vmem:[%s4955_s1 + $0x2b8] sm:$0xff]   ;;  %v4065_v5 = vld [vmem:[%s4216_s9 + $0x2f4] ss:$52 sps:$4 sm:$0xff]  }
  0x71   : > { %3576 = vmatprep.subr.bf16.mxu0 %v4006_v0  ;;  %v4054_v0 = vld [vmem:[%s4216_s9 + $0x1c0] ss:$52 sps:$4 sm:$0xff]  }
  0x74   : > { %3577 = vmatpush3.bf16.msra.mxu0 %v4007_v1  ;;  %v4056_v1 = vld [vmem:[%s4216_s9 + $0x28c] ss:$52 sps:$4 sm:$0xff]  }
  0x75   : > { %3745 = vmatprep.subr.bf16.mxu0 %v4153_v6 }
  0x76   : > { %2091 = vmatmul.mubr.bf16.gmra.mrb[40].mxu1 %v3958_v49  ;;  %2204 = vmatmul.mubr.bf16.gmra.mrb[40].mxu0 %v3959_v50  ;;  %v4040_v49 = vld [vmem:[%s4216_s9 + $0x1bc] ss:$52 sps:$4 sm:$0xff]  }
  0x77   : > { %2098 = vmatprep.mubr.bf16.mxu1 %v3962_v51  ;;  %2211 = vmatprep.mubr.bf16.mxu0 %v3964_v52  ;;  %v4042_v50 = vld [vmem:[%s4216_s9 + $0x15c] ss:$52 sps:$4 sm:$0xff]   ;;  %v4064_v51 = vld [vmem:[%s4955_s1 + $0x320] sm:$0xff]  }
  0x78   : > { %v4080_v52 = vld [vmem:[%s4955_s1 + $0x2f0] sm:$0xff]  }
  0x7e   : > { %2099 = vmatmul.mubr.bf16.gmra.mrb[44].mxu1 %v3967_v58  ;;  %2212 = vmatmul.mubr.bf16.gmra.mrb[44].mxu0 %v3968_v59  ;;  %v4046_v58 = vld [vmem:[%s4216_s9 + $0x158] ss:$52 sps:$4 sm:$0xff]  }
  0x7f   : > { %2106 = vmatprep.mubr.bf16.mxu1 %v3972_v60  ;;  %2219 = vmatprep.mubr.bf16.mxu0 %v3974_v61  ;;  %v4049_v59 = vld [vmem:[%s4216_s9 + $0x224] ss:$52 sps:$4 sm:$0xff]   ;;  %v4088_v61 = vld [vmem:[%s4955_s1 + $0x330] sm:$0xff]  }
  0x80   : > { %v4051_v60 = vld [vmem:[%s4216_s9 + $0x1c4] ss:$52 sps:$4 sm:$0xff]  }
  0x86   : > { %2107 = vmatmul.mubr.bf16.gmra.mrb[48].mxu1 %v3976_v2  ;;  %2220 = vmatmul.mubr.bf16.gmra.mrb[48].mxu0 %v3977_v3  ;;  %v4058_v2 = vld [vmem:[%s4216_s9 + $0x22c] ss:$52 sps:$4 sm:$0xff]   ;;  %v4061_v3 = vld [vmem:[%s4216_s9 + $0x288] ss:$52 sps:$4 sm:$0xff]  }
  0x87   : > { %2114 = vmatprep.mubr.bf16.mxu1 %v3980_v4  ;;  %2227 = vmatprep.mubr.bf16.mxu0 %v3982_v7  ;;  %v4062_v4 = vld [vmem:[%s4216_s9 + $0x228] ss:$52 sps:$4 sm:$0xff]  }
  0x88   : > { %v4067_v7 = vld [vmem:[%s4216_s9 + $0x294] ss:$52 sps:$4 sm:$0xff]  }
  0x8e   : > { %2115 = vmatmul.mubr.bf16.gmra.mrb[52].mxu1 %v3985_v8  ;;  %2228 = vmatmul.mubr.bf16.gmra.mrb[52].mxu0 %v3986_v9  ;;  %v4069_v8 = vld [vmem:[%s4216_s9 + $0x2f0] ss:$52 sps:$4 sm:$0xff]  }
  0x8f   : > { %2122 = vmatprep.mubr.bf16.mxu1 %v3990_v10  ;;  %2235 = vmatprep.mubr.bf16.mxu0 %v3992_v11  ;;  %v4070_v9 = vld [vmem:[%s4216_s9 + $0x290] ss:$52 sps:$4 sm:$0xff]  }
  0x90   : > { %v4073_v10 = vld [vmem:[%s4216_s9 + $0x35c] ss:$52 sps:$4 sm:$0xff]  }
  0x91   : > { %v4075_v11 = vld [vmem:[%s4216_s9 + $0x2fc] ss:$52 sps:$4 sm:$0xff]  }
  0x96   : > { %2123 = vmatmul.mubr.bf16.gmra.mrb[56].mxu1 %v3994_v12  ;;  %2236 = vmatmul.mubr.bf16.gmra.mrb[56].mxu0 %v3995_v13  ;;  %v4077_v12 = vld [vmem:[%s4216_s9 + $0x358] ss:$52 sps:$4 sm:$0xff]  }
  0x97   : > { %2130 = vmatprep.mubr.bf16.mxu1 %v3998_v14  ;;  %2243 = vmatprep.mubr.bf16.mxu0 %v4000_v15  ;;  %v4078_v13 = vld [vmem:[%s4216_s9 + $0x2f8] ss:$52 sps:$4 sm:$0xff]  }
  0x98   : > { %v4082_v14 = vld [vmem:[%s4216_s9 + $0x3c4] ss:$52 sps:$4 sm:$0xff]  }
  0x99   : > { %v4084_v15 = vld [vmem:[%s4216_s9 + $0x364] ss:$52 sps:$4 sm:$0xff]  }
  0x9e   : > { %2131 = vmatmul.mubr.bf16.gmra.mrb[60].mxu1 %v4002_v16  ;;  %2244 = vmatmul.mubr.bf16.gmra.mrb[60].mxu0 %v4003_v17  ;;  %v4086_v16 = vld [vmem:[%s4216_s9 + $0x3c0] ss:$52 sps:$4 sm:$0xff]  }
  0x9f   : > { %2251 = vmatprep.mubr.bf16.mxu0 %v4008_v18  ;;  %2292 = vmatprep.mubr.bf16.mxu1 %v4012_v19  ;;  %v4087_v17 = vld [vmem:[%s4216_s9 + $0x360] ss:$52 sps:$4 sm:$0xff]  }
  0xa0   : > { %v4089_v18 = vld [vmem:[%s4216_s9 + $0x42c] ss:$52 sps:$4 sm:$0xff]  }
  0xa1   : > { %v4091_v19 = vld [vmem:[%s4216_s9 + $0x3cc] ss:$52 sps:$4 sm:$0xff]  }
  0xa6   : > { %2252 = vmatmul.mubr.bf16.gmra.mrb[64].mxu0 %v4013_v21  ;;  %2293 = vmatmul.mubr.bf16.vlgmr.msra.gmra.mrb[64].mxu1 %v4010_v20  ;;  %v4093_v20 = vld [vmem:[%s4216_s9 + $0x428] ss:$52 sps:$4 sm:$0xff]  }
  0xa7   : > { %3645 = vmatpush3.bf16.msra.mxu1 %v4015_v22  ;;  %2300 = vmatprep.mubr.bf16.mxu1 %v4016_v23  ;;  %v4094_v21 = vld [vmem:[%s4216_s9 + $0x3c8] ss:$52 sps:$4 sm:$0xff]   ;;  %v4102_v23 = vld [vmem:[%s4216_s9 + $0x2c] ss:$52 sps:$4 sm:$0xff]  }
  0xa8   : > { %2413 = vmatprep.mubr.bf16.mxu0 %v4020_v24  ;;  %3646 = vmatprep.subr.bf16.mxu1 %v4023_v25  ;;  %v4098_v22 = vld [vmem:[%s4216_s9 + $0x434] ss:$52 sps:$4 sm:$0xff]  }
  0xab   : > { %3647 = vmatpush3.bf16.msra.mxu1 %v4028_v26 }
  0xac   : > { %3648 = vmatprep.subr.bf16.mxu1 %v4038_v28  ;;  %v4100_v28 = vld [vmem:[%s4216_s9 + $0x28] ss:$52 sps:$4 sm:$0xff]  }
  0xae   : > { %2301 = vmatmul.mubr.bf16.gmra.mrb[68].mxu1 %v4021_v29  ;;  %2414 = vmatmul.mubr.bf16.vlgmr.msra.gmra.mrb[68].mxu0 %v4018_v27  ;;  %v4103_v29 = vld [vmem:[%s4216_s9 + $0x430] ss:$52 sps:$4 sm:$0xff]  }
  0xaf   : > { %3746 = vmatpush3.bf16.msra.mxu0 %v4022_v30  ;;  %2308 = vmatprep.mubr.bf16.mxu1 %v4024_v31 }
  0xb0   : > { %2421 = vmatprep.mubr.bf16.mxu0 %v4026_v32  ;;  %3747 = vmatprep.subr.bf16.mxu0 %v4153_v6 }
  0xb1   : > { %3649 = vmatpush3.bf16.msra.mxu1 %v4039_v33 }
  0xb2   : > { %3650 = vmatprep.subr.bf16.mxu1 %v4047_v34  ;;  %v4104_v34 = vld [vmem:[%s4216_s9 + $0x94] ss:$52 sps:$4 sm:$0xff]  }
  0xb3   : > { %3748 = vmatpush3.bf16.msra.mxu0 %v4031_v35 }
  0xb4   : > { %3749 = vmatprep.subr.bf16.mxu0 %v4153_v6 }
  0xb5   : > { %3651 = vmatpush3.bf16.msra.mxu1 %v4048_v39 }
  0xb6   : > { %2309 = vmatmul.mubr.bf16.gmra.mrb[72].mxu1 %v4029_v36  ;;  %2422 = vmatmul.mubr.bf16.gmra.mrb[72].mxu0 %v4030_v37 }
  0xb7   : > { %2316 = vmatprep.mubr.bf16.mxu1 %v4032_v38  ;;  %2429 = vmatprep.mubr.bf16.mxu0 %v4034_v40 }
  0xb8   : > { %3750 = vmatpush3.bf16.msra.mxu0 %v4044_v41  ;;  %3652 = vmatprep.subr.bf16.mxu1 %v4060_v42 }
  0xb9   : > { %3751 = vmatprep.subr.bf16.mxu0 %v4153_v6  ;;  %3653 = vmatpush3.bf16.msra.mxu1 %v4063_v43  ;;  %v4106_v43 = vld [vmem:[%s4216_s9 + $0x90] ss:$52 sps:$4 sm:$0xff]  }
  0xba   : > { %3654 = vmatprep.subr.bf16.mxu1 %v4071_v44  ;;  %v4107_v44 = vld [vmem:[%s4216_s9 + $0x30] ss:$52 sps:$4 sm:$0xff]  }
  0xbc   : > { %3752 = vmatpush3.bf16.msra.mxu0 %v4055_v46 }
  0xbd   : > { %3753 = vmatprep.subr.bf16.mxu0 %v4153_v6  ;;  %3655 = vmatpush3.bf16.msra.mxu1 %v4072_v47 }
  0xbe   : > { %2317 = vmatmul.mubr.bf16.gmra.mrb[76].mxu1 %v4036_v45  ;;  %2430 = vmatmul.mubr.bf16.gmra.mrb[76].mxu0 %v4037_v48 }
  0xbf   : > { %2324 = vmatprep.mubr.bf16.mxu1 %v4040_v49  ;;  %2437 = vmatprep.mubr.bf16.mxu0 %v4042_v50  ;;  %v4108_v49 = vld [vmem:[%s4216_s9 + $0xfc] ss:$52 sps:$4 sm:$0xff]  }
  0xc0   : > { %3754 = vmatpush3.bf16.msra.mxu0 %v4064_v51  ;;  %3656 = vmatprep.subr.bf16.mxu1 %v4080_v52 }
  0xc1   : > { %3755 = vmatprep.subr.bf16.mxu0 %v4153_v6  ;;  %3657 = vmatpush3.bf16.msra.mxu1 %v4081_v53 }
  0xc2   : > { %3658 = vmatprep.subr.bf16.mxu1 %v4095_v54 }
  0xc4   : > { %3756 = vmatpush3.bf16.msra.mxu0 %v4079_v55 }
  0xc5   : > { %3757 = vmatprep.subr.bf16.mxu0 %v4153_v6  ;;  %3659 = vmatpush3.bf16.msra.mxu1 %v4096_v57 }
  0xc6   : > { %2325 = vmatmul.mubr.bf16.gmra.mrb[80].mxu1 %v4045_v56  ;;  %2438 = vmatmul.mubr.bf16.gmra.mrb[80].mxu0 %v4046_v58  ;;  %v4110_v58 = vld [vmem:[%s4216_s9 + $0xf8] ss:$52 sps:$4 sm:$0xff]  }
  0xc7   : > { %2332 = vmatprep.mubr.bf16.mxu1 %v4049_v59  ;;  %2445 = vmatprep.mubr.bf16.mxu0 %v4051_v60  ;;  %v4111_v59 = vld [vmem:[%s4216_s9 + $0x98] ss:$52 sps:$4 sm:$0xff]  }
  0xc8   : > { %3758 = vmatpush3.bf16.msra.mxu0 %v4088_v61 }
  0xc9   : > { %3759 = vmatprep.subr.bf16.mxu0 %v4153_v6 }
  0xcc   : > { %3760 = vmatpush3.bf16.msra.mxu0 %v4097_v62 }
  0xce   : > { %2333 = vmatmul.mubr.bf16.gmra.mrb[84].mxu1 %v4053_v63  ;;  %2446 = vmatmul.mubr.bf16.gmra.mrb[84].mxu0 %v4054_v0  ;;  %v4112_v0 = vld [vmem:[%s4216_s9 + $0x164] ss:$52 sps:$4 sm:$0xff]  }
  0xcf   : > { %2340 = vmatprep.mubr.bf16.mxu1 %v4056_v1  ;;  %2453 = vmatprep.mubr.bf16.mxu0 %v4058_v2  ;;  %v4655_v1 = vld [vmem:[%s4956_s2] ss:$0 sm:$0xff] }
  0xd6   : > { %2341 = vmatmul.mubr.bf16.gmra.mrb[88].mxu1 %v4061_v3  ;;  %2454 = vmatmul.mubr.bf16.gmra.mrb[88].mxu0 %v4062_v4 }
  0xd7   : > { %2348 = vmatprep.mubr.bf16.mxu1 %v4065_v5  ;;  %2461 = vmatprep.mubr.bf16.mxu0 %v4067_v7 }
  0xde   : > { %2349 = vmatmul.mubr.bf16.gmra.mrb[92].mxu1 %v4069_v8  ;;  %2462 = vmatmul.mubr.bf16.gmra.mrb[92].mxu0 %v4070_v9 }
  0xdf   : > { %2356 = vmatprep.mubr.bf16.mxu1 %v4073_v10  ;;  %2469 = vmatprep.mubr.bf16.mxu0 %v4075_v11 }
  0xe6   : > { %2357 = vmatmul.mubr.bf16.gmra.mrb[96].mxu1 %v4077_v12  ;;  %2470 = vmatmul.mubr.bf16.gmra.mrb[96].mxu0 %v4078_v13  ;;  %v4114_v13 = vld [vmem:[%s4216_s9 + $0x160] ss:$52 sps:$4 sm:$0xff]  }
  0xe7   : > { %2364 = vmatprep.mubr.bf16.mxu1 %v4082_v14  ;;  %2477 = vmatprep.mubr.bf16.mxu0 %v4084_v15  ;;  %v4115_v14 = vld [vmem:[%s4216_s9 + $0x100] ss:$52 sps:$4 sm:$0xff]  }
  0xee   : > { %2365 = vmatmul.mubr.bf16.gmra.mrb[100].mxu1 %v4086_v16  ;;  %2478 = vmatmul.mubr.bf16.gmra.mrb[100].mxu0 %v4087_v17 }
  0xef   : > { %2372 = vmatprep.mubr.bf16.mxu1 %v4089_v18  ;;  %2485 = vmatprep.mubr.bf16.mxu0 %v4091_v19  ;;  %v4116_v19 = vld [vmem:[%s4216_s9 + $0x1cc] ss:$52 sps:$4 sm:$0xff]  }
  0xf6   : > { %2373 = vmatmul.mubr.bf16.gmra.mrb[104].mxu1 %v4093_v20  ;;  %2486 = vmatmul.mubr.bf16.gmra.mrb[104].mxu0 %v4094_v21 }
  0xf7   : > { %2493 = vmatprep.mubr.bf16.mxu0 %v4098_v22  ;;  %2534 = vmatprep.mubr.bf16.mxu1 %v4102_v23 }
  0xf9   : > { %v3250_v24 = vpop.f32.mrb[0].mxu0  ;;  %v3286_v25 = vpop.f32.mrb[0].mxu1 }
  0xfa   : > { %v3251_v26 = vpop.f32.mrb[1].mxu0  ;;  %v3287_v27 = vpop.f32.mrb[1].mxu1 }
  0xfb   : > { %v4623_v30 = vadd.f32 %v3251_v26, %v3250_v24  ;;  %v3253_v31 = vpop.f32.mrb[2].mxu0  ;;  %v4625_v32 = vadd.f32 %v3287_v27, %v3286_v25  ;;  %v3289_v33 = vpop.f32.mrb[2].mxu1 }
  0xfc   : > { %v3254_v35 = vpop.f32.mrb[3].mxu0  ;;  %v3290_v36 = vpop.f32.mrb[3].mxu1 }
  0xfd   : > { %v4628_v37 = vadd.f32 %v3254_v35, %v3253_v31  ;;  %v4630_v38 = vadd.f32 %v3290_v36, %v3289_v33  ;;  %v4118_v31 = vld [vmem:[%s4216_s9 + $0x1c8] ss:$52 sps:$4 sm:$0xff]  }
  0xfe   : > { %2494 = vmatmul.mubr.bf16.gmra.mrb[108].mxu0 %v4103_v29  ;;  %2535 = vmatmul.mubr.bf16.vlgmr.msra.gmra.mrb[108].mxu1 %v4100_v28  ;;  %v4119_v33 = vld [vmem:[%s4216_s9 + $0x168] ss:$52 sps:$4 sm:$0xff]  }
  0xff   : > { %2542 = vmatprep.mubr.bf16.mxu1 %v4104_v34  ;;  %3761 = vmatprep.mubr.msk.bf16.mxu0 %vm4154_vm0, %v4153_v6 }
 0x101   : > { %v3256_v39 = vpop.f32.mrb[4].mxu0  ;;  %v3292_v40 = vpop.f32.mrb[4].mxu1 }
 0x102   : > { %v3257_v41 = vpop.f32.mrb[5].mxu0  ;;  %v3293_v42 = vpop.f32.mrb[5].mxu1 }
 0x103   : > { %v4636_v45 = vadd.f32 %v3257_v41, %v3256_v39  ;;  %v3259_v46 = vpop.f32.mrb[6].mxu0  ;;  %v4638_v47 = vadd.f32 %v3293_v42, %v3292_v40  ;;  %v3295_v48 = vpop.f32.mrb[6].mxu1  ;;  %v4120_v40 = vld [vmem:[%s4216_s9 + $0x234] ss:$52 sps:$4 sm:$0xff]  }
 0x104   : > { %v3260_v50 = vpop.f32.mrb[7].mxu0  ;;  %v3296_v51 = vpop.f32.mrb[7].mxu1 }
 0x105   : > { %v4641_v52 = vadd.f32 %v3260_v50, %v3259_v46  ;;  %v4643_v53 = vadd.f32 %v3296_v51, %v3295_v48 }
 0x106   : > { %2543 = vmatmul.mubr.bf16.gmra.mrb[112].mxu1 %v4106_v43  ;;  %3762 = vmatmul.mubr.bf16.vlgmr.msra.gmra.mrb[112].mxu0 %v4107_v44 }
 0x107   : > { %2550 = vmatprep.mubr.bf16.mxu1 %v4108_v49  ;;  %3765 = vmatprep.mubr.msk.bf16.mxu0 %vm4154_vm0, %v4153_v6 }
 0x109   : > { %v3262_v54 = vpop.f32.mrb[8].mxu0  ;;  %v3298_v55 = vpop.f32.mrb[8].mxu1 }
 0x10a   : > { %v3263_v56 = vpop.f32.mrb[9].mxu0  ;;  %v3299_v57 = vpop.f32.mrb[9].mxu1 }
 0x10b   : > { %v4649_v60 = vadd.f32 %v3263_v56, %v3262_v54  ;;  %v3265_v61 = vpop.f32.mrb[10].mxu0  ;;  %v3300_v62 = vadd.f32 %v3299_v57, %v3298_v55  ;;  %v3301_v63 = vpop.f32.mrb[10].mxu1  ;;  %v4122_v55 = vld [vmem:[%s4216_s9 + $0x230] ss:$52 sps:$4 sm:$0xff]   ;;  %v1932_v57 = vadd.f32 %v4623_v30, %v4655_v1 }
 0x10c   : > { %v3266_v2 = vpop.f32.mrb[11].mxu0  ;;  %v3302_v3 = vpop.f32.mrb[11].mxu1  ;;  %v4123_v56 = vld [vmem:[%s4216_s9 + $0x1d0] ss:$52 sps:$4 sm:$0xff]  }
 0x10d   : > { %v4658_v4 = vadd.f32 %v3300_v62, %v4655_v1  ;;  %v4660_v5 = vadd.f32 %v3266_v2, %v3265_v61  ;;  %v3303_v7 = vadd.f32 %v3302_v3, %v3301_v63  ;;  %v4124_v63 = vld [vmem:[%s4216_s9 + $0x29c] ss:$52 sps:$4 sm:$0xff]   ;;  %v1935_v3 = vadd.f32 %v4628_v37, %v4655_v1 }
 0x10e   : > { %2551 = vmatmul.mubr.bf16.gmra.mrb[116].mxu1 %v4110_v58  ;;  %3766 = vmatmul.mubr.bf16.gmra.mrb[116].mxu0 %v4111_v59  ;;  %v1940_v37 = vadd.f32 %v4636_v45, %v4655_v1 }
 0x10f   : > { %v4663_v8 = vadd.f32 %v3303_v7, %v4655_v1  ;;  %2558 = vmatprep.mubr.bf16.mxu1 %v4112_v0  ;;  %3769 = vmatprep.mubr.msk.bf16.mxu0 %vm4154_vm0, %v4153_v6 }
 0x111   : > { %v3268_v9 = vpop.f32.mrb[12].mxu0  ;;  %v3304_v10 = vpop.f32.mrb[12].mxu1 }
 0x112   : > { %v3269_v11 = vpop.f32.mrb[13].mxu0  ;;  %v3305_v12 = vpop.f32.mrb[13].mxu1 }
 0x113   : > { %v4669_v15 = vadd.f32 %v3269_v11, %v3268_v9  ;;  %v3271_v16 = vpop.f32.mrb[14].mxu0  ;;  %v3306_v17 = vadd.f32 %v3305_v12, %v3304_v10  ;;  %v3307_v18 = vpop.f32.mrb[14].mxu1 }
 0x114   : > { %v3272_v20 = vpop.f32.mrb[15].mxu0  ;;  %v3308_v21 = vpop.f32.mrb[15].mxu1 }
 0x115   : > { %v4673_v22 = vadd.f32 %v3306_v17, %v4655_v1  ;;  %v4675_v23 = vadd.f32 %v3272_v20, %v3271_v16  ;;  %v3309_v24 = vadd.f32 %v3308_v21, %v3307_v18  ;;  %v4126_v16 = vld [vmem:[%s4216_s9 + $0x298] ss:$52 sps:$4 sm:$0xff]  }
 0x116   : > { %2559 = vmatmul.mubr.bf16.gmra.mrb[120].mxu1 %v4114_v13  ;;  %3770 = vmatmul.mubr.bf16.gmra.mrb[120].mxu0 %v4115_v14  ;;  %v4127_v17 = vld [vmem:[%s4216_s9 + $0x238] ss:$52 sps:$4 sm:$0xff]  }
 0x117   : > { %v4678_v25 = vadd.f32 %v3309_v24, %v4655_v1  ;;  %2566 = vmatprep.mubr.bf16.mxu1 %v4116_v19  ;;  %3773 = vmatprep.mubr.msk.bf16.mxu0 %vm4154_vm0, %v4153_v6  ;;  %v4128_v24 = vld [vmem:[%s4216_s9 + $0x304] ss:$52 sps:$4 sm:$0xff]  }
 0x119   : > { %v3274_v26 = vpop.f32.mrb[16].mxu0  ;;  %v3310_v27 = vpop.f32.mrb[16].mxu1 }
 0x11a   : > { %v3275_v28 = vpop.f32.mrb[17].mxu0  ;;  %v3311_v29 = vpop.f32.mrb[17].mxu1 }
 0x11b   : > { %v4684_v34 = vadd.f32 %v3275_v28, %v3274_v26  ;;  %v3277_v35 = vpop.f32.mrb[18].mxu0  ;;  %v3312_v36 = vadd.f32 %v3311_v29, %v3310_v27  ;;  %v3313_v39 = vpop.f32.mrb[18].mxu1  ;;  %v1943_v26 = vadd.f32 %v4641_v52, %v4655_v1 }
 0x11c   : > { %v3278_v41 = vpop.f32.mrb[19].mxu0  ;;  %v3314_v42 = vpop.f32.mrb[19].mxu1 }
 0x11d   : > { %v4688_v43 = vadd.f32 %v3312_v36, %v4655_v1  ;;  %v4690_v44 = vadd.f32 %v3278_v41, %v3277_v35  ;;  %v3315_v46 = vadd.f32 %v3314_v42, %v3313_v39  ;;  %v4130_v42 = vld [vmem:[%s4216_s9 + $0x300] ss:$52 sps:$4 sm:$0xff]  }
 0x11e   : > { %2567 = vmatmul.mubr.bf16.gmra.mrb[124].mxu1 %v4118_v31  ;;  %3774 = vmatmul.mubr.bf16.gmra.mrb[124].mxu0 %v4119_v33 }
 0x11f   : > { %v4693_v48 = vadd.f32 %v3315_v46, %v4655_v1  ;;  %2574 = vmatprep.mubr.bf16.mxu1 %v4120_v40  ;;  %3777 = vmatprep.mubr.msk.bf16.mxu0 %vm4154_vm0, %v4153_v6  ;;  %v4131_v46 = vld [vmem:[%s4216_s9 + $0x2a0] ss:$52 sps:$4 sm:$0xff]  }
 0x121   : > { %v3280_v49 = vpop.f32.mrb[20].mxu0  ;;  %v3332_v50 = vpop.f32.mrb[20].mxu1 }
 0x122   : > { %v3281_v51 = vpop.f32.mrb[21].mxu0  ;;  %v3333_v54 = vpop.f32.mrb[21].mxu1 }
 0x123   : > { %v4701_v58 = vadd.f32 %v3281_v51, %v3280_v49  ;;  %v3334_v59 = vadd.f32 %v3333_v54, %v3332_v50  ;;  %v3283_v61 = vpop.f32.mrb[22].mxu0  ;;  %v3335_v62 = vpop.f32.mrb[22].mxu1  ;;  %v1948_v49 = vadd.f32 %v4649_v60, %v4655_v1 }
 0x124   : > { %v3284_v0 = vpop.f32.mrb[23].mxu0  ;;  %v3336_v2 = vpop.f32.mrb[23].mxu1 }
 0x125   : > { %v2053_v7 = vadd.f32 %v3334_v59, %v1932_v57  ;;  %v4706_v9 = vadd.f32 %v3284_v0, %v3283_v61  ;;  %v3337_v10 = vadd.f32 %v3336_v2, %v3335_v62  ;;  %v1951_v57 = vadd.f32 %v4660_v5, %v4655_v1 }
 0x126   : > { %2575 = vmatmul.mubr.bf16.gmra.mrb[128].mxu1 %v4122_v55  ;;  %3778 = vmatmul.mubr.bf16.gmra.mrb[128].mxu0 %v4123_v56  ;;  %v4132_v56 = vld [vmem:[%s4216_s9 + $0x36c] ss:$52 sps:$4 sm:$0xff]  }
 0x127   : > { %v2056_v30 = vadd.f32 %v3337_v10, %v1935_v3  ;;  %2582 = vmatprep.mubr.bf16.mxu1 %v4124_v63  ;;  %3781 = vmatprep.mubr.msk.bf16.mxu0 %vm4154_vm0, %v4153_v6 }
 0x129   : > { %v3338_v11 = vpop.f32.mrb[24].mxu1  ;;  %v3414_v12 = vpop.f32.mrb[24].mxu0 }
 0x12a   : > { %v3339_v13 = vpop.f32.mrb[25].mxu1  ;;  %v3415_v14 = vpop.f32.mrb[25].mxu0 }
 0x12b   : > { %v3340_v18 = vadd.f32 %v3339_v13, %v3338_v11  ;;  %v3416_v19 = vadd.f32 %v3415_v14, %v3414_v12  ;;  %v3341_v20 = vpop.f32.mrb[26].mxu1  ;;  %v3417_v21 = vpop.f32.mrb[26].mxu0  ;;  %v4134_v11 = vld [vmem:[%s4216_s9 + $0x368] ss:$52 sps:$4 sm:$0xff]   ;;  %v1956_v13 = vadd.f32 %v4669_v15, %v4655_v1 }
 0x12c   : > { %v3342_v27 = vpop.f32.mrb[27].mxu1  ;;  %v3418_v28 = vpop.f32.mrb[27].mxu0  ;;  %v4135_v12 = vld [vmem:[%s4216_s9 + $0x308] ss:$52 sps:$4 sm:$0xff]  }
 0x12d   : > { %v2061_v29 = vadd.f32 %v3340_v18, %v1940_v37  ;;  %v4717_v31 = vadd.f32 %v3416_v19, %v2053_v7  ;;  %v3343_v33 = vadd.f32 %v3342_v27, %v3341_v20  ;;  %v3419_v35 = vadd.f32 %v3418_v28, %v3417_v21  ;;  %v4136_v18 = vld [vmem:[%s4216_s9 + $0x3d4] ss:$52 sps:$4 sm:$0xff]  }
 0x12e   : > { %2583 = vmatmul.mubr.bf16.gmra.mrb[132].mxu1 %v4126_v16  ;;  %3782 = vmatmul.mubr.bf16.gmra.mrb[132].mxu0 %v4127_v17  ;;  %v1959_v19 = vadd.f32 %v4675_v23, %v4655_v1 }
 0x12f   : > { %v2064_v45 = vadd.f32 %v3343_v33, %v1943_v26  ;;  %v4719_v36 = vadd.f32 %v3419_v35, %v2056_v30  ;;  %2590 = vmatprep.mubr.bf16.mxu1 %v4128_v24  ;;  %3785 = vmatprep.mubr.msk.bf16.mxu0 %vm4154_vm0, %v4153_v6 }
 0x131   : > { %v3344_v52 = vpop.f32.mrb[28].mxu1  ;;  %v3420_v39 = vpop.f32.mrb[28].mxu0 }
 0x132   : > { %v3345_v40 = vpop.f32.mrb[29].mxu1  ;;  %v3421_v41 = vpop.f32.mrb[29].mxu0 }
 0x133   : > { %v3346_v50 = vadd.f32 %v3345_v40, %v3344_v52  ;;  %v3422_v51 = vadd.f32 %v3421_v41, %v3420_v39  ;;  %v3347_v54 = vpop.f32.mrb[30].mxu1  ;;  %v3423_v55 = vpop.f32.mrb[30].mxu0  ;;  %v4138_v52 = vld [vmem:[%s4216_s9 + $0x3d0] ss:$52 sps:$4 sm:$0xff]   ;;  %v1964_v40 = vadd.f32 %v4684_v34, %v4655_v1 }
 0x134   : > { %v3348_v59 = vpop.f32.mrb[31].mxu1  ;;  %v3424_v61 = vpop.f32.mrb[31].mxu0  ;;  %v4139_v39 = vld [vmem:[%s4216_s9 + $0x370] ss:$52 sps:$4 sm:$0xff]  }
 0x135   : > { %v2069_v62 = vadd.f32 %v3346_v50, %v1948_v49  ;;  %v4730_v63 = vadd.f32 %v3422_v51, %v2061_v29  ;;  %v3349_v0 = vadd.f32 %v3348_v59, %v3347_v54  ;;  %v3425_v2 = vadd.f32 %v3424_v61, %v3423_v55  ;;  %v4140_v50 = vld [vmem:[%s4216_s9 + $0x43c] ss:$52 sps:$4 sm:$0xff]  }
 0x136   : > { %2591 = vmatmul.mubr.bf16.gmra.mrb[136].mxu1 %v4130_v42  ;;  %3786 = vmatmul.mubr.bf16.gmra.mrb[136].mxu0 %v4131_v46  ;;  %v1967_v51 = vadd.f32 %v4690_v44, %v4655_v1 }
 0x137   : > { %v2072_v60 = vadd.f32 %v3349_v0, %v1951_v57  ;;  %v4732_v3 = vadd.f32 %v3425_v2, %v2064_v45  ;;  %2598 = vmatprep.mubr.bf16.mxu1 %v4132_v56  ;;  %3789 = vmatprep.mubr.msk.bf16.mxu0 %vm4154_vm0, %v4153_v6 }
 0x139   : > { %v3350_v5 = vpop.f32.mrb[32].mxu1  ;;  %v3426_v7 = vpop.f32.mrb[32].mxu0 }
 0x13a   : > { %v3351_v10 = vpop.f32.mrb[33].mxu1  ;;  %v3427_v30 = vpop.f32.mrb[33].mxu0 }
 0x13b   : > { %v3352_v14 = vadd.f32 %v3351_v10, %v3350_v5  ;;  %v3428_v16 = vadd.f32 %v3427_v30, %v3426_v7  ;;  %v3353_v17 = vpop.f32.mrb[34].mxu1  ;;  %v3429_v37 = vpop.f32.mrb[34].mxu0  ;;  %v4142_v5 = vld [vmem:[%s4216_s9 + $0x438] ss:$52 sps:$4 sm:$0xff]   ;;  %v1972_v10 = vadd.f32 %v4701_v58, %v4655_v1 }
 0x13c   : > { %v3354_v20 = vpop.f32.mrb[35].mxu1  ;;  %v3430_v21 = vpop.f32.mrb[35].mxu0  ;;  %v4143_v7 = vld [vmem:[%s4216_s9 + $0x3d8] ss:$52 sps:$4 sm:$0xff]  }
 0x13d   : > { %v2077_v24 = vadd.f32 %v3352_v14, %v1956_v13  ;;  %v4743_v26 = vadd.f32 %v3428_v16, %v2069_v62  ;;  %v3355_v27 = vadd.f32 %v3354_v20, %v3353_v17  ;;  %v3431_v28 = vadd.f32 %v3430_v21, %v3429_v37 }
 0x13e   : > { %2599 = vmatmul.mubr.bf16.gmra.mrb[140].mxu1 %v4134_v11  ;;  %3790 = vmatmul.mubr.bf16.gmra.mrb[140].mxu0 %v4135_v12  ;;  %v1975_v14 = vadd.f32 %v4706_v9, %v4655_v1 }
 0x13f   : > { %v2080_v15 = vadd.f32 %v3355_v27, %v1959_v19  ;;  %v4745_v29 = vadd.f32 %v3431_v28, %v2072_v60  ;;  %2606 = vmatprep.mubr.bf16.mxu1 %v4136_v18  ;;  %3793 = vmatprep.mubr.msk.bf16.mxu0 %vm4154_vm0, %v4153_v6 }
 0x141   : > { %v3356_v23 = vpop.f32.mrb[36].mxu1  ;;  %v3432_v33 = vpop.f32.mrb[36].mxu0 }
 0x142   : > { %v3357_v35 = vpop.f32.mrb[37].mxu1  ;;  %v3433_v45 = vpop.f32.mrb[37].mxu0 }
 0x143   : > { %v3358_v41 = vadd.f32 %v3357_v35, %v3356_v23  ;;  %v3434_v42 = vadd.f32 %v3433_v45, %v3432_v33  ;;  %v3359_v46 = vpop.f32.mrb[38].mxu1  ;;  %v3435_v49 = vpop.f32.mrb[38].mxu0  ;;  %v1980_v23 = vadd.f32 %v4625_v32, %v4655_v1 }
 0x144   : > { %v3360_v54 = vpop.f32.mrb[39].mxu1  ;;  %v3436_v55 = vpop.f32.mrb[39].mxu0 }
 0x145   : > { %v2085_v56 = vadd.f32 %v3358_v41, %v1964_v40  ;;  %v4756_v57 = vadd.f32 %v3434_v42, %v2077_v24  ;;  %v3361_v59 = vadd.f32 %v3360_v54, %v3359_v46  ;;  %v3437_v61 = vadd.f32 %v3436_v55, %v3435_v49 }
 0x146   : > { %2607 = vmatmul.mubr.bf16.gmra.mrb[144].mxu1 %v4138_v52  ;;  %3794 = vmatmul.mubr.bf16.gmra.mrb[144].mxu0 %v4139_v39  ;;  %v1983_v39 = vadd.f32 %v4630_v38, %v4655_v1 }
 0x147   : > { %v2088_v34 = vadd.f32 %v3361_v59, %v1967_v51  ;;  %v4758_v62 = vadd.f32 %v3437_v61, %v2080_v15  ;;  %2614 = vmatprep.mubr.bf16.mxu1 %v4140_v50  ;;  %3797 = vmatprep.mubr.msk.bf16.mxu0 %vm4154_vm0, %v4153_v6  ;;  %v4144_v15 = vld [vmem:[%s4216_s9 + $0x440] ss:$52 sps:$4 sm:$0xff]   ;;  %v1988_v59 = vadd.f32 %v4638_v47, %v4655_v1  ;;  %s2939_s9 = sshll.u32 %s4959_s16, 2 }
 0x148   : > { %s4885_s13 = scalar_lea.vmem %s4957_s3, %s2939_s9 }
 0x149   : > { %v3362_v0 = vpop.f32.mrb[40].mxu1  ;;  %v3438_v44 = vpop.f32.mrb[40].mxu0 }
 0x14a   : > { %v3363_v2 = vpop.f32.mrb[41].mxu1  ;;  %v3439_v60 = vpop.f32.mrb[41].mxu0 }
 0x14b   : > { %v3364_v30 = vadd.f32 %v3363_v2, %v3362_v0  ;;  %v3440_v11 = vadd.f32 %v3439_v60, %v3438_v44  ;;  %v3365_v12 = vpop.f32.mrb[42].mxu1  ;;  %v3441_v13 = vpop.f32.mrb[42].mxu0  ;;  %v1991_v44 = vadd.f32 %v4643_v53, %v4655_v1 }
 0x14c   : > { %v3366_v16 = vpop.f32.mrb[43].mxu1  ;;  %v3442_v17 = vpop.f32.mrb[43].mxu0 }
 0x14d   : > { %v2093_v37 = vadd.f32 %v3364_v30, %v1972_v10  ;;  %v4768_v18 = vadd.f32 %v3440_v11, %v2085_v56  ;;  %v3367_v19 = vadd.f32 %v3366_v16, %v3365_v12  ;;  %v3443_v20 = vadd.f32 %v3442_v17, %v3441_v13 }
 0x14e   : > { %2615 = vmatmul.mubr.bf16.gmra.mrb[148].mxu1 %v4142_v5  ;;  %3798 = vmatmul.mubr.bf16.gmra.mrb[148].mxu0 %v4143_v7 }
 0x14f   : > { %v2096_v21 = vadd.f32 %v3367_v19, %v1975_v14  ;;  %v4770_v24 = vadd.f32 %v3443_v20, %v2088_v34  ;;  %3801 = vmatprep.mubr.msk.bf16.mxu0 %vm4154_vm0, %v4153_v6 }
 0x151   : > { %v3368_v58 = vpop.f32.mrb[44].mxu1  ;;  %v3444_v27 = vpop.f32.mrb[44].mxu0 }
 0x152   : > { %v3369_v28 = vpop.f32.mrb[45].mxu1  ;;  %v3445_v9 = vpop.f32.mrb[45].mxu0 }
 0x153   : > { %v3370_v33 = vadd.f32 %v3369_v28, %v3368_v58  ;;  %v3446_v35 = vadd.f32 %v3445_v9, %v3444_v27  ;;  %v3371_v45 = vpop.f32.mrb[46].mxu1  ;;  %v3447_v52 = vpop.f32.mrb[46].mxu0 }
 0x154   : > { %v3372_v40 = vpop.f32.mrb[47].mxu1  ;;  %v3448_v41 = vpop.f32.mrb[47].mxu0 }
 0x155   : > { %v2101_v42 = vadd.f32 %v3370_v33, %v1980_v23  ;;  %v4779_v46 = vadd.f32 %v3446_v35, %v2093_v37  ;;  %v3373_v6 = vadd.f32 %v3372_v40, %v3371_v45  ;;  %v3449_v49 = vadd.f32 %v3448_v41, %v3447_v52 }
 0x156   : > { %3802 = vmatmul.mubr.bf16.gmra.mrb[152].mxu0 %v4144_v15 }
 0x157   : > { %v2104_v50 = vadd.f32 %v3373_v6, %v1983_v39  ;;  %v4781_v51 = vadd.f32 %v3449_v49, %v2096_v21 }
 0x159   : > { %v3374_v54 = vpop.f32.mrb[48].mxu1  ;;  %v3450_v32 = vpop.f32.mrb[48].mxu0 }
 0x15a   : > { %v3375_v55 = vpop.f32.mrb[49].mxu1  ;;  %v3451_v56 = vpop.f32.mrb[49].mxu0 }
 0x15b   : > { %v3376_v61 = vadd.f32 %v3375_v55, %v3374_v54  ;;  %v3452_v38 = vadd.f32 %v3451_v56, %v3450_v32  ;;  %v3377_v34 = vpop.f32.mrb[50].mxu1  ;;  %v3453_v0 = vpop.f32.mrb[50].mxu0 }
 0x15c   : > { %v3378_v2 = vpop.f32.mrb[51].mxu1  ;;  %v3454_v60 = vpop.f32.mrb[51].mxu0 }
 0x15d   : > { %v2109_v5 = vadd.f32 %v3376_v61, %v1988_v59  ;;  %v4787_v7 = vadd.f32 %v3452_v38, %v2101_v42  ;;  %v3379_v10 = vadd.f32 %v3378_v2, %v3377_v34  ;;  %v3455_v30 = vadd.f32 %v3454_v60, %v3453_v0 }
 0x15f   : > { %v2112_v11 = vadd.f32 %v3379_v10, %v1991_v44  ;;  %v4789_v12 = vadd.f32 %v3455_v30, %v2104_v50 }
 0x161   : > { %v3380_v13 = vpop.f32.mrb[52].mxu1  ;;  %v3456_v14 = vpop.f32.mrb[52].mxu0 }
 0x162   : > { %v3381_v47 = vpop.f32.mrb[53].mxu1  ;;  %v3457_v16 = vpop.f32.mrb[53].mxu0 }
 0x163   : > { %v3382_v17 = vadd.f32 %v3381_v47, %v3380_v13  ;;  %v3458_v37 = vadd.f32 %v3457_v16, %v3456_v14  ;;  %v3383_v19 = vpop.f32.mrb[54].mxu1  ;;  %v3459_v20 = vpop.f32.mrb[54].mxu0 }
 0x164   : > { %v3384_v21 = vpop.f32.mrb[55].mxu1  ;;  %v3460_v53 = vpop.f32.mrb[55].mxu0 }
 0x165   : > { %v2117_v1 = vadd.f32 %v3382_v17, %v4658_v4  ;;  %v4792_v58 = vadd.f32 %v3458_v37, %v2109_v5  ;;  %v3385_v27 = vadd.f32 %v3384_v21, %v3383_v19  ;;  %v3461_v28 = vadd.f32 %v3460_v53, %v3459_v20 }
 0x167   : > { %v2120_v9 = vadd.f32 %v3385_v27, %v4663_v8  ;;  %v4795_v15 = vadd.f32 %v3461_v28, %v2112_v11 }
 0x169   : > { %v3386_v23 = vpop.f32.mrb[56].mxu1  ;;  %v3462_v33 = vpop.f32.mrb[56].mxu0 }
 0x16a   : > { %v3387_v35 = vpop.f32.mrb[57].mxu1  ;;  %v3463_v45 = vpop.f32.mrb[57].mxu0 }
 0x16b   : > { %v3388_v52 = vadd.f32 %v3387_v35, %v3386_v23  ;;  %v3464_v39 = vadd.f32 %v3463_v45, %v3462_v33  ;;  %v3389_v40 = vpop.f32.mrb[58].mxu1  ;;  %v3465_v41 = vpop.f32.mrb[58].mxu0 }
 0x16c   : > { %v3390_v42 = vpop.f32.mrb[59].mxu1  ;;  %v3466_v6 = vpop.f32.mrb[59].mxu0 }
 0x16d   : > { %v2125_v4 = vadd.f32 %v3388_v52, %v4673_v22  ;;  %v4798_v49 = vadd.f32 %v3464_v39, %v2117_v1  ;;  %v3391_v50 = vadd.f32 %v3390_v42, %v3389_v40  ;;  %v3467_v54 = vadd.f32 %v3466_v6, %v3465_v41 }
 0x16f   : > { %v2128_v8 = vadd.f32 %v3391_v50, %v4678_v25  ;;  %v4801_v32 = vadd.f32 %v3467_v54, %v2120_v9 }
 0x171   : > { %v3392_v55 = vpop.f32.mrb[60].mxu1  ;;  %v3468_v56 = vpop.f32.mrb[60].mxu0 }
 0x172   : > { %v3393_v59 = vpop.f32.mrb[61].mxu1  ;;  %v3469_v61 = vpop.f32.mrb[61].mxu0 }
 0x173   : > { %v3394_v38 = vadd.f32 %v3393_v59, %v3392_v55  ;;  %v3470_v34 = vadd.f32 %v3469_v61, %v3468_v56  ;;  %v3395_v0 = vpop.f32.mrb[62].mxu1  ;;  %v3471_v44 = vpop.f32.mrb[62].mxu0 }
 0x174   : > { %v3396_v2 = vpop.f32.mrb[63].mxu1  ;;  %v3472_v60 = vpop.f32.mrb[63].mxu0 }
 0x175   : > { %v2133_v22 = vadd.f32 %v3394_v38, %v4688_v43  ;;  %v4804_v5 = vadd.f32 %v3470_v34, %v2125_v4  ;;  %v3397_v10 = vadd.f32 %v3396_v2, %v3395_v0  ;;  %v3473_v30 = vadd.f32 %v3472_v60, %v3471_v44 }
 0x177   : > { %v2136_v25 = vadd.f32 %v3397_v10, %v4693_v48  ;;  %v4807_v11 = vadd.f32 %v3473_v30, %v2128_v8 }
 0x179   : > { %v3474_v13 = vpop.f32.mrb[64].mxu0  ;;  %v3496_v14 = vpop.f32.mrb[64].mxu1 }
 0x17a   : > { %v3475_v47 = vpop.f32.mrb[65].mxu0  ;;  %v3497_v16 = vpop.f32.mrb[65].mxu1 }
 0x17b   : > { %v3476_v17 = vadd.f32 %v3475_v47, %v3474_v13  ;;  %v3498_v37 = vadd.f32 %v3497_v16, %v3496_v14  ;;  %v3477_v19 = vpop.f32.mrb[66].mxu0  ;;  %v3499_v20 = vpop.f32.mrb[66].mxu1 }
 0x17c   : > { %v3478_v21 = vpop.f32.mrb[67].mxu0  ;;  %v3500_v53 = vpop.f32.mrb[67].mxu1 }
 0x17d   : > { %v4809_v1 = vadd.f32 %v3476_v17, %v2133_v22  ;;  %v2295_v43 = vadd.f32 %v3498_v37, %v4717_v31  ;;  %v3479_v27 = vadd.f32 %v3478_v21, %v3477_v19  ;;  %v3501_v28 = vadd.f32 %v3500_v53, %v3499_v20 }
 0x17f   : > { %v4812_v9 = vadd.f32 %v3479_v27, %v2136_v25  ;;  %v2298_v48 = vadd.f32 %v3501_v28, %v4719_v36 }
 0x181   : > { %v3502_v23 = vpop.f32.mrb[68].mxu1  ;;  %v3578_v33 = vpop.f32.mrb[68].mxu0 }
 0x182   : > { %v3503_v35 = vpop.f32.mrb[69].mxu1  ;;  %v3579_v45 = vpop.f32.mrb[69].mxu0 }
 0x183   : > { %v3504_v52 = vadd.f32 %v3503_v35, %v3502_v23  ;;  %v3580_v39 = vadd.f32 %v3579_v45, %v3578_v33  ;;  %v3505_v40 = vpop.f32.mrb[70].mxu1  ;;  %v3581_v41 = vpop.f32.mrb[70].mxu0 }
 0x184   : > { %v3506_v42 = vpop.f32.mrb[71].mxu1  ;;  %v3582_v6 = vpop.f32.mrb[71].mxu0 }
 0x185   : > { %v2303_v4 = vadd.f32 %v3504_v52, %v4730_v63  ;;  %v4816_v50 = vadd.f32 %v3580_v39, %v2295_v43  ;;  %v3507_v31 = vadd.f32 %v3506_v42, %v3505_v40  ;;  %v3583_v54 = vadd.f32 %v3582_v6, %v3581_v41 }
 0x187   : > { %v2306_v8 = vadd.f32 %v3507_v31, %v4732_v3  ;;  %v4819_v55 = vadd.f32 %v3583_v54, %v2298_v48 }
 0x189   : > { %v3508_v36 = vpop.f32.mrb[72].mxu1  ;;  %v3584_v56 = vpop.f32.mrb[72].mxu0 }
 0x18a   : > { %v3509_v59 = vpop.f32.mrb[73].mxu1  ;;  %v3585_v61 = vpop.f32.mrb[73].mxu0 }
 0x18b   : > { %v3510_v38 = vadd.f32 %v3509_v59, %v3508_v36  ;;  %v3586_v34 = vadd.f32 %v3585_v61, %v3584_v56  ;;  %v3511_v0 = vpop.f32.mrb[74].mxu1  ;;  %v3587_v44 = vpop.f32.mrb[74].mxu0 }
 0x18c   : > { %v3512_v2 = vpop.f32.mrb[75].mxu1  ;;  %v3588_v60 = vpop.f32.mrb[75].mxu0 }
 0x18d   : > { %v2311_v63 = vadd.f32 %v3510_v38, %v4743_v26  ;;  %v4822_v22 = vadd.f32 %v3586_v34, %v2303_v4  ;;  %v3513_v10 = vadd.f32 %v3512_v2, %v3511_v0  ;;  %v3589_v30 = vadd.f32 %v3588_v60, %v3587_v44 }
 0x18f   : > { %v2314_v3 = vadd.f32 %v3513_v10, %v4745_v29  ;;  %v4825_v25 = vadd.f32 %v3589_v30, %v2306_v8 }
 0x191   : > { %v3514_v13 = vpop.f32.mrb[76].mxu1  ;;  %v3590_v14 = vpop.f32.mrb[76].mxu0 }
 0x192   : > { %v3515_v47 = vpop.f32.mrb[77].mxu1  ;;  %v3591_v16 = vpop.f32.mrb[77].mxu0 }
 0x193   : > { %v3516_v17 = vadd.f32 %v3515_v47, %v3514_v13  ;;  %v3592_v37 = vadd.f32 %v3591_v16, %v3590_v14  ;;  %v3517_v19 = vpop.f32.mrb[78].mxu1  ;;  %v3593_v20 = vpop.f32.mrb[78].mxu0 }
 0x194   : > { %v3518_v21 = vpop.f32.mrb[79].mxu1  ;;  %v3594_v53 = vpop.f32.mrb[79].mxu0 }
 0x195   : > { %v2319_v26 = vadd.f32 %v3516_v17, %v4756_v57  ;;  %v4828_v43 = vadd.f32 %v3592_v37, %v2311_v63  ;;  %v3519_v27 = vadd.f32 %v3518_v21, %v3517_v19  ;;  %v3595_v28 = vadd.f32 %v3594_v53, %v3593_v20 }
 0x197   : > { %v2322_v29 = vadd.f32 %v3519_v27, %v4758_v62  ;;  %v4831_v48 = vadd.f32 %v3595_v28, %v2314_v3 }
 0x199   : > { %v3520_v23 = vpop.f32.mrb[80].mxu1  ;;  %v3596_v33 = vpop.f32.mrb[80].mxu0 }
 0x19a   : > { %v3521_v35 = vpop.f32.mrb[81].mxu1  ;;  %v3597_v45 = vpop.f32.mrb[81].mxu0 }
 0x19b   : > { %v3522_v52 = vadd.f32 %v3521_v35, %v3520_v23  ;;  %v3598_v39 = vadd.f32 %v3597_v45, %v3596_v33  ;;  %v3523_v40 = vpop.f32.mrb[82].mxu1  ;;  %v3599_v41 = vpop.f32.mrb[82].mxu0 }
 0x19c   : > { %v3524_v42 = vpop.f32.mrb[83].mxu1  ;;  %v3600_v6 = vpop.f32.mrb[83].mxu0 }
 0x19d   : > { %v2327_v57 = vadd.f32 %v3522_v52, %v4768_v18  ;;  %v4834_v4 = vadd.f32 %v3598_v39, %v2319_v26  ;;  %v3525_v31 = vadd.f32 %v3524_v42, %v3523_v40  ;;  %v3601_v54 = vadd.f32 %v3600_v6, %v3599_v41 }
 0x19f   : > { %v2330_v62 = vadd.f32 %v3525_v31, %v4770_v24  ;;  %v4837_v8 = vadd.f32 %v3601_v54, %v2322_v29 }
 0x1a1   : > { %v3526_v36 = vpop.f32.mrb[84].mxu1  ;;  %v3602_v56 = vpop.f32.mrb[84].mxu0 }
 0x1a2   : > { %v3527_v59 = vpop.f32.mrb[85].mxu1  ;;  %v3603_v61 = vpop.f32.mrb[85].mxu0 }
 0x1a3   : > { %v3528_v38 = vadd.f32 %v3527_v59, %v3526_v36  ;;  %v3604_v34 = vadd.f32 %v3603_v61, %v3602_v56  ;;  %v3529_v0 = vpop.f32.mrb[86].mxu1  ;;  %v3605_v44 = vpop.f32.mrb[86].mxu0 }
 0x1a4   : > { %v3530_v2 = vpop.f32.mrb[87].mxu1  ;;  %v3606_v60 = vpop.f32.mrb[87].mxu0 }
 0x1a5   : > { %v2335_v18 = vadd.f32 %v3528_v38, %v4779_v46  ;;  %v4840_v63 = vadd.f32 %v3604_v34, %v2327_v57  ;;  %v3531_v10 = vadd.f32 %v3530_v2, %v3529_v0  ;;  %v3607_v30 = vadd.f32 %v3606_v60, %v3605_v44 }
 0x1a7   : > { %v2338_v24 = vadd.f32 %v3531_v10, %v4781_v51  ;;  %v4843_v3 = vadd.f32 %v3607_v30, %v2330_v62 }
 0x1a9   : > { %v3532_v13 = vpop.f32.mrb[88].mxu1  ;;  %v3608_v14 = vpop.f32.mrb[88].mxu0 }
 0x1aa   : > { %v3533_v47 = vpop.f32.mrb[89].mxu1  ;;  %v3609_v16 = vpop.f32.mrb[89].mxu0 }
 0x1ab   : > { %v3534_v17 = vadd.f32 %v3533_v47, %v3532_v13  ;;  %v3610_v37 = vadd.f32 %v3609_v16, %v3608_v14  ;;  %v3535_v19 = vpop.f32.mrb[90].mxu1  ;;  %v3611_v20 = vpop.f32.mrb[90].mxu0 }
 0x1ac   : > { %v3536_v21 = vpop.f32.mrb[91].mxu1  ;;  %v3612_v53 = vpop.f32.mrb[91].mxu0 }
 0x1ad   : > { %v2343_v46 = vadd.f32 %v3534_v17, %v4787_v7  ;;  %v4846_v26 = vadd.f32 %v3610_v37, %v2335_v18  ;;  %v3537_v27 = vadd.f32 %v3536_v21, %v3535_v19  ;;  %v3613_v28 = vadd.f32 %v3612_v53, %v3611_v20 }
 0x1af   : > { %v2346_v51 = vadd.f32 %v3537_v27, %v4789_v12  ;;  %v4849_v29 = vadd.f32 %v3613_v28, %v2338_v24 }
 0x1b1   : > { %v3538_v23 = vpop.f32.mrb[92].mxu1  ;;  %v3614_v33 = vpop.f32.mrb[92].mxu0 }
 0x1b2   : > { %v3539_v35 = vpop.f32.mrb[93].mxu1  ;;  %v3615_v45 = vpop.f32.mrb[93].mxu0 }
 0x1b3   : > { %v3540_v52 = vadd.f32 %v3539_v35, %v3538_v23  ;;  %v3616_v39 = vadd.f32 %v3615_v45, %v3614_v33  ;;  %v3541_v40 = vpop.f32.mrb[94].mxu1  ;;  %v3617_v41 = vpop.f32.mrb[94].mxu0 }
 0x1b4   : > { %v3542_v42 = vpop.f32.mrb[95].mxu1  ;;  %v3618_v6 = vpop.f32.mrb[95].mxu0 }
 0x1b5   : > { %v2351_v7 = vadd.f32 %v3540_v52, %v4792_v58  ;;  %v4852_v57 = vadd.f32 %v3616_v39, %v2343_v46  ;;  %v3543_v31 = vadd.f32 %v3542_v42, %v3541_v40  ;;  %v3619_v54 = vadd.f32 %v3618_v6, %v3617_v41 }
 0x1b7   : > { %v2354_v12 = vadd.f32 %v3543_v31, %v4795_v15  ;;  %v4855_v62 = vadd.f32 %v3619_v54, %v2346_v51 }
 0x1b9   : > { %v3544_v36 = vpop.f32.mrb[96].mxu1  ;;  %v3620_v56 = vpop.f32.mrb[96].mxu0 }
 0x1ba   : > { %v3545_v59 = vpop.f32.mrb[97].mxu1  ;;  %v3621_v61 = vpop.f32.mrb[97].mxu0 }
 0x1bb   : > { %v3546_v38 = vadd.f32 %v3545_v59, %v3544_v36  ;;  %v3622_v34 = vadd.f32 %v3621_v61, %v3620_v56  ;;  %v3547_v0 = vpop.f32.mrb[98].mxu1  ;;  %v3623_v44 = vpop.f32.mrb[98].mxu0 }
 0x1bc   : > { %v3548_v2 = vpop.f32.mrb[99].mxu1  ;;  %v3624_v60 = vpop.f32.mrb[99].mxu0 }
 0x1bd   : > { %v2359_v58 = vadd.f32 %v3546_v38, %v4798_v49  ;;  %v4858_v18 = vadd.f32 %v3622_v34, %v2351_v7  ;;  %v3549_v10 = vadd.f32 %v3548_v2, %v3547_v0  ;;  %v3625_v30 = vadd.f32 %v3624_v60, %v3623_v44 }
 0x1bf   : > { %v2362_v15 = vadd.f32 %v3549_v10, %v4801_v32  ;;  %v4861_v24 = vadd.f32 %v3625_v30, %v2354_v12 }
 0x1c1   : > { %v3550_v13 = vpop.f32.mrb[100].mxu1  ;;  %v3626_v14 = vpop.f32.mrb[100].mxu0 }
 0x1c2   : > { %v3551_v47 = vpop.f32.mrb[101].mxu1  ;;  %v3627_v16 = vpop.f32.mrb[101].mxu0 }
 0x1c3   : > { %v3552_v17 = vadd.f32 %v3551_v47, %v3550_v13  ;;  %v3628_v37 = vadd.f32 %v3627_v16, %v3626_v14  ;;  %v3553_v19 = vpop.f32.mrb[102].mxu1  ;;  %v3629_v20 = vpop.f32.mrb[102].mxu0 }
 0x1c4   : > { %v3554_v21 = vpop.f32.mrb[103].mxu1  ;;  %v3630_v53 = vpop.f32.mrb[103].mxu0 }
 0x1c5   : > { %v2367_v49 = vadd.f32 %v3552_v17, %v4804_v5  ;;  %v4864_v46 = vadd.f32 %v3628_v37, %v2359_v58  ;;  %v3555_v27 = vadd.f32 %v3554_v21, %v3553_v19  ;;  %v3631_v28 = vadd.f32 %v3630_v53, %v3629_v20 }
 0x1c7   : > { %v2370_v32 = vadd.f32 %v3555_v27, %v4807_v11  ;;  %v4867_v51 = vadd.f32 %v3631_v28, %v2362_v15 }
 0x1c9   : > { %v3556_v23 = vpop.f32.mrb[104].mxu1  ;;  %v3632_v33 = vpop.f32.mrb[104].mxu0 }
 0x1ca   : > { %v3557_v35 = vpop.f32.mrb[105].mxu1  ;;  %v3633_v45 = vpop.f32.mrb[105].mxu0 }
 0x1cb   : > { %v3558_v52 = vadd.f32 %v3557_v35, %v3556_v23  ;;  %v3634_v39 = vadd.f32 %v3633_v45, %v3632_v33  ;;  %v3559_v40 = vpop.f32.mrb[106].mxu1  ;;  %v3635_v41 = vpop.f32.mrb[106].mxu0 }
 0x1cc   : > { %v3560_v42 = vpop.f32.mrb[107].mxu1  ;;  %v3636_v6 = vpop.f32.mrb[107].mxu0 }
 0x1cd   : > { %v2375_v5 = vadd.f32 %v3558_v52, %v4809_v1  ;;  %v4870_v7 = vadd.f32 %v3634_v39, %v2367_v49  ;;  %v3561_v31 = vadd.f32 %v3560_v42, %v3559_v40  ;;  %v3637_v54 = vadd.f32 %v3636_v6, %v3635_v41 }
 0x1cf   : > { %v2378_v11 = vadd.f32 %v3561_v31, %v4812_v9  ;;  %v4873_v12 = vadd.f32 %v3637_v54, %v2370_v32 }
 0x1d1   : > { %v3638_v36 = vpop.f32.mrb[108].mxu0  ;;  %v3660_v56 = vpop.f32.mrb[108].mxu1 }
 0x1d2   : > { %v3639_v59 = vpop.f32.mrb[109].mxu0  ;;  %v3661_v61 = vpop.f32.mrb[109].mxu1 }
 0x1d3   : > { %v3640_v38 = vadd.f32 %v3639_v59, %v3638_v36  ;;  %v3662_v34 = vadd.f32 %v3661_v61, %v3660_v56  ;;  %v3641_v0 = vpop.f32.mrb[110].mxu0  ;;  %v3663_v44 = vpop.f32.mrb[110].mxu1 }
 0x1d4   : > { %v3642_v2 = vpop.f32.mrb[111].mxu0  ;;  %v3664_v60 = vpop.f32.mrb[111].mxu1 }
 0x1d5   : > { %v4875_v1 = vadd.f32 %v3640_v38, %v2375_v5  ;;  %v3643_v58 = vadd.f32 %v3642_v2, %v3641_v0  ;;  %v3665_v10 = vadd.f32 %v3664_v60, %v3663_v44  ;;  %v2537_v30 = vadd.f32 %v3662_v34, %v4816_v50 }
 0x1d7   : > { %v4878_v9 = vadd.f32 %v3643_v58, %v2378_v11  ;;  %v2540_v15 = vadd.f32 %v3665_v10, %v4819_v55 }
 0x1d9   : > { %v3666_v13 = vpop.f32.mrb[112].mxu1  ;;  %v2657_v14 = vpop.f32.mrb[112].mxu0 }
 0x1da   : > { %v2658_v47 = vadd.f32 %v2657_v14, %v2537_v30  ;;  %v3667_v16 = vpop.f32.mrb[113].mxu1  ;;  %v3763_v17 = vpop.f32.mrb[113].mxu0 }
 0x1db   : > { %v3668_v37 = vadd.f32 %v3667_v16, %v3666_v13  ;;  %v3669_v19 = vpop.f32.mrb[114].mxu1  ;;  %v2660_v20 = vpop.f32.mrb[114].mxu0 }
 0x1dc   : > { %v2744_v21 = vmax.f32 %v2658_v47, 0.0  ;;  %v2661_v53 = vadd.f32 %v2660_v20, %v2540_v15  ;;  %v3670_v49 = vpop.f32.mrb[115].mxu1  ;;  %v3764_v27 = vpop.f32.mrb[115].mxu0 }
 0x1dd   : > { %v3671_v50 = vadd.f32 %v3670_v49, %v3669_v19  ;;  %v2545_v55 = vadd.f32 %v3668_v37, %v4822_v22 }
 0x1de   : > { %v3212_v28 = vpack.c.bf16 %v2744_v21, %v2744_v21  ;;  %v2745_v32 = vmax.f32 %v2661_v53, 0.0 }
 0x1df   : > { %v2548_v23 = vadd.f32 %v3671_v50, %v4825_v25 }
 0x1e0   : > { %2855 = vst.msk [vmem:[%s4885_s13] sm:$0xf] %vm2854_vm1, %v3212_v28  ;;  %v3213_v33 = vpack.c.bf16 %v2745_v32, %v2745_v32 }
 0x1e1   : > { %v3672_v35 = vpop.f32.mrb[116].mxu1  ;;  %v2665_v45 = vpop.f32.mrb[116].mxu0 }
 0x1e2   : > { %2856 = vst.msk [vmem:[%s4885_s13 + $0x4] sm:$0xf] %vm2854_vm1, %v3213_v33  ;;  %v2666_v52 = vadd.f32 %v2665_v45, %v2545_v55  ;;  %v3673_v39 = vpop.f32.mrb[117].mxu1  ;;  %v3767_v40 = vpop.f32.mrb[117].mxu0 }
 0x1e3   : > { %v3674_v41 = vadd.f32 %v3673_v39, %v3672_v35  ;;  %v3675_v42 = vpop.f32.mrb[118].mxu1  ;;  %v2668_v6 = vpop.f32.mrb[118].mxu0 }
 0x1e4   : > { %v2746_v22 = vmax.f32 %v2666_v52, 0.0  ;;  %v2669_v5 = vadd.f32 %v2668_v6, %v2548_v23  ;;  %v3676_v31 = vpop.f32.mrb[119].mxu1  ;;  %v3768_v54 = vpop.f32.mrb[119].mxu0 }
 0x1e5   : > { %v3677_v25 = vadd.f32 %v3676_v31, %v3675_v42  ;;  %v2553_v11 = vadd.f32 %v3674_v41, %v4828_v43 }
 0x1e6   : > { %v3214_v36 = vpack.c.bf16 %v2746_v22, %v2746_v22  ;;  %v2747_v56 = vmax.f32 %v2669_v5, 0.0 }
 0x1e7   : > { %v2556_v59 = vadd.f32 %v3677_v25, %v4831_v48 }
 0x1e8   : > { %2857 = vst.msk [vmem:[%s4885_s13 + $0x8] sm:$0xf] %vm2854_vm1, %v3214_v36  ;;  %v3215_v61 = vpack.c.bf16 %v2747_v56, %v2747_v56 }
 0x1e9   : > { %v3678_v38 = vpop.f32.mrb[120].mxu1  ;;  %v2673_v34 = vpop.f32.mrb[120].mxu0 }
 0x1ea   : > { %2858 = vst.msk [vmem:[%s4885_s13 + $0xc] sm:$0xf] %vm2854_vm1, %v3215_v61  ;;  %v2674_v0 = vadd.f32 %v2673_v34, %v2553_v11  ;;  %v3679_v44 = vpop.f32.mrb[121].mxu1  ;;  %v3771_v2 = vpop.f32.mrb[121].mxu0 }
 0x1eb   : > { %v3680_v60 = vadd.f32 %v3679_v44, %v3678_v38  ;;  %v3681_v58 = vpop.f32.mrb[122].mxu1  ;;  %v2676_v10 = vpop.f32.mrb[122].mxu0 }
 0x1ec   : > { %v2748_v43 = vmax.f32 %v2674_v0, 0.0  ;;  %v2677_v30 = vadd.f32 %v2676_v10, %v2556_v59  ;;  %v3682_v15 = vpop.f32.mrb[123].mxu1  ;;  %v3772_v13 = vpop.f32.mrb[123].mxu0 }
 0x1ed   : > { %v3683_v48 = vadd.f32 %v3682_v15, %v3681_v58  ;;  %v2561_v14 = vadd.f32 %v3680_v60, %v4834_v4 }
 0x1ee   : > { %v3216_v47 = vpack.c.bf16 %v2748_v43, %v2748_v43  ;;  %v2749_v16 = vmax.f32 %v2677_v30, 0.0 }
 0x1ef   : > { %v2564_v17 = vadd.f32 %v3683_v48, %v4837_v8 }
 0x1f0   : > { %2859 = vst.msk [vmem:[%s4885_s13 + $0x10] sm:$0xf] %vm2854_vm1, %v3216_v47  ;;  %v3217_v37 = vpack.c.bf16 %v2749_v16, %v2749_v16 }
 0x1f1   : > { %v3684_v19 = vpop.f32.mrb[124].mxu1  ;;  %v2681_v20 = vpop.f32.mrb[124].mxu0 }
 0x1f2   : > { %2860 = vst.msk [vmem:[%s4885_s13 + $0x14] sm:$0xf] %vm2854_vm1, %v3217_v37  ;;  %v2682_v21 = vadd.f32 %v2681_v20, %v2561_v14  ;;  %v3685_v53 = vpop.f32.mrb[125].mxu1  ;;  %v3775_v49 = vpop.f32.mrb[125].mxu0 }
 0x1f3   : > { %v3686_v27 = vadd.f32 %v3685_v53, %v3684_v19  ;;  %v3687_v50 = vpop.f32.mrb[126].mxu1  ;;  %v2684_v55 = vpop.f32.mrb[126].mxu0 }
 0x1f4   : > { %v2750_v4 = vmax.f32 %v2682_v21, 0.0  ;;  %v2685_v28 = vadd.f32 %v2684_v55, %v2564_v17  ;;  %v3688_v32 = vpop.f32.mrb[127].mxu1  ;;  %v3776_v23 = vpop.f32.mrb[127].mxu0 }
 0x1f5   : > { %v3689_v8 = vadd.f32 %v3688_v32, %v3687_v50  ;;  %v2569_v33 = vadd.f32 %v3686_v27, %v4840_v63 }
 0x1f6   : > { %v3218_v35 = vpack.c.bf16 %v2750_v4, %v2750_v4  ;;  %v2751_v45 = vmax.f32 %v2685_v28, 0.0 }
 0x1f7   : > { %v2572_v52 = vadd.f32 %v3689_v8, %v4843_v3 }
 0x1f8   : > { %2861 = vst.msk [vmem:[%s4885_s13 + $0x18] sm:$0xf] %vm2854_vm1, %v3218_v35  ;;  %v3219_v39 = vpack.c.bf16 %v2751_v45, %v2751_v45 }
 0x1f9   : > { %v3690_v40 = vpop.f32.mrb[128].mxu1  ;;  %v2689_v41 = vpop.f32.mrb[128].mxu0 }
 0x1fa   : > { %2862 = vst.msk [vmem:[%s4885_s13 + $0x1c] sm:$0xf] %vm2854_vm1, %v3219_v39  ;;  %v2690_v42 = vadd.f32 %v2689_v41, %v2569_v33  ;;  %v3691_v6 = vpop.f32.mrb[129].mxu1  ;;  %v3779_v22 = vpop.f32.mrb[129].mxu0 }
 0x1fb   : > { %v3692_v5 = vadd.f32 %v3691_v6, %v3690_v40  ;;  %v3693_v31 = vpop.f32.mrb[130].mxu1  ;;  %v2692_v54 = vpop.f32.mrb[130].mxu0 }
 0x1fc   : > { %v2752_v63 = vmax.f32 %v2690_v42, 0.0  ;;  %v2693_v25 = vadd.f32 %v2692_v54, %v2572_v52  ;;  %v3694_v11 = vpop.f32.mrb[131].mxu1  ;;  %v3780_v36 = vpop.f32.mrb[131].mxu0 }
 0x1fd   : > { %v3695_v3 = vadd.f32 %v3694_v11, %v3693_v31  ;;  %v2577_v56 = vadd.f32 %v3692_v5, %v4846_v26 }
 0x1fe   : > { %v3220_v59 = vpack.c.bf16 %v2752_v63, %v2752_v63  ;;  %v2753_v61 = vmax.f32 %v2693_v25, 0.0 }
 0x1ff   : > { %v2580_v38 = vadd.f32 %v3695_v3, %v4849_v29 }
 0x200   : > { %2863 = vst.msk [vmem:[%s4885_s13 + $0x20] sm:$0xf] %vm2854_vm1, %v3220_v59  ;;  %v3221_v34 = vpack.c.bf16 %v2753_v61, %v2753_v61 }
 0x201   : > { %v3696_v0 = vpop.f32.mrb[132].mxu1  ;;  %v2697_v44 = vpop.f32.mrb[132].mxu0 }
 0x202   : > { %2864 = vst.msk [vmem:[%s4885_s13 + $0x24] sm:$0xf] %vm2854_vm1, %v3221_v34  ;;  %v2698_v2 = vadd.f32 %v2697_v44, %v2577_v56  ;;  %v3697_v60 = vpop.f32.mrb[133].mxu1  ;;  %v3783_v58 = vpop.f32.mrb[133].mxu0 }
 0x203   : > { %v3698_v10 = vadd.f32 %v3697_v60, %v3696_v0  ;;  %v3699_v43 = vpop.f32.mrb[134].mxu1  ;;  %v2700_v30 = vpop.f32.mrb[134].mxu0 }
 0x204   : > { %v2754_v26 = vmax.f32 %v2698_v2, 0.0  ;;  %v2701_v15 = vadd.f32 %v2700_v30, %v2580_v38  ;;  %v3700_v13 = vpop.f32.mrb[135].mxu1  ;;  %v3784_v48 = vpop.f32.mrb[135].mxu0 }
 0x205   : > { %v3701_v29 = vadd.f32 %v3700_v13, %v3699_v43  ;;  %v2585_v14 = vadd.f32 %v3698_v10, %v4852_v57 }
 0x206   : > { %v3222_v47 = vpack.c.bf16 %v2754_v26, %v2754_v26  ;;  %v2755_v16 = vmax.f32 %v2701_v15, 0.0 }
 0x207   : > { %v2588_v17 = vadd.f32 %v3701_v29, %v4855_v62 }
 0x208   : > { %2865 = vst.msk [vmem:[%s4885_s13 + $0x28] sm:$0xf] %vm2854_vm1, %v3222_v47  ;;  %v3223_v37 = vpack.c.bf16 %v2755_v16, %v2755_v16 }
 0x209   : > { %v3702_v19 = vpop.f32.mrb[136].mxu1  ;;  %v2705_v20 = vpop.f32.mrb[136].mxu0 }
 0x20a   : > { %2866 = vst.msk [vmem:[%s4885_s13 + $0x2c] sm:$0xf] %vm2854_vm1, %v3223_v37  ;;  %v2706_v21 = vadd.f32 %v2705_v20, %v2585_v14  ;;  %v3703_v53 = vpop.f32.mrb[137].mxu1  ;;  %v3787_v49 = vpop.f32.mrb[137].mxu0 }
 0x20b   : > { %v3704_v27 = vadd.f32 %v3703_v53, %v3702_v19  ;;  %v3705_v50 = vpop.f32.mrb[138].mxu1  ;;  %v2708_v55 = vpop.f32.mrb[138].mxu0 }
 0x20c   : > { %v2756_v57 = vmax.f32 %v2706_v21, 0.0  ;;  %v2709_v4 = vadd.f32 %v2708_v55, %v2588_v17  ;;  %v3706_v28 = vpop.f32.mrb[139].mxu1  ;;  %v3788_v32 = vpop.f32.mrb[139].mxu0 }
 0x20d   : > { %v3707_v62 = vadd.f32 %v3706_v28, %v3705_v50  ;;  %v2593_v23 = vadd.f32 %v3704_v27, %v4858_v18 }
 0x20e   : > { %v3224_v8 = vpack.c.bf16 %v2756_v57, %v2756_v57  ;;  %v2757_v33 = vmax.f32 %v2709_v4, 0.0 }
 0x20f   : > { %v2596_v35 = vadd.f32 %v3707_v62, %v4861_v24 }
 0x210   : > { %2867 = vst.msk [vmem:[%s4885_s13 + $0x30] sm:$0xf] %vm2854_vm1, %v3224_v8  ;;  %v3225_v45 = vpack.c.bf16 %v2757_v33, %v2757_v33 }
 0x211   : > { %v3708_v52 = vpop.f32.mrb[140].mxu1  ;;  %v2713_v39 = vpop.f32.mrb[140].mxu0 }
 0x212   : > { %2868 = vst.msk [vmem:[%s4885_s13 + $0x34] sm:$0xf] %vm2854_vm1, %v3225_v45  ;;  %v2714_v40 = vadd.f32 %v2713_v39, %v2593_v23  ;;  %v3709_v41 = vpop.f32.mrb[141].mxu1  ;;  %v3791_v42 = vpop.f32.mrb[141].mxu0 }
 0x213   : > { %v3710_v6 = vadd.f32 %v3709_v41, %v3708_v52  ;;  %v3711_v22 = vpop.f32.mrb[142].mxu1  ;;  %v2716_v5 = vpop.f32.mrb[142].mxu0 }
 0x214   : > { %v2758_v18 = vmax.f32 %v2714_v40, 0.0  ;;  %v2717_v31 = vadd.f32 %v2716_v5, %v2596_v35  ;;  %v3712_v54 = vpop.f32.mrb[143].mxu1  ;;  %v3792_v63 = vpop.f32.mrb[143].mxu0 }
 0x215   : > { %v3713_v24 = vadd.f32 %v3712_v54, %v3711_v22  ;;  %v2601_v25 = vadd.f32 %v3710_v6, %v4864_v46 }
 0x216   : > { %v3226_v11 = vpack.c.bf16 %v2758_v18, %v2758_v18  ;;  %v2759_v36 = vmax.f32 %v2717_v31, 0.0 }
 0x217   : > { %v2604_v3 = vadd.f32 %v3713_v24, %v4867_v51 }
 0x218   : > { %2869 = vst.msk [vmem:[%s4885_s13 + $0x38] sm:$0xf] %vm2854_vm1, %v3226_v11  ;;  %v3227_v56 = vpack.c.bf16 %v2759_v36, %v2759_v36 }
 0x219   : > { %v3714_v59 = vpop.f32.mrb[144].mxu1  ;;  %v2721_v61 = vpop.f32.mrb[144].mxu0 }
 0x21a   : > { %2870 = vst.msk [vmem:[%s4885_s13 + $0x3c] sm:$0xf] %vm2854_vm1, %v3227_v56  ;;  %v2722_v38 = vadd.f32 %v2721_v61, %v2601_v25  ;;  %v3715_v34 = vpop.f32.mrb[145].mxu1  ;;  %v3795_v0 = vpop.f32.mrb[145].mxu0 }
 0x21b   : > { %v3716_v44 = vadd.f32 %v3715_v34, %v3714_v59  ;;  %v3717_v2 = vpop.f32.mrb[146].mxu1  ;;  %v2724_v60 = vpop.f32.mrb[146].mxu0 }
 0x21c   : > { %v2760_v46 = vmax.f32 %v2722_v38, 0.0  ;;  %v2725_v58 = vadd.f32 %v2724_v60, %v2604_v3  ;;  %v3718_v10 = vpop.f32.mrb[147].mxu1  ;;  %v3796_v43 = vpop.f32.mrb[147].mxu0 }
 0x21d   : > { %v3719_v51 = vadd.f32 %v3718_v10, %v3717_v2  ;;  %v2609_v30 = vadd.f32 %v3716_v44, %v4870_v7 }
 0x21e   : > { %v3228_v26 = vpack.c.bf16 %v2760_v46, %v2760_v46  ;;  %v2761_v15 = vmax.f32 %v2725_v58, 0.0 }
 0x21f   : > { %v2612_v13 = vadd.f32 %v3719_v51, %v4873_v12 }
 0x220   : > { %2871 = vst.msk [vmem:[%s4885_s13 + $0x40] sm:$0xf] %vm2854_vm1, %v3228_v26  ;;  %v3229_v48 = vpack.c.bf16 %v2761_v15, %v2761_v15 }
 0x221   : > { %v3720_v29 = vpop.f32.mrb[148].mxu1  ;;  %v2729_v14 = vpop.f32.mrb[148].mxu0 }
 0x222   : > { %2872 = vst.msk [vmem:[%s4885_s13 + $0x44] sm:$0xf] %vm2854_vm1, %v3229_v48  ;;  %v2730_v47 = vadd.f32 %v2729_v14, %v2609_v30  ;;  %v3721_v16 = vpop.f32.mrb[149].mxu1  ;;  %v3799_v17 = vpop.f32.mrb[149].mxu0 }
 0x223   : > { %v3722_v37 = vadd.f32 %v3721_v16, %v3720_v29  ;;  %v3723_v19 = vpop.f32.mrb[150].mxu1  ;;  %v2732_v20 = vpop.f32.mrb[150].mxu0 }
 0x224   : > { %v2762_v7 = vmax.f32 %v2730_v47, 0.0  ;;  %v2733_v21 = vadd.f32 %v2732_v20, %v2612_v13  ;;  %v3724_v53 = vpop.f32.mrb[151].mxu1  ;;  %v3800_v49 = vpop.f32.mrb[151].mxu0 }
 0x225   : > { %v3725_v12 = vadd.f32 %v3724_v53, %v3723_v19  ;;  %v2617_v27 = vadd.f32 %v3722_v37, %v4875_v1 }
 0x226   : > { %v3230_v50 = vpack.c.bf16 %v2762_v7, %v2762_v7  ;;  %v2763_v55 = vmax.f32 %v2733_v21, 0.0 }
 0x227   : > { %v2620_v57 = vadd.f32 %v3725_v12, %v4878_v9 }
 0x228   : > { %2873 = vst.msk [vmem:[%s4885_s13 + $0x48] sm:$0xf] %vm2854_vm1, %v3230_v50  ;;  %v3231_v4 = vpack.c.bf16 %v2763_v55, %v2763_v55 }
 0x229   : > { %v2737_v28 = vpop.f32.mrb[152].mxu0 }
 0x22a   : > { %2874 = vst.msk [vmem:[%s4885_s13 + $0x4c] sm:$0xf] %vm2854_vm1, %v3231_v4  ;;  %v2738_v32 = vadd.f32 %v2737_v28, %v2617_v27  ;;  %v3803_v62 = vpop.f32.mrb[153].mxu0 }
 0x22b   : > { %v2740_v23 = vpop.f32.mrb[154].mxu0 }
 0x22c   : > { %v2764_v8 = vmax.f32 %v2738_v32, 0.0  ;;  %v2741_v33 = vadd.f32 %v2740_v23, %v2620_v57  ;;  %v3804_v35 = vpop.f32.mrb[155].mxu0 }
 0x22e   : > { %v3232_v45 = vpack.c.bf16 %v2764_v8, %v2764_v8  ;;  %v2765_v1 = vmax.f32 %v2741_v33, 0.0 }
 0x230   : > { %2875 = vst.msk [vmem:[%s4885_s13 + $0x50] sm:$0xf] %vm2854_vm1, %v3232_v45  ;;  %v3233_v52 = vpack.c.bf16 %v2765_v1, %v2765_v1 }
 0x232   : > { %2876 = vst.msk [vmem:[%s4885_s13 + $0x54] sm:$0xf] %vm2854_vm1, %v3233_v52 }
 0x233 PF: > { %s13_s12 = sadd.s32 1, %s4151_s12  }
 0x234   : > { %p10_p4 = scmp.ge.s32.totalorder %s13_s12, 4  }
 0x236   :  { %12 = sbr.rel (!%p10_p4) target bundleno = 1 (0x1), region = 62 }

// kernel: vae_forward.12
= control target key start
LH: loop header
LB: loop body
LE: loop exit
PB: predicated region body
PF: predicated region fallthrough
CT: control target
= control target key end

     0   :  { %s3120_s12 = smov 0   ;;  %s3730_s0 = inlined_call_operand.vmem [shape: bf16[1488,896], index: 0, kind: input, shape index: {}]   ;;  %s3731_s1 = inlined_call_operand.vmem [shape: bf16[896,32], index: 1, kind: input, shape index: {}]   ;;  %s3732_s2 = inlined_call_operand.vmem [shape: f32[1,32], index: 2, kind: input, shape index: {}]   ;;  %s3733_s3 = inlined_call_operand.vmem [shape: bf16[1488,32], index: 3, kind: output, shape index: {}]  }
   0x1 LB: > { %s2206_s13 = sadd.s32 4294967295, %s3098_s12   ;;  %p2210_p0 = scmp.ge.s32.totalorder %s3098_s12, 1  ;;  %s3098_s12 = sphi %s3120_s12, %s13_s12  }
   0x2   : > { %p139_p1 = scmp.lt.s32.totalorder %s3098_s12, 7 }
   0x4   : > { %p140_p2 = pnand %p2210_p0, %p139_p1 }
   0x5   : > { %v2879_v0 = vld [vmem:[%s3731_s1 + $0x40] sm:$0xff] (!%p140_p2)   ;;  %s164_s16 = smul.u32 (!%p140_p2), 31, %s2206_s13  ;;  %v2881_v2 = vld [vmem:[%s3731_s1 + $0x48] sm:$0xff] (!%p140_p2)   ;;  %v2883_v4 = vld [vmem:[%s3731_s1 + $0x50] sm:$0xff] (!%p140_p2)   ;;  %vm2118_vm0 = vcmask (!%p140_p2), 257024  }
   0x6   : > { %143 = sbr.rel (%p140_p2) target bundleno = 478 (0x1de), region = 32  ;;  %v2880_v1 = vld [vmem:[%s3731_s1] sm:$0xff] (!%p140_p2)   ;;  %2446 = vmatprep.subr.bf16.mxu0 (!%p140_p2), %v2879_v0  ;;  %2854 = vmatprep.subr.bf16.mxu1 (!%p140_p2), %v2879_v0  ;;  %v2882_v3 = vld [vmem:[%s3731_s1 + $0x8] sm:$0xff] (!%p140_p2)   ;;  %v2884_v5 = vld [vmem:[%s3731_s1 + $0x10] sm:$0xff] (!%p140_p2)  }
   0x7   : > { %p165_p3 = scmp.lt.s32.totalorder (!%p140_p2), %s164_s16, 185  ;;  %2447 = vmatpush3.bf16.msra.mxu0 (!%p140_p2), %v2880_v1  ;;  %2862 = vmatpush3.bf16.msra.mxu1 (!%p140_p2), %v2880_v1  ;;  %v2885_v6 = vld [vmem:[%s3731_s1 + $0x58] sm:$0xff] (!%p140_p2)   ;;  %v2887_v8 = vld [vmem:[%s3731_s1 + $0x60] sm:$0xff] (!%p140_p2)   ;;  %v2889_v10 = vld [vmem:[%s3731_s1 + $0x68] sm:$0xff] (!%p140_p2)  }
   0x8   : > { %2448 = vmatprep.subr.bf16.mxu0 (!%p140_p2), %v2881_v2  ;;  %2855 = vmatprep.subr.bf16.mxu1 (!%p140_p2), %v2881_v2  ;;  %v2886_v7 = vld [vmem:[%s3731_s1 + $0x18] sm:$0xff] (!%p140_p2)   ;;  %v2888_v9 = vld [vmem:[%s3731_s1 + $0x20] sm:$0xff] (!%p140_p2)   ;;  %v2890_v13 = vld [vmem:[%s3731_s1 + $0x28] sm:$0xff] (!%p140_p2)  }
   0x9   : > { %v2891_v14 = vld [vmem:[%s3731_s1 + $0x70] sm:$0xff] (!%p140_p2)   ;;  %v2893_v16 = vld [vmem:[%s3731_s1 + $0x78] sm:$0xff] (!%p140_p2)   ;;  %v2901_v18 = vld [vmem:[%s3731_s1 + $0xc0] sm:$0xff] (!%p140_p2)  }
   0xa   : > { %v2892_v15 = vld [vmem:[%s3731_s1 + $0x30] sm:$0xff] (!%p140_p2)   ;;  %v2894_v17 = vld [vmem:[%s3731_s1 + $0x38] sm:$0xff] (!%p140_p2)   ;;  %v2902_v21 = vld [vmem:[%s3731_s1 + $0x140] sm:$0xff] (!%p140_p2)  }
   0xb   : > { %2449 = vmatpush3.bf16.msra.mxu0 (!%p140_p2), %v2882_v3  ;;  %2863 = vmatpush3.bf16.msra.mxu1 (!%p140_p2), %v2882_v3  ;;  %v2903_v22 = vld [vmem:[%s3731_s1 + $0x80] sm:$0xff] (!%p140_p2)   ;;  %v2905_v24 = vld [vmem:[%s3731_s1 + $0xc8] sm:$0xff] (!%p140_p2)   ;;  %v2913_v32 = vld [vmem:[%s3731_s1 + $0xd0] sm:$0xff] (!%p140_p2)  }
   0xc   : > { %2450 = vmatprep.subr.bf16.mxu0 (!%p140_p2), %v2883_v4  ;;  %2856 = vmatprep.subr.bf16.mxu1 (!%p140_p2), %v2883_v4  ;;  %v2904_v23 = vld [vmem:[%s3731_s1 + $0x100] sm:$0xff] (!%p140_p2)   ;;  %v2916_v27 = vld [vmem:[%s3731_s1 + $0x148] sm:$0xff] (!%p140_p2)   ;;  %v2914_v33 = vld [vmem:[%s3731_s1 + $0x90] sm:$0xff] (!%p140_p2)  }
   0xd   : > { %s3735_s16 = smov (!%p165_p3, %s164_s16), 185  ;;  %v2906_v28 = vld [vmem:[%s3731_s1 + $0x88] sm:$0xff]   ;;  %v2915_v34 = vld [vmem:[%s3731_s1 + $0xd8] sm:$0xff]   ;;  %v2925_v38 = vld [vmem:[%s3731_s1 + $0xe0] sm:$0xff]  }
   0xe   : > { %s2870_s29 = smul.u32 28, %s3735_s16  ;;  %v2918_v29 = vld [vmem:[%s3731_s1 + $0x108] sm:$0xff]   ;;  %v2917_v37 = vld [vmem:[%s3731_s1 + $0x98] sm:$0xff]   ;;  %v2935_v39 = vld [vmem:[%s3731_s1 + $0x150] sm:$0xff]   ;;  %s2212_s8 = sshll.u32 %s3735_s16, 2 }
   0xf   : > { %2451 = vmatpush3.bf16.msra.mxu0 %v2884_v5  ;;  %2864 = vmatpush3.bf16.msra.mxu1 %v2884_v5  ;;  %v2937_v43 = vld [vmem:[%s3731_s1 + $0x110] sm:$0xff]   ;;  %v2926_v44 = vld [vmem:[%s3731_s1 + $0xa0] sm:$0xff]   ;;  %v2927_v46 = vld [vmem:[%s3731_s1 + $0xe8] sm:$0xff]   ;;  %s3617_s13 = scalar_lea.vmem %s3733_s3, %s2212_s8 }
  0x10   : > { %2452 = vmatprep.subr.bf16.mxu0 %v2885_v6  ;;  %2857 = vmatprep.subr.bf16.mxu1 %v2885_v6  ;;  %s3161_s9 = scalar_lea.vmem %s3730_s0, %s2870_s29  ;;  %v2928_v48 = vld [vmem:[%s3731_s1 + $0xa8] sm:$0xff]   ;;  %v2934_v49 = vld [vmem:[%s3731_s1 + $0xf0] sm:$0xff]   ;;  %v2947_v50 = vld [vmem:[%s3731_s1 + $0x158] sm:$0xff]  }
  0x11   : > { %v2897_v11 = vld [vmem:[%s3161_s9 + $0x4] ss:$28 sps:$4 sm:$0xff]   ;;  %v2907_v25 = vld [vmem:[%s3161_s9 + $0x3c] ss:$28 sps:$4 sm:$0xff]   ;;  %v2919_v35 = vld [vmem:[%s3161_s9 + $0x74] ss:$28 sps:$4 sm:$0xff]  }
  0x12   : > { %v2900_v12 = vld [vmem:[%s3161_s9 + $0x2a4] ss:$28 sps:$4 sm:$0xff]   ;;  %1354 = vmatprep.mubr.bf16.mxu0 %v2897_v11  ;;  %v2909_v26 = vld [vmem:[%s3161_s9 + $0x2dc] ss:$28 sps:$4 sm:$0xff]   ;;  %v2921_v36 = vld [vmem:[%s3161_s9 + $0x314] ss:$28 sps:$4 sm:$0xff]  }
  0x13   : > { %2453 = vmatpush3.bf16.msra.mxu0 %v2886_v7  ;;  %2865 = vmatpush3.bf16.msra.mxu1 %v2886_v7  ;;  %v2895_v19 = vld [vmem:[%s3161_s9] ss:$28 sps:$4 sm:$0xff]   ;;  %v2911_v30 = vld [vmem:[%s3161_s9 + $0x38] ss:$28 sps:$4 sm:$0xff]   ;;  %v2923_v40 = vld [vmem:[%s3161_s9 + $0x70] ss:$28 sps:$4 sm:$0xff]  }
  0x14   : > { %2454 = vmatprep.subr.bf16.mxu0 %v2887_v8  ;;  %2858 = vmatprep.subr.bf16.mxu1 %v2887_v8  ;;  %v2898_v20 = vld [vmem:[%s3161_s9 + $0x2a0] ss:$28 sps:$4 sm:$0xff]   ;;  %v2912_v31 = vld [vmem:[%s3161_s9 + $0x2d8] ss:$28 sps:$4 sm:$0xff]   ;;  %v2924_v41 = vld [vmem:[%s3161_s9 + $0x310] ss:$28 sps:$4 sm:$0xff]  }
  0x15   : > { %1450 = vmatprep.mubr.bf16.mxu1 %v2900_v12  ;;  %v298_v42 = vld [vmem:[%s3161_s9 + $0x348] sm:$0xff]  ;;  %v2948_v51 = vld [vmem:[%s3731_s1 + $0x118] sm:$0xff]   ;;  %v2936_v54 = vld [vmem:[%s3731_s1 + $0xb0] sm:$0xff]  }
  0x16   : > { %v2929_v45 = vld [vmem:[%s3161_s9 + $0xac] ss:$28 sps:$4 sm:$0xff]   ;;  %v2320_v47 = vcombine.high %v298_v42, %v298_v42  ;;  %v2319_v53 = vcombine.low %v298_v42, %v298_v42  ;;  %v2938_v55 = vld [vmem:[%s3731_s1 + $0xf8] sm:$0xff]   ;;  %v2940_v56 = vld [vmem:[%s3161_s9 + $0xe4] ss:$28 sps:$4 sm:$0xff]  }
  0x17   : > { %2455 = vmatpush3.bf16.msra.mxu0 %v2888_v9  ;;  %2866 = vmatpush3.bf16.msra.mxu1 %v2888_v9  ;;  %v2932_v52 = vld [vmem:[%s3161_s9 + $0xa8] ss:$28 sps:$4 sm:$0xff]   ;;  %v2939_v58 = vld [vmem:[%s3731_s1 + $0xb8] sm:$0xff]   ;;  %v2978_v7 = vld [vmem:[%s3731_s1 + $0x190] sm:$0xff]  }
  0x18   : > { %2456 = vmatprep.subr.bf16.mxu0 %v2889_v10  ;;  %2859 = vmatprep.subr.bf16.mxu1 %v2889_v10  ;;  %v2944_v57 = vld [vmem:[%s3161_s9 + $0xc] ss:$28 sps:$4 sm:$0xff]   ;;  %v2946_v59 = vld [vmem:[%s3731_s1 + $0x180] sm:$0xff]   ;;  %v2949_v0 = vld [vmem:[%s3161_s9 + $0x11c] ss:$28 sps:$4 sm:$0xff]  }
  0x19   : > { %v2961_v60 = vld [vmem:[%s3731_s1 + $0x160] sm:$0xff]   ;;  %v2963_v2 = vld [vmem:[%s3731_s1 + $0x188] sm:$0xff]   ;;  %v2953_v5 = vld [vmem:[%s3161_s9 + $0x118] ss:$28 sps:$4 sm:$0xff]  }
  0x1a   : > { %v2962_v61 = vld [vmem:[%s3731_s1 + $0x120] sm:$0xff]   ;;  %v2970_v3 = vld [vmem:[%s3731_s1 + $0x168] sm:$0xff]   ;;  %v2955_v8 = vld [vmem:[%s3161_s9 + $0x154] ss:$28 sps:$4 sm:$0xff]  }
  0x1b   : > { %2457 = vmatpush3.bf16.msra.mxu0 %v2890_v13  ;;  %2867 = vmatpush3.bf16.msra.mxu1 %v2890_v13  ;;  %v2942_v62 = vld [vmem:[%s3161_s9 + $0x8] ss:$28 sps:$4 sm:$0xff]   ;;  %v2945_v63 = vld [vmem:[%s3161_s9 + $0xe0] ss:$28 sps:$4 sm:$0xff]   ;;  %v2985_v10 = vld [vmem:[%s3731_s1 + $0x170] sm:$0xff]  }
  0x1c   : > { %2458 = vmatprep.subr.bf16.mxu0 %v2891_v14  ;;  %2860 = vmatprep.subr.bf16.mxu1 %v2891_v14  ;;  %v2951_v1 = vld [vmem:[%s3161_s9 + $0x44] ss:$28 sps:$4 sm:$0xff]   ;;  %v2971_v4 = vld [vmem:[%s3731_s1 + $0x128] sm:$0xff]   ;;  %v2957_v9 = vld [vmem:[%s3161_s9 + $0x7c] ss:$28 sps:$4 sm:$0xff]  }
  0x1d   : > { %v2954_v6 = vld [vmem:[%s3161_s9 + $0x40] ss:$28 sps:$4 sm:$0xff]   ;;  %v2986_v11 = vld [vmem:[%s3731_s1 + $0x130] sm:$0xff]   ;;  %v2964_v14 = vld [vmem:[%s3161_s9 + $0x18c] ss:$28 sps:$4 sm:$0xff]  }
  0x1e   : > { %v2959_v12 = vld [vmem:[%s3161_s9 + $0x150] ss:$28 sps:$4 sm:$0xff]   ;;  %v2960_v13 = vld [vmem:[%s3161_s9 + $0x78] ss:$28 sps:$4 sm:$0xff]  }
  0x1f   : > { %2459 = vmatpush3.bf16.msra.mxu0 %v2892_v15  ;;  %2868 = vmatpush3.bf16.msra.mxu1 %v2892_v15  ;;  %v2966_v15 = vld [vmem:[%s3161_s9 + $0xb4] ss:$28 sps:$4 sm:$0xff]  }
  0x20   : > { %2460 = vmatprep.subr.bf16.mxu0 %v2893_v16  ;;  %2861 = vmatprep.subr.bf16.mxu1 %v2893_v16  ;;  %v2993_v16 = vld [vmem:[%s3731_s1 + $0x198] sm:$0xff]   ;;  %v3006_v42 = vld [vmem:[%s3161_s9 + $0x14] ss:$28 sps:$4 sm:$0xff]  }
  0x23   : > { %2461 = vmatpush3.bf16.msra.mxu0 %v2894_v17  ;;  %2869 = vmatpush3.bf16.msra.mxu1 %v2894_v17  ;;  %v2994_v17 = vld [vmem:[%s3731_s1 + $0x178] sm:$0xff]  }
  0x24   : > { %2558 = vmatprep.subr.bf16.mxu1 %v2901_v18  ;;  %2670 = vmatprep.subr.bf16.mxu0 %v2902_v21  ;;  %v2995_v18 = vld [vmem:[%s3731_s1 + $0x138] sm:$0xff]   ;;  %v2972_v21 = vld [vmem:[%s3161_s9 + $0x1c4] ss:$28 sps:$4 sm:$0xff]  }
  0x26   : > { %1355 = vmatmul.mubr.bf16.vlgmr.msra.gmra.mrb[0].mxu0 %v2895_v19  ;;  %1451 = vmatmul.mubr.bf16.vlgmr.msra.gmra.mrb[0].mxu1 %v2898_v20  ;;  %v2968_v19 = vld [vmem:[%s3161_s9 + $0x188] ss:$28 sps:$4 sm:$0xff]   ;;  %v2969_v20 = vld [vmem:[%s3161_s9 + $0xb0] ss:$28 sps:$4 sm:$0xff]  }
  0x27   : > { %2559 = vmatpush3.bf16.msra.mxu1 %v2903_v22  ;;  %2671 = vmatpush3.bf16.msra.mxu0 %v2904_v23  ;;  %v3008_v22 = vld [vmem:[%s3731_s1 + $0x1a0] sm:$0xff]   ;;  %v2974_v23 = vld [vmem:[%s3161_s9 + $0xec] ss:$28 sps:$4 sm:$0xff]  }
  0x28   : > { %2560 = vmatprep.subr.bf16.mxu1 %v2905_v24  ;;  %1362 = vmatprep.mubr.bf16.mxu0 %v2907_v25  ;;  %v3021_v24 = vld [vmem:[%s3731_s1 + $0x1a8] sm:$0xff]   ;;  %v2976_v25 = vld [vmem:[%s3161_s9 + $0x1c0] ss:$28 sps:$4 sm:$0xff]  }
  0x29   : > { %1458 = vmatprep.mubr.bf16.mxu1 %v2909_v26  ;;  %2672 = vmatprep.subr.bf16.mxu0 %v2916_v27  ;;  %v2977_v26 = vld [vmem:[%s3161_s9 + $0xe8] ss:$28 sps:$4 sm:$0xff]   ;;  %v2979_v27 = vld [vmem:[%s3161_s9 + $0x1fc] ss:$28 sps:$4 sm:$0xff]  }
  0x2b   : > { %2561 = vmatpush3.bf16.msra.mxu1 %v2906_v28  ;;  %2673 = vmatpush3.bf16.msra.mxu0 %v2918_v29  ;;  %v2981_v28 = vld [vmem:[%s3161_s9 + $0x124] ss:$28 sps:$4 sm:$0xff]   ;;  %v3034_v29 = vld [vmem:[%s3731_s1 + $0x1b0] sm:$0xff]  }
  0x2c   : > { %2562 = vmatprep.subr.bf16.mxu1 %v2913_v32  ;;  %2674 = vmatprep.subr.bf16.mxu0 %v2935_v39  ;;  %v2987_v32 = vld [vmem:[%s3161_s9 + $0x234] ss:$28 sps:$4 sm:$0xff]   ;;  %v3000_v39 = vld [vmem:[%s3161_s9 + $0x268] ss:$28 sps:$4 sm:$0xff]  }
  0x2e   : > { %1363 = vmatmul.mubr.bf16.gmra.mrb[4].mxu0 %v2911_v30  ;;  %1459 = vmatmul.mubr.bf16.gmra.mrb[4].mxu1 %v2912_v31  ;;  %v2983_v30 = vld [vmem:[%s3161_s9 + $0x1f8] ss:$28 sps:$4 sm:$0xff]   ;;  %v2984_v31 = vld [vmem:[%s3161_s9 + $0x120] ss:$28 sps:$4 sm:$0xff]  }
  0x2f   : > { %2563 = vmatpush3.bf16.msra.mxu1 %v2914_v33  ;;  %1370 = vmatprep.mubr.bf16.mxu0 %v2919_v35  ;;  %v2989_v33 = vld [vmem:[%s3161_s9 + $0x15c] ss:$28 sps:$4 sm:$0xff]   ;;  %v2991_v35 = vld [vmem:[%s3161_s9 + $0x230] ss:$28 sps:$4 sm:$0xff]  }
  0x30   : > { %2564 = vmatprep.subr.bf16.mxu1 %v2915_v34  ;;  %1466 = vmatprep.mubr.bf16.mxu1 %v2921_v36  ;;  %v3047_v34 = vld [vmem:[%s3731_s1 + $0x1b8] sm:$0xff]  }
  0x31   : > { %2675 = vmatpush3.bf16.msra.mxu0 %v2937_v43  ;;  %v2992_v36 = vld [vmem:[%s3161_s9 + $0x158] ss:$28 sps:$4 sm:$0xff]   ;;  %v3004_v43 = vld [vmem:[%s3161_s9 + $0x10] ss:$28 sps:$4 sm:$0xff]  }
  0x32   : > { %2676 = vmatprep.subr.bf16.mxu0 %v2947_v50  ;;  %v3017_v50 = vld [vmem:[%s3161_s9 + $0x84] ss:$28 sps:$4 sm:$0xff]  }
  0x33   : > { %2565 = vmatpush3.bf16.msra.mxu1 %v2917_v37  ;;  %v2996_v37 = vld [vmem:[%s3161_s9 + $0x26c] ss:$28 sps:$4 sm:$0xff]  }
  0x34   : > { %2566 = vmatprep.subr.bf16.mxu1 %v2925_v38  ;;  %v2998_v38 = vld [vmem:[%s3161_s9 + $0x194] ss:$28 sps:$4 sm:$0xff]  }
  0x35   : > { %2677 = vmatpush3.bf16.msra.mxu0 %v2948_v51  ;;  %v3019_v51 = vld [vmem:[%s3161_s9 + $0x238] ss:$28 sps:$4 sm:$0xff]  }
  0x36   : > { %1371 = vmatmul.mubr.bf16.gmra.mrb[8].mxu0 %v2923_v40  ;;  %1467 = vmatmul.mubr.bf16.gmra.mrb[8].mxu1 %v2924_v41  ;;  %v3001_v40 = vld [vmem:[%s3161_s9 + $0x190] ss:$28 sps:$4 sm:$0xff]  }
  0x37   : > { %2567 = vmatpush3.bf16.msra.mxu1 %v2926_v44  ;;  %1378 = vmatprep.mubr.bf16.mxu0 %v2929_v45  ;;  %v3002_v41 = vld [vmem:[%s3161_s9 + $0x1cc] ss:$28 sps:$4 sm:$0xff]   ;;  %v3009_v45 = vld [vmem:[%s3161_s9 + $0x204] ss:$28 sps:$4 sm:$0xff]  }
  0x38   : > { %2568 = vmatprep.subr.bf16.mxu1 %v2927_v46  ;;  %1474 = vmatprep.mubr.bf16.mxu1 %v2320_v47  ;;  %v3007_v44 = vld [vmem:[%s3161_s9 + $0x1c8] ss:$28 sps:$4 sm:$0xff]   ;;  %v3013_v47 = vld [vmem:[%s3161_s9 + $0x200] ss:$28 sps:$4 sm:$0xff]  }
  0x39   : > { %2678 = vmatprep.subr.bf16.mxu0 %v2961_v60  ;;  %v3011_v46 = vld [vmem:[%s3161_s9 + $0x4c] ss:$28 sps:$4 sm:$0xff]  }
  0x3a   : > { %2679 = vmatpush3.bf16.msra.mxu0 %v2962_v61  ;;  %v3033_v60 = vld [vmem:[%s3161_s9 + $0xf0] ss:$28 sps:$4 sm:$0xff]   ;;  %v3035_v61 = vld [vmem:[%s3161_s9 + $0x2e4] ss:$28 sps:$4 sm:$0xff]  }
  0x3b   : > { %2569 = vmatpush3.bf16.msra.mxu1 %v2928_v48  ;;  %2680 = vmatprep.subr.bf16.mxu0 %v2970_v3  ;;  %v3014_v48 = vld [vmem:[%s3161_s9 + $0x48] ss:$28 sps:$4 sm:$0xff]   ;;  %v299_v3 = vld [vmem:[%s3161_s9 + $0x350] sm:$0xff] }
  0x3c   : > { %2570 = vmatprep.subr.bf16.mxu1 %v2934_v49  ;;  %v3015_v49 = vld [vmem:[%s3161_s9 + $0x23c] ss:$28 sps:$4 sm:$0xff]  }
  0x3e   : > { %1379 = vmatmul.mubr.bf16.gmra.mrb[12].mxu0 %v2932_v52  ;;  %1475 = vmatmul.mubr.bf16.gmra.mrb[12].mxu1 %v2319_v53  ;;  %v3020_v52 = vld [vmem:[%s3161_s9 + $0x80] ss:$28 sps:$4 sm:$0xff]   ;;  %v3022_v53 = vld [vmem:[%s3161_s9 + $0x274] ss:$28 sps:$4 sm:$0xff]  }
  0x3f   : > { %2571 = vmatpush3.bf16.msra.mxu1 %v2936_v54  ;;  %1386 = vmatprep.mubr.bf16.mxu0 %v2940_v56  ;;  %v3024_v54 = vld [vmem:[%s3161_s9 + $0xbc] ss:$28 sps:$4 sm:$0xff]  }
  0x40   : > { %2572 = vmatprep.subr.bf16.mxu1 %v2938_v55  ;;  %1514 = vmatprep.mubr.bf16.mxu1 %v2944_v57  ;;  %v3026_v55 = vld [vmem:[%s3161_s9 + $0x270] ss:$28 sps:$4 sm:$0xff]   ;;  %v3027_v56 = vld [vmem:[%s3161_s9 + $0xb8] ss:$28 sps:$4 sm:$0xff]  }
  0x41   : > { %2681 = vmatpush3.bf16.msra.mxu0 %v2971_v4  ;;  %v3028_v57 = vld [vmem:[%s3161_s9 + $0x2ac] ss:$28 sps:$4 sm:$0xff]   ;;  %v3045_v4 = vld [vmem:[%s3161_s9 + $0x318] ss:$28 sps:$4 sm:$0xff]  }
  0x42   : > { %2682 = vmatprep.subr.bf16.mxu0 %v2985_v10  ;;  %v3053_v10 = vld [vmem:[%s3161_s9 + $0x1d4] ss:$28 sps:$4 sm:$0xff]  }
  0x43   : > { %2573 = vmatpush3.bf16.msra.mxu1 %v2939_v58  ;;  %v3030_v58 = vld [vmem:[%s3161_s9 + $0xf4] ss:$28 sps:$4 sm:$0xff]  }
  0x44   : > { %2806 = vmatprep.subr.bf16.mxu1 %v2946_v59 }
  0x45   : > { %2683 = vmatpush3.bf16.msra.mxu0 %v2986_v11  ;;  %v3055_v11 = vld [vmem:[%s3161_s9 + $0x18] ss:$28 sps:$4 sm:$0xff]  }
  0x46   : > { %1387 = vmatmul.mubr.bf16.gmra.mrb[16].mxu0 %v2945_v63  ;;  %1515 = vmatmul.mubr.bf16.vlgmr.msra.gmra.mrb[16].mxu1 %v2942_v62  ;;  %v3037_v62 = vld [vmem:[%s3161_s9 + $0x12c] ss:$28 sps:$4 sm:$0xff]   ;;  %v3039_v63 = vld [vmem:[%s3161_s9 + $0x2e0] ss:$28 sps:$4 sm:$0xff]  }
  0x47   : > { %2807 = vmatpush3.bf16.msra.mxu1 %v2946_v59  ;;  %1394 = vmatprep.mubr.bf16.mxu0 %v2949_v0  ;;  %v3032_v59 = vld [vmem:[%s3161_s9 + $0x2a8] ss:$28 sps:$4 sm:$0xff]  }
  0x48   : > { %1522 = vmatprep.mubr.bf16.mxu1 %v2951_v1  ;;  %2808 = vmatprep.subr.bf16.mxu1 %v2963_v2  ;;  %v3040_v0 = vld [vmem:[%s3161_s9 + $0x128] ss:$28 sps:$4 sm:$0xff]   ;;  %v3041_v1 = vld [vmem:[%s3161_s9 + $0x31c] ss:$28 sps:$4 sm:$0xff]  }
  0x49   : > { %2684 = vmatprep.subr.bf16.mxu0 %v2994_v17  ;;  %v3062_v17 = vld [vmem:[%s3161_s9 + $0xc0] ss:$28 sps:$4 sm:$0xff]  }
  0x4a   : > { %2685 = vmatpush3.bf16.msra.mxu0 %v2995_v18  ;;  %v3063_v18 = vld [vmem:[%s3161_s9 + $0x244] ss:$28 sps:$4 sm:$0xff]  }
  0x4b   : > { %2809 = vmatpush3.bf16.msra.mxu1 %v2963_v2  ;;  %v3043_v2 = vld [vmem:[%s3161_s9 + $0x164] ss:$28 sps:$4 sm:$0xff]  }
  0x4c   : > { %2810 = vmatprep.subr.bf16.mxu1 %v2978_v7 }
  0x4e   : > { %1395 = vmatmul.mubr.bf16.gmra.mrb[20].mxu0 %v2953_v5  ;;  %1523 = vmatmul.mubr.bf16.gmra.mrb[20].mxu1 %v2954_v6  ;;  %v3046_v5 = vld [vmem:[%s3161_s9 + $0x160] ss:$28 sps:$4 sm:$0xff]   ;;  %v2322_v6 = vcombine.high %v299_v3, %v299_v3 }
  0x4f   : > { %1402 = vmatprep.mubr.bf16.mxu0 %v2955_v8  ;;  %1530 = vmatprep.mubr.bf16.mxu1 %v2957_v9  ;;  %v2321_v8 = vcombine.low %v299_v3, %v299_v3  ;;  %v3052_v9 = vld [vmem:[%s3161_s9 + $0x198] ss:$28 sps:$4 sm:$0xff]  }
  0x50   : > { %2811 = vmatpush3.bf16.msra.mxu1 %v2978_v7  ;;  %v3049_v7 = vld [vmem:[%s3161_s9 + $0x19c] ss:$28 sps:$4 sm:$0xff]  }
  0x51   : > { %2812 = vmatprep.subr.bf16.mxu1 %v2993_v16 }
  0x54   : > { %2813 = vmatpush3.bf16.msra.mxu1 %v2993_v16  ;;  %v3061_v16 = vld [vmem:[%s3161_s9 + $0x208] ss:$28 sps:$4 sm:$0xff]  }
  0x55   : > { %2814 = vmatprep.subr.bf16.mxu1 %v3008_v22 }
  0x56   : > { %1403 = vmatmul.mubr.bf16.gmra.mrb[24].mxu0 %v2959_v12  ;;  %1531 = vmatmul.mubr.bf16.gmra.mrb[24].mxu1 %v2960_v13  ;;  %v3056_v12 = vld [vmem:[%s3161_s9 + $0x1d0] ss:$28 sps:$4 sm:$0xff]  }
  0x57   : > { %1410 = vmatprep.mubr.bf16.mxu0 %v2964_v14  ;;  %1538 = vmatprep.mubr.bf16.mxu1 %v2966_v15  ;;  %v3057_v13 = vld [vmem:[%s3161_s9 + $0x50] ss:$28 sps:$4 sm:$0xff]   ;;  %v3060_v15 = vld [vmem:[%s3161_s9 + $0x88] ss:$28 sps:$4 sm:$0xff]  }
  0x58   : > { %2815 = vmatpush3.bf16.msra.mxu1 %v3008_v22  ;;  %v3058_v14 = vld [vmem:[%s3161_s9 + $0x20c] ss:$28 sps:$4 sm:$0xff]   ;;  %v3068_v22 = vld [vmem:[%s3161_s9 + $0x27c] ss:$28 sps:$4 sm:$0xff]  }
  0x59   : > { %2816 = vmatprep.subr.bf16.mxu1 %v3021_v24 }
  0x5c   : > { %2817 = vmatpush3.bf16.msra.mxu1 %v3021_v24  ;;  %v3071_v24 = vld [vmem:[%s3161_s9 + $0x278] ss:$28 sps:$4 sm:$0xff]  }
  0x5d   : > { %2818 = vmatprep.subr.bf16.mxu1 %v3034_v29 }
  0x5e   : > { %1411 = vmatmul.mubr.bf16.gmra.mrb[28].mxu0 %v2968_v19  ;;  %1539 = vmatmul.mubr.bf16.gmra.mrb[28].mxu1 %v2969_v20  ;;  %v3065_v19 = vld [vmem:[%s3161_s9 + $0xf8] ss:$28 sps:$4 sm:$0xff]   ;;  %v3066_v20 = vld [vmem:[%s3161_s9 + $0x240] ss:$28 sps:$4 sm:$0xff]  }
  0x5f   : > { %1418 = vmatprep.mubr.bf16.mxu0 %v2972_v21  ;;  %1546 = vmatprep.mubr.bf16.mxu1 %v2974_v23  ;;  %v3067_v21 = vld [vmem:[%s3161_s9 + $0x130] ss:$28 sps:$4 sm:$0xff]   ;;  %v3070_v23 = vld [vmem:[%s3161_s9 + $0x168] ss:$28 sps:$4 sm:$0xff]  }
  0x60   : > { %2819 = vmatpush3.bf16.msra.mxu1 %v3034_v29  ;;  %v3077_v29 = vld [vmem:[%s3161_s9 + $0x210] ss:$28 sps:$4 sm:$0xff]  }
  0x61   : > { %2820 = vmatprep.subr.bf16.mxu1 %v3047_v34 }
  0x64   : > { %2821 = vmatpush3.bf16.msra.mxu1 %v3047_v34  ;;  %v3083_v34 = vld [vmem:[%s3161_s9 + $0x324] ss:$28 sps:$4 sm:$0xff]  }
  0x66   : > { %1419 = vmatmul.mubr.bf16.gmra.mrb[32].mxu0 %v2976_v25  ;;  %1547 = vmatmul.mubr.bf16.gmra.mrb[32].mxu1 %v2977_v26  ;;  %v3072_v25 = vld [vmem:[%s3161_s9 + $0x1a0] ss:$28 sps:$4 sm:$0xff]   ;;  %v3073_v26 = vld [vmem:[%s3161_s9 + $0x2b4] ss:$28 sps:$4 sm:$0xff]  }
  0x67   : > { %1426 = vmatprep.mubr.bf16.mxu0 %v2979_v27  ;;  %1554 = vmatprep.mubr.bf16.mxu1 %v2981_v28  ;;  %v3075_v27 = vld [vmem:[%s3161_s9 + $0x1d8] ss:$28 sps:$4 sm:$0xff]   ;;  %v3076_v28 = vld [vmem:[%s3161_s9 + $0x2b0] ss:$28 sps:$4 sm:$0xff]  }
  0x6e   : > { %1427 = vmatmul.mubr.bf16.gmra.mrb[36].mxu0 %v2983_v30  ;;  %1555 = vmatmul.mubr.bf16.gmra.mrb[36].mxu1 %v2984_v31  ;;  %v3078_v30 = vld [vmem:[%s3161_s9 + $0x2ec] ss:$28 sps:$4 sm:$0xff]  }
  0x6f   : > { %1434 = vmatprep.mubr.bf16.mxu0 %v2987_v32  ;;  %1562 = vmatprep.mubr.bf16.mxu1 %v2989_v33  ;;  %v3080_v31 = vld [vmem:[%s3161_s9 + $0x248] ss:$28 sps:$4 sm:$0xff]   ;;  %v3082_v33 = vld [vmem:[%s3161_s9 + $0x280] ss:$28 sps:$4 sm:$0xff]  }
  0x70   : > { %v3081_v32 = vld [vmem:[%s3161_s9 + $0x2e8] ss:$28 sps:$4 sm:$0xff]  }
  0x76   : > { %1435 = vmatmul.mubr.bf16.gmra.mrb[40].mxu0 %v2991_v35  ;;  %1563 = vmatmul.mubr.bf16.gmra.mrb[40].mxu1 %v2992_v36  ;;  %v3085_v35 = vld [vmem:[%s3161_s9 + $0x2b8] ss:$28 sps:$4 sm:$0xff]  }
  0x77   : > { %1442 = vmatprep.mubr.bf16.mxu0 %v2996_v37  ;;  %1570 = vmatprep.mubr.bf16.mxu1 %v2998_v38  ;;  %v300_v36 = vld [vmem:[%s3161_s9 + $0x358] sm:$0xff]  ;;  %v3087_v38 = vld [vmem:[%s3161_s9 + $0x2f0] ss:$28 sps:$4 sm:$0xff]  }
  0x78   : > { %v3086_v37 = vld [vmem:[%s3161_s9 + $0x320] ss:$28 sps:$4 sm:$0xff]  }
  0x7e   : > { %1443 = vmatmul.mubr.bf16.gmra.mrb[44].mxu0 %v3000_v39  ;;  %1571 = vmatmul.mubr.bf16.gmra.mrb[44].mxu1 %v3001_v40  ;;  %v2324_v39 = vcombine.high %v300_v36, %v300_v36  ;;  %v3089_v40 = vld [vmem:[%s3161_s9 + $0x328] ss:$28 sps:$4 sm:$0xff]  }
  0x7f   : > { %1578 = vmatprep.mubr.bf16.mxu1 %v3002_v41  ;;  %1674 = vmatprep.mubr.bf16.mxu0 %v3006_v42 }
  0x86   : > { %1579 = vmatmul.mubr.bf16.gmra.mrb[48].mxu1 %v3007_v44  ;;  %1675 = vmatmul.mubr.bf16.vlgmr.msra.gmra.mrb[48].mxu0 %v3004_v43 }
  0x87   : > { %1586 = vmatprep.mubr.bf16.mxu1 %v3009_v45  ;;  %1682 = vmatprep.mubr.bf16.mxu0 %v3011_v46  ;;  %v2323_v45 = vcombine.low %v300_v36, %v300_v36  ;;  %v3091_v46 = vld [vmem:[%s3161_s9 + $0x360] ss:$0 sps:$4 sm:$0xff]  }
  0x8e   : > { %1587 = vmatmul.mubr.bf16.gmra.mrb[52].mxu1 %v3013_v47  ;;  %1683 = vmatmul.mubr.bf16.gmra.mrb[52].mxu0 %v3014_v48 }
  0x8f   : > { %1594 = vmatprep.mubr.bf16.mxu1 %v3015_v49  ;;  %1690 = vmatprep.mubr.bf16.mxu0 %v3017_v50 }
  0x96   : > { %1595 = vmatmul.mubr.bf16.gmra.mrb[56].mxu1 %v3019_v51  ;;  %1691 = vmatmul.mubr.bf16.gmra.mrb[56].mxu0 %v3020_v52 }
  0x97   : > { %1602 = vmatprep.mubr.bf16.mxu1 %v3022_v53  ;;  %1698 = vmatprep.mubr.bf16.mxu0 %v3024_v54 }
  0x9e   : > { %1603 = vmatmul.mubr.bf16.gmra.mrb[60].mxu1 %v3026_v55  ;;  %1699 = vmatmul.mubr.bf16.gmra.mrb[60].mxu0 %v3027_v56 }
  0x9f   : > { %1610 = vmatprep.mubr.bf16.mxu1 %v3028_v57  ;;  %1706 = vmatprep.mubr.bf16.mxu0 %v3030_v58 }
  0xa6   : > { %1611 = vmatmul.mubr.bf16.gmra.mrb[64].mxu1 %v3032_v59  ;;  %1707 = vmatmul.mubr.bf16.gmra.mrb[64].mxu0 %v3033_v60 }
  0xa7   : > { %1618 = vmatprep.mubr.bf16.mxu1 %v3035_v61  ;;  %1714 = vmatprep.mubr.bf16.mxu0 %v3037_v62 }
  0xae   : > { %1619 = vmatmul.mubr.bf16.gmra.mrb[68].mxu1 %v3039_v63  ;;  %1715 = vmatmul.mubr.bf16.gmra.mrb[68].mxu0 %v3040_v0 }
  0xaf   : > { %1626 = vmatprep.mubr.bf16.mxu1 %v3041_v1  ;;  %1722 = vmatprep.mubr.bf16.mxu0 %v3043_v2 }
  0xb6   : > { %1627 = vmatmul.mubr.bf16.gmra.mrb[72].mxu1 %v3045_v4  ;;  %1723 = vmatmul.mubr.bf16.gmra.mrb[72].mxu0 %v3046_v5 }
  0xb7   : > { %1634 = vmatprep.mubr.bf16.mxu1 %v2322_v6  ;;  %1730 = vmatprep.mubr.bf16.mxu0 %v3049_v7 }
  0xbe   : > { %1635 = vmatmul.mubr.bf16.gmra.mrb[76].mxu1 %v2321_v8  ;;  %1731 = vmatmul.mubr.bf16.gmra.mrb[76].mxu0 %v3052_v9 }
  0xbf   : > { %1738 = vmatprep.mubr.bf16.mxu0 %v3053_v10  ;;  %2822 = vmatprep.mubr.bf16.mxu1 %v3055_v11 }
  0xc6   : > { %1739 = vmatmul.mubr.bf16.gmra.mrb[80].mxu0 %v3056_v12  ;;  %2823 = vmatmul.mubr.bf16.vlgmr.msra.gmra.mrb[80].mxu1 %v3057_v13 }
  0xc7   : > { %1746 = vmatprep.mubr.bf16.mxu0 %v3058_v14  ;;  %2826 = vmatprep.mubr.bf16.mxu1 %v3060_v15 }
  0xce   : > { %1747 = vmatmul.mubr.bf16.gmra.mrb[84].mxu0 %v3061_v16  ;;  %2827 = vmatmul.mubr.bf16.gmra.mrb[84].mxu1 %v3062_v17 }
  0xcf   : > { %1754 = vmatprep.mubr.bf16.mxu0 %v3063_v18  ;;  %2830 = vmatprep.mubr.bf16.mxu1 %v3065_v19 }
  0xd6   : > { %1755 = vmatmul.mubr.bf16.gmra.mrb[88].mxu0 %v3066_v20  ;;  %2831 = vmatmul.mubr.bf16.gmra.mrb[88].mxu1 %v3067_v21 }
  0xd7   : > { %1762 = vmatprep.mubr.bf16.mxu0 %v3068_v22  ;;  %2834 = vmatprep.mubr.bf16.mxu1 %v3070_v23 }
  0xde   : > { %1763 = vmatmul.mubr.bf16.gmra.mrb[92].mxu0 %v3071_v24  ;;  %2835 = vmatmul.mubr.bf16.gmra.mrb[92].mxu1 %v3072_v25 }
  0xdf   : > { %1770 = vmatprep.mubr.bf16.mxu0 %v3073_v26  ;;  %2838 = vmatprep.mubr.bf16.mxu1 %v3075_v27  ;;  %v3430_v26 = vld [vmem:[%s3732_s2] ss:$0 sm:$0xff] }
  0xe6   : > { %1771 = vmatmul.mubr.bf16.gmra.mrb[96].mxu0 %v3076_v28  ;;  %2839 = vmatmul.mubr.bf16.gmra.mrb[96].mxu1 %v3077_v29 }
  0xe7   : > { %1778 = vmatprep.mubr.bf16.mxu0 %v3078_v30  ;;  %2842 = vmatprep.mubr.bf16.mxu1 %v3080_v31 }
  0xee   : > { %1779 = vmatmul.mubr.bf16.gmra.mrb[100].mxu0 %v3081_v32  ;;  %2843 = vmatmul.mubr.bf16.gmra.mrb[100].mxu1 %v3082_v33 }
  0xef   : > { %1786 = vmatprep.mubr.bf16.mxu0 %v3083_v34  ;;  %2846 = vmatprep.mubr.bf16.mxu1 %v3085_v35 }
  0xf6   : > { %1787 = vmatmul.mubr.bf16.gmra.mrb[104].mxu0 %v3086_v37  ;;  %2847 = vmatmul.mubr.bf16.gmra.mrb[104].mxu1 %v3087_v38 }
  0xf7   : > { %1794 = vmatprep.mubr.bf16.mxu0 %v2324_v39  ;;  %2850 = vmatprep.mubr.bf16.mxu1 %v3089_v40 }
  0xf9   : > { %v2462_v41 = vpop.f32.mrb[0].mxu0  ;;  %v2534_v42 = vpop.f32.mrb[0].mxu1 }
  0xfa   : > { %v2463_v43 = vpop.f32.mrb[1].mxu0  ;;  %v2535_v44 = vpop.f32.mrb[1].mxu1 }
  0xfb   : > { %v2464_v47 = vadd.f32 %v2463_v43, %v2462_v41  ;;  %v3413_v48 = vadd.f32 %v2535_v44, %v2534_v42  ;;  %v2465_v49 = vpop.f32.mrb[2].mxu0  ;;  %v2537_v50 = vpop.f32.mrb[2].mxu1 }
  0xfc   : > { %v2466_v51 = vpop.f32.mrb[3].mxu0  ;;  %v2538_v52 = vpop.f32.mrb[3].mxu1 }
  0xfd   : > { %v2467_v53 = vadd.f32 %v2466_v51, %v2465_v49  ;;  %v3415_v54 = vadd.f32 %v2538_v52, %v2537_v50  ;;  %v1357_v31 = vadd.f32 %v2464_v47, %v3430_v26 }
  0xfe   : > { %1795 = vmatmul.mubr.bf16.gmra.mrb[108].mxu0 %v2323_v45  ;;  %2851 = vmatmul.mubr.bf16.gmra.mrb[108].mxu1 %v3091_v46 }
  0xff   : > { %v1360_v38 = vadd.f32 %v2467_v53, %v3430_v26 }
 0x101   : > { %v2468_v55 = vpop.f32.mrb[4].mxu0  ;;  %v2540_v56 = vpop.f32.mrb[4].mxu1 }
 0x102   : > { %v2469_v57 = vpop.f32.mrb[5].mxu0  ;;  %v2541_v58 = vpop.f32.mrb[5].mxu1 }
 0x103   : > { %v2470_v59 = vadd.f32 %v2469_v57, %v2468_v55  ;;  %v3417_v60 = vadd.f32 %v2541_v58, %v2540_v56  ;;  %v2471_v61 = vpop.f32.mrb[6].mxu0  ;;  %v2543_v62 = vpop.f32.mrb[6].mxu1 }
 0x104   : > { %v2472_v63 = vpop.f32.mrb[7].mxu0  ;;  %v2544_v0 = vpop.f32.mrb[7].mxu1 }
 0x105   : > { %v2473_v1 = vadd.f32 %v2472_v63, %v2471_v61  ;;  %v3419_v2 = vadd.f32 %v2544_v0, %v2543_v62  ;;  %v1365_v47 = vadd.f32 %v2470_v59, %v3430_v26 }
 0x107   : > { %v1368_v53 = vadd.f32 %v2473_v1, %v3430_v26 }
 0x109   : > { %v2474_v3 = vpop.f32.mrb[8].mxu0  ;;  %v2546_v4 = vpop.f32.mrb[8].mxu1 }
 0x10a   : > { %v2475_v5 = vpop.f32.mrb[9].mxu0  ;;  %v2547_v6 = vpop.f32.mrb[9].mxu1 }
 0x10b   : > { %v2476_v7 = vadd.f32 %v2475_v5, %v2474_v3  ;;  %v3421_v8 = vadd.f32 %v2547_v6, %v2546_v4  ;;  %v2477_v9 = vpop.f32.mrb[10].mxu0  ;;  %v2549_v10 = vpop.f32.mrb[10].mxu1 }
 0x10c   : > { %v2478_v11 = vpop.f32.mrb[11].mxu0  ;;  %v2550_v12 = vpop.f32.mrb[11].mxu1 }
 0x10d   : > { %v2479_v13 = vadd.f32 %v2478_v11, %v2477_v9  ;;  %v3423_v14 = vadd.f32 %v2550_v12, %v2549_v10  ;;  %v1373_v59 = vadd.f32 %v2476_v7, %v3430_v26 }
 0x10f   : > { %v1376_v1 = vadd.f32 %v2479_v13, %v3430_v26 }
 0x111   : > { %v2480_v15 = vpop.f32.mrb[12].mxu0  ;;  %v2552_v16 = vpop.f32.mrb[12].mxu1 }
 0x112   : > { %v2481_v17 = vpop.f32.mrb[13].mxu0  ;;  %v2553_v18 = vpop.f32.mrb[13].mxu1 }
 0x113   : > { %v2482_v19 = vadd.f32 %v2481_v17, %v2480_v15  ;;  %v3425_v20 = vadd.f32 %v2553_v18, %v2552_v16  ;;  %v2483_v21 = vpop.f32.mrb[14].mxu0  ;;  %v2555_v22 = vpop.f32.mrb[14].mxu1 }
 0x114   : > { %v2484_v23 = vpop.f32.mrb[15].mxu0  ;;  %v2556_v24 = vpop.f32.mrb[15].mxu1 }
 0x115   : > { %v2485_v25 = vadd.f32 %v2484_v23, %v2483_v21  ;;  %v1381_v7 = vadd.f32 %v2482_v19, %v3430_v26 }
 0x117   : > { %v1384_v13 = vadd.f32 %v2485_v25, %v3430_v26 }
 0x119   : > { %v2486_v27 = vpop.f32.mrb[16].mxu0  ;;  %v2574_v28 = vpop.f32.mrb[16].mxu1 }
 0x11a   : > { %v2487_v29 = vpop.f32.mrb[17].mxu0  ;;  %v2575_v30 = vpop.f32.mrb[17].mxu1 }
 0x11b   : > { %v3433_v32 = vadd.f32 %v2487_v29, %v2486_v27  ;;  %v2576_v33 = vadd.f32 %v2575_v30, %v2574_v28  ;;  %v2489_v34 = vpop.f32.mrb[18].mxu0  ;;  %v2577_v35 = vpop.f32.mrb[18].mxu1 }
 0x11c   : > { %v2490_v36 = vpop.f32.mrb[19].mxu0  ;;  %v2578_v37 = vpop.f32.mrb[19].mxu1 }
 0x11d   : > { %v3436_v39 = vadd.f32 %v2576_v33, %v1357_v31  ;;  %v2491_v40 = vadd.f32 %v2490_v36, %v2489_v34  ;;  %v2579_v41 = vadd.f32 %v2578_v37, %v2577_v35  ;;  %v1389_v19 = vadd.f32 %v3433_v32, %v3430_v26 }
 0x11f   : > { %v3438_v42 = vadd.f32 %v2579_v41, %v1360_v38 }
 0x121   : > { %v2492_v43 = vpop.f32.mrb[20].mxu0  ;;  %v2580_v44 = vpop.f32.mrb[20].mxu1 }
 0x122   : > { %v2493_v45 = vpop.f32.mrb[21].mxu0  ;;  %v2581_v46 = vpop.f32.mrb[21].mxu1 }
 0x123   : > { %v3441_v49 = vadd.f32 %v2493_v45, %v2492_v43  ;;  %v2582_v50 = vadd.f32 %v2581_v46, %v2580_v44  ;;  %v2495_v51 = vpop.f32.mrb[22].mxu0  ;;  %v2583_v52 = vpop.f32.mrb[22].mxu1 }
 0x124   : > { %v2496_v55 = vpop.f32.mrb[23].mxu0  ;;  %v2584_v56 = vpop.f32.mrb[23].mxu1 }
 0x125   : > { %v3444_v57 = vadd.f32 %v2582_v50, %v1365_v47  ;;  %v2497_v58 = vadd.f32 %v2496_v55, %v2495_v51  ;;  %v2585_v61 = vadd.f32 %v2584_v56, %v2583_v52  ;;  %v1392_v52 = vadd.f32 %v2491_v40, %v3430_v26 }
 0x126   : > { %v1397_v32 = vadd.f32 %v3441_v49, %v3430_v26 }
 0x127   : > { %v3446_v62 = vadd.f32 %v2585_v61, %v1368_v53 }
 0x129   : > { %v2498_v63 = vpop.f32.mrb[24].mxu0  ;;  %v2586_v0 = vpop.f32.mrb[24].mxu1 }
 0x12a   : > { %v2499_v3 = vpop.f32.mrb[25].mxu0  ;;  %v2587_v4 = vpop.f32.mrb[25].mxu1 }
 0x12b   : > { %v3449_v5 = vadd.f32 %v2499_v3, %v2498_v63  ;;  %v2588_v6 = vadd.f32 %v2587_v4, %v2586_v0  ;;  %v2501_v9 = vpop.f32.mrb[26].mxu0  ;;  %v2589_v10 = vpop.f32.mrb[26].mxu1 }
 0x12c   : > { %v2502_v11 = vpop.f32.mrb[27].mxu0  ;;  %v2590_v12 = vpop.f32.mrb[27].mxu1 }
 0x12d   : > { %v3452_v15 = vadd.f32 %v2588_v6, %v1373_v59  ;;  %v2503_v16 = vadd.f32 %v2502_v11, %v2501_v9  ;;  %v2591_v17 = vadd.f32 %v2590_v12, %v2589_v10  ;;  %v1400_v12 = vadd.f32 %v2497_v58, %v3430_v26 }
 0x12e   : > { %v1405_v49 = vadd.f32 %v3449_v5, %v3430_v26 }
 0x12f   : > { %v3454_v18 = vadd.f32 %v2591_v17, %v1376_v1 }
 0x131   : > { %v2504_v21 = vpop.f32.mrb[28].mxu0  ;;  %v2592_v22 = vpop.f32.mrb[28].mxu1 }
 0x132   : > { %v2505_v23 = vpop.f32.mrb[29].mxu0  ;;  %v2593_v24 = vpop.f32.mrb[29].mxu1 }
 0x133   : > { %v3457_v27 = vadd.f32 %v2505_v23, %v2504_v21  ;;  %v2594_v28 = vadd.f32 %v2593_v24, %v2592_v22  ;;  %v2507_v29 = vpop.f32.mrb[30].mxu0  ;;  %v2595_v30 = vpop.f32.mrb[30].mxu1 }
 0x134   : > { %v2508_v31 = vpop.f32.mrb[31].mxu0  ;;  %v2596_v33 = vpop.f32.mrb[31].mxu1 }
 0x135   : > { %v3460_v34 = vadd.f32 %v2594_v28, %v1381_v7  ;;  %v2509_v35 = vadd.f32 %v2508_v31, %v2507_v29  ;;  %v2597_v36 = vadd.f32 %v2596_v33, %v2595_v30 }
 0x137   : > { %v3462_v37 = vadd.f32 %v2597_v36, %v1384_v13  ;;  %v1408_v36 = vadd.f32 %v2503_v16, %v3430_v26 }
 0x139   : > { %v2510_v38 = vpop.f32.mrb[32].mxu0  ;;  %v2598_v41 = vpop.f32.mrb[32].mxu1 }
 0x13a   : > { %v2511_v43 = vpop.f32.mrb[33].mxu0  ;;  %v2599_v44 = vpop.f32.mrb[33].mxu1 }
 0x13b   : > { %v3466_v45 = vadd.f32 %v2511_v43, %v2510_v38  ;;  %v2600_v46 = vadd.f32 %v2599_v44, %v2598_v41  ;;  %v2513_v47 = vpop.f32.mrb[34].mxu0  ;;  %v2601_v50 = vpop.f32.mrb[34].mxu1 }
 0x13c   : > { %v2514_v51 = vpop.f32.mrb[35].mxu0  ;;  %v2602_v25 = vpop.f32.mrb[35].mxu1 }
 0x13d   : > { %v3469_v55 = vadd.f32 %v2600_v46, %v1389_v19  ;;  %v2515_v56 = vadd.f32 %v2514_v51, %v2513_v47  ;;  %v2603_v53 = vadd.f32 %v2602_v25, %v2601_v50  ;;  %v1413_v50 = vadd.f32 %v3457_v27, %v3430_v26 }
 0x13f   : > { %v3471_v61 = vadd.f32 %v2603_v53, %v1392_v52 }
 0x141   : > { %v2516_v63 = vpop.f32.mrb[36].mxu0  ;;  %v2604_v0 = vpop.f32.mrb[36].mxu1 }
 0x142   : > { %v2517_v3 = vpop.f32.mrb[37].mxu0  ;;  %v2605_v4 = vpop.f32.mrb[37].mxu1 }
 0x143   : > { %v3475_v59 = vadd.f32 %v2517_v3, %v2516_v63  ;;  %v2606_v6 = vadd.f32 %v2605_v4, %v2604_v0  ;;  %v2519_v9 = vpop.f32.mrb[38].mxu0  ;;  %v2607_v10 = vpop.f32.mrb[38].mxu1  ;;  %v1416_v0 = vadd.f32 %v2509_v35, %v3430_v26  ;;  %v1424_v35 = vadd.f32 %v2515_v56, %v3430_v26 }
 0x144   : > { %v2520_v11 = vpop.f32.mrb[39].mxu0  ;;  %v2608_v40 = vpop.f32.mrb[39].mxu1 }
 0x145   : > { %v3478_v1 = vadd.f32 %v2606_v6, %v1397_v32  ;;  %v2521_v17 = vadd.f32 %v2520_v11, %v2519_v9  ;;  %v2609_v21 = vadd.f32 %v2608_v40, %v2607_v10  ;;  %v1421_v40 = vadd.f32 %v3466_v45, %v3430_v26 }
 0x146   : > { %v1429_v56 = vadd.f32 %v3475_v59, %v3430_v26 }
 0x147   : > { %v3480_v22 = vadd.f32 %v2609_v21, %v1400_v12 }
 0x149   : > { %v2522_v23 = vpop.f32.mrb[40].mxu0  ;;  %v2610_v24 = vpop.f32.mrb[40].mxu1 }
 0x14a   : > { %v2523_v7 = vpop.f32.mrb[41].mxu0  ;;  %v2611_v28 = vpop.f32.mrb[41].mxu1 }
 0x14b   : > { %v3484_v29 = vadd.f32 %v2523_v7, %v2522_v23  ;;  %v2612_v30 = vadd.f32 %v2611_v28, %v2610_v24  ;;  %v2525_v31 = vpop.f32.mrb[42].mxu0  ;;  %v2613_v33 = vpop.f32.mrb[42].mxu1 }
 0x14c   : > { %v2526_v13 = vpop.f32.mrb[43].mxu0  ;;  %v2614_v58 = vpop.f32.mrb[43].mxu1 }
 0x14d   : > { %v3487_v38 = vadd.f32 %v2612_v30, %v1405_v49  ;;  %v3489_v41 = vadd.f32 %v2526_v13, %v2525_v31  ;;  %v2615_v43 = vadd.f32 %v2614_v58, %v2613_v33 }
 0x14f   : > { %v3491_v44 = vadd.f32 %v2615_v43, %v1408_v36 }
 0x151   : > { %v2528_v19 = vpop.f32.mrb[44].mxu0  ;;  %v2616_v46 = vpop.f32.mrb[44].mxu1 }
 0x152   : > { %v2529_v47 = vpop.f32.mrb[45].mxu0  ;;  %v2617_v5 = vpop.f32.mrb[45].mxu1 }
 0x153   : > { %v3495_v51 = vadd.f32 %v2529_v47, %v2528_v19  ;;  %v2618_v25 = vadd.f32 %v2617_v5, %v2616_v46  ;;  %v2531_v52 = vpop.f32.mrb[46].mxu0  ;;  %v2619_v53 = vpop.f32.mrb[46].mxu1 }
 0x154   : > { %v2532_v16 = vpop.f32.mrb[47].mxu0  ;;  %v2620_v63 = vpop.f32.mrb[47].mxu1 }
 0x155   : > { %v3498_v3 = vadd.f32 %v2618_v25, %v1413_v50  ;;  %v3500_v4 = vadd.f32 %v2532_v16, %v2531_v52  ;;  %v2621_v32 = vadd.f32 %v2620_v63, %v2619_v53  ;;  %v1432_v25 = vadd.f32 %v2521_v17, %v3430_v26 }
 0x156   : > { %v1437_v17 = vadd.f32 %v3484_v29, %v3430_v26 }
 0x157   : > { %v3502_v6 = vadd.f32 %v2621_v32, %v1416_v0 }
 0x159   : > { %v2622_v9 = vpop.f32.mrb[48].mxu1  ;;  %v2686_v10 = vpop.f32.mrb[48].mxu0 }
 0x15a   : > { %v2623_v11 = vpop.f32.mrb[49].mxu1  ;;  %v2687_v27 = vpop.f32.mrb[49].mxu0 }
 0x15b   : > { %v2624_v12 = vadd.f32 %v2623_v11, %v2622_v9  ;;  %v2688_v21 = vadd.f32 %v2687_v27, %v2686_v10  ;;  %v2625_v23 = vpop.f32.mrb[50].mxu1  ;;  %v2689_v24 = vpop.f32.mrb[50].mxu0 }
 0x15c   : > { %v2626_v7 = vpop.f32.mrb[51].mxu1  ;;  %v2690_v28 = vpop.f32.mrb[51].mxu0 }
 0x15d   : > { %v3507_v49 = vadd.f32 %v2624_v12, %v1421_v40  ;;  %v2627_v30 = vadd.f32 %v2626_v7, %v2625_v23  ;;  %v2691_v31 = vadd.f32 %v2690_v28, %v2689_v24  ;;  %v3510_v33 = vadd.f32 %v2688_v21, %v3436_v39 }
 0x15f   : > { %v3512_v13 = vadd.f32 %v2627_v30, %v1424_v35  ;;  %v3515_v58 = vadd.f32 %v2691_v31, %v3438_v42 }
 0x161   : > { %v2628_v45 = vpop.f32.mrb[52].mxu1  ;;  %v2692_v36 = vpop.f32.mrb[52].mxu0 }
 0x162   : > { %v2629_v43 = vpop.f32.mrb[53].mxu1  ;;  %v2693_v19 = vpop.f32.mrb[53].mxu0 }
 0x163   : > { %v2630_v46 = vadd.f32 %v2629_v43, %v2628_v45  ;;  %v2694_v47 = vadd.f32 %v2693_v19, %v2692_v36  ;;  %v2631_v5 = vpop.f32.mrb[54].mxu1  ;;  %v2695_v50 = vpop.f32.mrb[54].mxu0 }
 0x164   : > { %v2632_v39 = vpop.f32.mrb[55].mxu1  ;;  %v2696_v52 = vpop.f32.mrb[55].mxu0 }
 0x165   : > { %v3520_v53 = vadd.f32 %v2630_v46, %v1429_v56  ;;  %v2633_v16 = vadd.f32 %v2632_v39, %v2631_v5  ;;  %v2697_v42 = vadd.f32 %v2696_v52, %v2695_v50  ;;  %v3523_v63 = vadd.f32 %v2694_v47, %v3444_v57 }
 0x166   : > { %v1440_v57 = vadd.f32 %v3489_v41, %v3430_v26  ;;  %v1445_v41 = vadd.f32 %v3495_v51, %v3430_v26 }
 0x167   : > { %v3525_v0 = vadd.f32 %v2633_v16, %v1432_v25  ;;  %v3528_v32 = vadd.f32 %v2697_v42, %v3446_v62 }
 0x169   : > { %v2634_v59 = vpop.f32.mrb[56].mxu1  ;;  %v2698_v9 = vpop.f32.mrb[56].mxu0 }
 0x16a   : > { %v2635_v10 = vpop.f32.mrb[57].mxu1  ;;  %v2699_v11 = vpop.f32.mrb[57].mxu0 }
 0x16b   : > { %v2636_v27 = vadd.f32 %v2635_v10, %v2634_v59  ;;  %v2700_v40 = vadd.f32 %v2699_v11, %v2698_v9  ;;  %v2637_v12 = vpop.f32.mrb[58].mxu1  ;;  %v2701_v21 = vpop.f32.mrb[58].mxu0 }
 0x16c   : > { %v2638_v23 = vpop.f32.mrb[59].mxu1  ;;  %v2702_v24 = vpop.f32.mrb[59].mxu0 }
 0x16d   : > { %v3534_v35 = vadd.f32 %v2636_v27, %v1437_v17  ;;  %v2639_v62 = vadd.f32 %v2638_v23, %v2637_v12  ;;  %v2703_v7 = vadd.f32 %v2702_v24, %v2701_v21  ;;  %v3537_v28 = vadd.f32 %v2700_v40, %v3452_v15 }
 0x16e   : > { %v1448_v15 = vadd.f32 %v3500_v4, %v3430_v26  ;;  %v1453_v4 = vadd.f32 %v3413_v48, %v3430_v26 }
 0x16f   : > { %v3539_v30 = vadd.f32 %v2639_v62, %v1440_v57  ;;  %v3542_v29 = vadd.f32 %v2703_v7, %v3454_v18 }
 0x171   : > { %v2640_v31 = vpop.f32.mrb[60].mxu1  ;;  %v2704_v45 = vpop.f32.mrb[60].mxu0 }
 0x172   : > { %v2641_v36 = vpop.f32.mrb[61].mxu1  ;;  %v2705_v43 = vpop.f32.mrb[61].mxu0 }
 0x173   : > { %v2642_v19 = vadd.f32 %v2641_v36, %v2640_v31  ;;  %v2706_v56 = vadd.f32 %v2705_v43, %v2704_v45  ;;  %v2643_v46 = vpop.f32.mrb[62].mxu1  ;;  %v2707_v47 = vpop.f32.mrb[62].mxu0 }
 0x174   : > { %v2644_v5 = vpop.f32.mrb[63].mxu1  ;;  %v2708_v50 = vpop.f32.mrb[63].mxu0 }
 0x175   : > { %v3548_v25 = vadd.f32 %v2642_v19, %v1445_v41  ;;  %v2645_v18 = vadd.f32 %v2644_v5, %v2643_v46  ;;  %v2709_v39 = vadd.f32 %v2708_v50, %v2707_v47  ;;  %v3551_v52 = vadd.f32 %v2706_v56, %v3460_v34 }
 0x176   : > { %v1456_v34 = vadd.f32 %v3415_v54, %v3430_v26  ;;  %v1461_v54 = vadd.f32 %v3417_v60, %v3430_v26 }
 0x177   : > { %v3553_v16 = vadd.f32 %v2645_v18, %v1448_v15  ;;  %v3556_v51 = vadd.f32 %v2709_v39, %v3462_v37 }
 0x179   : > { %v2646_v42 = vpop.f32.mrb[64].mxu1  ;;  %v2710_v59 = vpop.f32.mrb[64].mxu0 }
 0x17a   : > { %v2647_v9 = vpop.f32.mrb[65].mxu1  ;;  %v2711_v10 = vpop.f32.mrb[65].mxu0 }
 0x17b   : > { %v2648_v11 = vadd.f32 %v2647_v9, %v2646_v42  ;;  %v2712_v17 = vadd.f32 %v2711_v10, %v2710_v59  ;;  %v2649_v27 = vpop.f32.mrb[66].mxu1  ;;  %v2713_v40 = vpop.f32.mrb[66].mxu0 }
 0x17c   : > { %v2650_v12 = vpop.f32.mrb[67].mxu1  ;;  %v2714_v21 = vpop.f32.mrb[67].mxu0 }
 0x17d   : > { %v3562_v57 = vadd.f32 %v2648_v11, %v1453_v4  ;;  %v2651_v37 = vadd.f32 %v2650_v12, %v2649_v27  ;;  %v2715_v23 = vadd.f32 %v2714_v21, %v2713_v40  ;;  %v3565_v24 = vadd.f32 %v2712_v17, %v3469_v55 }
 0x17e   : > { %v1464_v55 = vadd.f32 %v3419_v2, %v3430_v26  ;;  %v1469_v2 = vadd.f32 %v3421_v8, %v3430_v26 }
 0x17f   : > { %v3567_v62 = vadd.f32 %v2651_v37, %v1456_v34  ;;  %v3570_v48 = vadd.f32 %v2715_v23, %v3471_v61 }
 0x181   : > { %v2652_v7 = vpop.f32.mrb[68].mxu1  ;;  %v2716_v31 = vpop.f32.mrb[68].mxu0 }
 0x182   : > { %v2653_v45 = vpop.f32.mrb[69].mxu1  ;;  %v2717_v36 = vpop.f32.mrb[69].mxu0 }
 0x183   : > { %v2654_v43 = vadd.f32 %v2653_v45, %v2652_v7  ;;  %v2718_v41 = vadd.f32 %v2717_v36, %v2716_v31  ;;  %v2655_v19 = vpop.f32.mrb[70].mxu1  ;;  %v2719_v56 = vpop.f32.mrb[70].mxu0 }
 0x184   : > { %v2656_v46 = vpop.f32.mrb[71].mxu1  ;;  %v2720_v47 = vpop.f32.mrb[71].mxu0 }
 0x185   : > { %v3576_v15 = vadd.f32 %v2654_v43, %v1461_v54  ;;  %v2657_v61 = vadd.f32 %v2656_v46, %v2655_v19  ;;  %v2721_v5 = vadd.f32 %v2720_v47, %v2719_v56  ;;  %v3579_v50 = vadd.f32 %v2718_v41, %v3478_v1 }
 0x186   : > { %v1472_v1 = vadd.f32 %v3423_v14, %v3430_v26  ;;  %v1477_v14 = vadd.f32 %v3425_v20, %v3430_v26 }
 0x187   : > { %v3581_v18 = vadd.f32 %v2657_v61, %v1464_v55  ;;  %v3584_v60 = vadd.f32 %v2721_v5, %v3480_v22 }
 0x189   : > { %v2658_v39 = vpop.f32.mrb[72].mxu1  ;;  %v2722_v42 = vpop.f32.mrb[72].mxu0 }
 0x18a   : > { %v2659_v59 = vpop.f32.mrb[73].mxu1  ;;  %v2723_v9 = vpop.f32.mrb[73].mxu0 }
 0x18b   : > { %v2660_v10 = vadd.f32 %v2659_v59, %v2658_v39  ;;  %v2724_v4 = vadd.f32 %v2723_v9, %v2722_v42  ;;  %v2661_v11 = vpop.f32.mrb[74].mxu1  ;;  %v2725_v17 = vpop.f32.mrb[74].mxu0 }
 0x18c   : > { %v2662_v27 = vpop.f32.mrb[75].mxu1  ;;  %v2726_v40 = vpop.f32.mrb[75].mxu0 }
 0x18d   : > { %v3590_v34 = vadd.f32 %v2660_v10, %v1469_v2  ;;  %v2663_v22 = vadd.f32 %v2662_v27, %v2661_v11  ;;  %v2727_v12 = vadd.f32 %v2726_v40, %v2725_v17  ;;  %v3593_v21 = vadd.f32 %v2724_v4, %v3487_v38 }
 0x18f   : > { %v3595_v37 = vadd.f32 %v2663_v22, %v1472_v1  ;;  %v3598_v8 = vadd.f32 %v2727_v12, %v3491_v44 }
 0x191   : > { %v2664_v23 = vpop.f32.mrb[76].mxu1  ;;  %v2728_v7 = vpop.f32.mrb[76].mxu0 }
 0x192   : > { %v2665_v31 = vpop.f32.mrb[77].mxu1  ;;  %v2729_v45 = vpop.f32.mrb[77].mxu0 }
 0x193   : > { %v2666_v36 = vadd.f32 %v2665_v31, %v2664_v23  ;;  %v2730_v54 = vadd.f32 %v2729_v45, %v2728_v7  ;;  %v2667_v43 = vpop.f32.mrb[78].mxu1  ;;  %v2731_v41 = vpop.f32.mrb[78].mxu0 }
 0x194   : > { %v2668_v19 = vpop.f32.mrb[79].mxu1  ;;  %v2732_v38 = vpop.f32.mrb[79].mxu0 }
 0x195   : > { %v3602_v56 = vadd.f32 %v2666_v36, %v1477_v14  ;;  %v2733_v55 = vadd.f32 %v2732_v38, %v2731_v41  ;;  %v3605_v44 = vadd.f32 %v2730_v54, %v3498_v3 }
 0x197   : > { %v3608_v46 = vadd.f32 %v2733_v55, %v3502_v6 }
 0x199   : > { %v2734_v47 = vpop.f32.mrb[80].mxu0  ;;  %v2824_v61 = vpop.f32.mrb[80].mxu1 }
 0x19a   : > { %v1845_v20 = vadd.f32 %v2824_v61, %v3523_v63  ;;  %v2735_v26 = vpop.f32.mrb[81].mxu0  ;;  %v1836_v5 = vpop.f32.mrb[81].mxu1 }
 0x19b   : > { %v2736_v39 = vadd.f32 %v2735_v26, %v2734_v47  ;;  %v1837_v42 = vadd.f32 %v1836_v5, %v3510_v33  ;;  %v2737_v59 = vpop.f32.mrb[82].mxu0  ;;  %v2825_v9 = vpop.f32.mrb[82].mxu1 }
 0x19c   : > { %v1964_v2 = vmax.f32 %v1845_v20, 0.0  ;;  %v1848_v3 = vadd.f32 %v2825_v9, %v3528_v32  ;;  %v2738_v10 = vpop.f32.mrb[83].mxu0  ;;  %v1839_v4 = vpop.f32.mrb[83].mxu1 }
 0x19d   : > { %v1962_v6 = vmax.f32 %v1837_v42, 0.0  ;;  %v2739_v63 = vadd.f32 %v2738_v10, %v2737_v59  ;;  %v1840_v33 = vadd.f32 %v1839_v4, %v3515_v58  ;;  %v3621_v11 = vadd.f32 %v2736_v39, %v3507_v49 }
 0x19e   : > { %v2417_v17 = vpack.c.bf16 %v1964_v2, %v1964_v2  ;;  %v1965_v32 = vmax.f32 %v1848_v3, 0.0 }
 0x19f   : > { %v2415_v1 = vpack.c.bf16 %v1962_v6, %v1962_v6  ;;  %v1963_v27 = vmax.f32 %v1840_v33, 0.0  ;;  %v3624_v40 = vadd.f32 %v2739_v63, %v3512_v13 }
 0x1a0   : > { %2121 = vst.msk [vmem:[%s3617_s13 + $0x8] sm:$0xf] %vm2118_vm0, %v2417_v17  ;;  %v2418_v22 = vpack.c.bf16 %v1965_v32, %v1965_v32 }
 0x1a1   : > { %2119 = vst.msk [vmem:[%s3617_s13] sm:$0xf] %vm2118_vm0, %v2415_v1  ;;  %v2416_v12 = vpack.c.bf16 %v1963_v27, %v1963_v27  ;;  %v2740_v23 = vpop.f32.mrb[84].mxu0  ;;  %v2828_v7 = vpop.f32.mrb[84].mxu1 }
 0x1a2   : > { %2122 = vst.msk [vmem:[%s3617_s13 + $0xc] sm:$0xf] %vm2118_vm0, %v2418_v22  ;;  %v1861_v49 = vadd.f32 %v2828_v7, %v3551_v52  ;;  %v2741_v58 = vpop.f32.mrb[85].mxu0  ;;  %v1852_v31 = vpop.f32.mrb[85].mxu1 }
 0x1a3   : > { %2120 = vst.msk [vmem:[%s3617_s13 + $0x4] sm:$0xf] %vm2118_vm0, %v2416_v12  ;;  %v2742_v45 = vadd.f32 %v2741_v58, %v2740_v23  ;;  %v1853_v13 = vadd.f32 %v1852_v31, %v3537_v28  ;;  %v2743_v14 = vpop.f32.mrb[86].mxu0  ;;  %v2829_v36 = vpop.f32.mrb[86].mxu1 }
 0x1a4   : > { %v1968_v54 = vmax.f32 %v1861_v49, 0.0  ;;  %v1864_v43 = vadd.f32 %v2829_v36, %v3556_v51  ;;  %v2744_v41 = vpop.f32.mrb[87].mxu0  ;;  %v1855_v19 = vpop.f32.mrb[87].mxu1 }
 0x1a5   : > { %v1966_v38 = vmax.f32 %v1853_v13, 0.0  ;;  %v2745_v55 = vadd.f32 %v2744_v41, %v2743_v14  ;;  %v1856_v52 = vadd.f32 %v1855_v19, %v3542_v29  ;;  %v3639_v47 = vadd.f32 %v2742_v45, %v3520_v53 }
 0x1a6   : > { %v2421_v61 = vpack.c.bf16 %v1968_v54, %v1968_v54  ;;  %v1969_v28 = vmax.f32 %v1864_v43, 0.0 }
 0x1a7   : > { %v2419_v20 = vpack.c.bf16 %v1966_v38, %v1966_v38  ;;  %v1967_v26 = vmax.f32 %v1856_v52, 0.0  ;;  %v3642_v5 = vadd.f32 %v2745_v55, %v3525_v0 }
 0x1a8   : > { %2125 = vst.msk [vmem:[%s3617_s13 + $0x18] sm:$0xf] %vm2118_vm0, %v2421_v61  ;;  %v2422_v51 = vpack.c.bf16 %v1969_v28, %v1969_v28 }
 0x1a9   : > { %2123 = vst.msk [vmem:[%s3617_s13 + $0x10] sm:$0xf] %vm2118_vm0, %v2419_v20  ;;  %v2420_v39 = vpack.c.bf16 %v1967_v26, %v1967_v26  ;;  %v2746_v42 = vpop.f32.mrb[88].mxu0  ;;  %v2832_v59 = vpop.f32.mrb[88].mxu1 }
 0x1aa   : > { %2126 = vst.msk [vmem:[%s3617_s13 + $0x1c] sm:$0xf] %vm2118_vm0, %v2422_v51  ;;  %v1877_v53 = vadd.f32 %v2832_v59, %v3579_v50  ;;  %v2747_v29 = vpop.f32.mrb[89].mxu0  ;;  %v1868_v9 = vpop.f32.mrb[89].mxu1 }
 0x1ab   : > { %2124 = vst.msk [vmem:[%s3617_s13 + $0x14] sm:$0xf] %vm2118_vm0, %v2420_v39  ;;  %v2748_v2 = vadd.f32 %v2747_v29, %v2746_v42  ;;  %v1869_v0 = vadd.f32 %v1868_v9, %v3565_v24  ;;  %v2749_v3 = vpop.f32.mrb[90].mxu0  ;;  %v2833_v10 = vpop.f32.mrb[90].mxu1 }
 0x1ac   : > { %v1972_v4 = vmax.f32 %v1877_v53, 0.0  ;;  %v1880_v6 = vadd.f32 %v2833_v10, %v3584_v60  ;;  %v2750_v63 = vpop.f32.mrb[91].mxu0  ;;  %v1871_v33 = vpop.f32.mrb[91].mxu1 }
 0x1ad   : > { %v1970_v17 = vmax.f32 %v1869_v0, 0.0  ;;  %v2751_v32 = vadd.f32 %v2750_v63, %v2749_v3  ;;  %v1872_v50 = vadd.f32 %v1871_v33, %v3570_v48  ;;  %v3657_v1 = vadd.f32 %v2748_v2, %v3534_v35 }
 0x1ae   : > { %v2425_v27 = vpack.c.bf16 %v1972_v4, %v1972_v4  ;;  %v1973_v24 = vmax.f32 %v1880_v6, 0.0 }
 0x1af   : > { %v2423_v22 = vpack.c.bf16 %v1970_v17, %v1970_v17  ;;  %v1971_v12 = vmax.f32 %v1872_v50, 0.0  ;;  %v3660_v23 = vadd.f32 %v2751_v32, %v3539_v30 }
 0x1b0   : > { %2129 = vst.msk [vmem:[%s3617_s13 + $0x28] sm:$0xf] %vm2118_vm0, %v2425_v27  ;;  %v2426_v60 = vpack.c.bf16 %v1973_v24, %v1973_v24 }
 0x1b1   : > { %2127 = vst.msk [vmem:[%s3617_s13 + $0x20] sm:$0xf] %vm2118_vm0, %v2423_v22  ;;  %v2424_v7 = vpack.c.bf16 %v1971_v12, %v1971_v12  ;;  %v2752_v49 = vpop.f32.mrb[92].mxu0  ;;  %v2836_v58 = vpop.f32.mrb[92].mxu1 }
 0x1b2   : > { %2130 = vst.msk [vmem:[%s3617_s13 + $0x2c] sm:$0xf] %vm2118_vm0, %v2426_v60  ;;  %v1893_v35 = vadd.f32 %v2836_v58, %v3605_v44  ;;  %v2753_v48 = vpop.f32.mrb[93].mxu0  ;;  %v1884_v31 = vpop.f32.mrb[93].mxu1 }
 0x1b3   : > { %2128 = vst.msk [vmem:[%s3617_s13 + $0x24] sm:$0xf] %vm2118_vm0, %v2424_v7  ;;  %v2754_v45 = vadd.f32 %v2753_v48, %v2752_v49  ;;  %v1885_v30 = vadd.f32 %v1884_v31, %v3593_v21  ;;  %v2755_v13 = vpop.f32.mrb[94].mxu0  ;;  %v2837_v14 = vpop.f32.mrb[94].mxu1 }
 0x1b4   : > { %v1976_v36 = vmax.f32 %v1893_v35, 0.0  ;;  %v1896_v54 = vadd.f32 %v2837_v14, %v3608_v46  ;;  %v2756_v43 = vpop.f32.mrb[95].mxu0  ;;  %v1887_v41 = vpop.f32.mrb[95].mxu1 }
 0x1b5   : > { %v1974_v19 = vmax.f32 %v1885_v30, 0.0  ;;  %v2757_v38 = vadd.f32 %v2756_v43, %v2755_v13  ;;  %v1888_v44 = vadd.f32 %v1887_v41, %v3598_v8  ;;  %v1765_v55 = vadd.f32 %v2754_v45, %v3548_v25 }
 0x1b6   : > { %v2429_v52 = vpack.c.bf16 %v1976_v36, %v1976_v36  ;;  %v1977_v61 = vmax.f32 %v1896_v54, 0.0 }
 0x1b7   : > { %v2427_v21 = vpack.c.bf16 %v1974_v19, %v1974_v19  ;;  %v1975_v28 = vmax.f32 %v1888_v44, 0.0  ;;  %v1768_v20 = vadd.f32 %v2757_v38, %v3553_v16 }
 0x1b8   : > { %2133 = vst.msk [vmem:[%s3617_s13 + $0x38] sm:$0xf] %vm2118_vm0, %v2429_v52  ;;  %v2430_v26 = vpack.c.bf16 %v1977_v61, %v1977_v61 }
 0x1b9   : > { %2131 = vst.msk [vmem:[%s3617_s13 + $0x30] sm:$0xf] %vm2118_vm0, %v2427_v21  ;;  %v2428_v46 = vpack.c.bf16 %v1975_v28, %v1975_v28  ;;  %v2758_v51 = vpop.f32.mrb[96].mxu0  ;;  %v2840_v39 = vpop.f32.mrb[96].mxu1 }
 0x1ba   : > { %2134 = vst.msk [vmem:[%s3617_s13 + $0x3c] sm:$0xf] %vm2118_vm0, %v2430_v26  ;;  %v1909_v8 = vadd.f32 %v2840_v39, %v3639_v47  ;;  %v2759_v25 = vpop.f32.mrb[97].mxu0  ;;  %v1900_v42 = vpop.f32.mrb[97].mxu1 }
 0x1bb   : > { %2132 = vst.msk [vmem:[%s3617_s13 + $0x34] sm:$0xf] %vm2118_vm0, %v2428_v46  ;;  %v2760_v59 = vadd.f32 %v2759_v25, %v2758_v51  ;;  %v1901_v53 = vadd.f32 %v1900_v42, %v3621_v11  ;;  %v2761_v16 = vpop.f32.mrb[98].mxu0  ;;  %v2841_v29 = vpop.f32.mrb[98].mxu1 }
 0x1bc   : > { %v1980_v9 = vmax.f32 %v1909_v8, 0.0  ;;  %v1912_v2 = vadd.f32 %v2841_v29, %v3642_v5  ;;  %v2762_v0 = vpop.f32.mrb[99].mxu0  ;;  %v1903_v3 = vpop.f32.mrb[99].mxu1 }
 0x1bd   : > { %v1978_v10 = vmax.f32 %v1901_v53, 0.0  ;;  %v2763_v4 = vadd.f32 %v2762_v0, %v2761_v16  ;;  %v1904_v47 = vadd.f32 %v1903_v3, %v3624_v40  ;;  %v1773_v6 = vadd.f32 %v2760_v59, %v3562_v57 }
 0x1be   : > { %v2433_v63 = vpack.c.bf16 %v1980_v9, %v1980_v9  ;;  %v1981_v33 = vmax.f32 %v1912_v2, 0.0 }
 0x1bf   : > { %v2431_v11 = vpack.c.bf16 %v1978_v10, %v1978_v10  ;;  %v1979_v17 = vmax.f32 %v1904_v47, 0.0  ;;  %v1776_v32 = vadd.f32 %v2763_v4, %v3567_v62 }
 0x1c0   : > { %2137 = vst.msk [vmem:[%s3617_s13 + $0x48] sm:$0xf] %vm2118_vm0, %v2433_v63  ;;  %v2434_v50 = vpack.c.bf16 %v1981_v33, %v1981_v33 }
 0x1c1   : > { %2135 = vst.msk [vmem:[%s3617_s13 + $0x40] sm:$0xf] %vm2118_vm0, %v2431_v11  ;;  %v2432_v5 = vpack.c.bf16 %v1979_v17, %v1979_v17  ;;  %v2764_v27 = vpop.f32.mrb[100].mxu0  ;;  %v2844_v24 = vpop.f32.mrb[100].mxu1 }
 0x1c2   : > { %2138 = vst.msk [vmem:[%s3617_s13 + $0x4c] sm:$0xf] %vm2118_vm0, %v2434_v50  ;;  %v1925_v40 = vadd.f32 %v2844_v24, %v1765_v55  ;;  %v2765_v22 = vpop.f32.mrb[101].mxu0  ;;  %v1916_v57 = vpop.f32.mrb[101].mxu1 }
 0x1c3   : > { %2136 = vst.msk [vmem:[%s3617_s13 + $0x44] sm:$0xf] %vm2118_vm0, %v2432_v5  ;;  %v2766_v12 = vadd.f32 %v2765_v22, %v2764_v27  ;;  %v1917_v60 = vadd.f32 %v1916_v57, %v3657_v1  ;;  %v2767_v62 = vpop.f32.mrb[102].mxu0  ;;  %v2845_v7 = vpop.f32.mrb[102].mxu1 }
 0x1c4   : > { %v1984_v49 = vmax.f32 %v1925_v40, 0.0  ;;  %v1928_v58 = vadd.f32 %v2845_v7, %v1768_v20  ;;  %v2768_v35 = vpop.f32.mrb[103].mxu0  ;;  %v1919_v48 = vpop.f32.mrb[103].mxu1 }
 0x1c5   : > { %v1982_v31 = vmax.f32 %v1917_v60, 0.0  ;;  %v2769_v45 = vadd.f32 %v2768_v35, %v2767_v62  ;;  %v1920_v30 = vadd.f32 %v1919_v48, %v3660_v23  ;;  %v1781_v13 = vadd.f32 %v2766_v12, %v3576_v15 }
 0x1c6   : > { %v2437_v14 = vpack.c.bf16 %v1984_v49, %v1984_v49  ;;  %v1985_v36 = vmax.f32 %v1928_v58, 0.0 }
 0x1c7   : > { %v2435_v54 = vpack.c.bf16 %v1982_v31, %v1982_v31  ;;  %v1983_v1 = vmax.f32 %v1920_v30, 0.0  ;;  %v1784_v43 = vadd.f32 %v2769_v45, %v3581_v18 }
 0x1c8   : > { %2141 = vst.msk [vmem:[%s3617_s13 + $0x58] sm:$0xf] %vm2118_vm0, %v2437_v14  ;;  %v2438_v41 = vpack.c.bf16 %v1985_v36, %v1985_v36 }
 0x1c9   : > { %2139 = vst.msk [vmem:[%s3617_s13 + $0x50] sm:$0xf] %vm2118_vm0, %v2435_v54  ;;  %v2436_v19 = vpack.c.bf16 %v1983_v1, %v1983_v1  ;;  %v2770_v38 = vpop.f32.mrb[104].mxu0  ;;  %v2848_v44 = vpop.f32.mrb[104].mxu1 }
 0x1ca   : > { %2142 = vst.msk [vmem:[%s3617_s13 + $0x5c] sm:$0xf] %vm2118_vm0, %v2438_v41  ;;  %v1941_v23 = vadd.f32 %v2848_v44, %v1781_v13  ;;  %v2771_v55 = vpop.f32.mrb[105].mxu0  ;;  %v1932_v15 = vpop.f32.mrb[105].mxu1 }
 0x1cb   : > { %2140 = vst.msk [vmem:[%s3617_s13 + $0x54] sm:$0xf] %vm2118_vm0, %v2436_v19  ;;  %v2772_v52 = vadd.f32 %v2771_v55, %v2770_v38  ;;  %v1933_v61 = vadd.f32 %v1932_v15, %v1773_v6  ;;  %v2773_v21 = vpop.f32.mrb[106].mxu0  ;;  %v2849_v18 = vpop.f32.mrb[106].mxu1 }
 0x1cc   : > { %v1988_v28 = vmax.f32 %v1941_v23, 0.0  ;;  %v1944_v20 = vadd.f32 %v2849_v18, %v1784_v43  ;;  %v2774_v26 = vpop.f32.mrb[107].mxu0  ;;  %v1935_v46 = vpop.f32.mrb[107].mxu1 }
 0x1cd   : > { %v1986_v51 = vmax.f32 %v1933_v61, 0.0  ;;  %v2775_v39 = vadd.f32 %v2774_v26, %v2773_v21  ;;  %v1936_v8 = vadd.f32 %v1935_v46, %v1776_v32  ;;  %v1789_v25 = vadd.f32 %v2772_v52, %v3590_v34 }
 0x1ce   : > { %v2441_v42 = vpack.c.bf16 %v1988_v28, %v1988_v28  ;;  %v1989_v59 = vmax.f32 %v1944_v20, 0.0 }
 0x1cf   : > { %v2439_v53 = vpack.c.bf16 %v1986_v51, %v1986_v51  ;;  %v1987_v16 = vmax.f32 %v1936_v8, 0.0  ;;  %v1792_v29 = vadd.f32 %v2775_v39, %v3595_v37 }
 0x1d0   : > { %2145 = vst.msk [vmem:[%s3617_s13 + $0x68] sm:$0xf] %vm2118_vm0, %v2441_v42  ;;  %v2442_v9 = vpack.c.bf16 %v1989_v59, %v1989_v59 }
 0x1d1   : > { %2143 = vst.msk [vmem:[%s3617_s13 + $0x60] sm:$0xf] %vm2118_vm0, %v2439_v53  ;;  %v2440_v2 = vpack.c.bf16 %v1987_v16, %v1987_v16  ;;  %v2776_v0 = vpop.f32.mrb[108].mxu0  ;;  %v2852_v3 = vpop.f32.mrb[108].mxu1 }
 0x1d2   : > { %2146 = vst.msk [vmem:[%s3617_s13 + $0x6c] sm:$0xf] %vm2118_vm0, %v2442_v9  ;;  %v2777_v10 = vpop.f32.mrb[109].mxu0  ;;  %v1948_v4 = vpop.f32.mrb[109].mxu1 }
 0x1d3   : > { %2144 = vst.msk [vmem:[%s3617_s13 + $0x64] sm:$0xf] %vm2118_vm0, %v2440_v2  ;;  %v2778_v34 = vadd.f32 %v2777_v10, %v2776_v0  ;;  %v1949_v47 = vadd.f32 %v1948_v4, %v1789_v25  ;;  %v2779_v37 = vpop.f32.mrb[110].mxu0  ;;  %v2853_v6 = vpop.f32.mrb[110].mxu1 }
 0x1d4   : > { %v2780_v63 = vpop.f32.mrb[111].mxu0  ;;  %v1951_v33 = vpop.f32.mrb[111].mxu1 }
 0x1d5   : > { %v1797_v11 = vadd.f32 %v2778_v34, %v3602_v56  ;;  %v1990_v17 = vmax.f32 %v1949_v47, 0.0  ;;  %v1952_v32 = vadd.f32 %v1951_v33, %v1792_v29 }
 0x1d7   : > { %v1957_v50 = vadd.f32 %v2852_v3, %v1797_v11  ;;  %v2443_v5 = vpack.c.bf16 %v1990_v17, %v1990_v17  ;;  %v1991_v27 = vmax.f32 %v1952_v32, 0.0 }
 0x1d9   : > { %v1992_v24 = vmax.f32 %v1957_v50, 0.0  ;;  %2147 = vst.msk [vmem:[%s3617_s13 + $0x70] sm:$0xf] %vm2118_vm0, %v2443_v5  ;;  %v2444_v40 = vpack.c.bf16 %v1991_v27, %v1991_v27 }
 0x1db   : > { %v2445_v22 = vpack.c.bf16 %v1992_v24, %v1992_v24  ;;  %2148 = vst.msk [vmem:[%s3617_s13 + $0x74] sm:$0xf] %vm2118_vm0, %v2444_v40 }
 0x1dd   : > { %2149 = vst.msk [vmem:[%s3617_s13 + $0x78] sm:$0xf] %vm2118_vm0, %v2445_v22 }
 0x1de PF: > { %s13_s12 = sadd.s32 1, %s3098_s12  }
 0x1df   : > { %p10_p4 = scmp.ge.s32.totalorder %s13_s12, 8  }
 0x1e1   :  { %12 = sbr.rel (!%p10_p4) target bundleno = 1 (0x1), region = 62 }

// kernel: vae_forward.13
= control target key start
LH: loop header
LB: loop body
LE: loop exit
PB: predicated region body
PF: predicated region fallthrough
CT: control target
= control target key end

     0   :  { %s1010_s14 = smov 0   ;;  %s1256_s0 = inlined_call_operand.vmem [shape: bf16[1568,384], index: 0, kind: input, shape index: {}]   ;;  %s1257_s1 = inlined_call_operand.vmem [shape: f32[1,384], index: 1, kind: input, shape index: {}]   ;;  %s1258_s2 = inlined_call_operand.<no memory space> [shape: f32[1,1], index: 2, kind: input, shape index: {}]   ;;  %s1259_s3 = inlined_call_operand.vmem [shape: f32[1568,1], index: 3, kind: output, shape index: {}]  }
   0x1   :  { %v8_v0 = vstv %s1258_s2 }
   0x2   :  { %9 = vst [vmem:[#allocation2] sm:$0x1] %v8_v0 }
   0x3 LB: > { %s820_s15 = sadd.s32 4294967295, %s985_s14   ;;  %p824_p0 = scmp.ge.s32.totalorder %s985_s14, 1  ;;  %s985_s14 = sphi %s1010_s14, %s15_s14  }
   0x4   : > { %p141_p1 = scmp.lt.s32.totalorder %s985_s14, 8 }
   0x6   : > { %p142_p2 = pnand %p824_p0, %p141_p1 }
   0x7   : > { %s166_s16 = smul.u32 (!%p142_p2), 28, %s820_s15  ;;  %v321_v1 = vlaneseq (!%p142_p2)  ;;  %v319_v6 = vld [vmem:[%s1257_s1] sm:$0x7] (!%p142_p2)  ;;  %vm735_vm0 = vcmask (!%p142_p2), 7168  }
   0x8   : > { %145 = sbr.rel (%p142_p2) target bundleno = 255 (0xff), region = 32 }
   0x9   : > { %p167_p3 = scmp.lt.s32.totalorder (!%p142_p2), %s166_s16, 195  ;;  %v322_v2 = vshrl.u32 (!%p142_p2), %v321_v1, 7 }
   0xb   : > { %v323_v3 = vsub.s32 (!%p142_p2), 0, %v322_v2  ;;  %v327_v4 = vsub.s32 (!%p142_p2), 1, %v322_v2  ;;  %v331_v5 = vsub.s32 (!%p142_p2), 2, %v322_v2 }
   0xd   : > { %v1029_v7 = vrot.slane (!%p142_p2), %v319_v6, %v323_v3  ;;  %v1031_v8 = vrot.slane (!%p142_p2), %v319_v6, %v327_v4  ;;  %v1033_v9 = vrot.slane (!%p142_p2), %v319_v6, %v331_v5 }
   0xf   : > { %s1261_s16 = smov (!%p167_p3, %s166_s16), 195 }
  0x10   : > { %s858_s18 = smul.u32 12, %s1261_s16  ;;  %s826_s22 = sshll.u32 %s1261_s16, 3 }
  0x11   : > { %s1180_s25 = scalar_lea.vmem %s1259_s3, %s826_s22 }
  0x12   : > { %s1027_s21 = scalar_lea.vmem %s1256_s0, %s858_s18 }
  0x13   : > { %v183_v10 = vld [vmem:[%s1027_s21 + $0x18] sm:$0xff]  ;;  %v184_v11 = vld [vmem:[%s1027_s21 + $0x8] ss:$24 sps:$4 sm:$0xff]   ;;  %v186_v18 = vld [vmem:[%s1027_s21 + $0x14] ss:$24 sps:$4 sm:$0xff]  }
  0x14   : > { %v179_v12 = vld [vmem:[%s1027_s21] sm:$0xff]  ;;  %v241_v13 = vunpack.c.l.bf16 %v183_v10  ;;  %v242_v14 = vunpack.c.h.bf16 %v183_v10  ;;  %v243_v15 = vunpack.c.h.bf16 %v184_v11  ;;  %v237_v20 = vunpack.c.l.bf16 %v184_v11  ;;  %v181_v23 = vld [vmem:[%s1027_s21 + $0xc] sm:$0xff]  ;;  %v193_v51 = vld [vmem:[%s1027_s21 + $0x54] sm:$0xff] }
  0x15   : > { %v235_v16 = vunpack.c.l.bf16 %v179_v12  ;;  %v185_v17 = vld [vmem:[%s1027_s21 + $0x24] sm:$0xff]  ;;  %v236_v19 = vunpack.c.h.bf16 %v179_v12  ;;  %v189_v28 = vld [vmem:[%s1027_s21 + $0x3c] sm:$0xff]  ;;  %v246_v31 = vunpack.c.h.bf16 %v186_v18  ;;  %v238_v35 = vunpack.c.l.bf16 %v181_v23  ;;  %v187_v42 = vld [vmem:[%s1027_s21 + $0x30] sm:$0xff] }
  0x16   : > { %v244_v21 = vunpack.c.l.bf16 %v185_v17  ;;  %v245_v22 = vunpack.c.h.bf16 %v185_v17  ;;  %v342_v24 = vmul.f32 %v1029_v7, %v241_v13  ;;  %v343_v25 = vmul.f32 %v1031_v8, %v242_v14  ;;  %v190_v37 = vld [vmem:[%s1027_s21 + $0x38] ss:$12 sps:$4 sm:$0xff]   ;;  %v194_v56 = vld [vmem:[%s1027_s21 + $0x50] ss:$12 sps:$4 sm:$0xff]   ;;  %v191_v61 = vld [vmem:[%s1027_s21 + $0x48] sm:$0xff] }
  0x17   : > { %v344_v26 = vmul.f32 %v1033_v9, %v243_v15  ;;  %v336_v27 = vmul.f32 %v1029_v7, %v235_v16  ;;  %v337_v29 = vmul.f32 %v1031_v8, %v236_v19  ;;  %v338_v30 = vmul.f32 %v1033_v9, %v237_v20  ;;  %v197_v6 = vld [vmem:[%s1027_s21 + $0x6c] sm:$0xff]  ;;  %v198_v14 = vld [vmem:[%s1027_s21 + $0x68] ss:$12 sps:$4 sm:$0xff]   ;;  %v195_v19 = vld [vmem:[%s1027_s21 + $0x60] sm:$0xff] }
  0x18   : > { %v345_v32 = vmul.f32 %v1029_v7, %v244_v21  ;;  %v428_v33 = vadd.f32 %v343_v25, %v342_v24  ;;  %v346_v34 = vmul.f32 %v1031_v8, %v245_v22  ;;  %v239_v36 = vunpack.c.h.bf16 %v181_v23 }
  0x19   : > { %v420_v38 = vadd.f32 %v337_v29, %v336_v27  ;;  %v347_v39 = vmul.f32 %v1033_v9, %v246_v31  ;;  %v240_v40 = vunpack.c.l.bf16 %v186_v18  ;;  %v250_v41 = vunpack.c.l.bf16 %v189_v28 }
  0x1a   : > { %v429_v43 = vadd.f32 %v428_v33, %v344_v26  ;;  %v432_v44 = vadd.f32 %v346_v34, %v345_v32  ;;  %v339_v45 = vmul.f32 %v1029_v7, %v238_v35  ;;  %v340_v46 = vmul.f32 %v1031_v8, %v239_v36  ;;  %v202_v33 = vld [vmem:[%s1027_s21 + $0x80] ss:$12 sps:$4 sm:$0xff]  }
  0x1b   : > { %v421_v47 = vadd.f32 %v420_v38, %v338_v30  ;;  %v341_v48 = vmul.f32 %v1033_v9, %v240_v40  ;;  %v251_v49 = vunpack.c.h.bf16 %v189_v28  ;;  %v252_v50 = vunpack.c.h.bf16 %v190_v37  ;;  %v201_v28 = vld [vmem:[%s1027_s21 + $0x84] sm:$0xff]  ;;  %v199_v38 = vld [vmem:[%s1027_s21 + $0x78] sm:$0xff] }
  0x1c   : > { %430 = vadd.xlane.f32.xlu1 %v429_v43  ;;  %v433_v52 = vadd.f32 %v432_v44, %v347_v39  ;;  %v424_v53 = vadd.f32 %v340_v46, %v339_v45  ;;  %v351_v54 = vmul.f32 %v1029_v7, %v250_v41  ;;  %v247_v55 = vunpack.c.l.bf16 %v187_v42 }
  0x1d   : > { %422 = vadd.xlane.f32.xlu0 %v421_v47  ;;  %v352_v57 = vmul.f32 %v1031_v8, %v251_v49  ;;  %v353_v58 = vmul.f32 %v1033_v9, %v252_v50  ;;  %v248_v59 = vunpack.c.h.bf16 %v187_v42  ;;  %v249_v60 = vunpack.c.l.bf16 %v190_v37  ;;  %v205_v47 = vld [vmem:[%s1027_s21 + $0x9c] sm:$0xff] }
  0x1e   : > { %v425_v62 = vadd.f32 %v424_v53, %v341_v48  ;;  %v348_v63 = vmul.f32 %v1029_v7, %v247_v55  ;;  %v256_v0 = vunpack.c.l.bf16 %v193_v51  ;;  %v257_v1 = vunpack.c.h.bf16 %v193_v51 }
  0x1f   : > { %v440_v2 = vadd.f32 %v352_v57, %v351_v54  ;;  %v349_v3 = vmul.f32 %v1031_v8, %v248_v59  ;;  %v350_v4 = vmul.f32 %v1033_v9, %v249_v60  ;;  %v258_v5 = vunpack.c.h.bf16 %v194_v56  ;;  %v203_v57 = vld [vmem:[%s1027_s21 + $0x90] sm:$0xff] }
  0x20   : > { %434 = vadd.xlane.f32.xlu1 %v433_v52  ;;  %v357_v10 = vmul.f32 %v1029_v7, %v256_v0  ;;  %v358_v11 = vmul.f32 %v1031_v8, %v257_v1  ;;  %v253_v12 = vunpack.c.l.bf16 %v191_v61  ;;  %v254_v13 = vunpack.c.h.bf16 %v191_v61  ;;  %v206_v52 = vld [vmem:[%s1027_s21 + $0x98] ss:$12 sps:$4 sm:$0xff]  }
  0x21   : > { %426 = vadd.xlane.f32.xlu0 %v425_v62  ;;  %v441_v15 = vadd.f32 %v440_v2, %v353_v58  ;;  %v436_v16 = vadd.f32 %v349_v3, %v348_v63  ;;  %v359_v17 = vmul.f32 %v1033_v9, %v258_v5  ;;  %v255_v18 = vunpack.c.l.bf16 %v194_v56  ;;  %v209_v2 = vld [vmem:[%s1027_s21 + $0xb4] sm:$0xff] }
  0x22   : > { %v448_v20 = vadd.f32 %v358_v11, %v357_v10  ;;  %v354_v21 = vmul.f32 %v1029_v7, %v253_v12  ;;  %v355_v22 = vmul.f32 %v1031_v8, %v254_v13  ;;  %v262_v23 = vunpack.c.l.bf16 %v197_v6  ;;  %v210_v10 = vld [vmem:[%s1027_s21 + $0xb0] ss:$12 sps:$4 sm:$0xff]  }
  0x23   : > { %v437_v24 = vadd.f32 %v436_v16, %v350_v4  ;;  %v356_v25 = vmul.f32 %v1033_v9, %v255_v18  ;;  %v263_v26 = vunpack.c.h.bf16 %v197_v6  ;;  %v264_v27 = vunpack.c.h.bf16 %v198_v14 }
  0x24   : > { %442 = vadd.xlane.f32.xlu1 %v441_v15  ;;  %v449_v29 = vadd.f32 %v448_v20, %v359_v17  ;;  %v444_v30 = vadd.f32 %v355_v22, %v354_v21  ;;  %v363_v31 = vmul.f32 %v1029_v7, %v262_v23  ;;  %v259_v32 = vunpack.c.l.bf16 %v195_v19  ;;  %v207_v15 = vld [vmem:[%s1027_s21 + $0xa8] sm:$0xff] }
  0x25   : > { %438 = vadd.xlane.f32.xlu0 %v437_v24  ;;  %v364_v34 = vmul.f32 %v1031_v8, %v263_v26  ;;  %v365_v35 = vmul.f32 %v1033_v9, %v264_v27  ;;  %v260_v36 = vunpack.c.h.bf16 %v195_v19  ;;  %v261_v37 = vunpack.c.l.bf16 %v198_v14  ;;  %v213_v24 = vld [vmem:[%s1027_s21 + $0xcc] sm:$0xff] }
  0x26   : > { %v445_v39 = vadd.f32 %v444_v30, %v356_v25  ;;  %v360_v40 = vmul.f32 %v1029_v7, %v259_v32  ;;  %v268_v41 = vunpack.c.l.bf16 %v201_v28  ;;  %v269_v42 = vunpack.c.h.bf16 %v201_v28 }
  0x27   : > { %v456_v43 = vadd.f32 %v364_v34, %v363_v31  ;;  %v361_v44 = vmul.f32 %v1031_v8, %v260_v36  ;;  %v362_v45 = vmul.f32 %v1033_v9, %v261_v37  ;;  %v270_v46 = vunpack.c.h.bf16 %v202_v33  ;;  %v211_v34 = vld [vmem:[%s1027_s21 + $0xc0] sm:$0xff] }
  0x28   : > { %450 = vadd.xlane.f32.xlu1 %v449_v29  ;;  %v369_v48 = vmul.f32 %v1029_v7, %v268_v41  ;;  %v370_v49 = vmul.f32 %v1031_v8, %v269_v42  ;;  %v265_v50 = vunpack.c.l.bf16 %v199_v38  ;;  %v266_v51 = vunpack.c.h.bf16 %v199_v38  ;;  %v214_v29 = vld [vmem:[%s1027_s21 + $0xc8] ss:$12 sps:$4 sm:$0xff]  }
  0x29   : > { %446 = vadd.xlane.f32.xlu0 %v445_v39  ;;  %v457_v53 = vadd.f32 %v456_v43, %v365_v35  ;;  %v452_v54 = vadd.f32 %v361_v44, %v360_v40  ;;  %v371_v55 = vmul.f32 %v1033_v9, %v270_v46  ;;  %v267_v56 = vunpack.c.l.bf16 %v202_v33  ;;  %v217_v43 = vld [vmem:[%s1027_s21 + $0xe4] sm:$0xff] }
  0x2a   : > { %v464_v58 = vadd.f32 %v370_v49, %v369_v48  ;;  %v366_v59 = vmul.f32 %v1029_v7, %v265_v50  ;;  %v367_v60 = vmul.f32 %v1031_v8, %v266_v51  ;;  %v274_v61 = vunpack.c.l.bf16 %v205_v47  ;;  %v218_v48 = vld [vmem:[%s1027_s21 + $0xe0] ss:$12 sps:$4 sm:$0xff]  }
  0x2b   : > { %v453_v62 = vadd.f32 %v452_v54, %v362_v45  ;;  %v368_v63 = vmul.f32 %v1033_v9, %v267_v56  ;;  %v275_v0 = vunpack.c.h.bf16 %v205_v47  ;;  %v276_v1 = vunpack.c.h.bf16 %v206_v52 }
  0x2c   : > { %458 = vadd.xlane.f32.xlu1 %v457_v53  ;;  %v465_v3 = vadd.f32 %v464_v58, %v371_v55  ;;  %v460_v4 = vadd.f32 %v367_v60, %v366_v59  ;;  %v375_v5 = vmul.f32 %v1029_v7, %v274_v61  ;;  %v271_v6 = vunpack.c.l.bf16 %v203_v57  ;;  %v215_v53 = vld [vmem:[%s1027_s21 + $0xd8] sm:$0xff] }
  0x2d   : > { %454 = vadd.xlane.f32.xlu0 %v453_v62  ;;  %v376_v11 = vmul.f32 %v1031_v8, %v275_v0  ;;  %v377_v12 = vmul.f32 %v1033_v9, %v276_v1  ;;  %v272_v13 = vunpack.c.h.bf16 %v203_v57  ;;  %v273_v14 = vunpack.c.l.bf16 %v206_v52  ;;  %v221_v62 = vld [vmem:[%s1027_s21 + $0xfc] sm:$0xff] }
  0x2e   : > { %v461_v16 = vadd.f32 %v460_v4, %v368_v63  ;;  %v372_v17 = vmul.f32 %v1029_v7, %v271_v6  ;;  %v280_v18 = vunpack.c.l.bf16 %v209_v2  ;;  %v281_v19 = vunpack.c.h.bf16 %v209_v2 }
  0x2f   : > { %v472_v20 = vadd.f32 %v376_v11, %v375_v5  ;;  %v373_v21 = vmul.f32 %v1031_v8, %v272_v13  ;;  %v374_v22 = vmul.f32 %v1033_v9, %v273_v14  ;;  %v282_v23 = vunpack.c.h.bf16 %v210_v10  ;;  %v219_v11 = vld [vmem:[%s1027_s21 + $0xf0] sm:$0xff] }
  0x30   : > { %466 = vadd.xlane.f32.xlu1 %v465_v3  ;;  %v381_v25 = vmul.f32 %v1029_v7, %v280_v18  ;;  %v382_v26 = vmul.f32 %v1031_v8, %v281_v19  ;;  %v277_v27 = vunpack.c.l.bf16 %v207_v15  ;;  %v278_v28 = vunpack.c.h.bf16 %v207_v15  ;;  %v222_v3 = vld [vmem:[%s1027_s21 + $0xf8] ss:$12 sps:$4 sm:$0xff]  }
  0x31   : > { %462 = vadd.xlane.f32.xlu0 %v461_v16  ;;  %v473_v30 = vadd.f32 %v472_v20, %v377_v12  ;;  %v468_v31 = vadd.f32 %v373_v21, %v372_v17  ;;  %v383_v32 = vmul.f32 %v1033_v9, %v282_v23  ;;  %v279_v33 = vunpack.c.l.bf16 %v210_v10  ;;  %v225_v20 = vld [vmem:[%s1027_s21 + $0x114] sm:$0xff] }
  0x32   : > { %v480_v35 = vadd.f32 %v382_v26, %v381_v25  ;;  %v378_v36 = vmul.f32 %v1029_v7, %v277_v27  ;;  %v379_v37 = vmul.f32 %v1031_v8, %v278_v28  ;;  %v286_v38 = vunpack.c.l.bf16 %v213_v24  ;;  %v226_v25 = vld [vmem:[%s1027_s21 + $0x110] ss:$12 sps:$4 sm:$0xff]  }
  0x33   : > { %v469_v39 = vadd.f32 %v468_v31, %v374_v22  ;;  %v380_v40 = vmul.f32 %v1033_v9, %v279_v33  ;;  %v287_v41 = vunpack.c.h.bf16 %v213_v24  ;;  %v288_v42 = vunpack.c.h.bf16 %v214_v29 }
  0x34   : > { %474 = vadd.xlane.f32.xlu1 %v473_v30  ;;  %v481_v44 = vadd.f32 %v480_v35, %v383_v32  ;;  %v476_v45 = vadd.f32 %v379_v37, %v378_v36  ;;  %v387_v46 = vmul.f32 %v1029_v7, %v286_v38  ;;  %v283_v47 = vunpack.c.l.bf16 %v211_v34  ;;  %v223_v30 = vld [vmem:[%s1027_s21 + $0x108] sm:$0xff] }
  0x35   : > { %470 = vadd.xlane.f32.xlu0 %v469_v39  ;;  %v388_v49 = vmul.f32 %v1031_v8, %v287_v41  ;;  %v389_v50 = vmul.f32 %v1033_v9, %v288_v42  ;;  %v284_v51 = vunpack.c.h.bf16 %v211_v34  ;;  %v285_v52 = vunpack.c.l.bf16 %v214_v29  ;;  %v229_v39 = vld [vmem:[%s1027_s21 + $0x12c] sm:$0xff] }
  0x36   : > { %v477_v54 = vadd.f32 %v476_v45, %v380_v40  ;;  %v384_v55 = vmul.f32 %v1029_v7, %v283_v47  ;;  %v292_v56 = vunpack.c.l.bf16 %v217_v43  ;;  %v293_v57 = vunpack.c.h.bf16 %v217_v43 }
  0x37   : > { %v488_v58 = vadd.f32 %v388_v49, %v387_v46  ;;  %v385_v59 = vmul.f32 %v1031_v8, %v284_v51  ;;  %v386_v60 = vmul.f32 %v1033_v9, %v285_v52  ;;  %v294_v61 = vunpack.c.h.bf16 %v218_v48  ;;  %v227_v49 = vld [vmem:[%s1027_s21 + $0x120] sm:$0xff] }
  0x38   : > { %482 = vadd.xlane.f32.xlu1 %v481_v44  ;;  %v393_v63 = vmul.f32 %v1029_v7, %v292_v56  ;;  %v394_v0 = vmul.f32 %v1031_v8, %v293_v57  ;;  %v289_v1 = vunpack.c.l.bf16 %v215_v53  ;;  %v290_v2 = vunpack.c.h.bf16 %v215_v53  ;;  %v230_v44 = vld [vmem:[%s1027_s21 + $0x128] ss:$12 sps:$4 sm:$0xff]  }
  0x39   : > { %478 = vadd.xlane.f32.xlu0 %v477_v54  ;;  %v489_v4 = vadd.f32 %v488_v58, %v389_v50  ;;  %v484_v5 = vadd.f32 %v385_v59, %v384_v55  ;;  %v395_v6 = vmul.f32 %v1033_v9, %v294_v61  ;;  %v291_v10 = vunpack.c.l.bf16 %v218_v48  ;;  %v233_v58 = vld [vmem:[%s1027_s21 + $0x144] sm:$0xff] }
  0x3a   : > { %v496_v12 = vadd.f32 %v394_v0, %v393_v63  ;;  %v390_v13 = vmul.f32 %v1029_v7, %v289_v1  ;;  %v391_v14 = vmul.f32 %v1031_v8, %v290_v2  ;;  %v298_v15 = vunpack.c.l.bf16 %v221_v62  ;;  %v234_v63 = vld [vmem:[%s1027_s21 + $0x140] ss:$12 sps:$4 sm:$0xff]  }
  0x3b   : > { %v485_v16 = vadd.f32 %v484_v5, %v386_v60  ;;  %v392_v17 = vmul.f32 %v1033_v9, %v291_v10  ;;  %v299_v18 = vunpack.c.h.bf16 %v221_v62  ;;  %v300_v19 = vunpack.c.h.bf16 %v222_v3 }
  0x3c   : > { %490 = vadd.xlane.f32.xlu1 %v489_v4  ;;  %v497_v21 = vadd.f32 %v496_v12, %v395_v6  ;;  %v492_v22 = vadd.f32 %v391_v14, %v390_v13  ;;  %v399_v23 = vmul.f32 %v1029_v7, %v298_v15  ;;  %v295_v24 = vunpack.c.l.bf16 %v219_v11  ;;  %v231_v4 = vld [vmem:[%s1027_s21 + $0x138] sm:$0xff] }
  0x3d   : > { %486 = vadd.xlane.f32.xlu0 %v485_v16  ;;  %v400_v26 = vmul.f32 %v1031_v8, %v299_v18  ;;  %v401_v27 = vmul.f32 %v1033_v9, %v300_v19  ;;  %v296_v28 = vunpack.c.h.bf16 %v219_v11  ;;  %v297_v29 = vunpack.c.l.bf16 %v222_v3 }
  0x3e   : > { %v493_v31 = vadd.f32 %v492_v22, %v392_v17  ;;  %v396_v32 = vmul.f32 %v1029_v7, %v295_v24  ;;  %v304_v33 = vunpack.c.l.bf16 %v225_v20  ;;  %v305_v34 = vunpack.c.h.bf16 %v225_v20 }
  0x3f   : > { %v504_v35 = vadd.f32 %v400_v26, %v399_v23  ;;  %v397_v36 = vmul.f32 %v1031_v8, %v296_v28  ;;  %v398_v37 = vmul.f32 %v1033_v9, %v297_v29  ;;  %v306_v38 = vunpack.c.h.bf16 %v226_v25 }
  0x40   : > { %498 = vadd.xlane.f32.xlu1 %v497_v21  ;;  %v405_v40 = vmul.f32 %v1029_v7, %v304_v33  ;;  %v406_v41 = vmul.f32 %v1031_v8, %v305_v34  ;;  %v301_v42 = vunpack.c.l.bf16 %v223_v30  ;;  %v302_v43 = vunpack.c.h.bf16 %v223_v30 }
  0x41   : > { %494 = vadd.xlane.f32.xlu0 %v493_v31  ;;  %v505_v45 = vadd.f32 %v504_v35, %v401_v27  ;;  %v500_v46 = vadd.f32 %v397_v36, %v396_v32  ;;  %v407_v47 = vmul.f32 %v1033_v9, %v306_v38  ;;  %v303_v48 = vunpack.c.l.bf16 %v226_v25  ;;  %v1161_v32 = vld [vmem:[#allocation2] ss:$0 sm:$0xff] }
  0x42   : > { %v512_v50 = vadd.f32 %v406_v41, %v405_v40  ;;  %v402_v51 = vmul.f32 %v1029_v7, %v301_v42  ;;  %v403_v52 = vmul.f32 %v1031_v8, %v302_v43  ;;  %v310_v53 = vunpack.c.l.bf16 %v229_v39 }
  0x43   : > { %v501_v54 = vadd.f32 %v500_v46, %v398_v37  ;;  %v404_v55 = vmul.f32 %v1033_v9, %v303_v48  ;;  %v311_v56 = vunpack.c.h.bf16 %v229_v39  ;;  %v312_v57 = vunpack.c.h.bf16 %v230_v44 }
  0x44   : > { %506 = vadd.xlane.f32.xlu1 %v505_v45  ;;  %v513_v59 = vadd.f32 %v512_v50, %v407_v47  ;;  %v508_v60 = vadd.f32 %v403_v52, %v402_v51  ;;  %v411_v61 = vmul.f32 %v1029_v7, %v310_v53  ;;  %v307_v62 = vunpack.c.l.bf16 %v227_v49 }
  0x45   : > { %502 = vadd.xlane.f32.xlu0 %v501_v54  ;;  %v412_v0 = vmul.f32 %v1031_v8, %v311_v56  ;;  %v413_v1 = vmul.f32 %v1033_v9, %v312_v57  ;;  %v308_v2 = vunpack.c.h.bf16 %v227_v49  ;;  %v309_v3 = vunpack.c.l.bf16 %v230_v44 }
  0x46   : > { %v509_v5 = vadd.f32 %v508_v60, %v404_v55  ;;  %v408_v6 = vmul.f32 %v1029_v7, %v307_v62  ;;  %v316_v10 = vunpack.c.l.bf16 %v233_v58  ;;  %v317_v11 = vunpack.c.h.bf16 %v233_v58 }
  0x47   : > { %v520_v12 = vadd.f32 %v412_v0, %v411_v61  ;;  %v409_v13 = vmul.f32 %v1031_v8, %v308_v2  ;;  %v410_v14 = vmul.f32 %v1033_v9, %v309_v3  ;;  %v318_v15 = vunpack.c.h.bf16 %v234_v63 }
  0x48   : > { %514 = vadd.xlane.f32.xlu1 %v513_v59  ;;  %v417_v16 = vmul.f32 %v1029_v7, %v316_v10  ;;  %v418_v17 = vmul.f32 %v1031_v8, %v317_v11  ;;  %v313_v18 = vunpack.c.l.bf16 %v231_v4  ;;  %v314_v19 = vunpack.c.h.bf16 %v231_v4 }
  0x49   : > { %510 = vadd.xlane.f32.xlu0 %v509_v5  ;;  %v521_v20 = vadd.f32 %v520_v12, %v413_v1  ;;  %v516_v21 = vadd.f32 %v409_v13, %v408_v6  ;;  %v419_v22 = vmul.f32 %v1033_v9, %v318_v15  ;;  %v315_v23 = vunpack.c.l.bf16 %v234_v63 }
  0x4a   : > { %v528_v24 = vadd.f32 %v418_v17, %v417_v16  ;;  %v414_v25 = vmul.f32 %v1029_v7, %v313_v18  ;;  %v415_v26 = vmul.f32 %v1031_v8, %v314_v19 }
  0x4b   : > { %v517_v27 = vadd.f32 %v516_v21, %v410_v14  ;;  %v416_v28 = vmul.f32 %v1033_v9, %v315_v23 }
  0x4c   : > { %522 = vadd.xlane.f32.xlu1 %v521_v20  ;;  %v529_v29 = vadd.f32 %v528_v24, %v419_v22  ;;  %v524_v30 = vadd.f32 %v415_v26, %v414_v25 }
  0x4d   : > { %518 = vadd.xlane.f32.xlu0 %v517_v27 }
  0x4e   : > { %v525_v31 = vadd.f32 %v524_v30, %v416_v28 }
  0x50   : > { %530 = vadd.xlane.f32.xlu1 %v529_v29 }
  0x51   : > { %526 = vadd.xlane.f32.xlu0 %v525_v31 }
  0xa9   : > { %v431_v33 = vpop.xlane.xlu1 %430 }
  0xaa   : > { %v541_v34 = vadd.f32 %v1161_v32, %v431_v33  ;;  %v423_v35 = vpop.xlane.xlu0 %422 }
  0xab   : > { %v539_v7 = vadd.f32 %v1161_v32, %v423_v35 }
  0xac   : > { %v830_v36 = vmul.f32 -1.442695, %v541_v34 }
  0xad   : > { %v828_v8 = vmul.f32 -1.442695, %v539_v7  ;;  %v435_v37 = vpop.xlane.xlu1 %434 }
  0xae   : > { %867 = vpow2.f32 %v830_v36  ;;  %v542_v9 = vadd.f32 %v1161_v32, %v435_v37  ;;  %v427_v38 = vpop.xlane.xlu0 %426 }
  0xaf   : > { %869 = vpow2.f32 %v828_v8  ;;  %v540_v39 = vadd.f32 %v1161_v32, %v427_v38 }
  0xb0   : > { %v831_v40 = vmul.f32 -1.442695, %v542_v9 }
  0xb1   : > { %v829_v41 = vmul.f32 -1.442695, %v540_v39  ;;  %v443_v42 = vpop.xlane.xlu1 %442 }
  0xb2   : > { %871 = vpow2.f32 %v831_v40  ;;  %v544_v43 = vadd.f32 %v1161_v32, %v443_v42  ;;  %v439_v44 = vpop.xlane.xlu0 %438 }
  0xb3   : > { %873 = vpow2.f32 %v829_v41  ;;  %v543_v45 = vadd.f32 %v1161_v32, %v439_v44 }
  0xb4   : > { %v833_v46 = vmul.f32 -1.442695, %v544_v43 }
  0xb5   : > { %v832_v47 = vmul.f32 -1.442695, %v543_v45  ;;  %v451_v48 = vpop.xlane.xlu1 %450 }
  0xb6   : > { %875 = vpow2.f32 %v833_v46  ;;  %v546_v49 = vadd.f32 %v1161_v32, %v451_v48  ;;  %v447_v50 = vpop.xlane.xlu0 %446 }
  0xb7   : > { %877 = vpow2.f32 %v832_v47  ;;  %v545_v51 = vadd.f32 %v1161_v32, %v447_v50 }
  0xb8   : > { %v868_v52 = vpop.eup %867  ;;  %v835_v53 = vmul.f32 -1.442695, %v546_v49 }
  0xb9   : > { %v870_v54 = vpop.eup %869  ;;  %v653_v55 = vadd.f32 1.0, %v868_v52  ;;  %v834_v56 = vmul.f32 -1.442695, %v545_v51  ;;  %v459_v57 = vpop.xlane.xlu1 %458 }
  0xba   : > { %v651_v58 = vadd.f32 1.0, %v870_v54  ;;  %879 = vpow2.f32 %v835_v53  ;;  %v548_v59 = vadd.f32 %v1161_v32, %v459_v57  ;;  %v455_v60 = vpop.xlane.xlu0 %454 }
  0xbb   : > { %881 = vrcp.f32 %v653_v55  ;;  %v547_v61 = vadd.f32 %v1161_v32, %v455_v60 }
  0xbc   : > { %v872_v62 = vpop.eup %871  ;;  %883 = vrcp.f32 %v651_v58  ;;  %v837_v63 = vmul.f32 -1.442695, %v548_v59 }
  0xbd   : > { %v874_v0 = vpop.eup %873  ;;  %v654_v1 = vadd.f32 1.0, %v872_v62  ;;  %885 = vpow2.f32 %v834_v56  ;;  %v836_v2 = vmul.f32 -1.442695, %v547_v61  ;;  %v467_v3 = vpop.xlane.xlu1 %466 }
  0xbe   : > { %v652_v4 = vadd.f32 1.0, %v874_v0  ;;  %887 = vpow2.f32 %v837_v63  ;;  %v550_v5 = vadd.f32 %v1161_v32, %v467_v3  ;;  %v463_v6 = vpop.xlane.xlu0 %462 }
  0xbf   : > { %889 = vrcp.f32 %v654_v1  ;;  %v549_v10 = vadd.f32 %v1161_v32, %v463_v6 }
  0xc0   : > { %v876_v11 = vpop.eup %875  ;;  %891 = vrcp.f32 %v652_v4  ;;  %v839_v12 = vmul.f32 -1.442695, %v550_v5 }
  0xc1   : > { %v878_v13 = vpop.eup %877  ;;  %v656_v14 = vadd.f32 1.0, %v876_v11  ;;  %893 = vpow2.f32 %v836_v2  ;;  %v838_v15 = vmul.f32 -1.442695, %v549_v10  ;;  %v475_v16 = vpop.xlane.xlu1 %474 }
  0xc2   : > { %v655_v17 = vadd.f32 1.0, %v878_v13  ;;  %895 = vpow2.f32 %v839_v12  ;;  %v552_v18 = vadd.f32 %v1161_v32, %v475_v16  ;;  %v471_v19 = vpop.xlane.xlu0 %470 }
  0xc3   : > { %897 = vrcp.f32 %v656_v14  ;;  %v551_v20 = vadd.f32 %v1161_v32, %v471_v19 }
  0xc4   : > { %v880_v21 = vpop.eup %879  ;;  %899 = vrcp.f32 %v655_v17  ;;  %v841_v22 = vmul.f32 -1.442695, %v552_v18 }
  0xc5   : > { %v882_v23 = vpop.eup %881  ;;  %v658_v24 = vadd.f32 1.0, %v880_v21  ;;  %901 = vpow2.f32 %v838_v15  ;;  %v840_v25 = vmul.f32 -1.442695, %v551_v20  ;;  %v483_v26 = vpop.xlane.xlu1 %482 }
  0xc6   : > { %v884_v27 = vpop.eup %883  ;;  %738 = vst.msk [vmem:[%s1180_s25 + $0x10] sm:$0xff] %vm735_vm0, %v882_v23  ;;  %903 = vpow2.f32 %v841_v22  ;;  %v554_v28 = vadd.f32 %v1161_v32, %v483_v26  ;;  %v479_v29 = vpop.xlane.xlu0 %478 }
  0xc7   : > { %v886_v30 = vpop.eup %885  ;;  %736 = vst.msk [vmem:[%s1180_s25] sm:$0xff] %vm735_vm0, %v884_v27  ;;  %905 = vrcp.f32 %v658_v24  ;;  %v553_v31 = vadd.f32 %v1161_v32, %v479_v29 }
  0xc8   : > { %v888_v33 = vpop.eup %887  ;;  %v657_v34 = vadd.f32 1.0, %v886_v30  ;;  %907 = vpow2.f32 %v840_v25  ;;  %v843_v35 = vmul.f32 -1.442695, %v554_v28 }
  0xc9   : > { %v890_v7 = vpop.eup %889  ;;  %v660_v36 = vadd.f32 1.0, %v888_v33  ;;  %v842_v8 = vmul.f32 -1.442695, %v553_v31  ;;  %v491_v37 = vpop.xlane.xlu1 %490 }
  0xca   : > { %v892_v9 = vpop.eup %891  ;;  %739 = vst.msk [vmem:[%s1180_s25 + $0x18] sm:$0xff] %vm735_vm0, %v890_v7  ;;  %909 = vrcp.f32 %v657_v34  ;;  %v556_v38 = vadd.f32 %v1161_v32, %v491_v37  ;;  %v487_v39 = vpop.xlane.xlu0 %486 }
  0xcb   : > { %v894_v40 = vpop.eup %893  ;;  %737 = vst.msk [vmem:[%s1180_s25 + $0x8] sm:$0xff] %vm735_vm0, %v892_v9  ;;  %911 = vrcp.f32 %v660_v36  ;;  %v555_v41 = vadd.f32 %v1161_v32, %v487_v39 }
  0xcc   : > { %v896_v42 = vpop.eup %895  ;;  %v659_v43 = vadd.f32 1.0, %v894_v40  ;;  %913 = vpow2.f32 %v843_v35  ;;  %v845_v44 = vmul.f32 -1.442695, %v556_v38 }
  0xcd   : > { %v898_v45 = vpop.eup %897  ;;  %v662_v46 = vadd.f32 1.0, %v896_v42  ;;  %915 = vpow2.f32 %v842_v8  ;;  %v844_v47 = vmul.f32 -1.442695, %v555_v41  ;;  %v499_v48 = vpop.xlane.xlu1 %498 }
  0xce   : > { %v900_v49 = vpop.eup %899  ;;  %741 = vst.msk [vmem:[%s1180_s25 + $0x28] sm:$0xff] %vm735_vm0, %v898_v45  ;;  %917 = vrcp.f32 %v659_v43  ;;  %v558_v50 = vadd.f32 %v1161_v32, %v499_v48  ;;  %v495_v51 = vpop.xlane.xlu0 %494 }
  0xcf   : > { %v902_v52 = vpop.eup %901  ;;  %740 = vst.msk [vmem:[%s1180_s25 + $0x20] sm:$0xff] %vm735_vm0, %v900_v49  ;;  %919 = vrcp.f32 %v662_v46  ;;  %v557_v53 = vadd.f32 %v1161_v32, %v495_v51 }
  0xd0   : > { %v904_v54 = vpop.eup %903  ;;  %v661_v55 = vadd.f32 1.0, %v902_v52  ;;  %921 = vpow2.f32 %v845_v44  ;;  %v847_v56 = vmul.f32 -1.442695, %v558_v50 }
  0xd1   : > { %v906_v57 = vpop.eup %905  ;;  %v664_v58 = vadd.f32 1.0, %v904_v54  ;;  %923 = vpow2.f32 %v844_v47  ;;  %v507_v59 = vpop.xlane.xlu1 %506  ;;  %v846_v61 = vmul.f32 -1.442695, %v557_v53 }
  0xd2   : > { %v908_v60 = vpop.eup %907  ;;  %743 = vst.msk [vmem:[%s1180_s25 + $0x38] sm:$0xff] %vm735_vm0, %v906_v57  ;;  %925 = vrcp.f32 %v661_v55  ;;  %v560_v62 = vadd.f32 %v1161_v32, %v507_v59  ;;  %v503_v63 = vpop.xlane.xlu0 %502 }
  0xd3   : > { %927 = vrcp.f32 %v664_v58  ;;  %v663_v0 = vadd.f32 1.0, %v908_v60  ;;  %v559_v1 = vadd.f32 %v1161_v32, %v503_v63 }
  0xd4   : > { %v910_v2 = vpop.eup %909  ;;  %929 = vpow2.f32 %v847_v56  ;;  %v849_v3 = vmul.f32 -1.442695, %v560_v62 }
  0xd5   : > { %v912_v4 = vpop.eup %911  ;;  %742 = vst.msk [vmem:[%s1180_s25 + $0x30] sm:$0xff] %vm735_vm0, %v910_v2  ;;  %931 = vrcp.f32 %v663_v0  ;;  %v848_v5 = vmul.f32 -1.442695, %v559_v1  ;;  %v515_v6 = vpop.xlane.xlu1 %514 }
  0xd6   : > { %v914_v10 = vpop.eup %913  ;;  %745 = vst.msk [vmem:[%s1180_s25 + $0x48] sm:$0xff] %vm735_vm0, %v912_v4  ;;  %933 = vpow2.f32 %v846_v61  ;;  %v562_v11 = vadd.f32 %v1161_v32, %v515_v6  ;;  %v511_v12 = vpop.xlane.xlu0 %510 }
  0xd7   : > { %v916_v13 = vpop.eup %915  ;;  %v666_v14 = vadd.f32 1.0, %v914_v10  ;;  %935 = vpow2.f32 %v849_v3  ;;  %v561_v15 = vadd.f32 %v1161_v32, %v511_v12 }
  0xd8   : > { %v918_v16 = vpop.eup %917  ;;  %v665_v17 = vadd.f32 1.0, %v916_v13  ;;  %937 = vpow2.f32 %v848_v5  ;;  %v851_v18 = vmul.f32 -1.442695, %v562_v11 }
  0xd9   : > { %v920_v19 = vpop.eup %919  ;;  %744 = vst.msk [vmem:[%s1180_s25 + $0x40] sm:$0xff] %vm735_vm0, %v918_v16  ;;  %939 = vrcp.f32 %v666_v14  ;;  %v850_v20 = vmul.f32 -1.442695, %v561_v15  ;;  %v523_v21 = vpop.xlane.xlu1 %522 }
  0xda   : > { %v922_v22 = vpop.eup %921  ;;  %747 = vst.msk [vmem:[%s1180_s25 + $0x58] sm:$0xff] %vm735_vm0, %v920_v19  ;;  %941 = vrcp.f32 %v665_v17  ;;  %v564_v23 = vadd.f32 %v1161_v32, %v523_v21  ;;  %v519_v24 = vpop.xlane.xlu0 %518 }
  0xdb   : > { %v924_v25 = vpop.eup %923  ;;  %v668_v26 = vadd.f32 1.0, %v922_v22  ;;  %943 = vpow2.f32 %v851_v18  ;;  %v563_v27 = vadd.f32 %v1161_v32, %v519_v24 }
  0xdc   : > { %v926_v28 = vpop.eup %925  ;;  %v667_v29 = vadd.f32 1.0, %v924_v25  ;;  %945 = vpow2.f32 %v850_v20  ;;  %v853_v30 = vmul.f32 -1.442695, %v564_v23 }
  0xdd   : > { %v928_v31 = vpop.eup %927  ;;  %746 = vst.msk [vmem:[%s1180_s25 + $0x50] sm:$0xff] %vm735_vm0, %v926_v28  ;;  %947 = vrcp.f32 %v668_v26  ;;  %v852_v33 = vmul.f32 -1.442695, %v563_v27  ;;  %v531_v34 = vpop.xlane.xlu1 %530 }
  0xde   : > { %v930_v35 = vpop.eup %929  ;;  %749 = vst.msk [vmem:[%s1180_s25 + $0x68] sm:$0xff] %vm735_vm0, %v928_v31  ;;  %949 = vrcp.f32 %v667_v29  ;;  %v566_v7 = vadd.f32 %v1161_v32, %v531_v34  ;;  %v527_v36 = vpop.xlane.xlu0 %526 }
  0xdf   : > { %v932_v8 = vpop.eup %931  ;;  %v670_v37 = vadd.f32 1.0, %v930_v35  ;;  %951 = vpow2.f32 %v853_v30  ;;  %v565_v9 = vadd.f32 %v1161_v32, %v527_v36 }
  0xe0   : > { %v934_v38 = vpop.eup %933  ;;  %748 = vst.msk [vmem:[%s1180_s25 + $0x60] sm:$0xff] %vm735_vm0, %v932_v8  ;;  %953 = vpow2.f32 %v852_v33  ;;  %v855_v39 = vmul.f32 -1.442695, %v566_v7 }
  0xe1   : > { %v936_v40 = vpop.eup %935  ;;  %955 = vrcp.f32 %v670_v37  ;;  %v669_v41 = vadd.f32 1.0, %v934_v38  ;;  %v854_v44 = vmul.f32 -1.442695, %v565_v9 }
  0xe2   : > { %v938_v42 = vpop.eup %937  ;;  %v672_v43 = vadd.f32 1.0, %v936_v40  ;;  %957 = vpow2.f32 %v855_v39 }
  0xe3   : > { %v940_v45 = vpop.eup %939  ;;  %959 = vrcp.f32 %v669_v41  ;;  %v671_v46 = vadd.f32 1.0, %v938_v42 }
  0xe4   : > { %v942_v32 = vpop.eup %941  ;;  %751 = vst.msk [vmem:[%s1180_s25 + $0x78] sm:$0xff] %vm735_vm0, %v940_v45  ;;  %961 = vrcp.f32 %v672_v43 }
  0xe5   : > { %v944_v47 = vpop.eup %943  ;;  %750 = vst.msk [vmem:[%s1180_s25 + $0x70] sm:$0xff] %vm735_vm0, %v942_v32  ;;  %963 = vrcp.f32 %v671_v46 }
  0xe6   : > { %v946_v48 = vpop.eup %945  ;;  %v674_v49 = vadd.f32 1.0, %v944_v47  ;;  %965 = vpow2.f32 %v854_v44 }
  0xe7   : > { %v948_v50 = vpop.eup %947  ;;  %v673_v51 = vadd.f32 1.0, %v946_v48 }
  0xe8   : > { %v950_v52 = vpop.eup %949  ;;  %753 = vst.msk [vmem:[%s1180_s25 + $0x88] sm:$0xff] %vm735_vm0, %v948_v50  ;;  %967 = vrcp.f32 %v674_v49 }
  0xe9   : > { %v952_v53 = vpop.eup %951  ;;  %752 = vst.msk [vmem:[%s1180_s25 + $0x80] sm:$0xff] %vm735_vm0, %v950_v52  ;;  %969 = vrcp.f32 %v673_v51 }
  0xea   : > { %v954_v54 = vpop.eup %953  ;;  %v676_v55 = vadd.f32 1.0, %v952_v53 }
  0xeb   : > { %v956_v56 = vpop.eup %955  ;;  %v675_v57 = vadd.f32 1.0, %v954_v54 }
  0xec   : > { %v958_v58 = vpop.eup %957  ;;  %755 = vst.msk [vmem:[%s1180_s25 + $0x98] sm:$0xff] %vm735_vm0, %v956_v56  ;;  %971 = vrcp.f32 %v676_v55 }
  0xed   : > { %v960_v59 = vpop.eup %959  ;;  %973 = vrcp.f32 %v675_v57  ;;  %v678_v60 = vadd.f32 1.0, %v958_v58 }
  0xee   : > { %v962_v61 = vpop.eup %961  ;;  %754 = vst.msk [vmem:[%s1180_s25 + $0x90] sm:$0xff] %vm735_vm0, %v960_v59 }
  0xef   : > { %v964_v62 = vpop.eup %963  ;;  %757 = vst.msk [vmem:[%s1180_s25 + $0xa8] sm:$0xff] %vm735_vm0, %v962_v61  ;;  %975 = vrcp.f32 %v678_v60 }
  0xf0   : > { %v966_v63 = vpop.eup %965  ;;  %756 = vst.msk [vmem:[%s1180_s25 + $0xa0] sm:$0xff] %vm735_vm0, %v964_v62 }
  0xf1   : > { %v677_v0 = vadd.f32 1.0, %v966_v63 }
  0xf2   : > { %v968_v1 = vpop.eup %967 }
  0xf3   : > { %v970_v2 = vpop.eup %969  ;;  %759 = vst.msk [vmem:[%s1180_s25 + $0xb8] sm:$0xff] %vm735_vm0, %v968_v1  ;;  %977 = vrcp.f32 %v677_v0 }
  0xf4   : > { %758 = vst.msk [vmem:[%s1180_s25 + $0xb0] sm:$0xff] %vm735_vm0, %v970_v2 }
  0xf6   : > { %v972_v3 = vpop.eup %971 }
  0xf7   : > { %v974_v4 = vpop.eup %973  ;;  %761 = vst.msk [vmem:[%s1180_s25 + $0xc8] sm:$0xff] %vm735_vm0, %v972_v3 }
  0xf8   : > { %760 = vst.msk [vmem:[%s1180_s25 + $0xc0] sm:$0xff] %vm735_vm0, %v974_v4 }
  0xf9   : > { %v976_v5 = vpop.eup %975 }
  0xfa   : > { %763 = vst.msk [vmem:[%s1180_s25 + $0xd8] sm:$0xff] %vm735_vm0, %v976_v5 }
  0xfd   : > { %v978_v6 = vpop.eup %977 }
  0xfe   : > { %762 = vst.msk [vmem:[%s1180_s25 + $0xd0] sm:$0xff] %vm735_vm0, %v978_v6 }
  0xff PF: > { %s15_s14 = sadd.s32 1, %s985_s14  }
 0x100   : > { %p12_p4 = scmp.ge.s32.totalorder %s15_s14, 9  }
 0x102   :  { %14 = sbr.rel (!%p12_p4) target bundleno = 3 (0x3), region = 62 }

</bundles_post_ra>
